<compile_context>
chip_gen: v6e
topology: v6e:2x2x1
jax: 0.10.0
libtpu: 0.0.40
codegen_flags: <defaults>
</compile_context>

<pallas_src>
import jax
import jax.numpy as jnp
from jax.experimental import pallas as pl
from jax.experimental.pallas import tpu as pltpu

H, W, C_IN = 16, 16, 3
KH, KW = 3, 3
C_OUT = 8
H_OUT, W_OUT = H - KH + 1, W - KW + 1      # 14, 14 (VALID conv)
M_REAL = H_OUT * W_OUT                     # 196 conv output positions
K_REAL = KH * KW * C_IN                    # 27 conv taps
K_PAD = 32                                 # contraction dim padded to sublane mult.
B_TILE = 128                               # pairs per grid step (lane-dense)
LANES_HALF = M_REAL * B_TILE               # 25088 lanes per image role


def fr_metric_kernel(pt_ref, pr_ref, w_ref, b_ref, out_ref):
    """One grid step: FR quality scores for B_TILE image pairs.

    pt_ref / pr_ref : (K_PAD, LANES_HALF) im2col patches for target / reference;
                      lane j = m * B_TILE + pair.
    w_ref           : (C_OUT, K_PAD) conv weights (transposed, 1/65535 folded,
                      zero-padded along K).
    b_ref           : (C_OUT, 1) conv bias.
    out_ref         : (1, B_TILE) one score per pair.
    """
    w = w_ref[...]
    b = b_ref[...]

    # Two MXU matmuls (target / reference features), bias + ReLU on the VPU.
    ft = jnp.maximum(
        jnp.dot(w, pt_ref[...], preferred_element_type=jnp.float32) + b, 0.0)
    fr = jnp.maximum(
        jnp.dot(w, pr_ref[...], preferred_element_type=jnp.float32) + b, 0.0)

    d = ft - fr
    sq = d * d                                               # (C_OUT, LANES_HALF)

    # Per-pair sum over the M positions: lanes are ordered m*B_TILE + pair, so
    # summing the 196 aligned B_TILE-wide lane tiles reduces over m while keeping
    # the pair index on lanes.  Four round-robin accumulators keep the dependency
    # chain short; each slice is a vreg-aligned view.
    accs = [jnp.zeros((C_OUT, B_TILE), jnp.float32) for _ in range(4)]
    for m in range(M_REAL):
        accs[m % 4] = accs[m % 4] + sq[:, m * B_TILE:(m + 1) * B_TILE]
    acc = (accs[0] + accs[1]) + (accs[2] + accs[3])

    # Reduce feature channels (sublanes) -> lane-dense (1, B_TILE) scores.
    scores = jnp.sum(acc, axis=0, keepdims=True) * (1.0 / float(M_REAL * C_OUT))
    out_ref[...] = scores


def _im2col(imgs):
    """(N, H, W, C_IN) -> (N, M_REAL, K_REAL) with k = (kh*KW + kw)*C_IN + c."""
    n = imgs.shape[0]
    cols = []
    for kh in range(KH):
        for kw in range(KW):
            cols.append(
                imgs[:, kh:kh + H_OUT, kw:kw + W_OUT, :].reshape(n, M_REAL, C_IN))
    return jnp.concatenate(cols, axis=-1)


def _pack(patches, n_blocks):
    """(N, M_REAL, K_REAL) -> (K_PAD, n_blocks*LANES_HALF); lane = m*B_TILE + pair."""
    p = jnp.pad(patches.astype(jnp.float32),
                ((0, 0), (0, 0), (0, K_PAD - K_REAL)))
    p = p.reshape(n_blocks, B_TILE, M_REAL, K_PAD)
    p = jnp.transpose(p, (3, 0, 2, 1))          # (K_PAD, n_blocks, M_REAL, B_TILE)
    return p.reshape(K_PAD, n_blocks * LANES_HALF)


def inference_model_forward(targets_hwc, refs_hwc, conv_w, conv_b):
    """Batched InferenceModel.forward for metric_mode='FR'.

    targets_hwc / refs_hwc : (N, H, W, C_IN) images in uint16 value range
                             (the batched equivalent of the single-image imread
                             path; unsqueeze(0) becomes the pair axis).
    conv_w : (C_OUT, C_IN, KH, KW) torch-layout conv weights of the synthetic net.
    conv_b : (C_OUT,) conv bias.
    Returns (N,) float32 scores, one per (target, ref) pair.
    """
    n = targets_hwc.shape[0]
    n_blocks = (n + B_TILE - 1) // B_TILE
    n_padded = n_blocks * B_TILE

    def pad_pairs(x):
        return jnp.pad(x.astype(jnp.float32),
                       ((0, n_padded - n), (0, 0), (0, 0), (0, 0)))

    pt = _pack(_im2col(pad_pairs(targets_hwc)), n_blocks)   # (K_PAD, G*LANES_HALF)
    pr = _pack(_im2col(pad_pairs(refs_hwc)), n_blocks)

    # Fold the imread2tensor 1/65535 normalization into the transposed weights.
    w2 = jnp.transpose(conv_w.astype(jnp.float32), (0, 2, 3, 1)).reshape(C_OUT, K_REAL)
    w2 = w2 * (1.0 / 65535.0)
    w2 = jnp.pad(w2, ((0, 0), (0, K_PAD - K_REAL)))          # (C_OUT, K_PAD)
    b2 = conv_b.astype(jnp.float32).reshape(C_OUT, 1)

    scores = pl.pallas_call(
        fr_metric_kernel,
        out_shape=jax.ShapeDtypeStruct((1, n_padded), jnp.float32),
        grid=(n_blocks,),
        in_specs=[
            pl.BlockSpec((K_PAD, LANES_HALF), lambda g: (0, g)),   # target patches
            pl.BlockSpec((K_PAD, LANES_HALF), lambda g: (0, g)),   # ref patches
            pl.BlockSpec((C_OUT, K_PAD), lambda g: (0, 0)),        # weights
            pl.BlockSpec((C_OUT, 1), lambda g: (0, 0)),            # bias
        ],
        out_specs=pl.BlockSpec((1, B_TILE), lambda g: (0, g)),
        compiler_params=pltpu.CompilerParams(
            dimension_semantics=("parallel",),
            vmem_limit_bytes=40 * 1024 * 1024,
        ),
    )(pt, pr, w2, b2)

    return scores[0, :n]


def _reference_scores(targets_hwc, refs_hwc, conv_w, conv_b):
    """Pure-JAX reference for correctness checking (mirrors the torch module)."""
    def feats(imgs):
        x = imgs.astype(jnp.float32) / 65535.0
        x = jnp.transpose(x, (0, 3, 1, 2))                   # NCHW (imread2tensor)
        y = jax.lax.conv_general_dilated(
            x, conv_w, window_strides=(1, 1), padding='VALID',
            dimension_numbers=('NCHW', 'OIHW', 'NCHW'))
        return jnp.maximum(y + conv_b[None, :, None, None], 0.0)
    d = feats(targets_hwc) - feats(refs_hwc)
    return jnp.mean(d * d, axis=(1, 2, 3))


if __name__ == "__main__":
    key = jax.random.PRNGKey(0)
    k1, k2, k3, k4 = jax.random.split(key, 4)

    N = 256  # image pairs -> grid of 2 steps x 128 pairs
    targets = jax.random.uniform(k1, (N, H, W, C_IN), jnp.float32, 0.0, 65535.0)
    refs = jax.random.uniform(k2, (N, H, W, C_IN), jnp.float32, 0.0, 65535.0)
    conv_w = jax.random.normal(k3, (C_OUT, C_IN, KH, KW), jnp.float32) * 0.1
    conv_b = jax.random.normal(k4, (C_OUT,), jnp.float32) * 0.01

    scores = inference_model_forward(targets, refs, conv_w, conv_b)
    jax.block_until_ready(scores)

    expected = _reference_scores(targets, refs, conv_w, conv_b)
    assert scores.shape == (N,)
    assert jnp.allclose(scores, expected, rtol=1e-3, atol=1e-6), (
        scores[:4], expected[:4])

    print("KERNEL_OK")
</pallas_src>

<mosaic_0001>
module attributes {stable_mosaic.version = 11 : i64} {
  func.func @fr_metric_kernel(%arg0: i32, %arg1: memref<32x25088xf32, #tpu.memory_space<vmem>>, %arg2: memref<32x25088xf32, #tpu.memory_space<vmem>>, %arg3: memref<8x32xf32, #tpu.memory_space<vmem>>, %arg4: memref<8x1xf32, #tpu.memory_space<vmem>>, %arg5: memref<1x128xf32, #tpu.memory_space<vmem>>) attributes {dimension_semantics = [#tpu.dimension_semantics<parallel>], iteration_bounds = array<i64: 2>, scalar_prefetch = 0 : i64, scratch_operands = 0 : i64, tpu.core_type = #tpu.core_type<tc>, window_params = [{transform_indices = @transform_0, window_bounds = array<i64: 32, 25088>}, {transform_indices = @transform_1, window_bounds = array<i64: 32, 25088>}, {pipeline_mode = #tpu.pipeline_mode<synchronous>, transform_indices = @transform_2, window_bounds = array<i64: 8, 32>}, {pipeline_mode = #tpu.pipeline_mode<synchronous>, transform_indices = @transform_3, window_bounds = array<i64: 8, 1>}, {transform_indices = @transform_4, window_bounds = array<i64: 1, 128>}]} {
    %c0 = arith.constant 0 : index
    %c0_0 = arith.constant 0 : index
    %0 = vector.load %arg3[%c0, %c0_0] : memref<8x32xf32, #tpu.memory_space<vmem>>, vector<8x32xf32>
    %c0_1 = arith.constant 0 : index
    %c0_2 = arith.constant 0 : index
    %1 = vector.load %arg4[%c0_1, %c0_2] : memref<8x1xf32, #tpu.memory_space<vmem>>, vector<8x1xf32>
    %c0_3 = arith.constant 0 : index
    %c0_4 = arith.constant 0 : index
    %2 = vector.load %arg1[%c0_3, %c0_4] : memref<32x25088xf32, #tpu.memory_space<vmem>>, vector<32x25088xf32>
    %cst = arith.constant dense<0.000000e+00> : vector<8x25088xf32>
    %3 = tpu.matmul %0, %2, %cst {dimension_numbers = #tpu.dot_dimension_numbers<[1], [0], [0], [1], [0, 0, 1, 1], [], []>} : vector<8x32xf32>, vector<32x25088xf32>, vector<8x25088xf32> -> vector<8x25088xf32>
    %4 = vector.broadcast %1 : vector<8x1xf32> to vector<8x25088xf32>
    %5 = arith.addf %3, %4 : vector<8x25088xf32>
    %cst_5 = arith.constant 0.000000e+00 : f32
    %6 = vector.broadcast %cst_5 : f32 to vector<8x25088xf32>
    %7 = arith.maximumf %5, %6 : vector<8x25088xf32>
    %c0_6 = arith.constant 0 : index
    %c0_7 = arith.constant 0 : index
    %8 = vector.load %arg2[%c0_6, %c0_7] : memref<32x25088xf32, #tpu.memory_space<vmem>>, vector<32x25088xf32>
    %cst_8 = arith.constant dense<0.000000e+00> : vector<8x25088xf32>
    %9 = tpu.matmul %0, %8, %cst_8 {dimension_numbers = #tpu.dot_dimension_numbers<[1], [0], [0], [1], [0, 0, 1, 1], [], []>} : vector<8x32xf32>, vector<32x25088xf32>, vector<8x25088xf32> -> vector<8x25088xf32>
    %10 = vector.broadcast %1 : vector<8x1xf32> to vector<8x25088xf32>
    %11 = arith.addf %9, %10 : vector<8x25088xf32>
    %cst_9 = arith.constant 0.000000e+00 : f32
    %12 = vector.broadcast %cst_9 : f32 to vector<8x25088xf32>
    %13 = arith.maximumf %11, %12 : vector<8x25088xf32>
    %14 = arith.subf %7, %13 : vector<8x25088xf32>
    %15 = arith.mulf %14, %14 : vector<8x25088xf32>
    %cst_10 = arith.constant 0.000000e+00 : f32
    %16 = vector.broadcast %cst_10 : f32 to vector<8x128xf32>
    %cst_11 = arith.constant 0.000000e+00 : f32
    %17 = vector.broadcast %cst_11 : f32 to vector<8x128xf32>
    %cst_12 = arith.constant 0.000000e+00 : f32
    %18 = vector.broadcast %cst_12 : f32 to vector<8x128xf32>
    %cst_13 = arith.constant 0.000000e+00 : f32
    %19 = vector.broadcast %cst_13 : f32 to vector<8x128xf32>
    %20 = vector.extract_strided_slice %15 {offsets = [0, 0], sizes = [8, 128], strides = [1, 1]} : vector<8x25088xf32> to vector<8x128xf32>
    %21 = arith.addf %16, %20 : vector<8x128xf32>
    %22 = vector.extract_strided_slice %15 {offsets = [0, 128], sizes = [8, 128], strides = [1, 1]} : vector<8x25088xf32> to vector<8x128xf32>
    %23 = arith.addf %17, %22 : vector<8x128xf32>
    %24 = vector.extract_strided_slice %15 {offsets = [0, 256], sizes = [8, 128], strides = [1, 1]} : vector<8x25088xf32> to vector<8x128xf32>
    %25 = arith.addf %18, %24 : vector<8x128xf32>
    %26 = vector.extract_strided_slice %15 {offsets = [0, 384], sizes = [8, 128], strides = [1, 1]} : vector<8x25088xf32> to vector<8x128xf32>
    %27 = arith.addf %19, %26 : vector<8x128xf32>
    %28 = vector.extract_strided_slice %15 {offsets = [0, 512], sizes = [8, 128], strides = [1, 1]} : vector<8x25088xf32> to vector<8x128xf32>
    %29 = arith.addf %21, %28 : vector<8x128xf32>
    %30 = vector.extract_strided_slice %15 {offsets = [0, 640], sizes = [8, 128], strides = [1, 1]} : vector<8x25088xf32> to vector<8x128xf32>
    %31 = arith.addf %23, %30 : vector<8x128xf32>
    %32 = vector.extract_strided_slice %15 {offsets = [0, 768], sizes = [8, 128], strides = [1, 1]} : vector<8x25088xf32> to vector<8x128xf32>
    %33 = arith.addf %25, %32 : vector<8x128xf32>
    %34 = vector.extract_strided_slice %15 {offsets = [0, 896], sizes = [8, 128], strides = [1, 1]} : vector<8x25088xf32> to vector<8x128xf32>
    %35 = arith.addf %27, %34 : vector<8x128xf32>
    %36 = vector.extract_strided_slice %15 {offsets = [0, 1024], sizes = [8, 128], strides = [1, 1]} : vector<8x25088xf32> to vector<8x128xf32>
    %37 = arith.addf %29, %36 : vector<8x128xf32>
    %38 = vector.extract_strided_slice %15 {offsets = [0, 1152], sizes = [8, 128], strides = [1, 1]} : vector<8x25088xf32> to vector<8x128xf32>
    %39 = arith.addf %31, %38 : vector<8x128xf32>
    %40 = vector.extract_strided_slice %15 {offsets = [0, 1280], sizes = [8, 128], strides = [1, 1]} : vector<8x25088xf32> to vector<8x128xf32>
    %41 = arith.addf %33, %40 : vector<8x128xf32>
    %42 = vector.extract_strided_slice %15 {offsets = [0, 1408], sizes = [8, 128], strides = [1, 1]} : vector<8x25088xf32> to vector<8x128xf32>
    %43 = arith.addf %35, %42 : vector<8x128xf32>
    %44 = vector.extract_strided_slice %15 {offsets = [0, 1536], sizes = [8, 128], strides = [1, 1]} : vector<8x25088xf32> to vector<8x128xf32>
    %45 = arith.addf %37, %44 : vector<8x128xf32>
    %46 = vector.extract_strided_slice %15 {offsets = [0, 1664], sizes = [8, 128], strides = [1, 1]} : vector<8x25088xf32> to vector<8x128xf32>
    %47 = arith.addf %39, %46 : vector<8x128xf32>
    %48 = vector.extract_strided_slice %15 {offsets = [0, 1792], sizes = [8, 128], strides = [1, 1]} : vector<8x25088xf32> to vector<8x128xf32>
    %49 = arith.addf %41, %48 : vector<8x128xf32>
    %50 = vector.extract_strided_slice %15 {offsets = [0, 1920], sizes = [8, 128], strides = [1, 1]} : vector<8x25088xf32> to vector<8x128xf32>
    %51 = arith.addf %43, %50 : vector<8x128xf32>
    %52 = vector.extract_strided_slice %15 {offsets = [0, 2048], sizes = [8, 128], strides = [1, 1]} : vector<8x25088xf32> to vector<8x128xf32>
    %53 = arith.addf %45, %52 : vector<8x128xf32>
    %54 = vector.extract_strided_slice %15 {offsets = [0, 2176], sizes = [8, 128], strides = [1, 1]} : vector<8x25088xf32> to vector<8x128xf32>
    %55 = arith.addf %47, %54 : vector<8x128xf32>
    %56 = vector.extract_strided_slice %15 {offsets = [0, 2304], sizes = [8, 128], strides = [1, 1]} : vector<8x25088xf32> to vector<8x128xf32>
    %57 = arith.addf %49, %56 : vector<8x128xf32>
    %58 = vector.extract_strided_slice %15 {offsets = [0, 2432], sizes = [8, 128], strides = [1, 1]} : vector<8x25088xf32> to vector<8x128xf32>
    %59 = arith.addf %51, %58 : vector<8x128xf32>
    %60 = vector.extract_strided_slice %15 {offsets = [0, 2560], sizes = [8, 128], strides = [1, 1]} : vector<8x25088xf32> to vector<8x128xf32>
    %61 = arith.addf %53, %60 : vector<8x128xf32>
    %62 = vector.extract_strided_slice %15 {offsets = [0, 2688], sizes = [8, 128], strides = [1, 1]} : vector<8x25088xf32> to vector<8x128xf32>
    %63 = arith.addf %55, %62 : vector<8x128xf32>
    %64 = vector.extract_strided_slice %15 {offsets = [0, 2816], sizes = [8, 128], strides = [1, 1]} : vector<8x25088xf32> to vector<8x128xf32>
    %65 = arith.addf %57, %64 : vector<8x128xf32>
    %66 = vector.extract_strided_slice %15 {offsets = [0, 2944], sizes = [8, 128], strides = [1, 1]} : vector<8x25088xf32> to vector<8x128xf32>
    %67 = arith.addf %59, %66 : vector<8x128xf32>
    %68 = vector.extract_strided_slice %15 {offsets = [0, 3072], sizes = [8, 128], strides = [1, 1]} : vector<8x25088xf32> to vector<8x128xf32>
    %69 = arith.addf %61, %68 : vector<8x128xf32>
    %70 = vector.extract_strided_slice %15 {offsets = [0, 3200], sizes = [8, 128], strides = [1, 1]} : vector<8x25088xf32> to vector<8x128xf32>
    %71 = arith.addf %63, %70 : vector<8x128xf32>
    %72 = vector.extract_strided_slice %15 {offsets = [0, 3328], sizes = [8, 128], strides = [1, 1]} : vector<8x25088xf32> to vector<8x128xf32>
    %73 = arith.addf %65, %72 : vector<8x128xf32>
    %74 = vector.extract_strided_slice %15 {offsets = [0, 3456], sizes = [8, 128], strides = [1, 1]} : vector<8x25088xf32> to vector<8x128xf32>
    %75 = arith.addf %67, %74 : vector<8x128xf32>
    %76 = vector.extract_strided_slice %15 {offsets = [0, 3584], sizes = [8, 128], strides = [1, 1]} : vector<8x25088xf32> to vector<8x128xf32>
    %77 = arith.addf %69, %76 : vector<8x128xf32>
    %78 = vector.extract_strided_slice %15 {offsets = [0, 3712], sizes = [8, 128], strides = [1, 1]} : vector<8x25088xf32> to vector<8x128xf32>
    %79 = arith.addf %71, %78 : vector<8x128xf32>
    %80 = vector.extract_strided_slice %15 {offsets = [0, 3840], sizes = [8, 128], strides = [1, 1]} : vector<8x25088xf32> to vector<8x128xf32>
    %81 = arith.addf %73, %80 : vector<8x128xf32>
    %82 = vector.extract_strided_slice %15 {offsets = [0, 3968], sizes = [8, 128], strides = [1, 1]} : vector<8x25088xf32> to vector<8x128xf32>
    %83 = arith.addf %75, %82 : vector<8x128xf32>
    %84 = vector.extract_strided_slice %15 {offsets = [0, 4096], sizes = [8, 128], strides = [1, 1]} : vector<8x25088xf32> to vector<8x128xf32>
    %85 = arith.addf %77, %84 : vector<8x128xf32>
    %86 = vector.extract_strided_slice %15 {offsets = [0, 4224], sizes = [8, 128], strides = [1, 1]} : vector<8x25088xf32> to vector<8x128xf32>
    %87 = arith.addf %79, %86 : vector<8x128xf32>
    %88 = vector.extract_strided_slice %15 {offsets = [0, 4352], sizes = [8, 128], strides = [1, 1]} : vector<8x25088xf32> to vector<8x128xf32>
    %89 = arith.addf %81, %88 : vector<8x128xf32>
    %90 = vector.extract_strided_slice %15 {offsets = [0, 4480], sizes = [8, 128], strides = [1, 1]} : vector<8x25088xf32> to vector<8x128xf32>
    %91 = arith.addf %83, %90 : vector<8x128xf32>
    %92 = vector.extract_strided_slice %15 {offsets = [0, 4608], sizes = [8, 128], strides = [1, 1]} : vector<8x25088xf32> to vector<8x128xf32>
    %93 = arith.addf %85, %92 : vector<8x128xf32>
    %94 = vector.extract_strided_slice %15 {offsets = [0, 4736], sizes = [8, 128], strides = [1, 1]} : vector<8x25088xf32> to vector<8x128xf32>
    %95 = arith.addf %87, %94 : vector<8x128xf32>
    %96 = vector.extract_strided_slice %15 {offsets = [0, 4864], sizes = [8, 128], strides = [1, 1]} : vector<8x25088xf32> to vector<8x128xf32>
    %97 = arith.addf %89, %96 : vector<8x128xf32>
    %98 = vector.extract_strided_slice %15 {offsets = [0, 4992], sizes = [8, 128], strides = [1, 1]} : vector<8x25088xf32> to vector<8x128xf32>
    %99 = arith.addf %91, %98 : vector<8x128xf32>
    %100 = vector.extract_strided_slice %15 {offsets = [0, 5120], sizes = [8, 128], strides = [1, 1]} : vector<8x25088xf32> to vector<8x128xf32>
    %101 = arith.addf %93, %100 : vector<8x128xf32>
    %102 = vector.extract_strided_slice %15 {offsets = [0, 5248], sizes = [8, 128], strides = [1, 1]} : vector<8x25088xf32> to vector<8x128xf32>
    %103 = arith.addf %95, %102 : vector<8x128xf32>
    %104 = vector.extract_strided_slice %15 {offsets = [0, 5376], sizes = [8, 128], strides = [1, 1]} : vector<8x25088xf32> to vector<8x128xf32>
    %105 = arith.addf %97, %104 : vector<8x128xf32>
    %106 = vector.extract_strided_slice %15 {offsets = [0, 5504], sizes = [8, 128], strides = [1, 1]} : vector<8x25088xf32> to vector<8x128xf32>
    %107 = arith.addf %99, %106 : vector<8x128xf32>
    %108 = vector.extract_strided_slice %15 {offsets = [0, 5632], sizes = [8, 128], strides = [1, 1]} : vector<8x25088xf32> to vector<8x128xf32>
    %109 = arith.addf %101, %108 : vector<8x128xf32>
    %110 = vector.extract_strided_slice %15 {offsets = [0, 5760], sizes = [8, 128], strides = [1, 1]} : vector<8x25088xf32> to vector<8x128xf32>
    %111 = arith.addf %103, %110 : vector<8x128xf32>
    %112 = vector.extract_strided_slice %15 {offsets = [0, 5888], sizes = [8, 128], strides = [1, 1]} : vector<8x25088xf32> to vector<8x128xf32>
    %113 = arith.addf %105, %112 : vector<8x128xf32>
    %114 = vector.extract_strided_slice %15 {offsets = [0, 6016], sizes = [8, 128], strides = [1, 1]} : vector<8x25088xf32> to vector<8x128xf32>
    %115 = arith.addf %107, %114 : vector<8x128xf32>
    %116 = vector.extract_strided_slice %15 {offsets = [0, 6144], sizes = [8, 128], strides = [1, 1]} : vector<8x25088xf32> to vector<8x128xf32>
    %117 = arith.addf %109, %116 : vector<8x128xf32>
    %118 = vector.extract_strided_slice %15 {offsets = [0, 6272], sizes = [8, 128], strides = [1, 1]} : vector<8x25088xf32> to vector<8x128xf32>
    %119 = arith.addf %111, %118 : vector<8x128xf32>
    %120 = vector.extract_strided_slice %15 {offsets = [0, 6400], sizes = [8, 128], strides = [1, 1]} : vector<8x25088xf32> to vector<8x128xf32>
    %121 = arith.addf %113, %120 : vector<8x128xf32>
    %122 = vector.extract_strided_slice %15 {offsets = [0, 6528], sizes = [8, 128], strides = [1, 1]} : vector<8x25088xf32> to vector<8x128xf32>
    %123 = arith.addf %115, %122 : vector<8x128xf32>
    %124 = vector.extract_strided_slice %15 {offsets = [0, 6656], sizes = [8, 128], strides = [1, 1]} : vector<8x25088xf32> to vector<8x128xf32>
    %125 = arith.addf %117, %124 : vector<8x128xf32>
    %126 = vector.extract_strided_slice %15 {offsets = [0, 6784], sizes = [8, 128], strides = [1, 1]} : vector<8x25088xf32> to vector<8x128xf32>
    %127 = arith.addf %119, %126 : vector<8x128xf32>
    %128 = vector.extract_strided_slice %15 {offsets = [0, 6912], sizes = [8, 128], strides = [1, 1]} : vector<8x25088xf32> to vector<8x128xf32>
    %129 = arith.addf %121, %128 : vector<8x128xf32>
    %130 = vector.extract_strided_slice %15 {offsets = [0, 7040], sizes = [8, 128], strides = [1, 1]} : vector<8x25088xf32> to vector<8x128xf32>
    %131 = arith.addf %123, %130 : vector<8x128xf32>
    %132 = vector.extract_strided_slice %15 {offsets = [0, 7168], sizes = [8, 128], strides = [1, 1]} : vector<8x25088xf32> to vector<8x128xf32>
    %133 = arith.addf %125, %132 : vector<8x128xf32>
    %134 = vector.extract_strided_slice %15 {offsets = [0, 7296], sizes = [8, 128], strides = [1, 1]} : vector<8x25088xf32> to vector<8x128xf32>
    %135 = arith.addf %127, %134 : vector<8x128xf32>
    %136 = vector.extract_strided_slice %15 {offsets = [0, 7424], sizes = [8, 128], strides = [1, 1]} : vector<8x25088xf32> to vector<8x128xf32>
    %137 = arith.addf %129, %136 : vector<8x128xf32>
    %138 = vector.extract_strided_slice %15 {offsets = [0, 7552], sizes = [8, 128], strides = [1, 1]} : vector<8x25088xf32> to vector<8x128xf32>
    %139 = arith.addf %131, %138 : vector<8x128xf32>
    %140 = vector.extract_strided_slice %15 {offsets = [0, 7680], sizes = [8, 128], strides = [1, 1]} : vector<8x25088xf32> to vector<8x128xf32>
    %141 = arith.addf %133, %140 : vector<8x128xf32>
    %142 = vector.extract_strided_slice %15 {offsets = [0, 7808], sizes = [8, 128], strides = [1, 1]} : vector<8x25088xf32> to vector<8x128xf32>
    %143 = arith.addf %135, %142 : vector<8x128xf32>
    %144 = vector.extract_strided_slice %15 {offsets = [0, 7936], sizes = [8, 128], strides = [1, 1]} : vector<8x25088xf32> to vector<8x128xf32>
    %145 = arith.addf %137, %144 : vector<8x128xf32>
    %146 = vector.extract_strided_slice %15 {offsets = [0, 8064], sizes = [8, 128], strides = [1, 1]} : vector<8x25088xf32> to vector<8x128xf32>
    %147 = arith.addf %139, %146 : vector<8x128xf32>
    %148 = vector.extract_strided_slice %15 {offsets = [0, 8192], sizes = [8, 128], strides = [1, 1]} : vector<8x25088xf32> to vector<8x128xf32>
    %149 = arith.addf %141, %148 : vector<8x128xf32>
    %150 = vector.extract_strided_slice %15 {offsets = [0, 8320], sizes = [8, 128], strides = [1, 1]} : vector<8x25088xf32> to vector<8x128xf32>
    %151 = arith.addf %143, %150 : vector<8x128xf32>
    %152 = vector.extract_strided_slice %15 {offsets = [0, 8448], sizes = [8, 128], strides = [1, 1]} : vector<8x25088xf32> to vector<8x128xf32>
    %153 = arith.addf %145, %152 : vector<8x128xf32>
    %154 = vector.extract_strided_slice %15 {offsets = [0, 8576], sizes = [8, 128], strides = [1, 1]} : vector<8x25088xf32> to vector<8x128xf32>
    %155 = arith.addf %147, %154 : vector<8x128xf32>
    %156 = vector.extract_strided_slice %15 {offsets = [0, 8704], sizes = [8, 128], strides = [1, 1]} : vector<8x25088xf32> to vector<8x128xf32>
    %157 = arith.addf %149, %156 : vector<8x128xf32>
    %158 = vector.extract_strided_slice %15 {offsets = [0, 8832], sizes = [8, 128], strides = [1, 1]} : vector<8x25088xf32> to vector<8x128xf32>
    %159 = arith.addf %151, %158 : vector<8x128xf32>
    %160 = vector.extract_strided_slice %15 {offsets = [0, 8960], sizes = [8, 128], strides = [1, 1]} : vector<8x25088xf32> to vector<8x128xf32>
    %161 = arith.addf %153, %160 : vector<8x128xf32>
    %162 = vector.extract_strided_slice %15 {offsets = [0, 9088], sizes = [8, 128], strides = [1, 1]} : vector<8x25088xf32> to vector<8x128xf32>
    %163 = arith.addf %155, %162 : vector<8x128xf32>
    %164 = vector.extract_strided_slice %15 {offsets = [0, 9216], sizes = [8, 128], strides = [1, 1]} : vector<8x25088xf32> to vector<8x128xf32>
    %165 = arith.addf %157, %164 : vector<8x128xf32>
    %166 = vector.extract_strided_slice %15 {offsets = [0, 9344], sizes = [8, 128], strides = [1, 1]} : vector<8x25088xf32> to vector<8x128xf32>
    %167 = arith.addf %159, %166 : vector<8x128xf32>
    %168 = vector.extract_strided_slice %15 {offsets = [0, 9472], sizes = [8, 128], strides = [1, 1]} : vector<8x25088xf32> to vector<8x128xf32>
    %169 = arith.addf %161, %168 : vector<8x128xf32>
    %170 = vector.extract_strided_slice %15 {offsets = [0, 9600], sizes = [8, 128], strides = [1, 1]} : vector<8x25088xf32> to vector<8x128xf32>
    %171 = arith.addf %163, %170 : vector<8x128xf32>
    %172 = vector.extract_strided_slice %15 {offsets = [0, 9728], sizes = [8, 128], strides = [1, 1]} : vector<8x25088xf32> to vector<8x128xf32>
    %173 = arith.addf %165, %172 : vector<8x128xf32>
    %174 = vector.extract_strided_slice %15 {offsets = [0, 9856], sizes = [8, 128], strides = [1, 1]} : vector<8x25088xf32> to vector<8x128xf32>
    %175 = arith.addf %167, %174 : vector<8x128xf32>
    %176 = vector.extract_strided_slice %15 {offsets = [0, 9984], sizes = [8, 128], strides = [1, 1]} : vector<8x25088xf32> to vector<8x128xf32>
    %177 = arith.addf %169, %176 : vector<8x128xf32>
    %178 = vector.extract_strided_slice %15 {offsets = [0, 10112], sizes = [8, 128], strides = [1, 1]} : vector<8x25088xf32> to vector<8x128xf32>
    %179 = arith.addf %171, %178 : vector<8x128xf32>
    %180 = vector.extract_strided_slice %15 {offsets = [0, 10240], sizes = [8, 128], strides = [1, 1]} : vector<8x25088xf32> to vector<8x128xf32>
    %181 = arith.addf %173, %180 : vector<8x128xf32>
    %182 = vector.extract_strided_slice %15 {offsets = [0, 10368], sizes = [8, 128], strides = [1, 1]} : vector<8x25088xf32> to vector<8x128xf32>
    %183 = arith.addf %175, %182 : vector<8x128xf32>
    %184 = vector.extract_strided_slice %15 {offsets = [0, 10496], sizes = [8, 128], strides = [1, 1]} : vector<8x25088xf32> to vector<8x128xf32>
    %185 = arith.addf %177, %184 : vector<8x128xf32>
    %186 = vector.extract_strided_slice %15 {offsets = [0, 10624], sizes = [8, 128], strides = [1, 1]} : vector<8x25088xf32> to vector<8x128xf32>
    %187 = arith.addf %179, %186 : vector<8x128xf32>
    %188 = vector.extract_strided_slice %15 {offsets = [0, 10752], sizes = [8, 128], strides = [1, 1]} : vector<8x25088xf32> to vector<8x128xf32>
    %189 = arith.addf %181, %188 : vector<8x128xf32>
    %190 = vector.extract_strided_slice %15 {offsets = [0, 10880], sizes = [8, 128], strides = [1, 1]} : vector<8x25088xf32> to vector<8x128xf32>
    %191 = arith.addf %183, %190 : vector<8x128xf32>
    %192 = vector.extract_strided_slice %15 {offsets = [0, 11008], sizes = [8, 128], strides = [1, 1]} : vector<8x25088xf32> to vector<8x128xf32>
    %193 = arith.addf %185, %192 : vector<8x128xf32>
    %194 = vector.extract_strided_slice %15 {offsets = [0, 11136], sizes = [8, 128], strides = [1, 1]} : vector<8x25088xf32> to vector<8x128xf32>
    %195 = arith.addf %187, %194 : vector<8x128xf32>
    %196 = vector.extract_strided_slice %15 {offsets = [0, 11264], sizes = [8, 128], strides = [1, 1]} : vector<8x25088xf32> to vector<8x128xf32>
    %197 = arith.addf %189, %196 : vector<8x128xf32>
    %198 = vector.extract_strided_slice %15 {offsets = [0, 11392], sizes = [8, 128], strides = [1, 1]} : vector<8x25088xf32> to vector<8x128xf32>
    %199 = arith.addf %191, %198 : vector<8x128xf32>
    %200 = vector.extract_strided_slice %15 {offsets = [0, 11520], sizes = [8, 128], strides = [1, 1]} : vector<8x25088xf32> to vector<8x128xf32>
    %201 = arith.addf %193, %200 : vector<8x128xf32>
    %202 = vector.extract_strided_slice %15 {offsets = [0, 11648], sizes = [8, 128], strides = [1, 1]} : vector<8x25088xf32> to vector<8x128xf32>
    %203 = arith.addf %195, %202 : vector<8x128xf32>
    %204 = vector.extract_strided_slice %15 {offsets = [0, 11776], sizes = [8, 128], strides = [1, 1]} : vector<8x25088xf32> to vector<8x128xf32>
    %205 = arith.addf %197, %204 : vector<8x128xf32>
    %206 = vector.extract_strided_slice %15 {offsets = [0, 11904], sizes = [8, 128], strides = [1, 1]} : vector<8x25088xf32> to vector<8x128xf32>
    %207 = arith.addf %199, %206 : vector<8x128xf32>
    %208 = vector.extract_strided_slice %15 {offsets = [0, 12032], sizes = [8, 128], strides = [1, 1]} : vector<8x25088xf32> to vector<8x128xf32>
    %209 = arith.addf %201, %208 : vector<8x128xf32>
    %210 = vector.extract_strided_slice %15 {offsets = [0, 12160], sizes = [8, 128], strides = [1, 1]} : vector<8x25088xf32> to vector<8x128xf32>
    %211 = arith.addf %203, %210 : vector<8x128xf32>
    %212 = vector.extract_strided_slice %15 {offsets = [0, 12288], sizes = [8, 128], strides = [1, 1]} : vector<8x25088xf32> to vector<8x128xf32>
    %213 = arith.addf %205, %212 : vector<8x128xf32>
    %214 = vector.extract_strided_slice %15 {offsets = [0, 12416], sizes = [8, 128], strides = [1, 1]} : vector<8x25088xf32> to vector<8x128xf32>
    %215 = arith.addf %207, %214 : vector<8x128xf32>
    %216 = vector.extract_strided_slice %15 {offsets = [0, 12544], sizes = [8, 128], strides = [1, 1]} : vector<8x25088xf32> to vector<8x128xf32>
    %217 = arith.addf %209, %216 : vector<8x128xf32>
    %218 = vector.extract_strided_slice %15 {offsets = [0, 12672], sizes = [8, 128], strides = [1, 1]} : vector<8x25088xf32> to vector<8x128xf32>
    %219 = arith.addf %211, %218 : vector<8x128xf32>
    %220 = vector.extract_strided_slice %15 {offsets = [0, 12800], sizes = [8, 128], strides = [1, 1]} : vector<8x25088xf32> to vector<8x128xf32>
    %221 = arith.addf %213, %220 : vector<8x128xf32>
    %222 = vector.extract_strided_slice %15 {offsets = [0, 12928], sizes = [8, 128], strides = [1, 1]} : vector<8x25088xf32> to vector<8x128xf32>
    %223 = arith.addf %215, %222 : vector<8x128xf32>
    %224 = vector.extract_strided_slice %15 {offsets = [0, 13056], sizes = [8, 128], strides = [1, 1]} : vector<8x25088xf32> to vector<8x128xf32>
    %225 = arith.addf %217, %224 : vector<8x128xf32>
    %226 = vector.extract_strided_slice %15 {offsets = [0, 13184], sizes = [8, 128], strides = [1, 1]} : vector<8x25088xf32> to vector<8x128xf32>
    %227 = arith.addf %219, %226 : vector<8x128xf32>
    %228 = vector.extract_strided_slice %15 {offsets = [0, 13312], sizes = [8, 128], strides = [1, 1]} : vector<8x25088xf32> to vector<8x128xf32>
    %229 = arith.addf %221, %228 : vector<8x128xf32>
    %230 = vector.extract_strided_slice %15 {offsets = [0, 13440], sizes = [8, 128], strides = [1, 1]} : vector<8x25088xf32> to vector<8x128xf32>
    %231 = arith.addf %223, %230 : vector<8x128xf32>
    %232 = vector.extract_strided_slice %15 {offsets = [0, 13568], sizes = [8, 128], strides = [1, 1]} : vector<8x25088xf32> to vector<8x128xf32>
    %233 = arith.addf %225, %232 : vector<8x128xf32>
    %234 = vector.extract_strided_slice %15 {offsets = [0, 13696], sizes = [8, 128], strides = [1, 1]} : vector<8x25088xf32> to vector<8x128xf32>
    %235 = arith.addf %227, %234 : vector<8x128xf32>
    %236 = vector.extract_strided_slice %15 {offsets = [0, 13824], sizes = [8, 128], strides = [1, 1]} : vector<8x25088xf32> to vector<8x128xf32>
    %237 = arith.addf %229, %236 : vector<8x128xf32>
    %238 = vector.extract_strided_slice %15 {offsets = [0, 13952], sizes = [8, 128], strides = [1, 1]} : vector<8x25088xf32> to vector<8x128xf32>
    %239 = arith.addf %231, %238 : vector<8x128xf32>
    %240 = vector.extract_strided_slice %15 {offsets = [0, 14080], sizes = [8, 128], strides = [1, 1]} : vector<8x25088xf32> to vector<8x128xf32>
    %241 = arith.addf %233, %240 : vector<8x128xf32>
    %242 = vector.extract_strided_slice %15 {offsets = [0, 14208], sizes = [8, 128], strides = [1, 1]} : vector<8x25088xf32> to vector<8x128xf32>
    %243 = arith.addf %235, %242 : vector<8x128xf32>
    %244 = vector.extract_strided_slice %15 {offsets = [0, 14336], sizes = [8, 128], strides = [1, 1]} : vector<8x25088xf32> to vector<8x128xf32>
    %245 = arith.addf %237, %244 : vector<8x128xf32>
    %246 = vector.extract_strided_slice %15 {offsets = [0, 14464], sizes = [8, 128], strides = [1, 1]} : vector<8x25088xf32> to vector<8x128xf32>
    %247 = arith.addf %239, %246 : vector<8x128xf32>
    %248 = vector.extract_strided_slice %15 {offsets = [0, 14592], sizes = [8, 128], strides = [1, 1]} : vector<8x25088xf32> to vector<8x128xf32>
    %249 = arith.addf %241, %248 : vector<8x128xf32>
    %250 = vector.extract_strided_slice %15 {offsets = [0, 14720], sizes = [8, 128], strides = [1, 1]} : vector<8x25088xf32> to vector<8x128xf32>
    %251 = arith.addf %243, %250 : vector<8x128xf32>
    %252 = vector.extract_strided_slice %15 {offsets = [0, 14848], sizes = [8, 128], strides = [1, 1]} : vector<8x25088xf32> to vector<8x128xf32>
    %253 = arith.addf %245, %252 : vector<8x128xf32>
    %254 = vector.extract_strided_slice %15 {offsets = [0, 14976], sizes = [8, 128], strides = [1, 1]} : vector<8x25088xf32> to vector<8x128xf32>
    %255 = arith.addf %247, %254 : vector<8x128xf32>
    %256 = vector.extract_strided_slice %15 {offsets = [0, 15104], sizes = [8, 128], strides = [1, 1]} : vector<8x25088xf32> to vector<8x128xf32>
    %257 = arith.addf %249, %256 : vector<8x128xf32>
    %258 = vector.extract_strided_slice %15 {offsets = [0, 15232], sizes = [8, 128], strides = [1, 1]} : vector<8x25088xf32> to vector<8x128xf32>
    %259 = arith.addf %251, %258 : vector<8x128xf32>
    %260 = vector.extract_strided_slice %15 {offsets = [0, 15360], sizes = [8, 128], strides = [1, 1]} : vector<8x25088xf32> to vector<8x128xf32>
    %261 = arith.addf %253, %260 : vector<8x128xf32>
    %262 = vector.extract_strided_slice %15 {offsets = [0, 15488], sizes = [8, 128], strides = [1, 1]} : vector<8x25088xf32> to vector<8x128xf32>
    %263 = arith.addf %255, %262 : vector<8x128xf32>
    %264 = vector.extract_strided_slice %15 {offsets = [0, 15616], sizes = [8, 128], strides = [1, 1]} : vector<8x25088xf32> to vector<8x128xf32>
    %265 = arith.addf %257, %264 : vector<8x128xf32>
    %266 = vector.extract_strided_slice %15 {offsets = [0, 15744], sizes = [8, 128], strides = [1, 1]} : vector<8x25088xf32> to vector<8x128xf32>
    %267 = arith.addf %259, %266 : vector<8x128xf32>
    %268 = vector.extract_strided_slice %15 {offsets = [0, 15872], sizes = [8, 128], strides = [1, 1]} : vector<8x25088xf32> to vector<8x128xf32>
    %269 = arith.addf %261, %268 : vector<8x128xf32>
    %270 = vector.extract_strided_slice %15 {offsets = [0, 16000], sizes = [8, 128], strides = [1, 1]} : vector<8x25088xf32> to vector<8x128xf32>
    %271 = arith.addf %263, %270 : vector<8x128xf32>
    %272 = vector.extract_strided_slice %15 {offsets = [0, 16128], sizes = [8, 128], strides = [1, 1]} : vector<8x25088xf32> to vector<8x128xf32>
    %273 = arith.addf %265, %272 : vector<8x128xf32>
    %274 = vector.extract_strided_slice %15 {offsets = [0, 16256], sizes = [8, 128], strides = [1, 1]} : vector<8x25088xf32> to vector<8x128xf32>
    %275 = arith.addf %267, %274 : vector<8x128xf32>
    %276 = vector.extract_strided_slice %15 {offsets = [0, 16384], sizes = [8, 128], strides = [1, 1]} : vector<8x25088xf32> to vector<8x128xf32>
    %277 = arith.addf %269, %276 : vector<8x128xf32>
    %278 = vector.extract_strided_slice %15 {offsets = [0, 16512], sizes = [8, 128], strides = [1, 1]} : vector<8x25088xf32> to vector<8x128xf32>
    %279 = arith.addf %271, %278 : vector<8x128xf32>
    %280 = vector.extract_strided_slice %15 {offsets = [0, 16640], sizes = [8, 128], strides = [1, 1]} : vector<8x25088xf32> to vector<8x128xf32>
    %281 = arith.addf %273, %280 : vector<8x128xf32>
    %282 = vector.extract_strided_slice %15 {offsets = [0, 16768], sizes = [8, 128], strides = [1, 1]} : vector<8x25088xf32> to vector<8x128xf32>
    %283 = arith.addf %275, %282 : vector<8x128xf32>
    %284 = vector.extract_strided_slice %15 {offsets = [0, 16896], sizes = [8, 128], strides = [1, 1]} : vector<8x25088xf32> to vector<8x128xf32>
    %285 = arith.addf %277, %284 : vector<8x128xf32>
    %286 = vector.extract_strided_slice %15 {offsets = [0, 17024], sizes = [8, 128], strides = [1, 1]} : vector<8x25088xf32> to vector<8x128xf32>
    %287 = arith.addf %279, %286 : vector<8x128xf32>
    %288 = vector.extract_strided_slice %15 {offsets = [0, 17152], sizes = [8, 128], strides = [1, 1]} : vector<8x25088xf32> to vector<8x128xf32>
    %289 = arith.addf %281, %288 : vector<8x128xf32>
    %290 = vector.extract_strided_slice %15 {offsets = [0, 17280], sizes = [8, 128], strides = [1, 1]} : vector<8x25088xf32> to vector<8x128xf32>
    %291 = arith.addf %283, %290 : vector<8x128xf32>
    %292 = vector.extract_strided_slice %15 {offsets = [0, 17408], sizes = [8, 128], strides = [1, 1]} : vector<8x25088xf32> to vector<8x128xf32>
    %293 = arith.addf %285, %292 : vector<8x128xf32>
    %294 = vector.extract_strided_slice %15 {offsets = [0, 17536], sizes = [8, 128], strides = [1, 1]} : vector<8x25088xf32> to vector<8x128xf32>
    %295 = arith.addf %287, %294 : vector<8x128xf32>
    %296 = vector.extract_strided_slice %15 {offsets = [0, 17664], sizes = [8, 128], strides = [1, 1]} : vector<8x25088xf32> to vector<8x128xf32>
    %297 = arith.addf %289, %296 : vector<8x128xf32>
    %298 = vector.extract_strided_slice %15 {offsets = [0, 17792], sizes = [8, 128], strides = [1, 1]} : vector<8x25088xf32> to vector<8x128xf32>
    %299 = arith.addf %291, %298 : vector<8x128xf32>
    %300 = vector.extract_strided_slice %15 {offsets = [0, 17920], sizes = [8, 128], strides = [1, 1]} : vector<8x25088xf32> to vector<8x128xf32>
    %301 = arith.addf %293, %300 : vector<8x128xf32>
    %302 = vector.extract_strided_slice %15 {offsets = [0, 18048], sizes = [8, 128], strides = [1, 1]} : vector<8x25088xf32> to vector<8x128xf32>
    %303 = arith.addf %295, %302 : vector<8x128xf32>
    %304 = vector.extract_strided_slice %15 {offsets = [0, 18176], sizes = [8, 128], strides = [1, 1]} : vector<8x25088xf32> to vector<8x128xf32>
    %305 = arith.addf %297, %304 : vector<8x128xf32>
    %306 = vector.extract_strided_slice %15 {offsets = [0, 18304], sizes = [8, 128], strides = [1, 1]} : vector<8x25088xf32> to vector<8x128xf32>
    %307 = arith.addf %299, %306 : vector<8x128xf32>
    %308 = vector.extract_strided_slice %15 {offsets = [0, 18432], sizes = [8, 128], strides = [1, 1]} : vector<8x25088xf32> to vector<8x128xf32>
    %309 = arith.addf %301, %308 : vector<8x128xf32>
    %310 = vector.extract_strided_slice %15 {offsets = [0, 18560], sizes = [8, 128], strides = [1, 1]} : vector<8x25088xf32> to vector<8x128xf32>
    %311 = arith.addf %303, %310 : vector<8x128xf32>
    %312 = vector.extract_strided_slice %15 {offsets = [0, 18688], sizes = [8, 128], strides = [1, 1]} : vector<8x25088xf32> to vector<8x128xf32>
    %313 = arith.addf %305, %312 : vector<8x128xf32>
    %314 = vector.extract_strided_slice %15 {offsets = [0, 18816], sizes = [8, 128], strides = [1, 1]} : vector<8x25088xf32> to vector<8x128xf32>
    %315 = arith.addf %307, %314 : vector<8x128xf32>
    %316 = vector.extract_strided_slice %15 {offsets = [0, 18944], sizes = [8, 128], strides = [1, 1]} : vector<8x25088xf32> to vector<8x128xf32>
    %317 = arith.addf %309, %316 : vector<8x128xf32>
    %318 = vector.extract_strided_slice %15 {offsets = [0, 19072], sizes = [8, 128], strides = [1, 1]} : vector<8x25088xf32> to vector<8x128xf32>
    %319 = arith.addf %311, %318 : vector<8x128xf32>
    %320 = vector.extract_strided_slice %15 {offsets = [0, 19200], sizes = [8, 128], strides = [1, 1]} : vector<8x25088xf32> to vector<8x128xf32>
    %321 = arith.addf %313, %320 : vector<8x128xf32>
    %322 = vector.extract_strided_slice %15 {offsets = [0, 19328], sizes = [8, 128], strides = [1, 1]} : vector<8x25088xf32> to vector<8x128xf32>
    %323 = arith.addf %315, %322 : vector<8x128xf32>
    %324 = vector.extract_strided_slice %15 {offsets = [0, 19456], sizes = [8, 128], strides = [1, 1]} : vector<8x25088xf32> to vector<8x128xf32>
    %325 = arith.addf %317, %324 : vector<8x128xf32>
    %326 = vector.extract_strided_slice %15 {offsets = [0, 19584], sizes = [8, 128], strides = [1, 1]} : vector<8x25088xf32> to vector<8x128xf32>
    %327 = arith.addf %319, %326 : vector<8x128xf32>
    %328 = vector.extract_strided_slice %15 {offsets = [0, 19712], sizes = [8, 128], strides = [1, 1]} : vector<8x25088xf32> to vector<8x128xf32>
    %329 = arith.addf %321, %328 : vector<8x128xf32>
    %330 = vector.extract_strided_slice %15 {offsets = [0, 19840], sizes = [8, 128], strides = [1, 1]} : vector<8x25088xf32> to vector<8x128xf32>
    %331 = arith.addf %323, %330 : vector<8x128xf32>
    %332 = vector.extract_strided_slice %15 {offsets = [0, 19968], sizes = [8, 128], strides = [1, 1]} : vector<8x25088xf32> to vector<8x128xf32>
    %333 = arith.addf %325, %332 : vector<8x128xf32>
    %334 = vector.extract_strided_slice %15 {offsets = [0, 20096], sizes = [8, 128], strides = [1, 1]} : vector<8x25088xf32> to vector<8x128xf32>
    %335 = arith.addf %327, %334 : vector<8x128xf32>
    %336 = vector.extract_strided_slice %15 {offsets = [0, 20224], sizes = [8, 128], strides = [1, 1]} : vector<8x25088xf32> to vector<8x128xf32>
    %337 = arith.addf %329, %336 : vector<8x128xf32>
    %338 = vector.extract_strided_slice %15 {offsets = [0, 20352], sizes = [8, 128], strides = [1, 1]} : vector<8x25088xf32> to vector<8x128xf32>
    %339 = arith.addf %331, %338 : vector<8x128xf32>
    %340 = vector.extract_strided_slice %15 {offsets = [0, 20480], sizes = [8, 128], strides = [1, 1]} : vector<8x25088xf32> to vector<8x128xf32>
    %341 = arith.addf %333, %340 : vector<8x128xf32>
    %342 = vector.extract_strided_slice %15 {offsets = [0, 20608], sizes = [8, 128], strides = [1, 1]} : vector<8x25088xf32> to vector<8x128xf32>
    %343 = arith.addf %335, %342 : vector<8x128xf32>
    %344 = vector.extract_strided_slice %15 {offsets = [0, 20736], sizes = [8, 128], strides = [1, 1]} : vector<8x25088xf32> to vector<8x128xf32>
    %345 = arith.addf %337, %344 : vector<8x128xf32>
    %346 = vector.extract_strided_slice %15 {offsets = [0, 20864], sizes = [8, 128], strides = [1, 1]} : vector<8x25088xf32> to vector<8x128xf32>
    %347 = arith.addf %339, %346 : vector<8x128xf32>
    %348 = vector.extract_strided_slice %15 {offsets = [0, 20992], sizes = [8, 128], strides = [1, 1]} : vector<8x25088xf32> to vector<8x128xf32>
    %349 = arith.addf %341, %348 : vector<8x128xf32>
    %350 = vector.extract_strided_slice %15 {offsets = [0, 21120], sizes = [8, 128], strides = [1, 1]} : vector<8x25088xf32> to vector<8x128xf32>
    %351 = arith.addf %343, %350 : vector<8x128xf32>
    %352 = vector.extract_strided_slice %15 {offsets = [0, 21248], sizes = [8, 128], strides = [1, 1]} : vector<8x25088xf32> to vector<8x128xf32>
    %353 = arith.addf %345, %352 : vector<8x128xf32>
    %354 = vector.extract_strided_slice %15 {offsets = [0, 21376], sizes = [8, 128], strides = [1, 1]} : vector<8x25088xf32> to vector<8x128xf32>
    %355 = arith.addf %347, %354 : vector<8x128xf32>
    %356 = vector.extract_strided_slice %15 {offsets = [0, 21504], sizes = [8, 128], strides = [1, 1]} : vector<8x25088xf32> to vector<8x128xf32>
    %357 = arith.addf %349, %356 : vector<8x128xf32>
    %358 = vector.extract_strided_slice %15 {offsets = [0, 21632], sizes = [8, 128], strides = [1, 1]} : vector<8x25088xf32> to vector<8x128xf32>
    %359 = arith.addf %351, %358 : vector<8x128xf32>
    %360 = vector.extract_strided_slice %15 {offsets = [0, 21760], sizes = [8, 128], strides = [1, 1]} : vector<8x25088xf32> to vector<8x128xf32>
    %361 = arith.addf %353, %360 : vector<8x128xf32>
    %362 = vector.extract_strided_slice %15 {offsets = [0, 21888], sizes = [8, 128], strides = [1, 1]} : vector<8x25088xf32> to vector<8x128xf32>
    %363 = arith.addf %355, %362 : vector<8x128xf32>
    %364 = vector.extract_strided_slice %15 {offsets = [0, 22016], sizes = [8, 128], strides = [1, 1]} : vector<8x25088xf32> to vector<8x128xf32>
    %365 = arith.addf %357, %364 : vector<8x128xf32>
    %366 = vector.extract_strided_slice %15 {offsets = [0, 22144], sizes = [8, 128], strides = [1, 1]} : vector<8x25088xf32> to vector<8x128xf32>
    %367 = arith.addf %359, %366 : vector<8x128xf32>
    %368 = vector.extract_strided_slice %15 {offsets = [0, 22272], sizes = [8, 128], strides = [1, 1]} : vector<8x25088xf32> to vector<8x128xf32>
    %369 = arith.addf %361, %368 : vector<8x128xf32>
    %370 = vector.extract_strided_slice %15 {offsets = [0, 22400], sizes = [8, 128], strides = [1, 1]} : vector<8x25088xf32> to vector<8x128xf32>
    %371 = arith.addf %363, %370 : vector<8x128xf32>
    %372 = vector.extract_strided_slice %15 {offsets = [0, 22528], sizes = [8, 128], strides = [1, 1]} : vector<8x25088xf32> to vector<8x128xf32>
    %373 = arith.addf %365, %372 : vector<8x128xf32>
    %374 = vector.extract_strided_slice %15 {offsets = [0, 22656], sizes = [8, 128], strides = [1, 1]} : vector<8x25088xf32> to vector<8x128xf32>
    %375 = arith.addf %367, %374 : vector<8x128xf32>
    %376 = vector.extract_strided_slice %15 {offsets = [0, 22784], sizes = [8, 128], strides = [1, 1]} : vector<8x25088xf32> to vector<8x128xf32>
    %377 = arith.addf %369, %376 : vector<8x128xf32>
    %378 = vector.extract_strided_slice %15 {offsets = [0, 22912], sizes = [8, 128], strides = [1, 1]} : vector<8x25088xf32> to vector<8x128xf32>
    %379 = arith.addf %371, %378 : vector<8x128xf32>
    %380 = vector.extract_strided_slice %15 {offsets = [0, 23040], sizes = [8, 128], strides = [1, 1]} : vector<8x25088xf32> to vector<8x128xf32>
    %381 = arith.addf %373, %380 : vector<8x128xf32>
    %382 = vector.extract_strided_slice %15 {offsets = [0, 23168], sizes = [8, 128], strides = [1, 1]} : vector<8x25088xf32> to vector<8x128xf32>
    %383 = arith.addf %375, %382 : vector<8x128xf32>
    %384 = vector.extract_strided_slice %15 {offsets = [0, 23296], sizes = [8, 128], strides = [1, 1]} : vector<8x25088xf32> to vector<8x128xf32>
    %385 = arith.addf %377, %384 : vector<8x128xf32>
    %386 = vector.extract_strided_slice %15 {offsets = [0, 23424], sizes = [8, 128], strides = [1, 1]} : vector<8x25088xf32> to vector<8x128xf32>
    %387 = arith.addf %379, %386 : vector<8x128xf32>
    %388 = vector.extract_strided_slice %15 {offsets = [0, 23552], sizes = [8, 128], strides = [1, 1]} : vector<8x25088xf32> to vector<8x128xf32>
    %389 = arith.addf %381, %388 : vector<8x128xf32>
    %390 = vector.extract_strided_slice %15 {offsets = [0, 23680], sizes = [8, 128], strides = [1, 1]} : vector<8x25088xf32> to vector<8x128xf32>
    %391 = arith.addf %383, %390 : vector<8x128xf32>
    %392 = vector.extract_strided_slice %15 {offsets = [0, 23808], sizes = [8, 128], strides = [1, 1]} : vector<8x25088xf32> to vector<8x128xf32>
    %393 = arith.addf %385, %392 : vector<8x128xf32>
    %394 = vector.extract_strided_slice %15 {offsets = [0, 23936], sizes = [8, 128], strides = [1, 1]} : vector<8x25088xf32> to vector<8x128xf32>
    %395 = arith.addf %387, %394 : vector<8x128xf32>
    %396 = vector.extract_strided_slice %15 {offsets = [0, 24064], sizes = [8, 128], strides = [1, 1]} : vector<8x25088xf32> to vector<8x128xf32>
    %397 = arith.addf %389, %396 : vector<8x128xf32>
    %398 = vector.extract_strided_slice %15 {offsets = [0, 24192], sizes = [8, 128], strides = [1, 1]} : vector<8x25088xf32> to vector<8x128xf32>
    %399 = arith.addf %391, %398 : vector<8x128xf32>
    %400 = vector.extract_strided_slice %15 {offsets = [0, 24320], sizes = [8, 128], strides = [1, 1]} : vector<8x25088xf32> to vector<8x128xf32>
    %401 = arith.addf %393, %400 : vector<8x128xf32>
    %402 = vector.extract_strided_slice %15 {offsets = [0, 24448], sizes = [8, 128], strides = [1, 1]} : vector<8x25088xf32> to vector<8x128xf32>
    %403 = arith.addf %395, %402 : vector<8x128xf32>
    %404 = vector.extract_strided_slice %15 {offsets = [0, 24576], sizes = [8, 128], strides = [1, 1]} : vector<8x25088xf32> to vector<8x128xf32>
    %405 = arith.addf %397, %404 : vector<8x128xf32>
    %406 = vector.extract_strided_slice %15 {offsets = [0, 24704], sizes = [8, 128], strides = [1, 1]} : vector<8x25088xf32> to vector<8x128xf32>
    %407 = arith.addf %399, %406 : vector<8x128xf32>
    %408 = vector.extract_strided_slice %15 {offsets = [0, 24832], sizes = [8, 128], strides = [1, 1]} : vector<8x25088xf32> to vector<8x128xf32>
    %409 = arith.addf %401, %408 : vector<8x128xf32>
    %410 = vector.extract_strided_slice %15 {offsets = [0, 24960], sizes = [8, 128], strides = [1, 1]} : vector<8x25088xf32> to vector<8x128xf32>
    %411 = arith.addf %403, %410 : vector<8x128xf32>
    %412 = arith.addf %405, %407 : vector<8x128xf32>
    %413 = arith.addf %409, %411 : vector<8x128xf32>
    %414 = arith.addf %412, %413 : vector<8x128xf32>
    %cst_14 = arith.constant dense<0.000000e+00> : vector<128xf32>
    %415 = vector.multi_reduction <add>, %414, %cst_14 [0] : vector<8x128xf32> to vector<128xf32>
    %416 = vector.shape_cast %415 : vector<128xf32> to vector<1x128xf32>
    %cst_15 = arith.constant 6.37755089E-4 : f32
    %417 = vector.broadcast %cst_15 : f32 to vector<1x128xf32>
    %418 = arith.mulf %416, %417 : vector<1x128xf32>
    %c0_16 = arith.constant 0 : index
    %c0_17 = arith.constant 0 : index
    %419 = vector.load %arg5[%c0_16, %c0_17] : memref<1x128xf32, #tpu.memory_space<vmem>>, vector<1x128xf32>
    tpu.vector_store %arg5[%c0_16, %c0_17], %418 {strides = array<i32>} : memref<1x128xf32, #tpu.memory_space<vmem>>, vector<1x128xf32>,
    return
  }
  func.func @transform_0(%arg0: i32) -> (i32, i32) {
    %c0_i32 = arith.constant 0 : i32
    %c0_i32_0 = arith.constant 0 : i32
    return %c0_i32, %arg0 : i32, i32
  }
  func.func @transform_1(%arg0: i32) -> (i32, i32) {
    %c0_i32 = arith.constant 0 : i32
    %c0_i32_0 = arith.constant 0 : i32
    return %c0_i32, %arg0 : i32, i32
  }
  func.func @transform_2(%arg0: i32) -> (i32, i32) {
    %c0_i32 = arith.constant 0 : i32
    %c0_i32_0 = arith.constant 0 : i32
    %c0_i32_1 = arith.constant 0 : i32
    return %c0_i32, %c0_i32_0 : i32, i32
  }
  func.func @transform_3(%arg0: i32) -> (i32, i32) {
    %c0_i32 = arith.constant 0 : i32
    %c0_i32_0 = arith.constant 0 : i32
    %c0_i32_1 = arith.constant 0 : i32
    return %c0_i32, %c0_i32_0 : i32, i32
  }
  func.func @transform_4(%arg0: i32) -> (i32, i32) {
    %c0_i32 = arith.constant 0 : i32
    %c0_i32_0 = arith.constant 0 : i32
    return %c0_i32, %arg0 : i32, i32
  }
}

</mosaic_0001>

<bundles_post_ra>
// kernel: tpu_custom_call.1
= control target key start
LH: loop header
LB: loop body
LE: loop exit
PB: predicated region body
PF: predicated region fallthrough
CT: control target
= control target key end

     0   :  { %s21422_s0 = inlined_call_operand.hbm [shape: f32[32,50176], index: 0, kind: input, shape index: {}]   ;;  %s21423_s1 = inlined_call_operand.hbm [shape: f32[32,50176], index: 1, kind: input, shape index: {}]   ;;  %s21424_s2 = inlined_call_operand.hbm [shape: f32[8,32], index: 2, kind: input, shape index: {}]   ;;  %s21425_s3 = inlined_call_operand.vmem [shape: f32[8,1], index: 3, kind: input, shape index: {}]   ;;  %s21426_s4 = inlined_call_operand.hbm [shape: f32[1,256], index: 4, kind: output, shape index: {}]  }
   0x1   :  { %21474 = sst [smem:[#allocation170_spill]] %s21422_s0 }
   0x2   :  { %21475 = sst [smem:[#allocation171_spill]] %s21424_s2 }
   0x3   :  { %9 = vsyncpa [#allocation3], 0 }
   0x4   :  { %11 = vsyncpa [#allocation3 + $0x1], 0 }
   0x5   :  { %12 = vsyncpa [#allocation6], 0 }
   0x6   :  { %14 = vsyncpa [#allocation6 + $0x1], 0 }
   0x7   :  { %15 = vsyncpa [#allocation4], 0 }
   0x8   :  { %17 = vsyncpa [#allocation4 + $0x1], 0  ;;  %s17344_s15 = smov 0   ;;  %s17346_s16 = smov 0  }
   0x9   :  { %s17348_s17 = smov 0   ;;  %s17350_s18 = smov 0  }
   0xa LB: > { %s17365_s19 = sadd.s32 4294967295, %s17308_s18   ;;  %s16866_s20 = sadd.s32 4294967294, %s17308_s18   ;;  %s17308_s18 = sphi %s17350_s18, %s21996_s18   ;;  %s17304_s17 = sphi %s17348_s17, %s21995_s17   ;;  %s17300_s16 = sphi %s17346_s16, %s21994_s16   ;;  %s17296_s15 = sphi %s17344_s15, %s21993_s15  }
   0xb   : > { %s17369_s21 = sadd.s32 1, %s17308_s18   ;;  %s30_s22 = sadd.s32 1, %s17304_s17 }
   0xc   : > { %s27_s23 = ssub.s32 %s17308_s18, %s17369_s21  ;;  %p37_p0 = scmp.ne.s32.totalorder %s17304_s17, %s17300_s16 }
   0xd   : > { %p28_p1 = scmp.eq.s32.totalorder %s27_s23, 0  ;;  %p38_p2 = scmp.eq.s32.totalorder %s17308_s18, 0 }
   0xe   : > { %p43_p3 = scmp.ne.s32.totalorder %s17300_s16, %s17296_s15  ;;  %p21427_p4 = scmp.eq.s32.totalorder %s17365_s19, 0 }
   0xf   : > { %s17381_s24 = scalar_select %p28_p1, %s17304_s17, %s30_s22  }
  0x10   : > { %p17383_p5 = por %p38_p2, %p37_p0  ;;  %p17389_p6 = por %p21427_p4, %p43_p3 }
  0x11   : > { %p135_p7 = scmp.eq.s32.totalorder %s17365_s19, 1  ;;  %p141_p8 = scmp.eq.s32.totalorder %s16866_s20, 1 }
  0x12   : > { %s21477_s26 = scalar_select %p17389_p6, 1, 0 }
  0x13   : > { %p16867_p9 = scmp.ge.s32.totalorder %s17308_s18, 1  ;;  %p148_p10 = scmp.lt.s32.totalorder %s17308_s18, 3 }
  0x14   : > { %p17396_p11 = por %p135_p7, %p37_p0  ;;  %p17400_p12 = por %p141_p8, %p43_p3 }
  0x15   : > { %p17404_p13 = pnand %p16867_p9, %p148_p10  ;;  %s17310_s30 = smov [#allocation7]  }
  0x16   : > { %s21478_s27 = scalar_select %p17396_p11, 1, 0 }
  0x17   : > { %s21479_s28 = scalar_select %p17400_p12, 1, 0 }
  0x18   : > { %p17088_p2 = pneg %p17404_p13  ;;  %s161_s5 = sshll.u32 %s17310_s30, 4  ;;  %s162_s5 = int_to_ptr.vmem [resolvable:$true] %s161_s5 }
  0x19   : > { %p17104_p4 = scmp.lt.s32.totalorder %s17308_s18, 2  ;;  %p21481_p0 = scmp.eq.s32.totalorder %s17365_s19, 0 }
  0x1a   : > { %s175_s7 = sand.u32 1, %s17304_s17   ;;  %s17165_s10 = scalar_lea.vmem %s162_s5, 128 }
  0x1b   : > { %p17414_p7 = pnand %p17088_p2, %p21481_p0  ;;  %p17421_p3 = pnand %p17104_p4, %p17383_p5 }
  0x1c   : > { %s17425_s9 = smul.u32 6272, %s175_s7  ;;  %p17166_p9 = scmp.ne.s32.totalorder %s162_s5, %s17165_s10 }
  0x1d   : > { %p17156_p8 = pneg %p17414_p7  ;;  %p17173_p12 = scmp.lt.s32.totalorder %s162_s5, %s162_s5 }
  0x1e   : > { %p17174_p2 = scmp.lt.s32.totalorder %s17165_s10, %s17165_s10 }
  0x1f   : > { %p17168_p10 = pnand %p17166_p9, %p17156_p8 }
  0x20   : > { %p17175_p0 = por %p17174_p2, %p17173_p12 }
  0x21   : > { %p17169_p1 = pneg %p17168_p10 }
  0x23   : > { %p17176_p11 = pnand %p17175_p0, %p17169_p1 }
  0x25   : > { %17179 = shalt.err (!%p17176_p11)
}
  0x26   : > { %s21484_s2 = sld [smem:[#allocation171_spill]]  ;;  %s17073_s13 = smul.u32 25088, %s17308_s18 }
  0x27   : > { %s179_s14 = scalar_lea.vmem [#allocation2], %s17425_s9  ;;  %s21485_s0 = sld [smem:[#allocation170_spill]] }
  0x28   : > { %s186_s20 = sshll.u32 %s179_s14, 4  ;;  %s17445_s30 = scalar_lea.sflag [#allocation3], %s175_s7  ;;  %s17436_s20 = int_to_ptr.vmem [resolvable:$true] %s186_s20 }
  0x29   : > { %p17182_p5 = pneg %p17421_p3 }
  0x2c   : > { %17091 = dma.hbm_to_vmem [thread:$0]  (!%p17414_p7), %s21484_s2, 128, %s162_s5, [#allocation6]  }
  0x2d   : > { %s17443_s25 = scalar_lea.hbm %s21485_s0, %s17073_s13  ;;  %s17185_s11 = scalar_lea.hbm %s21485_s0, 200704 }
  0x2e   : > { %s17180_s6 = scalar_lea.hbm %s17443_s25, 100352  ;;  %p17186_p1 = scmp.lt.s32.totalorder %s17443_s25, %s21485_s0 }
  0x2f   : > { %p17181_p4 = scmp.ne.s32.totalorder %s17443_s25, %s17180_s6  ;;  %p17187_p7 = scmp.lt.s32.totalorder %s17185_s11, %s17180_s6 }
  0x31   : > { %p17183_p11 = pnand %p17182_p5, %p17181_p4  ;;  %p17188_p8 = por %p17187_p7, %p17186_p1 }
  0x33   : > { %p17184_p12 = pneg %p17183_p11 }
  0x35   : > { %p17189_p9 = pnand %p17188_p8, %p17184_p12 }
  0x37   : > { %17192 = shalt.err (!%p17189_p9)
}
  0x38   : > { %s17193_s7 = scalar_lea.vmem %s17436_s20, 100352  ;;  %s17311_s22 = smov [#allocation2]  }
  0x39   : > { %p17194_p10 = scmp.ne.s32.totalorder %s17436_s20, %s17193_s7  ;;  %s17198_s23 = sshll.u32 %s17311_s22, 4  ;;  %s17199_s23 = int_to_ptr.vmem [resolvable:$false] %s17198_s23 }
  0x3a   : > { %s17200_s5 = scalar_lea.vmem %s17199_s23, 200704  ;;  %p17201_p4 = scmp.lt.s32.totalorder %s17436_s20, %s17199_s23 }
  0x3b   : > { %p17196_p2 = pnand %p17194_p10, %p17182_p5  ;;  %p17202_p11 = scmp.lt.s32.totalorder %s17200_s5, %s17193_s7 }
  0x3d   : > { %p17197_p0 = pneg %p17196_p2  ;;  %p17203_p6 = por %p17202_p11, %p17201_p4 }
  0x3f   : > { %p17204_p1 = pnand %p17203_p6, %p17197_p0 }
  0x41   : > { %17207 = shalt.err (!%p17204_p1)
}
  0x42   : > { %s17312_s6 = smov 50176   ;;  %s17313_s10 = smov 25088  }
  0x43   : > { %s17314_s11 = smov 1568   ;;  %s196_s12 = sand.u32 1, %s17308_s18  }
  0x44   : > { %17095 = dma.hbm_to_vmem [thread:$0]  (!%p17421_p3), %s17443_s25, 100352, %s17436_s20, %s17445_s30, %s17312_s6, %s17313_s10, %s17314_s11  }
  0x45   : > { %s17481_s22 = scalar_lea.hbm %s21423_s1, %s17073_s13  ;;  %s200_s23 = scalar_lea.vmem [#allocation5], %s17425_s9 }
  0x46   : > { %s207_s5 = sshll.u32 %s200_s23, 4  ;;  %s197_s0 = scalar_lea.sflag [#allocation6], %s196_s12  ;;  %s17484_s5 = int_to_ptr.vmem [resolvable:$true] %s207_s5 }
  0x47   : > { %s17208_s2 = scalar_lea.hbm %s17481_s22, 100352  ;;  %s17213_s30 = scalar_lea.hbm %s21423_s1, 200704 }
  0x48   : > { %p17209_p6 = scmp.ne.s32.totalorder %s17481_s22, %s17208_s2  ;;  %p17214_p8 = scmp.lt.s32.totalorder %s17481_s22, %s21423_s1 }
  0x49   : > { %p17215_p9 = scmp.lt.s32.totalorder %s17213_s30, %s17208_s2 }
  0x4a   : > { %p17211_p12 = pnand %p17209_p6, %p17182_p5 }
  0x4b   : > { %p17216_p10 = por %p17215_p9, %p17214_p8 }
  0x4c   : > { %p17212_p7 = pneg %p17211_p12 }
  0x4e   : > { %p17217_p2 = pnand %p17216_p10, %p17212_p7 }
  0x50   : > { %17220 = shalt.err (!%p17217_p2)
}
  0x51   : > { %s17221_s9 = scalar_lea.vmem %s17484_s5, 100352  ;;  %s17315_s12 = smov [#allocation5]  }
  0x52   : > { %p17222_p0 = scmp.ne.s32.totalorder %s17484_s5, %s17221_s9  ;;  %s17226_s7 = sshll.u32 %s17315_s12, 4  ;;  %s17227_s7 = int_to_ptr.vmem [resolvable:$false] %s17226_s7 }
  0x53   : > { %s17228_s23 = scalar_lea.vmem %s17227_s7, 200704  ;;  %p17229_p1 = scmp.lt.s32.totalorder %s17484_s5, %s17227_s7 }
  0x54   : > { %p17224_p4 = pnand %p17222_p0, %p17182_p5  ;;  %p17230_p6 = scmp.lt.s32.totalorder %s17228_s23, %s17221_s9 }
  0x56   : > { %p17225_p11 = pneg %p17224_p4  ;;  %p17231_p12 = por %p17230_p6, %p17229_p1 }
  0x58   : > { %p17232_p8 = pnand %p17231_p12, %p17225_p11 }
  0x5a   : > { %17235 = shalt.err (!%p17232_p8)
}
  0x5b   : > { %17098 = dma.hbm_to_vmem [thread:$0]  (!%p17421_p3), %s17481_s22, 100352, %s17484_s5, %s197_s0, %s17312_s6, %s17313_s10, %s17314_s11  }
  0x5c   : > { %219 = sbr.rel (%p17404_p13) target bundleno = 1325 (0x52d), region = 36 }
  0x61   : > { %s17514_s2 = sand.u32 1, %s17300_s16   ;;  %p21486_p5 = scmp.ne.s32.totalorder %s21477_s26, 0 }
  0x62   : > { %s17077_s20 = smul.u32 6272, %s17514_s2  ;;  %s222_s25 = scalar_lea.sflag [#allocation3], %s17514_s2 }
  0x64   : > { %s17518_s30 = scalar_lea.vmem [#allocation2], %s17077_s20 }
  0x65   : > { %17279 = dma.done.wait (%p21486_p5), %s222_s25, 100352  }
  0x66   : > { %17281 = vsyncadd (%p21486_p5), %s222_s25, 4294866944  ;;  %s230_s0 = sand.u32 1, %s17365_s19   ;;  %s17525_s8 = scalar_lea.vmem [#allocation5], %s17077_s20 }
  0x67   : > { %s231_s29 = scalar_lea.sflag [#allocation6], %s230_s0 }
  0x68   : > { %17283 = dma.done.wait (%p21486_p5), %s231_s29, 100352  }
  0x69   : > { %17285 = vsyncadd (%p21486_p5), %s231_s29, 4294866944  ;;  %p21487_p13 = scmp.eq.s32.totalorder %s17365_s19, 0 }
  0x6b   : > { %17287 = dma.done.wait (%p21487_p13), [#allocation6], 128   ;;  %p21488_p3 = pmov %p21487_p13 }
  0x6c   : > { %v21430_v0 = vmov 0.0   ;;  %v17317_v1 = vmov 0   ;;  %v860_v2 = vld [vmem:[%s17518_s30 + $0x1268] sm:$0xff]  ;;  %v862_v3 = vld [vmem:[%s17518_s30 + $0x1278] sm:$0xff]  ;;  %v859_v4 = vld [vmem:[%s17518_s30 + $0x1260] sm:$0xff]  ;;  %vm1060_vm0 = vcmask 261120  }
  0x6d   : > { %17289 = vsyncadd (%p21488_p3), [#allocation6], 4294967168  ;;  %1128 = vmatprep.mubr.f32.mxu0 %v21430_v0  ;;  %1199 = vmatprep.mubr.f32.mxu1 %v21430_v0  ;;  %v861_v5 = vld [vmem:[%s17518_s30 + $0x1270] sm:$0xff]  ;;  %v664_v6 = vld [vmem:[%s17518_s30 + $0xc48] sm:$0xff]  ;;  %s17070_s10 = sshll.u32 %s17365_s19, 4  ;;  %s266_s11 = scalar_lea.vmem [#allocation8], %s17514_s2 }
  0x6e   : > { %17145 = vset.pattern.permute.xlu0 %v17317_v1  ;;  %1088 = vmatprep.subr.mxu0 %v860_v2  ;;  %v666_v7 = vld [vmem:[%s17518_s30 + $0xc58] sm:$0xff]  ;;  %v663_v8 = vld [vmem:[%s17518_s30 + $0xc40] sm:$0xff]  ;;  %v665_v9 = vld [vmem:[%s17518_s30 + $0xc50] sm:$0xff]  ;;  %s16768_s22 = sshll.u32 %s266_s11, 4  ;;  %s16766_s14 = scalar_lea.hbm %s21426_s4, %s17070_s10  ;;  %s16769_s22 = int_to_ptr.vmem [resolvable:$true] %s16768_s22 }
  0x6f   : > { %1159 = vmatprep.subr.mxu1 %v862_v3  ;;  %1089 = vmatpush1.msra.mxu0 %v859_v4  ;;  %v468_v10 = vld [vmem:[%s17518_s30 + $0x628] sm:$0xff]  ;;  %v470_v11 = vld [vmem:[%s17518_s30 + $0x638] sm:$0xff]  ;;  %v467_v12 = vld [vmem:[%s17518_s30 + $0x620] sm:$0xff]  ;;  %s16756_s9 = scalar_lea.sflag [#allocation4], %s17514_s2  ;;  %s17236_s12 = scalar_lea.vmem %s16769_s22, 16 }
  0x70   : > { %1160 = vmatpush1.msra.mxu1 %v861_v5  ;;  %1090 = vmatprep.subr.mxu0 %v664_v6  ;;  %v469_v13 = vld [vmem:[%s17518_s30 + $0x630] sm:$0xff]  ;;  %v272_v14 = vld [vmem:[%s17518_s30 + $0x8] sm:$0xff]  ;;  %v274_v15 = vld [vmem:[%s17518_s30 + $0x18] sm:$0xff]  ;;  %p17237_p7 = scmp.ne.s32.totalorder %s16769_s22, %s17236_s12  ;;  %p21990_p9 = scmp.ne.s32.totalorder %s21478_s27, 0 }
  0x71   : > { %1161 = vmatprep.subr.mxu1 %v666_v7  ;;  %1091 = vmatpush1.msra.mxu0 %v663_v8  ;;  %v271_v16 = vld [vmem:[%s17518_s30] sm:$0xff]  ;;  %v273_v17 = vld [vmem:[%s17518_s30 + $0x10] sm:$0xff]  ;;  %v864_v19 = vld [vmem:[%s17518_s30 + $0x1288] sm:$0xff]  ;;  %s17318_s7 = smov [#allocation8]  }
  0x72   : > { %1162 = vmatpush1.msra.mxu1 %v665_v9  ;;  %1092 = vmatprep.subr.mxu0 %v468_v10  ;;  %v17553_v18 = vld [vmem:[#allocation7] sm:$0xff]  ;;  %v866_v20 = vld [vmem:[%s17518_s30 + $0x1298] sm:$0xff]  ;;  %v865_v22 = vld [vmem:[%s17518_s30 + $0x1290] sm:$0xff]  ;;  %p17238_p10 = pnand %p17237_p7, %p21990_p9  ;;  %s17240_s23 = sshll.u32 %s17318_s7, 4  ;;  %s17241_s23 = int_to_ptr.vmem [resolvable:$false] %s17240_s23 }
  0x73   : > { %1163 = vmatprep.subr.mxu1 %v470_v11  ;;  %1093 = vmatpush1.msra.mxu0 %v467_v12  ;;  %v863_v21 = vld [vmem:[%s17518_s30 + $0x1280] sm:$0xff]  ;;  %v668_v23 = vld [vmem:[%s17518_s30 + $0xc68] sm:$0xff]  ;;  %v670_v24 = vld [vmem:[%s17518_s30 + $0xc78] sm:$0xff]  ;;  %s17242_s19 = scalar_lea.vmem %s17241_s23, 32  ;;  %p17243_p0 = scmp.lt.s32.totalorder %s16769_s22, %s17241_s23 }
  0x74   : > { %1164 = vmatpush1.msra.mxu1 %v469_v13  ;;  %1094 = vmatprep.subr.mxu0 %v272_v14  ;;  %v667_v25 = vld [vmem:[%s17518_s30 + $0xc60] sm:$0xff]  ;;  %v669_v26 = vld [vmem:[%s17518_s30 + $0xc70] sm:$0xff]  ;;  %v472_v27 = vld [vmem:[%s17518_s30 + $0x648] sm:$0xff]  ;;  %p17239_p2 = pneg %p17238_p10  ;;  %p17244_p4 = scmp.lt.s32.totalorder %s17242_s19, %s17236_s12 }
  0x75   : > { %1165 = vmatprep.subr.mxu1 %v274_v15  ;;  %1095 = vmatpush1.msra.mxu0 %v271_v16  ;;  %v474_v28 = vld [vmem:[%s17518_s30 + $0x658] sm:$0xff]  ;;  %v471_v29 = vld [vmem:[%s17518_s30 + $0x640] sm:$0xff]  ;;  %v473_v30 = vld [vmem:[%s17518_s30 + $0x650] sm:$0xff] }
  0x76   : > { %1166 = vmatpush1.msra.mxu1 %v273_v17  ;;  %16874 = vmatmul.mubr.msk.f32.vlgmr.msra.gmra.mxu0 %vm1060_vm0, %v17553_v18  ;;  %v276_v31 = vld [vmem:[%s17518_s30 + $0x28] sm:$0xff]  ;;  %v278_v32 = vld [vmem:[%s17518_s30 + $0x38] sm:$0xff]  ;;  %v275_v33 = vld [vmem:[%s17518_s30 + $0x20] sm:$0xff]  ;;  %p17245_p11 = por %p17244_p4, %p17243_p0 }
  0x77   : > { %16875 = vmatmul.mubr.msk.f32.vlgmr.msra.gmra.mxu1 %vm1060_vm0, %v17553_v18  ;;  %1230 = vmatprep.subr.mxu0 %v864_v19  ;;  %v277_v34 = vld [vmem:[%s17518_s30 + $0x30] sm:$0xff]  ;;  %v868_v35 = vld [vmem:[%s17518_s30 + $0x12a8] sm:$0xff]  ;;  %v870_v36 = vld [vmem:[%s17518_s30 + $0x12b8] sm:$0xff] }
  0x78   : > { %1301 = vmatprep.subr.mxu1 %v866_v20  ;;  %1231 = vmatpush1.msra.mxu0 %v863_v21  ;;  %v867_v37 = vld [vmem:[%s17518_s30 + $0x12a0] sm:$0xff]  ;;  %v869_v38 = vld [vmem:[%s17518_s30 + $0x12b0] sm:$0xff]  ;;  %v672_v39 = vld [vmem:[%s17518_s30 + $0xc88] sm:$0xff]  ;;  %p17246_p1 = pnand %p17245_p11, %p17239_p2 }
  0x79   : > { %1302 = vmatpush1.msra.mxu1 %v865_v22  ;;  %1232 = vmatprep.subr.mxu0 %v668_v23  ;;  %v674_v40 = vld [vmem:[%s17518_s30 + $0xc98] sm:$0xff]  ;;  %v671_v41 = vld [vmem:[%s17518_s30 + $0xc80] sm:$0xff]  ;;  %v673_v42 = vld [vmem:[%s17518_s30 + $0xc90] sm:$0xff] }
  0x7a   : > { %1303 = vmatprep.subr.mxu1 %v670_v24  ;;  %1233 = vmatpush1.msra.mxu0 %v667_v25  ;;  %v476_v43 = vld [vmem:[%s17518_s30 + $0x668] sm:$0xff]  ;;  %v478_v44 = vld [vmem:[%s17518_s30 + $0x678] sm:$0xff]  ;;  %v475_v45 = vld [vmem:[%s17518_s30 + $0x660] sm:$0xff] }
  0x7b   : > { %1304 = vmatpush1.msra.mxu1 %v669_v26  ;;  %1234 = vmatprep.subr.mxu0 %v472_v27  ;;  %v477_v46 = vld [vmem:[%s17518_s30 + $0x670] sm:$0xff]  ;;  %v280_v47 = vld [vmem:[%s17518_s30 + $0x48] sm:$0xff]  ;;  %v282_v48 = vld [vmem:[%s17518_s30 + $0x58] sm:$0xff] }
  0x7c   : > { %1305 = vmatprep.subr.mxu1 %v474_v28  ;;  %1235 = vmatpush1.msra.mxu0 %v471_v29  ;;  %v279_v49 = vld [vmem:[%s17518_s30 + $0x40] sm:$0xff]  ;;  %v281_v50 = vld [vmem:[%s17518_s30 + $0x50] sm:$0xff]  ;;  %v872_v51 = vld [vmem:[%s17518_s30 + $0x12c8] sm:$0xff] }
  0x7d   : > { %1306 = vmatpush1.msra.mxu1 %v473_v30  ;;  %1236 = vmatprep.subr.mxu0 %v276_v31  ;;  %v874_v52 = vld [vmem:[%s17518_s30 + $0x12d8] sm:$0xff]  ;;  %v871_v53 = vld [vmem:[%s17518_s30 + $0x12c0] sm:$0xff]  ;;  %v873_v54 = vld [vmem:[%s17518_s30 + $0x12d0] sm:$0xff] }
  0x7e   : > { %1307 = vmatprep.subr.mxu1 %v278_v32  ;;  %1237 = vmatpush1.msra.mxu0 %v275_v33  ;;  %v676_v55 = vld [vmem:[%s17518_s30 + $0xca8] sm:$0xff]  ;;  %v678_v56 = vld [vmem:[%s17518_s30 + $0xcb8] sm:$0xff]  ;;  %v675_v57 = vld [vmem:[%s17518_s30 + $0xca0] sm:$0xff] }
  0x7f   : > { %1270 = vmatprep.mubr.f32.mxu0 %v21430_v0  ;;  %1308 = vmatpush1.msra.mxu1 %v277_v34  ;;  %v677_v58 = vld [vmem:[%s17518_s30 + $0xcb0] sm:$0xff]  ;;  %v480_v59 = vld [vmem:[%s17518_s30 + $0x688] sm:$0xff]  ;;  %v482_v60 = vld [vmem:[%s17518_s30 + $0x698] sm:$0xff] }
  0x80   : > { %1341 = vmatprep.mubr.f32.mxu1 %v21430_v0  ;;  %16876 = vmatmul.mubr.msk.f32.vlgmr.msra.gmra.mxu0 %vm1060_vm0, %v17553_v18  ;;  %v479_v61 = vld [vmem:[%s17518_s30 + $0x680] sm:$0xff]  ;;  %v481_v62 = vld [vmem:[%s17518_s30 + $0x690] sm:$0xff]  ;;  %v284_v63 = vld [vmem:[%s17518_s30 + $0x68] sm:$0xff] }
  0x81   : > { %16877 = vmatmul.mubr.msk.f32.vlgmr.msra.gmra.mxu1 %vm1060_vm0, %v17553_v18  ;;  %1372 = vmatprep.subr.mxu0 %v868_v35  ;;  %v286_v1 = vld [vmem:[%s17518_s30 + $0x78] sm:$0xff]  ;;  %v283_v2 = vld [vmem:[%s17518_s30 + $0x60] sm:$0xff]  ;;  %v285_v3 = vld [vmem:[%s17518_s30 + $0x70] sm:$0xff] }
  0x82   : > { %1443 = vmatprep.subr.mxu1 %v870_v36  ;;  %1373 = vmatpush1.msra.mxu0 %v867_v37  ;;  %v876_v4 = vld [vmem:[%s17518_s30 + $0x12e8] sm:$0xff]  ;;  %v878_v5 = vld [vmem:[%s17518_s30 + $0x12f8] sm:$0xff]  ;;  %v875_v6 = vld [vmem:[%s17518_s30 + $0x12e0] sm:$0xff] }
  0x83   : > { %1444 = vmatpush1.msra.mxu1 %v869_v38  ;;  %1374 = vmatprep.subr.mxu0 %v672_v39  ;;  %v877_v7 = vld [vmem:[%s17518_s30 + $0x12f0] sm:$0xff]  ;;  %v680_v8 = vld [vmem:[%s17518_s30 + $0xcc8] sm:$0xff]  ;;  %v682_v9 = vld [vmem:[%s17518_s30 + $0xcd8] sm:$0xff] }
  0x84   : > { %1445 = vmatprep.subr.mxu1 %v674_v40  ;;  %1375 = vmatpush1.msra.mxu0 %v671_v41  ;;  %v679_v10 = vld [vmem:[%s17518_s30 + $0xcc0] sm:$0xff]  ;;  %v681_v11 = vld [vmem:[%s17518_s30 + $0xcd0] sm:$0xff]  ;;  %v484_v12 = vld [vmem:[%s17518_s30 + $0x6a8] sm:$0xff] }
  0x85   : > { %1446 = vmatpush1.msra.mxu1 %v673_v42  ;;  %1376 = vmatprep.subr.mxu0 %v476_v43  ;;  %v486_v13 = vld [vmem:[%s17518_s30 + $0x6b8] sm:$0xff]  ;;  %v483_v14 = vld [vmem:[%s17518_s30 + $0x6a0] sm:$0xff]  ;;  %v485_v15 = vld [vmem:[%s17518_s30 + $0x6b0] sm:$0xff] }
  0x86   : > { %1447 = vmatprep.subr.mxu1 %v478_v44  ;;  %1377 = vmatpush1.msra.mxu0 %v475_v45  ;;  %v288_v16 = vld [vmem:[%s17518_s30 + $0x88] sm:$0xff]  ;;  %v290_v17 = vld [vmem:[%s17518_s30 + $0x98] sm:$0xff]  ;;  %v287_v19 = vld [vmem:[%s17518_s30 + $0x80] sm:$0xff] }
  0x87   : > { %1448 = vmatpush1.msra.mxu1 %v477_v46  ;;  %1378 = vmatprep.subr.mxu0 %v280_v47  ;;  %v289_v20 = vld [vmem:[%s17518_s30 + $0x90] sm:$0xff]  ;;  %v880_v21 = vld [vmem:[%s17518_s30 + $0x1308] sm:$0xff]  ;;  %v882_v22 = vld [vmem:[%s17518_s30 + $0x1318] sm:$0xff] }
  0x88   : > { %1449 = vmatprep.subr.mxu1 %v282_v48  ;;  %1379 = vmatpush1.msra.mxu0 %v279_v49  ;;  %v879_v23 = vld [vmem:[%s17518_s30 + $0x1300] sm:$0xff]  ;;  %v881_v24 = vld [vmem:[%s17518_s30 + $0x1310] sm:$0xff]  ;;  %v684_v25 = vld [vmem:[%s17518_s30 + $0xce8] sm:$0xff] }
  0x89   : > { %1412 = vmatprep.mubr.f32.mxu0 %v21430_v0  ;;  %1450 = vmatpush1.msra.mxu1 %v281_v50  ;;  %v686_v26 = vld [vmem:[%s17518_s30 + $0xcf8] sm:$0xff]  ;;  %v683_v27 = vld [vmem:[%s17518_s30 + $0xce0] sm:$0xff]  ;;  %v685_v28 = vld [vmem:[%s17518_s30 + $0xcf0] sm:$0xff] }
  0x8a   : > { %1483 = vmatprep.mubr.f32.mxu1 %v21430_v0  ;;  %16878 = vmatmul.mubr.msk.f32.vlgmr.msra.gmra.mxu0 %vm1060_vm0, %v17553_v18  ;;  %v488_v29 = vld [vmem:[%s17518_s30 + $0x6c8] sm:$0xff]  ;;  %v490_v30 = vld [vmem:[%s17518_s30 + $0x6d8] sm:$0xff]  ;;  %v487_v31 = vld [vmem:[%s17518_s30 + $0x6c0] sm:$0xff] }
  0x8b   : > { %16879 = vmatmul.mubr.msk.f32.vlgmr.msra.gmra.mxu1 %vm1060_vm0, %v17553_v18  ;;  %1514 = vmatprep.subr.mxu0 %v872_v51  ;;  %v489_v32 = vld [vmem:[%s17518_s30 + $0x6d0] sm:$0xff]  ;;  %v292_v33 = vld [vmem:[%s17518_s30 + $0xa8] sm:$0xff]  ;;  %v294_v34 = vld [vmem:[%s17518_s30 + $0xb8] sm:$0xff] }
  0x8c   : > { %1585 = vmatprep.subr.mxu1 %v874_v52  ;;  %1515 = vmatpush1.msra.mxu0 %v871_v53  ;;  %v291_v35 = vld [vmem:[%s17518_s30 + $0xa0] sm:$0xff]  ;;  %v293_v36 = vld [vmem:[%s17518_s30 + $0xb0] sm:$0xff]  ;;  %v884_v37 = vld [vmem:[%s17518_s30 + $0x1328] sm:$0xff] }
  0x8d   : > { %1586 = vmatpush1.msra.mxu1 %v873_v54  ;;  %1516 = vmatprep.subr.mxu0 %v676_v55  ;;  %v886_v38 = vld [vmem:[%s17518_s30 + $0x1338] sm:$0xff]  ;;  %v883_v39 = vld [vmem:[%s17518_s30 + $0x1320] sm:$0xff]  ;;  %v885_v40 = vld [vmem:[%s17518_s30 + $0x1330] sm:$0xff] }
  0x8e   : > { %1587 = vmatprep.subr.mxu1 %v678_v56  ;;  %1517 = vmatpush1.msra.mxu0 %v675_v57  ;;  %v688_v41 = vld [vmem:[%s17518_s30 + $0xd08] sm:$0xff]  ;;  %v690_v42 = vld [vmem:[%s17518_s30 + $0xd18] sm:$0xff]  ;;  %v687_v43 = vld [vmem:[%s17518_s30 + $0xd00] sm:$0xff] }
  0x8f   : > { %1588 = vmatpush1.msra.mxu1 %v677_v58  ;;  %1518 = vmatprep.subr.mxu0 %v480_v59  ;;  %v689_v44 = vld [vmem:[%s17518_s30 + $0xd10] sm:$0xff]  ;;  %v492_v45 = vld [vmem:[%s17518_s30 + $0x6e8] sm:$0xff]  ;;  %v494_v46 = vld [vmem:[%s17518_s30 + $0x6f8] sm:$0xff] }
  0x90   : > { %1589 = vmatprep.subr.mxu1 %v482_v60  ;;  %1519 = vmatpush1.msra.mxu0 %v479_v61  ;;  %v491_v47 = vld [vmem:[%s17518_s30 + $0x6e0] sm:$0xff]  ;;  %v493_v48 = vld [vmem:[%s17518_s30 + $0x6f0] sm:$0xff]  ;;  %v296_v49 = vld [vmem:[%s17518_s30 + $0xc8] sm:$0xff] }
  0x91   : > { %1590 = vmatpush1.msra.mxu1 %v481_v62  ;;  %1520 = vmatprep.subr.mxu0 %v284_v63  ;;  %v298_v50 = vld [vmem:[%s17518_s30 + $0xd8] sm:$0xff]  ;;  %v295_v51 = vld [vmem:[%s17518_s30 + $0xc0] sm:$0xff]  ;;  %v297_v52 = vld [vmem:[%s17518_s30 + $0xd0] sm:$0xff] }
  0x92   : > { %1591 = vmatprep.subr.mxu1 %v286_v1  ;;  %1521 = vmatpush1.msra.mxu0 %v283_v2  ;;  %v888_v53 = vld [vmem:[%s17518_s30 + $0x1348] sm:$0xff]  ;;  %v890_v54 = vld [vmem:[%s17518_s30 + $0x1358] sm:$0xff]  ;;  %v887_v55 = vld [vmem:[%s17518_s30 + $0x1340] sm:$0xff] }
  0x93   : > { %1554 = vmatprep.mubr.f32.mxu0 %v21430_v0  ;;  %1592 = vmatpush1.msra.mxu1 %v285_v3  ;;  %v889_v56 = vld [vmem:[%s17518_s30 + $0x1350] sm:$0xff]  ;;  %v692_v57 = vld [vmem:[%s17518_s30 + $0xd28] sm:$0xff]  ;;  %v694_v58 = vld [vmem:[%s17518_s30 + $0xd38] sm:$0xff] }
  0x94   : > { %1625 = vmatprep.mubr.f32.mxu1 %v21430_v0  ;;  %16880 = vmatmul.mubr.msk.f32.vlgmr.msra.gmra.mxu0 %vm1060_vm0, %v17553_v18  ;;  %v691_v59 = vld [vmem:[%s17518_s30 + $0xd20] sm:$0xff]  ;;  %v693_v60 = vld [vmem:[%s17518_s30 + $0xd30] sm:$0xff]  ;;  %v496_v61 = vld [vmem:[%s17518_s30 + $0x708] sm:$0xff] }
  0x95   : > { %16881 = vmatmul.mubr.msk.f32.vlgmr.msra.gmra.mxu1 %vm1060_vm0, %v17553_v18  ;;  %1656 = vmatprep.subr.mxu0 %v876_v4  ;;  %v498_v62 = vld [vmem:[%s17518_s30 + $0x718] sm:$0xff]  ;;  %v495_v63 = vld [vmem:[%s17518_s30 + $0x700] sm:$0xff]  ;;  %v497_v1 = vld [vmem:[%s17518_s30 + $0x710] sm:$0xff] }
  0x96   : > { %1727 = vmatprep.subr.mxu1 %v878_v5  ;;  %1657 = vmatpush1.msra.mxu0 %v875_v6  ;;  %v300_v2 = vld [vmem:[%s17518_s30 + $0xe8] sm:$0xff]  ;;  %v302_v3 = vld [vmem:[%s17518_s30 + $0xf8] sm:$0xff]  ;;  %v299_v4 = vld [vmem:[%s17518_s30 + $0xe0] sm:$0xff] }
  0x97   : > { %1728 = vmatpush1.msra.mxu1 %v877_v7  ;;  %1658 = vmatprep.subr.mxu0 %v680_v8  ;;  %v301_v5 = vld [vmem:[%s17518_s30 + $0xf0] sm:$0xff]  ;;  %v892_v6 = vld [vmem:[%s17518_s30 + $0x1368] sm:$0xff]  ;;  %v894_v7 = vld [vmem:[%s17518_s30 + $0x1378] sm:$0xff] }
  0x98   : > { %1729 = vmatprep.subr.mxu1 %v682_v9  ;;  %1659 = vmatpush1.msra.mxu0 %v679_v10  ;;  %v891_v8 = vld [vmem:[%s17518_s30 + $0x1360] sm:$0xff]  ;;  %v893_v9 = vld [vmem:[%s17518_s30 + $0x1370] sm:$0xff]  ;;  %v696_v10 = vld [vmem:[%s17518_s30 + $0xd48] sm:$0xff] }
  0x99   : > { %1730 = vmatpush1.msra.mxu1 %v681_v11  ;;  %1660 = vmatprep.subr.mxu0 %v484_v12  ;;  %v698_v11 = vld [vmem:[%s17518_s30 + $0xd58] sm:$0xff]  ;;  %v695_v12 = vld [vmem:[%s17518_s30 + $0xd40] sm:$0xff] }
  0x9a   : > { %1731 = vmatprep.subr.mxu1 %v486_v13  ;;  %1661 = vmatpush1.msra.mxu0 %v483_v14  ;;  %v697_v13 = vld [vmem:[%s17518_s30 + $0xd50] sm:$0xff]  ;;  %v500_v14 = vld [vmem:[%s17518_s30 + $0x728] sm:$0xff] }
  0x9b   : > { %1732 = vmatpush1.msra.mxu1 %v485_v15  ;;  %1662 = vmatprep.subr.mxu0 %v288_v16  ;;  %v502_v15 = vld [vmem:[%s17518_s30 + $0x738] sm:$0xff]  ;;  %v499_v16 = vld [vmem:[%s17518_s30 + $0x720] sm:$0xff] }
  0x9c   : > { %1733 = vmatprep.subr.mxu1 %v290_v17  ;;  %1663 = vmatpush1.msra.mxu0 %v287_v19  ;;  %v501_v17 = vld [vmem:[%s17518_s30 + $0x730] sm:$0xff]  ;;  %v304_v19 = vld [vmem:[%s17518_s30 + $0x108] sm:$0xff] }
  0x9d   : > { %1696 = vmatprep.mubr.f32.mxu0 %v21430_v0  ;;  %1734 = vmatpush1.msra.mxu1 %v289_v20  ;;  %v306_v20 = vld [vmem:[%s17518_s30 + $0x118] sm:$0xff] }
  0x9e   : > { %1767 = vmatprep.mubr.f32.mxu1 %v21430_v0  ;;  %16882 = vmatmul.mubr.msk.f32.vlgmr.msra.gmra.mxu0 %vm1060_vm0, %v17553_v18 }
  0x9f   : > { %16883 = vmatmul.mubr.msk.f32.vlgmr.msra.gmra.mxu1 %vm1060_vm0, %v17553_v18  ;;  %1798 = vmatprep.subr.mxu0 %v880_v21  ;;  %v303_v21 = vld [vmem:[%s17518_s30 + $0x100] sm:$0xff] }
  0xa0   : > { %1869 = vmatprep.subr.mxu1 %v882_v22  ;;  %1799 = vmatpush1.msra.mxu0 %v879_v23  ;;  %v305_v22 = vld [vmem:[%s17518_s30 + $0x110] sm:$0xff]  ;;  %v896_v23 = vld [vmem:[%s17518_s30 + $0x1388] sm:$0xff] }
  0xa1   : > { %1870 = vmatpush1.msra.mxu1 %v881_v24  ;;  %1800 = vmatprep.subr.mxu0 %v684_v25  ;;  %v898_v24 = vld [vmem:[%s17518_s30 + $0x1398] sm:$0xff]  ;;  %v895_v25 = vld [vmem:[%s17518_s30 + $0x1380] sm:$0xff] }
  0xa2   : > { %1871 = vmatprep.subr.mxu1 %v686_v26  ;;  %1801 = vmatpush1.msra.mxu0 %v683_v27  ;;  %v897_v26 = vld [vmem:[%s17518_s30 + $0x1390] sm:$0xff]  ;;  %v700_v27 = vld [vmem:[%s17518_s30 + $0xd68] sm:$0xff] }
  0xa3   : > { %1872 = vmatpush1.msra.mxu1 %v685_v28  ;;  %1802 = vmatprep.subr.mxu0 %v488_v29  ;;  %v702_v28 = vld [vmem:[%s17518_s30 + $0xd78] sm:$0xff]  ;;  %v699_v29 = vld [vmem:[%s17518_s30 + $0xd60] sm:$0xff] }
  0xa4   : > { %1873 = vmatprep.subr.mxu1 %v490_v30  ;;  %1803 = vmatpush1.msra.mxu0 %v487_v31  ;;  %v701_v30 = vld [vmem:[%s17518_s30 + $0xd70] sm:$0xff]  ;;  %v504_v31 = vld [vmem:[%s17518_s30 + $0x748] sm:$0xff] }
  0xa5   : > { %1874 = vmatpush1.msra.mxu1 %v489_v32  ;;  %1804 = vmatprep.subr.mxu0 %v292_v33  ;;  %v506_v32 = vld [vmem:[%s17518_s30 + $0x758] sm:$0xff]  ;;  %v503_v33 = vld [vmem:[%s17518_s30 + $0x740] sm:$0xff] }
  0xa6   : > { %1875 = vmatprep.subr.mxu1 %v294_v34  ;;  %1805 = vmatpush1.msra.mxu0 %v291_v35  ;;  %v505_v34 = vld [vmem:[%s17518_s30 + $0x750] sm:$0xff]  ;;  %v270_v35 = vld [vmem:[%s21425_s3] sm:$0xff] }
  0xa7   : > { %1838 = vmatprep.mubr.f32.mxu0 %v21430_v0  ;;  %1876 = vmatpush1.msra.mxu1 %v293_v36  ;;  %v308_v36 = vld [vmem:[%s17518_s30 + $0x128] sm:$0xff] }
  0xa8   : > { %1909 = vmatprep.mubr.f32.mxu1 %v21430_v0  ;;  %16884 = vmatmul.mubr.msk.f32.vlgmr.msra.gmra.mxu0 %vm1060_vm0, %v17553_v18 }
  0xa9   : > { %16885 = vmatmul.mubr.msk.f32.vlgmr.msra.gmra.mxu1 %vm1060_vm0, %v17553_v18  ;;  %1940 = vmatprep.subr.mxu0 %v884_v37  ;;  %v310_v37 = vld [vmem:[%s17518_s30 + $0x138] sm:$0xff] }
  0xaa   : > { %2011 = vmatprep.subr.mxu1 %v886_v38  ;;  %1941 = vmatpush1.msra.mxu0 %v883_v39  ;;  %v307_v38 = vld [vmem:[%s17518_s30 + $0x120] sm:$0xff]  ;;  %v309_v39 = vld [vmem:[%s17518_s30 + $0x130] sm:$0xff] }
  0xab   : > { %2012 = vmatpush1.msra.mxu1 %v885_v40  ;;  %1942 = vmatprep.subr.mxu0 %v688_v41  ;;  %v900_v40 = vld [vmem:[%s17518_s30 + $0x13a8] sm:$0xff]  ;;  %v902_v41 = vld [vmem:[%s17518_s30 + $0x13b8] sm:$0xff] }
  0xac   : > { %2013 = vmatprep.subr.mxu1 %v690_v42  ;;  %1943 = vmatpush1.msra.mxu0 %v687_v43  ;;  %v899_v42 = vld [vmem:[%s17518_s30 + $0x13a0] sm:$0xff]  ;;  %v901_v43 = vld [vmem:[%s17518_s30 + $0x13b0] sm:$0xff] }
  0xad   : > { %2014 = vmatpush1.msra.mxu1 %v689_v44  ;;  %1944 = vmatprep.subr.mxu0 %v492_v45  ;;  %v704_v44 = vld [vmem:[%s17518_s30 + $0xd88] sm:$0xff]  ;;  %v706_v45 = vld [vmem:[%s17518_s30 + $0xd98] sm:$0xff] }
  0xae   : > { %2015 = vmatprep.subr.mxu1 %v494_v46  ;;  %1945 = vmatpush1.msra.mxu0 %v491_v47  ;;  %v703_v46 = vld [vmem:[%s17518_s30 + $0xd80] sm:$0xff]  ;;  %v705_v47 = vld [vmem:[%s17518_s30 + $0xd90] sm:$0xff] }
  0xaf   : > { %2016 = vmatpush1.msra.mxu1 %v493_v48  ;;  %1946 = vmatprep.subr.mxu0 %v296_v49  ;;  %v508_v48 = vld [vmem:[%s17518_s30 + $0x768] sm:$0xff]  ;;  %v510_v49 = vld [vmem:[%s17518_s30 + $0x778] sm:$0xff] }
  0xb0   : > { %2017 = vmatprep.subr.mxu1 %v298_v50  ;;  %1947 = vmatpush1.msra.mxu0 %v295_v51  ;;  %v507_v50 = vld [vmem:[%s17518_s30 + $0x760] sm:$0xff]  ;;  %v509_v51 = vld [vmem:[%s17518_s30 + $0x770] sm:$0xff] }
  0xb1   : > { %1980 = vmatprep.mubr.f32.mxu0 %v21430_v0  ;;  %2018 = vmatpush1.msra.mxu1 %v297_v52  ;;  %v312_v52 = vld [vmem:[%s17518_s30 + $0x148] sm:$0xff] }
  0xb2   : > { %2051 = vmatprep.mubr.f32.mxu1 %v21430_v0  ;;  %16886 = vmatmul.mubr.msk.f32.vlgmr.msra.gmra.mxu0 %vm1060_vm0, %v17553_v18 }
  0xb3   : > { %16887 = vmatmul.mubr.msk.f32.vlgmr.msra.gmra.mxu1 %vm1060_vm0, %v17553_v18  ;;  %2082 = vmatprep.subr.mxu0 %v888_v53  ;;  %v314_v53 = vld [vmem:[%s17518_s30 + $0x158] sm:$0xff] }
  0xb4   : > { %2153 = vmatprep.subr.mxu1 %v890_v54  ;;  %2083 = vmatpush1.msra.mxu0 %v887_v55  ;;  %v311_v54 = vld [vmem:[%s17518_s30 + $0x140] sm:$0xff]  ;;  %v313_v55 = vld [vmem:[%s17518_s30 + $0x150] sm:$0xff] }
  0xb5   : > { %2154 = vmatpush1.msra.mxu1 %v889_v56  ;;  %2084 = vmatprep.subr.mxu0 %v692_v57  ;;  %v904_v56 = vld [vmem:[%s17518_s30 + $0x13c8] sm:$0xff]  ;;  %v906_v57 = vld [vmem:[%s17518_s30 + $0x13d8] sm:$0xff] }
  0xb6   : > { %2155 = vmatprep.subr.mxu1 %v694_v58  ;;  %2085 = vmatpush1.msra.mxu0 %v691_v59  ;;  %v903_v58 = vld [vmem:[%s17518_s30 + $0x13c0] sm:$0xff]  ;;  %v905_v59 = vld [vmem:[%s17518_s30 + $0x13d0] sm:$0xff] }
  0xb7   : > { %2156 = vmatpush1.msra.mxu1 %v693_v60  ;;  %2086 = vmatprep.subr.mxu0 %v496_v61  ;;  %v708_v60 = vld [vmem:[%s17518_s30 + $0xda8] sm:$0xff]  ;;  %v710_v61 = vld [vmem:[%s17518_s30 + $0xdb8] sm:$0xff] }
  0xb8   : > { %2157 = vmatprep.subr.mxu1 %v498_v62  ;;  %2087 = vmatpush1.msra.mxu0 %v495_v63  ;;  %v707_v62 = vld [vmem:[%s17518_s30 + $0xda0] sm:$0xff]  ;;  %v709_v63 = vld [vmem:[%s17518_s30 + $0xdb0] sm:$0xff] }
  0xb9   : > { %2158 = vmatpush1.msra.mxu1 %v497_v1  ;;  %2088 = vmatprep.subr.mxu0 %v300_v2  ;;  %v512_v1 = vld [vmem:[%s17518_s30 + $0x788] sm:$0xff]  ;;  %v514_v2 = vld [vmem:[%s17518_s30 + $0x798] sm:$0xff] }
  0xba   : > { %2159 = vmatprep.subr.mxu1 %v302_v3  ;;  %2089 = vmatpush1.msra.mxu0 %v299_v4  ;;  %v511_v3 = vld [vmem:[%s17518_s30 + $0x780] sm:$0xff]  ;;  %v513_v4 = vld [vmem:[%s17518_s30 + $0x790] sm:$0xff] }
  0xbb   : > { %2122 = vmatprep.mubr.f32.mxu0 %v21430_v0  ;;  %2160 = vmatpush1.msra.mxu1 %v301_v5  ;;  %v316_v5 = vld [vmem:[%s17518_s30 + $0x168] sm:$0xff] }
  0xbc   : > { %2193 = vmatprep.mubr.f32.mxu1 %v21430_v0  ;;  %16888 = vmatmul.mubr.msk.f32.vlgmr.msra.gmra.mxu0 %vm1060_vm0, %v17553_v18 }
  0xbd   : > { %16889 = vmatmul.mubr.msk.f32.vlgmr.msra.gmra.mxu1 %vm1060_vm0, %v17553_v18  ;;  %2224 = vmatprep.subr.mxu0 %v892_v6  ;;  %v318_v6 = vld [vmem:[%s17518_s30 + $0x178] sm:$0xff] }
  0xbe   : > { %2295 = vmatprep.subr.mxu1 %v894_v7  ;;  %2225 = vmatpush1.msra.mxu0 %v891_v8  ;;  %v315_v7 = vld [vmem:[%s17518_s30 + $0x160] sm:$0xff]  ;;  %v317_v8 = vld [vmem:[%s17518_s30 + $0x170] sm:$0xff] }
  0xbf   : > { %2296 = vmatpush1.msra.mxu1 %v893_v9  ;;  %2226 = vmatprep.subr.mxu0 %v696_v10  ;;  %v908_v9 = vld [vmem:[%s17518_s30 + $0x13e8] sm:$0xff]  ;;  %v910_v10 = vld [vmem:[%s17518_s30 + $0x13f8] sm:$0xff] }
  0xc0   : > { %2297 = vmatprep.subr.mxu1 %v698_v11  ;;  %2227 = vmatpush1.msra.mxu0 %v695_v12  ;;  %v907_v11 = vld [vmem:[%s17518_s30 + $0x13e0] sm:$0xff]  ;;  %v909_v12 = vld [vmem:[%s17518_s30 + $0x13f0] sm:$0xff] }
  0xc1   : > { %2298 = vmatpush1.msra.mxu1 %v697_v13  ;;  %2228 = vmatprep.subr.mxu0 %v500_v14  ;;  %v712_v13 = vld [vmem:[%s17518_s30 + $0xdc8] sm:$0xff]  ;;  %v714_v14 = vld [vmem:[%s17518_s30 + $0xdd8] sm:$0xff] }
  0xc2   : > { %2299 = vmatprep.subr.mxu1 %v502_v15  ;;  %2229 = vmatpush1.msra.mxu0 %v499_v16  ;;  %v711_v15 = vld [vmem:[%s17518_s30 + $0xdc0] sm:$0xff]  ;;  %v713_v16 = vld [vmem:[%s17518_s30 + $0xdd0] sm:$0xff] }
  0xc3   : > { %2300 = vmatpush1.msra.mxu1 %v501_v17  ;;  %2230 = vmatprep.subr.mxu0 %v304_v19  ;;  %v516_v17 = vld [vmem:[%s17518_s30 + $0x7a8] sm:$0xff]  ;;  %v518_v19 = vld [vmem:[%s17518_s30 + $0x7b8] sm:$0xff] }
  0xc4   : > { %2301 = vmatprep.subr.mxu1 %v306_v20  ;;  %2231 = vmatpush1.msra.mxu0 %v303_v21  ;;  %v515_v20 = vld [vmem:[%s17518_s30 + $0x7a0] sm:$0xff]  ;;  %v517_v21 = vld [vmem:[%s17518_s30 + $0x7b0] sm:$0xff] }
  0xc5   : > { %2264 = vmatprep.mubr.f32.mxu0 %v21430_v0  ;;  %2302 = vmatpush1.msra.mxu1 %v305_v22  ;;  %v320_v22 = vld [vmem:[%s17518_s30 + $0x188] sm:$0xff] }
  0xc6   : > { %2335 = vmatprep.mubr.f32.mxu1 %v21430_v0  ;;  %16890 = vmatmul.mubr.msk.f32.vlgmr.msra.gmra.mxu0 %vm1060_vm0, %v17553_v18 }
  0xc7   : > { %16891 = vmatmul.mubr.msk.f32.vlgmr.msra.gmra.mxu1 %vm1060_vm0, %v17553_v18  ;;  %2366 = vmatprep.subr.mxu0 %v896_v23  ;;  %v322_v23 = vld [vmem:[%s17518_s30 + $0x198] sm:$0xff] }
  0xc8   : > { %2437 = vmatprep.subr.mxu1 %v898_v24  ;;  %2367 = vmatpush1.msra.mxu0 %v895_v25  ;;  %v319_v24 = vld [vmem:[%s17518_s30 + $0x180] sm:$0xff]  ;;  %v321_v25 = vld [vmem:[%s17518_s30 + $0x190] sm:$0xff] }
  0xc9   : > { %2438 = vmatpush1.msra.mxu1 %v897_v26  ;;  %2368 = vmatprep.subr.mxu0 %v700_v27  ;;  %v912_v26 = vld [vmem:[%s17518_s30 + $0x1408] sm:$0xff]  ;;  %v914_v27 = vld [vmem:[%s17518_s30 + $0x1418] sm:$0xff] }
  0xca   : > { %2439 = vmatprep.subr.mxu1 %v702_v28  ;;  %2369 = vmatpush1.msra.mxu0 %v699_v29  ;;  %v911_v28 = vld [vmem:[%s17518_s30 + $0x1400] sm:$0xff]  ;;  %v913_v29 = vld [vmem:[%s17518_s30 + $0x1410] sm:$0xff] }
  0xcb   : > { %2440 = vmatpush1.msra.mxu1 %v701_v30  ;;  %2370 = vmatprep.subr.mxu0 %v504_v31  ;;  %v716_v30 = vld [vmem:[%s17518_s30 + $0xde8] sm:$0xff]  ;;  %v718_v31 = vld [vmem:[%s17518_s30 + $0xdf8] sm:$0xff] }
  0xcc   : > { %2441 = vmatprep.subr.mxu1 %v506_v32  ;;  %2371 = vmatpush1.msra.mxu0 %v503_v33  ;;  %v715_v32 = vld [vmem:[%s17518_s30 + $0xde0] sm:$0xff]  ;;  %v717_v33 = vld [vmem:[%s17518_s30 + $0xdf0] sm:$0xff] }
  0xcd   : > { %2442 = vmatpush1.msra.mxu1 %v505_v34  ;;  %1057 = vperm.xlu0 %17145, %v270_v35   ;;  %v520_v34 = vld [vmem:[%s17518_s30 + $0x7c8] sm:$0xff]  ;;  %v522_v35 = vld [vmem:[%s17518_s30 + $0x7d8] sm:$0xff] }
  0xce   : > { %2372 = vmatprep.subr.mxu0 %v308_v36  ;;  %2443 = vmatprep.subr.mxu1 %v310_v37  ;;  %v519_v36 = vld [vmem:[%s17518_s30 + $0x7c0] sm:$0xff]  ;;  %v521_v37 = vld [vmem:[%s17518_s30 + $0x7d0] sm:$0xff] }
  0xcf   : > { %2373 = vmatpush1.msra.mxu0 %v307_v38  ;;  %2406 = vmatprep.mubr.f32.mxu0 %v21430_v0  ;;  %v324_v38 = vld [vmem:[%s17518_s30 + $0x1a8] sm:$0xff] }
  0xd0   : > { %2444 = vmatpush1.msra.mxu1 %v309_v39  ;;  %2477 = vmatprep.mubr.f32.mxu1 %v21430_v0  ;;  %v326_v39 = vld [vmem:[%s17518_s30 + $0x1b8] sm:$0xff] }
  0xd1   : > { %16892 = vmatmul.mubr.msk.f32.vlgmr.msra.gmra.mxu0 %vm1060_vm0, %v17553_v18  ;;  %16893 = vmatmul.mubr.msk.f32.vlgmr.msra.gmra.mxu1 %vm1060_vm0, %v17553_v18 }
  0xd2   : > { %2508 = vmatprep.subr.mxu0 %v900_v40  ;;  %2579 = vmatprep.subr.mxu1 %v902_v41  ;;  %v323_v40 = vld [vmem:[%s17518_s30 + $0x1a0] sm:$0xff]  ;;  %v325_v41 = vld [vmem:[%s17518_s30 + $0x1b0] sm:$0xff] }
  0xd3   : > { %2509 = vmatpush1.msra.mxu0 %v899_v42  ;;  %2580 = vmatpush1.msra.mxu1 %v901_v43  ;;  %v916_v42 = vld [vmem:[%s17518_s30 + $0x1428] sm:$0xff]  ;;  %v918_v43 = vld [vmem:[%s17518_s30 + $0x1438] sm:$0xff] }
  0xd4   : > { %2510 = vmatprep.subr.mxu0 %v704_v44  ;;  %2581 = vmatprep.subr.mxu1 %v706_v45  ;;  %v915_v44 = vld [vmem:[%s17518_s30 + $0x1420] sm:$0xff]  ;;  %v917_v45 = vld [vmem:[%s17518_s30 + $0x1430] sm:$0xff] }
  0xd5   : > { %2511 = vmatpush1.msra.mxu0 %v703_v46  ;;  %2582 = vmatpush1.msra.mxu1 %v705_v47  ;;  %v720_v46 = vld [vmem:[%s17518_s30 + $0xe08] sm:$0xff]  ;;  %v722_v47 = vld [vmem:[%s17518_s30 + $0xe18] sm:$0xff] }
  0xd6   : > { %2512 = vmatprep.subr.mxu0 %v508_v48  ;;  %2583 = vmatprep.subr.mxu1 %v510_v49  ;;  %v719_v48 = vld [vmem:[%s17518_s30 + $0xe00] sm:$0xff]  ;;  %v721_v49 = vld [vmem:[%s17518_s30 + $0xe10] sm:$0xff] }
  0xd7   : > { %2513 = vmatpush1.msra.mxu0 %v507_v50  ;;  %2584 = vmatpush1.msra.mxu1 %v509_v51  ;;  %v524_v50 = vld [vmem:[%s17518_s30 + $0x7e8] sm:$0xff]  ;;  %v526_v51 = vld [vmem:[%s17518_s30 + $0x7f8] sm:$0xff] }
  0xd8   : > { %2514 = vmatprep.subr.mxu0 %v312_v52  ;;  %2585 = vmatprep.subr.mxu1 %v314_v53  ;;  %v523_v52 = vld [vmem:[%s17518_s30 + $0x7e0] sm:$0xff]  ;;  %v525_v53 = vld [vmem:[%s17518_s30 + $0x7f0] sm:$0xff] }
  0xd9   : > { %2515 = vmatpush1.msra.mxu0 %v311_v54  ;;  %2548 = vmatprep.mubr.f32.mxu0 %v21430_v0  ;;  %v330_v54 = vld [vmem:[%s17518_s30 + $0x1d8] sm:$0xff] }
  0xda   : > { %2586 = vmatpush1.msra.mxu1 %v313_v55  ;;  %2619 = vmatprep.mubr.f32.mxu1 %v21430_v0  ;;  %v327_v55 = vld [vmem:[%s17518_s30 + $0x1c0] sm:$0xff] }
  0xdb   : > { %16894 = vmatmul.mubr.msk.f32.vlgmr.msra.gmra.mxu0 %vm1060_vm0, %v17553_v18  ;;  %16895 = vmatmul.mubr.msk.f32.vlgmr.msra.gmra.mxu1 %vm1060_vm0, %v17553_v18 }
  0xdc   : > { %2650 = vmatprep.subr.mxu0 %v904_v56  ;;  %2721 = vmatprep.subr.mxu1 %v906_v57  ;;  %v329_v56 = vld [vmem:[%s17518_s30 + $0x1d0] sm:$0xff]  ;;  %v920_v57 = vld [vmem:[%s17518_s30 + $0x1448] sm:$0xff] }
  0xdd   : > { %2651 = vmatpush1.msra.mxu0 %v903_v58  ;;  %2722 = vmatpush1.msra.mxu1 %v905_v59  ;;  %v922_v58 = vld [vmem:[%s17518_s30 + $0x1458] sm:$0xff]  ;;  %v919_v59 = vld [vmem:[%s17518_s30 + $0x1440] sm:$0xff] }
  0xde   : > { %2652 = vmatprep.subr.mxu0 %v708_v60  ;;  %2723 = vmatprep.subr.mxu1 %v710_v61  ;;  %v17869_v60 = vld [vmem:[#allocation7] sm:$0xff]  ;;  %v921_v61 = vld [vmem:[%s17518_s30 + $0x1450] sm:$0xff] }
  0xdf   : > { %2653 = vmatpush1.msra.mxu0 %v707_v62  ;;  %2724 = vmatpush1.msra.mxu1 %v709_v63  ;;  %v724_v62 = vld [vmem:[%s17518_s30 + $0xe28] sm:$0xff]  ;;  %v726_v63 = vld [vmem:[%s17518_s30 + $0xe38] sm:$0xff] }
  0xe0   : > { %2654 = vmatprep.subr.mxu0 %v512_v1  ;;  %2725 = vmatprep.subr.mxu1 %v514_v2  ;;  %v723_v1 = vld [vmem:[%s17518_s30 + $0xe20] sm:$0xff]  ;;  %v725_v2 = vld [vmem:[%s17518_s30 + $0xe30] sm:$0xff] }
  0xe1   : > { %2655 = vmatpush1.msra.mxu0 %v511_v3  ;;  %2726 = vmatpush1.msra.mxu1 %v513_v4  ;;  %v528_v3 = vld [vmem:[%s17518_s30 + $0x808] sm:$0xff]  ;;  %v530_v4 = vld [vmem:[%s17518_s30 + $0x818] sm:$0xff] }
  0xe2   : > { %2656 = vmatprep.subr.mxu0 %v316_v5  ;;  %2727 = vmatprep.subr.mxu1 %v318_v6  ;;  %v527_v5 = vld [vmem:[%s17518_s30 + $0x800] sm:$0xff]  ;;  %v529_v6 = vld [vmem:[%s17518_s30 + $0x810] sm:$0xff] }
  0xe3   : > { %2657 = vmatpush1.msra.mxu0 %v315_v7  ;;  %2690 = vmatprep.mubr.f32.mxu0 %v21430_v0  ;;  %v332_v7 = vld [vmem:[%s17518_s30 + $0x1e8] sm:$0xff] }
  0xe4   : > { %2728 = vmatpush1.msra.mxu1 %v317_v8  ;;  %2761 = vmatprep.mubr.f32.mxu1 %v21430_v0  ;;  %v334_v8 = vld [vmem:[%s17518_s30 + $0x1f8] sm:$0xff] }
  0xe5   : > { %16896 = vmatmul.mubr.msk.f32.vlgmr.msra.gmra.mxu0 %vm1060_vm0, %v17553_v18  ;;  %16897 = vmatmul.mubr.msk.f32.vlgmr.msra.gmra.mxu1 %vm1060_vm0, %v17553_v18 }
  0xe6   : > { %2792 = vmatprep.subr.mxu0 %v908_v9  ;;  %2863 = vmatprep.subr.mxu1 %v910_v10  ;;  %v331_v9 = vld [vmem:[%s17518_s30 + $0x1e0] sm:$0xff]  ;;  %v333_v10 = vld [vmem:[%s17518_s30 + $0x1f0] sm:$0xff] }
  0xe7   : > { %2793 = vmatpush1.msra.mxu0 %v907_v11  ;;  %2864 = vmatpush1.msra.mxu1 %v909_v12  ;;  %v924_v11 = vld [vmem:[%s17518_s30 + $0x1468] sm:$0xff]  ;;  %v926_v12 = vld [vmem:[%s17518_s30 + $0x1478] sm:$0xff] }
  0xe8   : > { %2794 = vmatprep.subr.mxu0 %v712_v13  ;;  %2865 = vmatprep.subr.mxu1 %v714_v14  ;;  %v923_v13 = vld [vmem:[%s17518_s30 + $0x1460] sm:$0xff]  ;;  %v925_v14 = vld [vmem:[%s17518_s30 + $0x1470] sm:$0xff] }
  0xe9   : > { %2795 = vmatpush1.msra.mxu0 %v711_v15  ;;  %2866 = vmatpush1.msra.mxu1 %v713_v16  ;;  %v728_v15 = vld [vmem:[%s17518_s30 + $0xe48] sm:$0xff]  ;;  %v730_v16 = vld [vmem:[%s17518_s30 + $0xe58] sm:$0xff] }
  0xea   : > { %2796 = vmatprep.subr.mxu0 %v516_v17  ;;  %2867 = vmatprep.subr.mxu1 %v518_v19  ;;  %v727_v17 = vld [vmem:[%s17518_s30 + $0xe40] sm:$0xff]  ;;  %v729_v19 = vld [vmem:[%s17518_s30 + $0xe50] sm:$0xff] }
  0xeb   : > { %2797 = vmatpush1.msra.mxu0 %v515_v20  ;;  %2868 = vmatpush1.msra.mxu1 %v517_v21  ;;  %v532_v20 = vld [vmem:[%s17518_s30 + $0x828] sm:$0xff]  ;;  %v534_v21 = vld [vmem:[%s17518_s30 + $0x838] sm:$0xff] }
  0xec   : > { %2798 = vmatprep.subr.mxu0 %v320_v22  ;;  %2869 = vmatprep.subr.mxu1 %v322_v23  ;;  %v531_v22 = vld [vmem:[%s17518_s30 + $0x820] sm:$0xff]  ;;  %v533_v23 = vld [vmem:[%s17518_s30 + $0x830] sm:$0xff] }
  0xed   : > { %2799 = vmatpush1.msra.mxu0 %v319_v24  ;;  %2832 = vmatprep.mubr.f32.mxu0 %v21430_v0  ;;  %v336_v24 = vld [vmem:[%s17518_s30 + $0x208] sm:$0xff] }
  0xee   : > { %2870 = vmatpush1.msra.mxu1 %v321_v25  ;;  %2903 = vmatprep.mubr.f32.mxu1 %v21430_v0  ;;  %v338_v25 = vld [vmem:[%s17518_s30 + $0x218] sm:$0xff] }
  0xef   : > { %16898 = vmatmul.mubr.msk.f32.vlgmr.msra.gmra.mxu0 %vm1060_vm0, %v17553_v18  ;;  %16899 = vmatmul.mubr.msk.f32.vlgmr.msra.gmra.mxu1 %vm1060_vm0, %v17553_v18 }
  0xf0   : > { %2934 = vmatprep.subr.mxu0 %v912_v26  ;;  %3005 = vmatprep.subr.mxu1 %v914_v27  ;;  %v335_v26 = vld [vmem:[%s17518_s30 + $0x200] sm:$0xff]  ;;  %v337_v27 = vld [vmem:[%s17518_s30 + $0x210] sm:$0xff] }
  0xf1   : > { %2935 = vmatpush1.msra.mxu0 %v911_v28  ;;  %3006 = vmatpush1.msra.mxu1 %v913_v29  ;;  %v928_v28 = vld [vmem:[%s17518_s30 + $0x1488] sm:$0xff]  ;;  %v930_v29 = vld [vmem:[%s17518_s30 + $0x1498] sm:$0xff] }
  0xf2   : > { %2936 = vmatprep.subr.mxu0 %v716_v30  ;;  %3007 = vmatprep.subr.mxu1 %v718_v31  ;;  %v927_v30 = vld [vmem:[%s17518_s30 + $0x1480] sm:$0xff]  ;;  %v929_v31 = vld [vmem:[%s17518_s30 + $0x1490] sm:$0xff] }
  0xf3   : > { %2937 = vmatpush1.msra.mxu0 %v715_v32  ;;  %3008 = vmatpush1.msra.mxu1 %v717_v33  ;;  %v732_v32 = vld [vmem:[%s17518_s30 + $0xe68] sm:$0xff]  ;;  %v734_v33 = vld [vmem:[%s17518_s30 + $0xe78] sm:$0xff] }
  0xf4   : > { %2938 = vmatprep.subr.mxu0 %v520_v34  ;;  %3009 = vmatprep.subr.mxu1 %v522_v35  ;;  %v731_v34 = vld [vmem:[%s17518_s30 + $0xe60] sm:$0xff]  ;;  %v733_v35 = vld [vmem:[%s17518_s30 + $0xe70] sm:$0xff] }
  0xf5   : > { %2939 = vmatpush1.msra.mxu0 %v519_v36  ;;  %3010 = vmatpush1.msra.mxu1 %v521_v37  ;;  %v536_v36 = vld [vmem:[%s17518_s30 + $0x848] sm:$0xff]  ;;  %v538_v37 = vld [vmem:[%s17518_s30 + $0x858] sm:$0xff] }
  0xf6   : > { %2940 = vmatprep.subr.mxu0 %v324_v38  ;;  %3011 = vmatprep.subr.mxu1 %v326_v39  ;;  %v535_v38 = vld [vmem:[%s17518_s30 + $0x840] sm:$0xff]  ;;  %v537_v39 = vld [vmem:[%s17518_s30 + $0x850] sm:$0xff] }
  0xf7   : > { %2941 = vmatpush1.msra.mxu0 %v323_v40  ;;  %2974 = vmatprep.mubr.f32.mxu0 %v21430_v0  ;;  %v340_v40 = vld [vmem:[%s17518_s30 + $0x228] sm:$0xff] }
  0xf8   : > { %3012 = vmatpush1.msra.mxu1 %v325_v41  ;;  %3045 = vmatprep.mubr.f32.mxu1 %v21430_v0  ;;  %v342_v41 = vld [vmem:[%s17518_s30 + $0x238] sm:$0xff] }
  0xf9   : > { %16900 = vmatmul.mubr.msk.f32.vlgmr.msra.gmra.mxu0 %vm1060_vm0, %v17553_v18  ;;  %16901 = vmatmul.mubr.msk.f32.vlgmr.msra.gmra.mxu1 %vm1060_vm0, %v17553_v18  ;;  %v328_v18 = vld [vmem:[%s17518_s30 + $0x1c8] sm:$0xff] }
  0xfa   : > { %3076 = vmatprep.subr.mxu0 %v916_v42  ;;  %3147 = vmatprep.subr.mxu1 %v918_v43  ;;  %v339_v42 = vld [vmem:[%s17518_s30 + $0x220] sm:$0xff]  ;;  %v341_v43 = vld [vmem:[%s17518_s30 + $0x230] sm:$0xff] }
  0xfb   : > { %3077 = vmatpush1.msra.mxu0 %v915_v44  ;;  %3148 = vmatpush1.msra.mxu1 %v917_v45  ;;  %v932_v44 = vld [vmem:[%s17518_s30 + $0x14a8] sm:$0xff]  ;;  %v934_v45 = vld [vmem:[%s17518_s30 + $0x14b8] sm:$0xff] }
  0xfc   : > { %3078 = vmatprep.subr.mxu0 %v720_v46  ;;  %3149 = vmatprep.subr.mxu1 %v722_v47  ;;  %v931_v46 = vld [vmem:[%s17518_s30 + $0x14a0] sm:$0xff]  ;;  %v933_v47 = vld [vmem:[%s17518_s30 + $0x14b0] sm:$0xff] }
  0xfd   : > { %3079 = vmatpush1.msra.mxu0 %v719_v48  ;;  %3150 = vmatpush1.msra.mxu1 %v721_v49  ;;  %v736_v48 = vld [vmem:[%s17518_s30 + $0xe88] sm:$0xff]  ;;  %v738_v49 = vld [vmem:[%s17518_s30 + $0xe98] sm:$0xff] }
  0xfe   : > { %3080 = vmatprep.subr.mxu0 %v524_v50  ;;  %3151 = vmatprep.subr.mxu1 %v526_v51  ;;  %v735_v50 = vld [vmem:[%s17518_s30 + $0xe80] sm:$0xff]  ;;  %v737_v51 = vld [vmem:[%s17518_s30 + $0xe90] sm:$0xff] }
  0xff   : > { %3081 = vmatpush1.msra.mxu0 %v523_v52  ;;  %3152 = vmatpush1.msra.mxu1 %v525_v53  ;;  %v540_v52 = vld [vmem:[%s17518_s30 + $0x868] sm:$0xff]  ;;  %v542_v53 = vld [vmem:[%s17518_s30 + $0x878] sm:$0xff] }
 0x100   : > { %3082 = vmatprep.subr.mxu0 %v328_v18  ;;  %3153 = vmatprep.subr.mxu1 %v330_v54  ;;  %v539_v18 = vld [vmem:[%s17518_s30 + $0x860] sm:$0xff]  ;;  %v541_v54 = vld [vmem:[%s17518_s30 + $0x870] sm:$0xff] }
 0x101   : > { %3083 = vmatpush1.msra.mxu0 %v327_v55  ;;  %3116 = vmatprep.mubr.f32.mxu0 %v21430_v0  ;;  %v344_v55 = vld [vmem:[%s17518_s30 + $0x248] sm:$0xff] }
 0x102   : > { %3154 = vmatpush1.msra.mxu1 %v329_v56  ;;  %3187 = vmatprep.mubr.f32.mxu1 %v21430_v0  ;;  %v346_v56 = vld [vmem:[%s17518_s30 + $0x258] sm:$0xff] }
 0x103   : > { %16902 = vmatmul.mubr.msk.f32.vlgmr.msra.gmra.mxu0 %vm1060_vm0, %v17869_v60  ;;  %16903 = vmatmul.mubr.msk.f32.vlgmr.msra.gmra.mxu1 %vm1060_vm0, %v17869_v60 }
 0x104   : > { %3218 = vmatprep.subr.mxu0 %v920_v57  ;;  %3289 = vmatprep.subr.mxu1 %v922_v58  ;;  %v343_v57 = vld [vmem:[%s17518_s30 + $0x240] sm:$0xff]  ;;  %v345_v58 = vld [vmem:[%s17518_s30 + $0x250] sm:$0xff] }
 0x105   : > { %3219 = vmatpush1.msra.mxu0 %v919_v59  ;;  %3290 = vmatpush1.msra.mxu1 %v921_v61  ;;  %v936_v59 = vld [vmem:[%s17518_s30 + $0x14c8] sm:$0xff]  ;;  %v938_v61 = vld [vmem:[%s17518_s30 + $0x14d8] sm:$0xff] }
 0x106   : > { %3220 = vmatprep.subr.mxu0 %v724_v62  ;;  %3291 = vmatprep.subr.mxu1 %v726_v63  ;;  %v935_v62 = vld [vmem:[%s17518_s30 + $0x14c0] sm:$0xff]  ;;  %v937_v63 = vld [vmem:[%s17518_s30 + $0x14d0] sm:$0xff] }
 0x107   : > { %3221 = vmatpush1.msra.mxu0 %v723_v1  ;;  %3292 = vmatpush1.msra.mxu1 %v725_v2  ;;  %v740_v1 = vld [vmem:[%s17518_s30 + $0xea8] sm:$0xff]  ;;  %v742_v2 = vld [vmem:[%s17518_s30 + $0xeb8] sm:$0xff] }
 0x108   : > { %3222 = vmatprep.subr.mxu0 %v528_v3  ;;  %3293 = vmatprep.subr.mxu1 %v530_v4  ;;  %v739_v3 = vld [vmem:[%s17518_s30 + $0xea0] sm:$0xff]  ;;  %v741_v4 = vld [vmem:[%s17518_s30 + $0xeb0] sm:$0xff] }
 0x109   : > { %3223 = vmatpush1.msra.mxu0 %v527_v5  ;;  %3294 = vmatpush1.msra.mxu1 %v529_v6  ;;  %v544_v5 = vld [vmem:[%s17518_s30 + $0x888] sm:$0xff]  ;;  %v546_v6 = vld [vmem:[%s17518_s30 + $0x898] sm:$0xff] }
 0x10a   : > { %3224 = vmatprep.subr.mxu0 %v332_v7  ;;  %3295 = vmatprep.subr.mxu1 %v334_v8  ;;  %v543_v7 = vld [vmem:[%s17518_s30 + $0x880] sm:$0xff]  ;;  %v545_v8 = vld [vmem:[%s17518_s30 + $0x890] sm:$0xff] }
 0x10b   : > { %3225 = vmatpush1.msra.mxu0 %v331_v9  ;;  %3258 = vmatprep.mubr.f32.mxu0 %v21430_v0  ;;  %v348_v9 = vld [vmem:[%s17518_s30 + $0x268] sm:$0xff] }
 0x10c   : > { %3296 = vmatpush1.msra.mxu1 %v333_v10  ;;  %3329 = vmatprep.mubr.f32.mxu1 %v21430_v0  ;;  %v350_v10 = vld [vmem:[%s17518_s30 + $0x278] sm:$0xff] }
 0x10d   : > { %16904 = vmatmul.mubr.msk.f32.vlgmr.msra.gmra.mxu0 %vm1060_vm0, %v17869_v60  ;;  %16905 = vmatmul.mubr.msk.f32.vlgmr.msra.gmra.mxu1 %vm1060_vm0, %v17869_v60 }
 0x10e   : > { %3360 = vmatprep.subr.mxu0 %v924_v11  ;;  %3431 = vmatprep.subr.mxu1 %v926_v12  ;;  %v347_v11 = vld [vmem:[%s17518_s30 + $0x260] sm:$0xff]  ;;  %v349_v12 = vld [vmem:[%s17518_s30 + $0x270] sm:$0xff] }
 0x10f   : > { %3361 = vmatpush1.msra.mxu0 %v923_v13  ;;  %3432 = vmatpush1.msra.mxu1 %v925_v14  ;;  %v940_v13 = vld [vmem:[%s17518_s30 + $0x14e8] sm:$0xff]  ;;  %v942_v14 = vld [vmem:[%s17518_s30 + $0x14f8] sm:$0xff] }
 0x110   : > { %3362 = vmatprep.subr.mxu0 %v728_v15  ;;  %3433 = vmatprep.subr.mxu1 %v730_v16  ;;  %v939_v15 = vld [vmem:[%s17518_s30 + $0x14e0] sm:$0xff]  ;;  %v941_v16 = vld [vmem:[%s17518_s30 + $0x14f0] sm:$0xff] }
 0x111   : > { %3363 = vmatpush1.msra.mxu0 %v727_v17  ;;  %3434 = vmatpush1.msra.mxu1 %v729_v19  ;;  %v744_v17 = vld [vmem:[%s17518_s30 + $0xec8] sm:$0xff]  ;;  %v746_v19 = vld [vmem:[%s17518_s30 + $0xed8] sm:$0xff] }
 0x112   : > { %3364 = vmatprep.subr.mxu0 %v532_v20  ;;  %3435 = vmatprep.subr.mxu1 %v534_v21  ;;  %v743_v20 = vld [vmem:[%s17518_s30 + $0xec0] sm:$0xff]  ;;  %v745_v21 = vld [vmem:[%s17518_s30 + $0xed0] sm:$0xff] }
 0x113   : > { %3365 = vmatpush1.msra.mxu0 %v531_v22  ;;  %3436 = vmatpush1.msra.mxu1 %v533_v23  ;;  %v548_v22 = vld [vmem:[%s17518_s30 + $0x8a8] sm:$0xff]  ;;  %v550_v23 = vld [vmem:[%s17518_s30 + $0x8b8] sm:$0xff] }
 0x114   : > { %3366 = vmatprep.subr.mxu0 %v336_v24  ;;  %3437 = vmatprep.subr.mxu1 %v338_v25  ;;  %v547_v24 = vld [vmem:[%s17518_s30 + $0x8a0] sm:$0xff]  ;;  %v549_v25 = vld [vmem:[%s17518_s30 + $0x8b0] sm:$0xff] }
 0x115   : > { %3367 = vmatpush1.msra.mxu0 %v335_v26  ;;  %3400 = vmatprep.mubr.f32.mxu0 %v21430_v0  ;;  %v352_v26 = vld [vmem:[%s17518_s30 + $0x288] sm:$0xff] }
 0x116   : > { %3438 = vmatpush1.msra.mxu1 %v337_v27  ;;  %3471 = vmatprep.mubr.f32.mxu1 %v21430_v0  ;;  %v354_v27 = vld [vmem:[%s17518_s30 + $0x298] sm:$0xff] }
 0x117   : > { %16906 = vmatmul.mubr.msk.f32.vlgmr.msra.gmra.mxu0 %vm1060_vm0, %v17869_v60  ;;  %16907 = vmatmul.mubr.msk.f32.vlgmr.msra.gmra.mxu1 %vm1060_vm0, %v17869_v60 }
 0x118   : > { %3502 = vmatprep.subr.mxu0 %v928_v28  ;;  %3573 = vmatprep.subr.mxu1 %v930_v29  ;;  %v351_v28 = vld [vmem:[%s17518_s30 + $0x280] sm:$0xff]  ;;  %v353_v29 = vld [vmem:[%s17518_s30 + $0x290] sm:$0xff] }
 0x119   : > { %3503 = vmatpush1.msra.mxu0 %v927_v30  ;;  %3574 = vmatpush1.msra.mxu1 %v929_v31  ;;  %v944_v30 = vld [vmem:[%s17518_s30 + $0x1508] sm:$0xff]  ;;  %v946_v31 = vld [vmem:[%s17518_s30 + $0x1518] sm:$0xff] }
 0x11a   : > { %3504 = vmatprep.subr.mxu0 %v732_v32  ;;  %3575 = vmatprep.subr.mxu1 %v734_v33  ;;  %v943_v32 = vld [vmem:[%s17518_s30 + $0x1500] sm:$0xff]  ;;  %v945_v33 = vld [vmem:[%s17518_s30 + $0x1510] sm:$0xff] }
 0x11b   : > { %3505 = vmatpush1.msra.mxu0 %v731_v34  ;;  %3576 = vmatpush1.msra.mxu1 %v733_v35  ;;  %v748_v34 = vld [vmem:[%s17518_s30 + $0xee8] sm:$0xff]  ;;  %v750_v35 = vld [vmem:[%s17518_s30 + $0xef8] sm:$0xff] }
 0x11c   : > { %3506 = vmatprep.subr.mxu0 %v536_v36  ;;  %3577 = vmatprep.subr.mxu1 %v538_v37  ;;  %v747_v36 = vld [vmem:[%s17518_s30 + $0xee0] sm:$0xff]  ;;  %v749_v37 = vld [vmem:[%s17518_s30 + $0xef0] sm:$0xff] }
 0x11d   : > { %3507 = vmatpush1.msra.mxu0 %v535_v38  ;;  %3578 = vmatpush1.msra.mxu1 %v537_v39  ;;  %v552_v38 = vld [vmem:[%s17518_s30 + $0x8c8] sm:$0xff]  ;;  %v554_v39 = vld [vmem:[%s17518_s30 + $0x8d8] sm:$0xff] }
 0x11e   : > { %3508 = vmatprep.subr.mxu0 %v340_v40  ;;  %3579 = vmatprep.subr.mxu1 %v342_v41  ;;  %v551_v40 = vld [vmem:[%s17518_s30 + $0x8c0] sm:$0xff]  ;;  %v553_v41 = vld [vmem:[%s17518_s30 + $0x8d0] sm:$0xff] }
 0x11f   : > { %3509 = vmatpush1.msra.mxu0 %v339_v42  ;;  %3542 = vmatprep.mubr.f32.mxu0 %v21430_v0  ;;  %v356_v42 = vld [vmem:[%s17518_s30 + $0x2a8] sm:$0xff] }
 0x120   : > { %3580 = vmatpush1.msra.mxu1 %v341_v43  ;;  %3613 = vmatprep.mubr.f32.mxu1 %v21430_v0  ;;  %v358_v43 = vld [vmem:[%s17518_s30 + $0x2b8] sm:$0xff] }
 0x121   : > { %16908 = vmatmul.mubr.msk.f32.vlgmr.msra.gmra.mxu0 %vm1060_vm0, %v17869_v60  ;;  %16909 = vmatmul.mubr.msk.f32.vlgmr.msra.gmra.mxu1 %vm1060_vm0, %v17869_v60 }
 0x122   : > { %3644 = vmatprep.subr.mxu0 %v932_v44  ;;  %3715 = vmatprep.subr.mxu1 %v934_v45  ;;  %v355_v44 = vld [vmem:[%s17518_s30 + $0x2a0] sm:$0xff]  ;;  %v357_v45 = vld [vmem:[%s17518_s30 + $0x2b0] sm:$0xff] }
 0x123   : > { %3645 = vmatpush1.msra.mxu0 %v931_v46  ;;  %3716 = vmatpush1.msra.mxu1 %v933_v47  ;;  %v948_v46 = vld [vmem:[%s17518_s30 + $0x1528] sm:$0xff]  ;;  %v950_v47 = vld [vmem:[%s17518_s30 + $0x1538] sm:$0xff] }
 0x124   : > { %3646 = vmatprep.subr.mxu0 %v736_v48  ;;  %3717 = vmatprep.subr.mxu1 %v738_v49  ;;  %v947_v48 = vld [vmem:[%s17518_s30 + $0x1520] sm:$0xff]  ;;  %v949_v49 = vld [vmem:[%s17518_s30 + $0x1530] sm:$0xff] }
 0x125   : > { %3647 = vmatpush1.msra.mxu0 %v735_v50  ;;  %3718 = vmatpush1.msra.mxu1 %v737_v51  ;;  %v752_v50 = vld [vmem:[%s17518_s30 + $0xf08] sm:$0xff]  ;;  %v754_v51 = vld [vmem:[%s17518_s30 + $0xf18] sm:$0xff] }
 0x126   : > { %3648 = vmatprep.subr.mxu0 %v540_v52  ;;  %3719 = vmatprep.subr.mxu1 %v542_v53  ;;  %v751_v52 = vld [vmem:[%s17518_s30 + $0xf00] sm:$0xff]  ;;  %v753_v53 = vld [vmem:[%s17518_s30 + $0xf10] sm:$0xff] }
 0x127   : > { %3649 = vmatpush1.msra.mxu0 %v539_v18  ;;  %3720 = vmatpush1.msra.mxu1 %v541_v54  ;;  %v556_v18 = vld [vmem:[%s17518_s30 + $0x8e8] sm:$0xff]  ;;  %v558_v54 = vld [vmem:[%s17518_s30 + $0x8f8] sm:$0xff] }
 0x128   : > { %3650 = vmatprep.subr.mxu0 %v344_v55  ;;  %3721 = vmatprep.subr.mxu1 %v346_v56  ;;  %v555_v55 = vld [vmem:[%s17518_s30 + $0x8e0] sm:$0xff]  ;;  %v557_v56 = vld [vmem:[%s17518_s30 + $0x8f0] sm:$0xff] }
 0x129   : > { %3651 = vmatpush1.msra.mxu0 %v343_v57  ;;  %3684 = vmatprep.mubr.f32.mxu0 %v21430_v0  ;;  %v360_v57 = vld [vmem:[%s17518_s30 + $0x2c8] sm:$0xff] }
 0x12a   : > { %3722 = vmatpush1.msra.mxu1 %v345_v58  ;;  %3755 = vmatprep.mubr.f32.mxu1 %v21430_v0  ;;  %v362_v58 = vld [vmem:[%s17518_s30 + $0x2d8] sm:$0xff] }
 0x12b   : > { %16910 = vmatmul.mubr.msk.f32.vlgmr.msra.gmra.mxu0 %vm1060_vm0, %v17869_v60  ;;  %16911 = vmatmul.mubr.msk.f32.vlgmr.msra.gmra.mxu1 %vm1060_vm0, %v17869_v60 }
 0x12c   : > { %3786 = vmatprep.subr.mxu0 %v936_v59  ;;  %3857 = vmatprep.subr.mxu1 %v938_v61  ;;  %v359_v59 = vld [vmem:[%s17518_s30 + $0x2c0] sm:$0xff]  ;;  %v361_v61 = vld [vmem:[%s17518_s30 + $0x2d0] sm:$0xff] }
 0x12d   : > { %3787 = vmatpush1.msra.mxu0 %v935_v62  ;;  %3858 = vmatpush1.msra.mxu1 %v937_v63  ;;  %v952_v62 = vld [vmem:[%s17518_s30 + $0x1548] sm:$0xff]  ;;  %v954_v63 = vld [vmem:[%s17518_s30 + $0x1558] sm:$0xff] }
 0x12e   : > { %3788 = vmatprep.subr.mxu0 %v740_v1  ;;  %3859 = vmatprep.subr.mxu1 %v742_v2  ;;  %v951_v1 = vld [vmem:[%s17518_s30 + $0x1540] sm:$0xff]  ;;  %v953_v2 = vld [vmem:[%s17518_s30 + $0x1550] sm:$0xff] }
 0x12f   : > { %3789 = vmatpush1.msra.mxu0 %v739_v3  ;;  %3860 = vmatpush1.msra.mxu1 %v741_v4  ;;  %v756_v3 = vld [vmem:[%s17518_s30 + $0xf28] sm:$0xff]  ;;  %v758_v4 = vld [vmem:[%s17518_s30 + $0xf38] sm:$0xff] }
 0x130   : > { %3790 = vmatprep.subr.mxu0 %v544_v5  ;;  %3861 = vmatprep.subr.mxu1 %v546_v6  ;;  %v755_v5 = vld [vmem:[%s17518_s30 + $0xf20] sm:$0xff]  ;;  %v757_v6 = vld [vmem:[%s17518_s30 + $0xf30] sm:$0xff] }
 0x131   : > { %3791 = vmatpush1.msra.mxu0 %v543_v7  ;;  %3862 = vmatpush1.msra.mxu1 %v545_v8  ;;  %v560_v7 = vld [vmem:[%s17518_s30 + $0x908] sm:$0xff]  ;;  %v562_v8 = vld [vmem:[%s17518_s30 + $0x918] sm:$0xff] }
 0x132   : > { %3792 = vmatprep.subr.mxu0 %v348_v9  ;;  %3863 = vmatprep.subr.mxu1 %v350_v10  ;;  %v559_v9 = vld [vmem:[%s17518_s30 + $0x900] sm:$0xff]  ;;  %v561_v10 = vld [vmem:[%s17518_s30 + $0x910] sm:$0xff] }
 0x133   : > { %3793 = vmatpush1.msra.mxu0 %v347_v11  ;;  %3826 = vmatprep.mubr.f32.mxu0 %v21430_v0  ;;  %v364_v11 = vld [vmem:[%s17518_s30 + $0x2e8] sm:$0xff] }
 0x134   : > { %3864 = vmatpush1.msra.mxu1 %v349_v12  ;;  %3897 = vmatprep.mubr.f32.mxu1 %v21430_v0  ;;  %v366_v12 = vld [vmem:[%s17518_s30 + $0x2f8] sm:$0xff] }
 0x135   : > { %16912 = vmatmul.mubr.msk.f32.vlgmr.msra.gmra.mxu0 %vm1060_vm0, %v17869_v60  ;;  %16913 = vmatmul.mubr.msk.f32.vlgmr.msra.gmra.mxu1 %vm1060_vm0, %v17869_v60 }
 0x136   : > { %3928 = vmatprep.subr.mxu0 %v940_v13  ;;  %3999 = vmatprep.subr.mxu1 %v942_v14  ;;  %v363_v13 = vld [vmem:[%s17518_s30 + $0x2e0] sm:$0xff]  ;;  %v365_v14 = vld [vmem:[%s17518_s30 + $0x2f0] sm:$0xff] }
 0x137   : > { %3929 = vmatpush1.msra.mxu0 %v939_v15  ;;  %4000 = vmatpush1.msra.mxu1 %v941_v16  ;;  %v956_v15 = vld [vmem:[%s17518_s30 + $0x1568] sm:$0xff]  ;;  %v958_v16 = vld [vmem:[%s17518_s30 + $0x1578] sm:$0xff] }
 0x138   : > { %3930 = vmatprep.subr.mxu0 %v744_v17  ;;  %4001 = vmatprep.subr.mxu1 %v746_v19  ;;  %v955_v17 = vld [vmem:[%s17518_s30 + $0x1560] sm:$0xff]  ;;  %v957_v19 = vld [vmem:[%s17518_s30 + $0x1570] sm:$0xff] }
 0x139   : > { %3931 = vmatpush1.msra.mxu0 %v743_v20  ;;  %4002 = vmatpush1.msra.mxu1 %v745_v21  ;;  %v760_v20 = vld [vmem:[%s17518_s30 + $0xf48] sm:$0xff]  ;;  %v762_v21 = vld [vmem:[%s17518_s30 + $0xf58] sm:$0xff] }
 0x13a   : > { %3932 = vmatprep.subr.mxu0 %v548_v22  ;;  %4003 = vmatprep.subr.mxu1 %v550_v23  ;;  %v759_v22 = vld [vmem:[%s17518_s30 + $0xf40] sm:$0xff]  ;;  %v761_v23 = vld [vmem:[%s17518_s30 + $0xf50] sm:$0xff] }
 0x13b   : > { %3933 = vmatpush1.msra.mxu0 %v547_v24  ;;  %4004 = vmatpush1.msra.mxu1 %v549_v25  ;;  %v564_v24 = vld [vmem:[%s17518_s30 + $0x928] sm:$0xff]  ;;  %v566_v25 = vld [vmem:[%s17518_s30 + $0x938] sm:$0xff] }
 0x13c   : > { %3934 = vmatprep.subr.mxu0 %v352_v26  ;;  %4005 = vmatprep.subr.mxu1 %v354_v27  ;;  %v563_v26 = vld [vmem:[%s17518_s30 + $0x920] sm:$0xff]  ;;  %v565_v27 = vld [vmem:[%s17518_s30 + $0x930] sm:$0xff] }
 0x13d   : > { %3935 = vmatpush1.msra.mxu0 %v351_v28  ;;  %3968 = vmatprep.mubr.f32.mxu0 %v21430_v0  ;;  %v368_v28 = vld [vmem:[%s17518_s30 + $0x308] sm:$0xff] }
 0x13e   : > { %4006 = vmatpush1.msra.mxu1 %v353_v29  ;;  %4039 = vmatprep.mubr.f32.mxu1 %v21430_v0  ;;  %v370_v29 = vld [vmem:[%s17518_s30 + $0x318] sm:$0xff] }
 0x13f   : > { %16914 = vmatmul.mubr.msk.f32.vlgmr.msra.gmra.mxu0 %vm1060_vm0, %v17869_v60  ;;  %16915 = vmatmul.mubr.msk.f32.vlgmr.msra.gmra.mxu1 %vm1060_vm0, %v17869_v60 }
 0x140   : > { %4070 = vmatprep.subr.mxu0 %v944_v30  ;;  %4141 = vmatprep.subr.mxu1 %v946_v31  ;;  %v367_v30 = vld [vmem:[%s17518_s30 + $0x300] sm:$0xff]  ;;  %v369_v31 = vld [vmem:[%s17518_s30 + $0x310] sm:$0xff] }
 0x141   : > { %4071 = vmatpush1.msra.mxu0 %v943_v32  ;;  %4142 = vmatpush1.msra.mxu1 %v945_v33  ;;  %v960_v32 = vld [vmem:[%s17518_s30 + $0x1588] sm:$0xff]  ;;  %v962_v33 = vld [vmem:[%s17518_s30 + $0x1598] sm:$0xff] }
 0x142   : > { %4072 = vmatprep.subr.mxu0 %v748_v34  ;;  %4143 = vmatprep.subr.mxu1 %v750_v35  ;;  %v959_v34 = vld [vmem:[%s17518_s30 + $0x1580] sm:$0xff]  ;;  %v961_v35 = vld [vmem:[%s17518_s30 + $0x1590] sm:$0xff] }
 0x143   : > { %4073 = vmatpush1.msra.mxu0 %v747_v36  ;;  %4144 = vmatpush1.msra.mxu1 %v749_v37  ;;  %v764_v36 = vld [vmem:[%s17518_s30 + $0xf68] sm:$0xff]  ;;  %v766_v37 = vld [vmem:[%s17518_s30 + $0xf78] sm:$0xff] }
 0x144   : > { %4074 = vmatprep.subr.mxu0 %v552_v38  ;;  %4145 = vmatprep.subr.mxu1 %v554_v39  ;;  %v763_v38 = vld [vmem:[%s17518_s30 + $0xf60] sm:$0xff]  ;;  %v765_v39 = vld [vmem:[%s17518_s30 + $0xf70] sm:$0xff] }
 0x145   : > { %4075 = vmatpush1.msra.mxu0 %v551_v40  ;;  %4146 = vmatpush1.msra.mxu1 %v553_v41  ;;  %v568_v40 = vld [vmem:[%s17518_s30 + $0x948] sm:$0xff]  ;;  %v570_v41 = vld [vmem:[%s17518_s30 + $0x958] sm:$0xff] }
 0x146   : > { %4076 = vmatprep.subr.mxu0 %v356_v42  ;;  %4147 = vmatprep.subr.mxu1 %v358_v43  ;;  %v567_v42 = vld [vmem:[%s17518_s30 + $0x940] sm:$0xff]  ;;  %v569_v43 = vld [vmem:[%s17518_s30 + $0x950] sm:$0xff] }
 0x147   : > { %4077 = vmatpush1.msra.mxu0 %v355_v44  ;;  %4110 = vmatprep.mubr.f32.mxu0 %v21430_v0  ;;  %v372_v44 = vld [vmem:[%s17518_s30 + $0x328] sm:$0xff] }
 0x148   : > { %4148 = vmatpush1.msra.mxu1 %v357_v45  ;;  %4181 = vmatprep.mubr.f32.mxu1 %v21430_v0  ;;  %v374_v45 = vld [vmem:[%s17518_s30 + $0x338] sm:$0xff] }
 0x149   : > { %16916 = vmatmul.mubr.msk.f32.vlgmr.msra.gmra.mxu0 %vm1060_vm0, %v17869_v60  ;;  %16917 = vmatmul.mubr.msk.f32.vlgmr.msra.gmra.mxu1 %vm1060_vm0, %v17869_v60 }
 0x14a   : > { %4212 = vmatprep.subr.mxu0 %v948_v46  ;;  %4283 = vmatprep.subr.mxu1 %v950_v47  ;;  %v371_v46 = vld [vmem:[%s17518_s30 + $0x320] sm:$0xff]  ;;  %v373_v47 = vld [vmem:[%s17518_s30 + $0x330] sm:$0xff] }
 0x14b   : > { %4213 = vmatpush1.msra.mxu0 %v947_v48  ;;  %4284 = vmatpush1.msra.mxu1 %v949_v49  ;;  %v964_v48 = vld [vmem:[%s17518_s30 + $0x15a8] sm:$0xff]  ;;  %v966_v49 = vld [vmem:[%s17518_s30 + $0x15b8] sm:$0xff] }
 0x14c   : > { %4214 = vmatprep.subr.mxu0 %v752_v50  ;;  %4285 = vmatprep.subr.mxu1 %v754_v51  ;;  %v963_v50 = vld [vmem:[%s17518_s30 + $0x15a0] sm:$0xff]  ;;  %v965_v51 = vld [vmem:[%s17518_s30 + $0x15b0] sm:$0xff] }
 0x14d   : > { %4215 = vmatpush1.msra.mxu0 %v751_v52  ;;  %4286 = vmatpush1.msra.mxu1 %v753_v53  ;;  %v768_v52 = vld [vmem:[%s17518_s30 + $0xf88] sm:$0xff]  ;;  %v770_v53 = vld [vmem:[%s17518_s30 + $0xf98] sm:$0xff] }
 0x14e   : > { %4216 = vmatprep.subr.mxu0 %v556_v18  ;;  %4287 = vmatprep.subr.mxu1 %v558_v54  ;;  %v767_v18 = vld [vmem:[%s17518_s30 + $0xf80] sm:$0xff]  ;;  %v769_v54 = vld [vmem:[%s17518_s30 + $0xf90] sm:$0xff] }
 0x14f   : > { %4217 = vmatpush1.msra.mxu0 %v555_v55  ;;  %4288 = vmatpush1.msra.mxu1 %v557_v56  ;;  %v572_v55 = vld [vmem:[%s17518_s30 + $0x968] sm:$0xff]  ;;  %v574_v56 = vld [vmem:[%s17518_s30 + $0x978] sm:$0xff] }
 0x150   : > { %4218 = vmatprep.subr.mxu0 %v360_v57  ;;  %4289 = vmatprep.subr.mxu1 %v362_v58  ;;  %v571_v57 = vld [vmem:[%s17518_s30 + $0x960] sm:$0xff]  ;;  %v573_v58 = vld [vmem:[%s17518_s30 + $0x970] sm:$0xff] }
 0x151   : > { %4219 = vmatpush1.msra.mxu0 %v359_v59  ;;  %4252 = vmatprep.mubr.f32.mxu0 %v21430_v0  ;;  %v376_v59 = vld [vmem:[%s17518_s30 + $0x348] sm:$0xff] }
 0x152   : > { %4290 = vmatpush1.msra.mxu1 %v361_v61  ;;  %4323 = vmatprep.mubr.f32.mxu1 %v21430_v0  ;;  %v378_v61 = vld [vmem:[%s17518_s30 + $0x358] sm:$0xff] }
 0x153   : > { %16918 = vmatmul.mubr.msk.f32.vlgmr.msra.gmra.mxu0 %vm1060_vm0, %v17869_v60  ;;  %16919 = vmatmul.mubr.msk.f32.vlgmr.msra.gmra.mxu1 %vm1060_vm0, %v17869_v60 }
 0x154   : > { %4354 = vmatprep.subr.mxu0 %v952_v62  ;;  %4425 = vmatprep.subr.mxu1 %v954_v63  ;;  %v375_v62 = vld [vmem:[%s17518_s30 + $0x340] sm:$0xff]  ;;  %v377_v63 = vld [vmem:[%s17518_s30 + $0x350] sm:$0xff] }
 0x155   : > { %4355 = vmatpush1.msra.mxu0 %v951_v1  ;;  %4426 = vmatpush1.msra.mxu1 %v953_v2  ;;  %v968_v1 = vld [vmem:[%s17518_s30 + $0x15c8] sm:$0xff]  ;;  %v970_v2 = vld [vmem:[%s17518_s30 + $0x15d8] sm:$0xff] }
 0x156   : > { %4356 = vmatprep.subr.mxu0 %v756_v3  ;;  %4427 = vmatprep.subr.mxu1 %v758_v4  ;;  %v967_v3 = vld [vmem:[%s17518_s30 + $0x15c0] sm:$0xff]  ;;  %v969_v4 = vld [vmem:[%s17518_s30 + $0x15d0] sm:$0xff] }
 0x157   : > { %4357 = vmatpush1.msra.mxu0 %v755_v5  ;;  %4428 = vmatpush1.msra.mxu1 %v757_v6  ;;  %v772_v5 = vld [vmem:[%s17518_s30 + $0xfa8] sm:$0xff]  ;;  %v774_v6 = vld [vmem:[%s17518_s30 + $0xfb8] sm:$0xff] }
 0x158   : > { %4358 = vmatprep.subr.mxu0 %v560_v7  ;;  %4429 = vmatprep.subr.mxu1 %v562_v8  ;;  %v771_v7 = vld [vmem:[%s17518_s30 + $0xfa0] sm:$0xff]  ;;  %v773_v8 = vld [vmem:[%s17518_s30 + $0xfb0] sm:$0xff] }
 0x159   : > { %4359 = vmatpush1.msra.mxu0 %v559_v9  ;;  %4430 = vmatpush1.msra.mxu1 %v561_v10  ;;  %v576_v9 = vld [vmem:[%s17518_s30 + $0x988] sm:$0xff]  ;;  %v578_v10 = vld [vmem:[%s17518_s30 + $0x998] sm:$0xff] }
 0x15a   : > { %4360 = vmatprep.subr.mxu0 %v364_v11  ;;  %4431 = vmatprep.subr.mxu1 %v366_v12  ;;  %v575_v11 = vld [vmem:[%s17518_s30 + $0x980] sm:$0xff]  ;;  %v577_v12 = vld [vmem:[%s17518_s30 + $0x990] sm:$0xff] }
 0x15b   : > { %4361 = vmatpush1.msra.mxu0 %v363_v13  ;;  %4394 = vmatprep.mubr.f32.mxu0 %v21430_v0  ;;  %v380_v13 = vld [vmem:[%s17518_s30 + $0x368] sm:$0xff] }
 0x15c   : > { %4432 = vmatpush1.msra.mxu1 %v365_v14  ;;  %4465 = vmatprep.mubr.f32.mxu1 %v21430_v0  ;;  %v382_v14 = vld [vmem:[%s17518_s30 + $0x378] sm:$0xff] }
 0x15d   : > { %16920 = vmatmul.mubr.msk.f32.vlgmr.msra.gmra.mxu0 %vm1060_vm0, %v17869_v60  ;;  %16921 = vmatmul.mubr.msk.f32.vlgmr.msra.gmra.mxu1 %vm1060_vm0, %v17869_v60 }
 0x15e   : > { %4496 = vmatprep.subr.mxu0 %v956_v15  ;;  %4567 = vmatprep.subr.mxu1 %v958_v16  ;;  %v379_v15 = vld [vmem:[%s17518_s30 + $0x360] sm:$0xff]  ;;  %v381_v16 = vld [vmem:[%s17518_s30 + $0x370] sm:$0xff] }
 0x15f   : > { %4497 = vmatpush1.msra.mxu0 %v955_v17  ;;  %4568 = vmatpush1.msra.mxu1 %v957_v19  ;;  %v972_v17 = vld [vmem:[%s17518_s30 + $0x15e8] sm:$0xff]  ;;  %v974_v19 = vld [vmem:[%s17518_s30 + $0x15f8] sm:$0xff] }
 0x160   : > { %4498 = vmatprep.subr.mxu0 %v760_v20  ;;  %4569 = vmatprep.subr.mxu1 %v762_v21  ;;  %v971_v20 = vld [vmem:[%s17518_s30 + $0x15e0] sm:$0xff]  ;;  %v973_v21 = vld [vmem:[%s17518_s30 + $0x15f0] sm:$0xff] }
 0x161   : > { %4499 = vmatpush1.msra.mxu0 %v759_v22  ;;  %4570 = vmatpush1.msra.mxu1 %v761_v23  ;;  %v776_v22 = vld [vmem:[%s17518_s30 + $0xfc8] sm:$0xff]  ;;  %v778_v23 = vld [vmem:[%s17518_s30 + $0xfd8] sm:$0xff] }
 0x162   : > { %4500 = vmatprep.subr.mxu0 %v564_v24  ;;  %4571 = vmatprep.subr.mxu1 %v566_v25  ;;  %v775_v24 = vld [vmem:[%s17518_s30 + $0xfc0] sm:$0xff]  ;;  %v777_v25 = vld [vmem:[%s17518_s30 + $0xfd0] sm:$0xff] }
 0x163   : > { %4501 = vmatpush1.msra.mxu0 %v563_v26  ;;  %4572 = vmatpush1.msra.mxu1 %v565_v27  ;;  %v580_v26 = vld [vmem:[%s17518_s30 + $0x9a8] sm:$0xff]  ;;  %v582_v27 = vld [vmem:[%s17518_s30 + $0x9b8] sm:$0xff] }
 0x164   : > { %4502 = vmatprep.subr.mxu0 %v368_v28  ;;  %4573 = vmatprep.subr.mxu1 %v370_v29  ;;  %v579_v28 = vld [vmem:[%s17518_s30 + $0x9a0] sm:$0xff]  ;;  %v581_v29 = vld [vmem:[%s17518_s30 + $0x9b0] sm:$0xff] }
 0x165   : > { %4503 = vmatpush1.msra.mxu0 %v367_v30  ;;  %4536 = vmatprep.mubr.f32.mxu0 %v21430_v0  ;;  %v384_v30 = vld [vmem:[%s17518_s30 + $0x388] sm:$0xff] }
 0x166   : > { %4574 = vmatpush1.msra.mxu1 %v369_v31  ;;  %4607 = vmatprep.mubr.f32.mxu1 %v21430_v0  ;;  %v386_v31 = vld [vmem:[%s17518_s30 + $0x398] sm:$0xff] }
 0x167   : > { %16922 = vmatmul.mubr.msk.f32.vlgmr.msra.gmra.mxu0 %vm1060_vm0, %v17869_v60  ;;  %16923 = vmatmul.mubr.msk.f32.vlgmr.msra.gmra.mxu1 %vm1060_vm0, %v17869_v60 }
 0x168   : > { %4638 = vmatprep.subr.mxu0 %v960_v32  ;;  %4709 = vmatprep.subr.mxu1 %v962_v33  ;;  %v383_v32 = vld [vmem:[%s17518_s30 + $0x380] sm:$0xff]  ;;  %v385_v33 = vld [vmem:[%s17518_s30 + $0x390] sm:$0xff] }
 0x169   : > { %4639 = vmatpush1.msra.mxu0 %v959_v34  ;;  %4710 = vmatpush1.msra.mxu1 %v961_v35  ;;  %v976_v34 = vld [vmem:[%s17518_s30 + $0x1608] sm:$0xff]  ;;  %v978_v35 = vld [vmem:[%s17518_s30 + $0x1618] sm:$0xff] }
 0x16a   : > { %4640 = vmatprep.subr.mxu0 %v764_v36  ;;  %4711 = vmatprep.subr.mxu1 %v766_v37  ;;  %v975_v36 = vld [vmem:[%s17518_s30 + $0x1600] sm:$0xff]  ;;  %v977_v37 = vld [vmem:[%s17518_s30 + $0x1610] sm:$0xff] }
 0x16b   : > { %4641 = vmatpush1.msra.mxu0 %v763_v38  ;;  %4712 = vmatpush1.msra.mxu1 %v765_v39  ;;  %v780_v38 = vld [vmem:[%s17518_s30 + $0xfe8] sm:$0xff]  ;;  %v782_v39 = vld [vmem:[%s17518_s30 + $0xff8] sm:$0xff] }
 0x16c   : > { %4642 = vmatprep.subr.mxu0 %v568_v40  ;;  %4713 = vmatprep.subr.mxu1 %v570_v41  ;;  %v779_v40 = vld [vmem:[%s17518_s30 + $0xfe0] sm:$0xff]  ;;  %v781_v41 = vld [vmem:[%s17518_s30 + $0xff0] sm:$0xff] }
 0x16d   : > { %4643 = vmatpush1.msra.mxu0 %v567_v42  ;;  %4714 = vmatpush1.msra.mxu1 %v569_v43  ;;  %v584_v42 = vld [vmem:[%s17518_s30 + $0x9c8] sm:$0xff]  ;;  %v586_v43 = vld [vmem:[%s17518_s30 + $0x9d8] sm:$0xff] }
 0x16e   : > { %4644 = vmatprep.subr.mxu0 %v372_v44  ;;  %4715 = vmatprep.subr.mxu1 %v374_v45  ;;  %v583_v44 = vld [vmem:[%s17518_s30 + $0x9c0] sm:$0xff]  ;;  %v585_v45 = vld [vmem:[%s17518_s30 + $0x9d0] sm:$0xff] }
 0x16f   : > { %4645 = vmatpush1.msra.mxu0 %v371_v46  ;;  %4678 = vmatprep.mubr.f32.mxu0 %v21430_v0  ;;  %v390_v46 = vld [vmem:[%s17518_s30 + $0x3b8] sm:$0xff] }
 0x170   : > { %4716 = vmatpush1.msra.mxu1 %v373_v47  ;;  %4749 = vmatprep.mubr.f32.mxu1 %v21430_v0  ;;  %v387_v47 = vld [vmem:[%s17518_s30 + $0x3a0] sm:$0xff] }
 0x171   : > { %16924 = vmatmul.mubr.msk.f32.vlgmr.msra.gmra.mxu0 %vm1060_vm0, %v17869_v60  ;;  %16925 = vmatmul.mubr.msk.f32.vlgmr.msra.gmra.mxu1 %vm1060_vm0, %v17869_v60 }
 0x172   : > { %4780 = vmatprep.subr.mxu0 %v964_v48  ;;  %4851 = vmatprep.subr.mxu1 %v966_v49  ;;  %v389_v48 = vld [vmem:[%s17518_s30 + $0x3b0] sm:$0xff]  ;;  %v980_v49 = vld [vmem:[%s17518_s30 + $0x1628] sm:$0xff] }
 0x173   : > { %4781 = vmatpush1.msra.mxu0 %v963_v50  ;;  %4852 = vmatpush1.msra.mxu1 %v965_v51  ;;  %v982_v50 = vld [vmem:[%s17518_s30 + $0x1638] sm:$0xff]  ;;  %v979_v51 = vld [vmem:[%s17518_s30 + $0x1620] sm:$0xff] }
 0x174   : > { %4782 = vmatprep.subr.mxu0 %v768_v52  ;;  %4853 = vmatprep.subr.mxu1 %v770_v53  ;;  %v18201_v52 = vld [vmem:[#allocation7] sm:$0xff]  ;;  %v981_v53 = vld [vmem:[%s17518_s30 + $0x1630] sm:$0xff] }
 0x175   : > { %4783 = vmatpush1.msra.mxu0 %v767_v18  ;;  %4854 = vmatpush1.msra.mxu1 %v769_v54  ;;  %v784_v18 = vld [vmem:[%s17518_s30 + $0x1008] sm:$0xff]  ;;  %v786_v54 = vld [vmem:[%s17518_s30 + $0x1018] sm:$0xff] }
 0x176   : > { %4784 = vmatprep.subr.mxu0 %v572_v55  ;;  %4855 = vmatprep.subr.mxu1 %v574_v56  ;;  %v783_v55 = vld [vmem:[%s17518_s30 + $0x1000] sm:$0xff]  ;;  %v785_v56 = vld [vmem:[%s17518_s30 + $0x1010] sm:$0xff] }
 0x177   : > { %4785 = vmatpush1.msra.mxu0 %v571_v57  ;;  %4856 = vmatpush1.msra.mxu1 %v573_v58  ;;  %v588_v57 = vld [vmem:[%s17518_s30 + $0x9e8] sm:$0xff]  ;;  %v590_v58 = vld [vmem:[%s17518_s30 + $0x9f8] sm:$0xff] }
 0x178   : > { %4786 = vmatprep.subr.mxu0 %v376_v59  ;;  %4857 = vmatprep.subr.mxu1 %v378_v61  ;;  %v587_v59 = vld [vmem:[%s17518_s30 + $0x9e0] sm:$0xff]  ;;  %v589_v61 = vld [vmem:[%s17518_s30 + $0x9f0] sm:$0xff] }
 0x179   : > { %4787 = vmatpush1.msra.mxu0 %v375_v62  ;;  %4820 = vmatprep.mubr.f32.mxu0 %v21430_v0  ;;  %v392_v62 = vld [vmem:[%s17518_s30 + $0x3c8] sm:$0xff] }
 0x17a   : > { %4858 = vmatpush1.msra.mxu1 %v377_v63  ;;  %4891 = vmatprep.mubr.f32.mxu1 %v21430_v0  ;;  %v394_v63 = vld [vmem:[%s17518_s30 + $0x3d8] sm:$0xff] }
 0x17b   : > { %16926 = vmatmul.mubr.msk.f32.vlgmr.msra.gmra.mxu0 %vm1060_vm0, %v17869_v60  ;;  %16927 = vmatmul.mubr.msk.f32.vlgmr.msra.gmra.mxu1 %vm1060_vm0, %v17869_v60 }
 0x17c   : > { %4922 = vmatprep.subr.mxu0 %v968_v1  ;;  %4993 = vmatprep.subr.mxu1 %v970_v2  ;;  %v391_v1 = vld [vmem:[%s17518_s30 + $0x3c0] sm:$0xff]  ;;  %v393_v2 = vld [vmem:[%s17518_s30 + $0x3d0] sm:$0xff] }
 0x17d   : > { %4923 = vmatpush1.msra.mxu0 %v967_v3  ;;  %4994 = vmatpush1.msra.mxu1 %v969_v4  ;;  %v984_v3 = vld [vmem:[%s17518_s30 + $0x1648] sm:$0xff]  ;;  %v986_v4 = vld [vmem:[%s17518_s30 + $0x1658] sm:$0xff] }
 0x17e   : > { %4924 = vmatprep.subr.mxu0 %v772_v5  ;;  %4995 = vmatprep.subr.mxu1 %v774_v6  ;;  %v983_v5 = vld [vmem:[%s17518_s30 + $0x1640] sm:$0xff]  ;;  %v985_v6 = vld [vmem:[%s17518_s30 + $0x1650] sm:$0xff] }
 0x17f   : > { %4925 = vmatpush1.msra.mxu0 %v771_v7  ;;  %4996 = vmatpush1.msra.mxu1 %v773_v8  ;;  %v788_v7 = vld [vmem:[%s17518_s30 + $0x1028] sm:$0xff]  ;;  %v790_v8 = vld [vmem:[%s17518_s30 + $0x1038] sm:$0xff] }
 0x180   : > { %4926 = vmatprep.subr.mxu0 %v576_v9  ;;  %4997 = vmatprep.subr.mxu1 %v578_v10  ;;  %v787_v9 = vld [vmem:[%s17518_s30 + $0x1020] sm:$0xff]  ;;  %v789_v10 = vld [vmem:[%s17518_s30 + $0x1030] sm:$0xff] }
 0x181   : > { %4927 = vmatpush1.msra.mxu0 %v575_v11  ;;  %4998 = vmatpush1.msra.mxu1 %v577_v12  ;;  %v592_v11 = vld [vmem:[%s17518_s30 + $0xa08] sm:$0xff]  ;;  %v594_v12 = vld [vmem:[%s17518_s30 + $0xa18] sm:$0xff] }
 0x182   : > { %4928 = vmatprep.subr.mxu0 %v380_v13  ;;  %4999 = vmatprep.subr.mxu1 %v382_v14  ;;  %v591_v13 = vld [vmem:[%s17518_s30 + $0xa00] sm:$0xff]  ;;  %v593_v14 = vld [vmem:[%s17518_s30 + $0xa10] sm:$0xff] }
 0x183   : > { %4929 = vmatpush1.msra.mxu0 %v379_v15  ;;  %4962 = vmatprep.mubr.f32.mxu0 %v21430_v0  ;;  %v396_v15 = vld [vmem:[%s17518_s30 + $0x3e8] sm:$0xff] }
 0x184   : > { %5000 = vmatpush1.msra.mxu1 %v381_v16  ;;  %5033 = vmatprep.mubr.f32.mxu1 %v21430_v0  ;;  %v398_v16 = vld [vmem:[%s17518_s30 + $0x3f8] sm:$0xff] }
 0x185   : > { %16928 = vmatmul.mubr.msk.f32.vlgmr.msra.gmra.mxu0 %vm1060_vm0, %v17869_v60  ;;  %16929 = vmatmul.mubr.msk.f32.vlgmr.msra.gmra.mxu1 %vm1060_vm0, %v17869_v60 }
 0x186   : > { %5064 = vmatprep.subr.mxu0 %v972_v17  ;;  %5135 = vmatprep.subr.mxu1 %v974_v19  ;;  %v395_v17 = vld [vmem:[%s17518_s30 + $0x3e0] sm:$0xff]  ;;  %v397_v19 = vld [vmem:[%s17518_s30 + $0x3f0] sm:$0xff] }
 0x187   : > { %5065 = vmatpush1.msra.mxu0 %v971_v20  ;;  %5136 = vmatpush1.msra.mxu1 %v973_v21  ;;  %v988_v20 = vld [vmem:[%s17518_s30 + $0x1668] sm:$0xff]  ;;  %v990_v21 = vld [vmem:[%s17518_s30 + $0x1678] sm:$0xff] }
 0x188   : > { %5066 = vmatprep.subr.mxu0 %v776_v22  ;;  %5137 = vmatprep.subr.mxu1 %v778_v23  ;;  %v987_v22 = vld [vmem:[%s17518_s30 + $0x1660] sm:$0xff]  ;;  %v989_v23 = vld [vmem:[%s17518_s30 + $0x1670] sm:$0xff] }
 0x189   : > { %5067 = vmatpush1.msra.mxu0 %v775_v24  ;;  %5138 = vmatpush1.msra.mxu1 %v777_v25  ;;  %v792_v24 = vld [vmem:[%s17518_s30 + $0x1048] sm:$0xff]  ;;  %v794_v25 = vld [vmem:[%s17518_s30 + $0x1058] sm:$0xff] }
 0x18a   : > { %5068 = vmatprep.subr.mxu0 %v580_v26  ;;  %5139 = vmatprep.subr.mxu1 %v582_v27  ;;  %v791_v26 = vld [vmem:[%s17518_s30 + $0x1040] sm:$0xff]  ;;  %v793_v27 = vld [vmem:[%s17518_s30 + $0x1050] sm:$0xff] }
 0x18b   : > { %5069 = vmatpush1.msra.mxu0 %v579_v28  ;;  %5140 = vmatpush1.msra.mxu1 %v581_v29  ;;  %v596_v28 = vld [vmem:[%s17518_s30 + $0xa28] sm:$0xff]  ;;  %v598_v29 = vld [vmem:[%s17518_s30 + $0xa38] sm:$0xff] }
 0x18c   : > { %5070 = vmatprep.subr.mxu0 %v384_v30  ;;  %5141 = vmatprep.subr.mxu1 %v386_v31  ;;  %v595_v30 = vld [vmem:[%s17518_s30 + $0xa20] sm:$0xff]  ;;  %v597_v31 = vld [vmem:[%s17518_s30 + $0xa30] sm:$0xff] }
 0x18d   : > { %5071 = vmatpush1.msra.mxu0 %v383_v32  ;;  %5104 = vmatprep.mubr.f32.mxu0 %v21430_v0  ;;  %v400_v32 = vld [vmem:[%s17518_s30 + $0x408] sm:$0xff] }
 0x18e   : > { %5142 = vmatpush1.msra.mxu1 %v385_v33  ;;  %5175 = vmatprep.mubr.f32.mxu1 %v21430_v0  ;;  %v402_v33 = vld [vmem:[%s17518_s30 + $0x418] sm:$0xff] }
 0x18f   : > { %16930 = vmatmul.mubr.msk.f32.vlgmr.msra.gmra.mxu0 %vm1060_vm0, %v17869_v60  ;;  %16931 = vmatmul.mubr.msk.f32.vlgmr.msra.gmra.mxu1 %vm1060_vm0, %v17869_v60  ;;  %v388_v60 = vld [vmem:[%s17518_s30 + $0x3a8] sm:$0xff] }
 0x190   : > { %5206 = vmatprep.subr.mxu0 %v976_v34  ;;  %5277 = vmatprep.subr.mxu1 %v978_v35  ;;  %v399_v34 = vld [vmem:[%s17518_s30 + $0x400] sm:$0xff]  ;;  %v401_v35 = vld [vmem:[%s17518_s30 + $0x410] sm:$0xff] }
 0x191   : > { %5207 = vmatpush1.msra.mxu0 %v975_v36  ;;  %5278 = vmatpush1.msra.mxu1 %v977_v37  ;;  %v992_v36 = vld [vmem:[%s17518_s30 + $0x1688] sm:$0xff]  ;;  %v994_v37 = vld [vmem:[%s17518_s30 + $0x1698] sm:$0xff] }
 0x192   : > { %5208 = vmatprep.subr.mxu0 %v780_v38  ;;  %5279 = vmatprep.subr.mxu1 %v782_v39  ;;  %v991_v38 = vld [vmem:[%s17518_s30 + $0x1680] sm:$0xff]  ;;  %v993_v39 = vld [vmem:[%s17518_s30 + $0x1690] sm:$0xff] }
 0x193   : > { %5209 = vmatpush1.msra.mxu0 %v779_v40  ;;  %5280 = vmatpush1.msra.mxu1 %v781_v41  ;;  %v796_v40 = vld [vmem:[%s17518_s30 + $0x1068] sm:$0xff]  ;;  %v798_v41 = vld [vmem:[%s17518_s30 + $0x1078] sm:$0xff] }
 0x194   : > { %5210 = vmatprep.subr.mxu0 %v584_v42  ;;  %5281 = vmatprep.subr.mxu1 %v586_v43  ;;  %v795_v42 = vld [vmem:[%s17518_s30 + $0x1060] sm:$0xff]  ;;  %v797_v43 = vld [vmem:[%s17518_s30 + $0x1070] sm:$0xff] }
 0x195   : > { %5211 = vmatpush1.msra.mxu0 %v583_v44  ;;  %5282 = vmatpush1.msra.mxu1 %v585_v45  ;;  %v600_v44 = vld [vmem:[%s17518_s30 + $0xa48] sm:$0xff]  ;;  %v602_v45 = vld [vmem:[%s17518_s30 + $0xa58] sm:$0xff] }
 0x196   : > { %5212 = vmatprep.subr.mxu0 %v388_v60  ;;  %5283 = vmatprep.subr.mxu1 %v390_v46  ;;  %v599_v60 = vld [vmem:[%s17518_s30 + $0xa40] sm:$0xff]  ;;  %v601_v46 = vld [vmem:[%s17518_s30 + $0xa50] sm:$0xff] }
 0x197   : > { %5213 = vmatpush1.msra.mxu0 %v387_v47  ;;  %5246 = vmatprep.mubr.f32.mxu0 %v21430_v0  ;;  %v404_v47 = vld [vmem:[%s17518_s30 + $0x428] sm:$0xff] }
 0x198   : > { %5284 = vmatpush1.msra.mxu1 %v389_v48  ;;  %5317 = vmatprep.mubr.f32.mxu1 %v21430_v0  ;;  %v406_v48 = vld [vmem:[%s17518_s30 + $0x438] sm:$0xff] }
 0x199   : > { %16932 = vmatmul.mubr.msk.f32.vlgmr.msra.gmra.mxu0 %vm1060_vm0, %v18201_v52  ;;  %16933 = vmatmul.mubr.msk.f32.vlgmr.msra.gmra.mxu1 %vm1060_vm0, %v18201_v52 }
 0x19a   : > { %5348 = vmatprep.subr.mxu0 %v980_v49  ;;  %5419 = vmatprep.subr.mxu1 %v982_v50  ;;  %v403_v49 = vld [vmem:[%s17518_s30 + $0x420] sm:$0xff]  ;;  %v405_v50 = vld [vmem:[%s17518_s30 + $0x430] sm:$0xff] }
 0x19b   : > { %5349 = vmatpush1.msra.mxu0 %v979_v51  ;;  %5420 = vmatpush1.msra.mxu1 %v981_v53  ;;  %v996_v51 = vld [vmem:[%s17518_s30 + $0x16a8] sm:$0xff]  ;;  %v998_v53 = vld [vmem:[%s17518_s30 + $0x16b8] sm:$0xff] }
 0x19c   : > { %5350 = vmatprep.subr.mxu0 %v784_v18  ;;  %5421 = vmatprep.subr.mxu1 %v786_v54  ;;  %v995_v18 = vld [vmem:[%s17518_s30 + $0x16a0] sm:$0xff]  ;;  %v997_v54 = vld [vmem:[%s17518_s30 + $0x16b0] sm:$0xff] }
 0x19d   : > { %5351 = vmatpush1.msra.mxu0 %v783_v55  ;;  %5422 = vmatpush1.msra.mxu1 %v785_v56  ;;  %v800_v55 = vld [vmem:[%s17518_s30 + $0x1088] sm:$0xff]  ;;  %v802_v56 = vld [vmem:[%s17518_s30 + $0x1098] sm:$0xff] }
 0x19e   : > { %5352 = vmatprep.subr.mxu0 %v588_v57  ;;  %5423 = vmatprep.subr.mxu1 %v590_v58  ;;  %v799_v57 = vld [vmem:[%s17518_s30 + $0x1080] sm:$0xff]  ;;  %v801_v58 = vld [vmem:[%s17518_s30 + $0x1090] sm:$0xff] }
 0x19f   : > { %5353 = vmatpush1.msra.mxu0 %v587_v59  ;;  %5424 = vmatpush1.msra.mxu1 %v589_v61  ;;  %v604_v59 = vld [vmem:[%s17518_s30 + $0xa68] sm:$0xff]  ;;  %v606_v61 = vld [vmem:[%s17518_s30 + $0xa78] sm:$0xff] }
 0x1a0   : > { %5354 = vmatprep.subr.mxu0 %v392_v62  ;;  %5425 = vmatprep.subr.mxu1 %v394_v63  ;;  %v603_v62 = vld [vmem:[%s17518_s30 + $0xa60] sm:$0xff]  ;;  %v605_v63 = vld [vmem:[%s17518_s30 + $0xa70] sm:$0xff] }
 0x1a1   : > { %5355 = vmatpush1.msra.mxu0 %v391_v1  ;;  %5388 = vmatprep.mubr.f32.mxu0 %v21430_v0  ;;  %v408_v1 = vld [vmem:[%s17518_s30 + $0x448] sm:$0xff] }
 0x1a2   : > { %5426 = vmatpush1.msra.mxu1 %v393_v2  ;;  %5459 = vmatprep.mubr.f32.mxu1 %v21430_v0  ;;  %v410_v2 = vld [vmem:[%s17518_s30 + $0x458] sm:$0xff] }
 0x1a3   : > { %16934 = vmatmul.mubr.msk.f32.vlgmr.msra.gmra.mxu0 %vm1060_vm0, %v18201_v52  ;;  %16935 = vmatmul.mubr.msk.f32.vlgmr.msra.gmra.mxu1 %vm1060_vm0, %v18201_v52 }
 0x1a4   : > { %5490 = vmatprep.subr.mxu0 %v984_v3  ;;  %5561 = vmatprep.subr.mxu1 %v986_v4  ;;  %v407_v3 = vld [vmem:[%s17518_s30 + $0x440] sm:$0xff]  ;;  %v409_v4 = vld [vmem:[%s17518_s30 + $0x450] sm:$0xff] }
 0x1a5   : > { %5491 = vmatpush1.msra.mxu0 %v983_v5  ;;  %5562 = vmatpush1.msra.mxu1 %v985_v6  ;;  %v1000_v5 = vld [vmem:[%s17518_s30 + $0x16c8] sm:$0xff]  ;;  %v1002_v6 = vld [vmem:[%s17518_s30 + $0x16d8] sm:$0xff] }
 0x1a6   : > { %5492 = vmatprep.subr.mxu0 %v788_v7  ;;  %5563 = vmatprep.subr.mxu1 %v790_v8  ;;  %v999_v7 = vld [vmem:[%s17518_s30 + $0x16c0] sm:$0xff]  ;;  %v1001_v8 = vld [vmem:[%s17518_s30 + $0x16d0] sm:$0xff] }
 0x1a7   : > { %5493 = vmatpush1.msra.mxu0 %v787_v9  ;;  %5564 = vmatpush1.msra.mxu1 %v789_v10  ;;  %v804_v9 = vld [vmem:[%s17518_s30 + $0x10a8] sm:$0xff]  ;;  %v806_v10 = vld [vmem:[%s17518_s30 + $0x10b8] sm:$0xff] }
 0x1a8   : > { %5494 = vmatprep.subr.mxu0 %v592_v11  ;;  %5565 = vmatprep.subr.mxu1 %v594_v12  ;;  %v803_v11 = vld [vmem:[%s17518_s30 + $0x10a0] sm:$0xff]  ;;  %v805_v12 = vld [vmem:[%s17518_s30 + $0x10b0] sm:$0xff] }
 0x1a9   : > { %5495 = vmatpush1.msra.mxu0 %v591_v13  ;;  %5566 = vmatpush1.msra.mxu1 %v593_v14  ;;  %v608_v13 = vld [vmem:[%s17518_s30 + $0xa88] sm:$0xff]  ;;  %v610_v14 = vld [vmem:[%s17518_s30 + $0xa98] sm:$0xff] }
 0x1aa   : > { %5496 = vmatprep.subr.mxu0 %v396_v15  ;;  %5567 = vmatprep.subr.mxu1 %v398_v16  ;;  %v607_v15 = vld [vmem:[%s17518_s30 + $0xa80] sm:$0xff]  ;;  %v609_v16 = vld [vmem:[%s17518_s30 + $0xa90] sm:$0xff] }
 0x1ab   : > { %5497 = vmatpush1.msra.mxu0 %v395_v17  ;;  %5530 = vmatprep.mubr.f32.mxu0 %v21430_v0  ;;  %v412_v17 = vld [vmem:[%s17518_s30 + $0x468] sm:$0xff] }
 0x1ac   : > { %5568 = vmatpush1.msra.mxu1 %v397_v19  ;;  %5601 = vmatprep.mubr.f32.mxu1 %v21430_v0  ;;  %v414_v19 = vld [vmem:[%s17518_s30 + $0x478] sm:$0xff] }
 0x1ad   : > { %16936 = vmatmul.mubr.msk.f32.vlgmr.msra.gmra.mxu0 %vm1060_vm0, %v18201_v52  ;;  %16937 = vmatmul.mubr.msk.f32.vlgmr.msra.gmra.mxu1 %vm1060_vm0, %v18201_v52 }
 0x1ae   : > { %5632 = vmatprep.subr.mxu0 %v988_v20  ;;  %5703 = vmatprep.subr.mxu1 %v990_v21  ;;  %v411_v20 = vld [vmem:[%s17518_s30 + $0x460] sm:$0xff]  ;;  %v413_v21 = vld [vmem:[%s17518_s30 + $0x470] sm:$0xff] }
 0x1af   : > { %5633 = vmatpush1.msra.mxu0 %v987_v22  ;;  %5704 = vmatpush1.msra.mxu1 %v989_v23  ;;  %v1004_v22 = vld [vmem:[%s17518_s30 + $0x16e8] sm:$0xff]  ;;  %v1006_v23 = vld [vmem:[%s17518_s30 + $0x16f8] sm:$0xff] }
 0x1b0   : > { %5634 = vmatprep.subr.mxu0 %v792_v24  ;;  %5705 = vmatprep.subr.mxu1 %v794_v25  ;;  %v1003_v24 = vld [vmem:[%s17518_s30 + $0x16e0] sm:$0xff]  ;;  %v1005_v25 = vld [vmem:[%s17518_s30 + $0x16f0] sm:$0xff] }
 0x1b1   : > { %5635 = vmatpush1.msra.mxu0 %v791_v26  ;;  %5706 = vmatpush1.msra.mxu1 %v793_v27  ;;  %v808_v26 = vld [vmem:[%s17518_s30 + $0x10c8] sm:$0xff]  ;;  %v810_v27 = vld [vmem:[%s17518_s30 + $0x10d8] sm:$0xff] }
 0x1b2   : > { %5636 = vmatprep.subr.mxu0 %v596_v28  ;;  %5707 = vmatprep.subr.mxu1 %v598_v29  ;;  %v807_v28 = vld [vmem:[%s17518_s30 + $0x10c0] sm:$0xff]  ;;  %v809_v29 = vld [vmem:[%s17518_s30 + $0x10d0] sm:$0xff] }
 0x1b3   : > { %5637 = vmatpush1.msra.mxu0 %v595_v30  ;;  %5708 = vmatpush1.msra.mxu1 %v597_v31  ;;  %v612_v30 = vld [vmem:[%s17518_s30 + $0xaa8] sm:$0xff]  ;;  %v614_v31 = vld [vmem:[%s17518_s30 + $0xab8] sm:$0xff] }
 0x1b4   : > { %5638 = vmatprep.subr.mxu0 %v400_v32  ;;  %5709 = vmatprep.subr.mxu1 %v402_v33  ;;  %v611_v32 = vld [vmem:[%s17518_s30 + $0xaa0] sm:$0xff]  ;;  %v613_v33 = vld [vmem:[%s17518_s30 + $0xab0] sm:$0xff] }
 0x1b5   : > { %5639 = vmatpush1.msra.mxu0 %v399_v34  ;;  %5672 = vmatprep.mubr.f32.mxu0 %v21430_v0  ;;  %v416_v34 = vld [vmem:[%s17518_s30 + $0x488] sm:$0xff] }
 0x1b6   : > { %5710 = vmatpush1.msra.mxu1 %v401_v35  ;;  %5743 = vmatprep.mubr.f32.mxu1 %v21430_v0  ;;  %v418_v35 = vld [vmem:[%s17518_s30 + $0x498] sm:$0xff] }
 0x1b7   : > { %16938 = vmatmul.mubr.msk.f32.vlgmr.msra.gmra.mxu0 %vm1060_vm0, %v18201_v52  ;;  %16939 = vmatmul.mubr.msk.f32.vlgmr.msra.gmra.mxu1 %vm1060_vm0, %v18201_v52 }
 0x1b8   : > { %5774 = vmatprep.subr.mxu0 %v992_v36  ;;  %5845 = vmatprep.subr.mxu1 %v994_v37  ;;  %v415_v36 = vld [vmem:[%s17518_s30 + $0x480] sm:$0xff]  ;;  %v417_v37 = vld [vmem:[%s17518_s30 + $0x490] sm:$0xff] }
 0x1b9   : > { %5775 = vmatpush1.msra.mxu0 %v991_v38  ;;  %5846 = vmatpush1.msra.mxu1 %v993_v39  ;;  %v1008_v38 = vld [vmem:[%s17518_s30 + $0x1708] sm:$0xff]  ;;  %v1010_v39 = vld [vmem:[%s17518_s30 + $0x1718] sm:$0xff] }
 0x1ba   : > { %5776 = vmatprep.subr.mxu0 %v796_v40  ;;  %5847 = vmatprep.subr.mxu1 %v798_v41  ;;  %v1007_v40 = vld [vmem:[%s17518_s30 + $0x1700] sm:$0xff]  ;;  %v1009_v41 = vld [vmem:[%s17518_s30 + $0x1710] sm:$0xff] }
 0x1bb   : > { %5777 = vmatpush1.msra.mxu0 %v795_v42  ;;  %5848 = vmatpush1.msra.mxu1 %v797_v43  ;;  %v812_v42 = vld [vmem:[%s17518_s30 + $0x10e8] sm:$0xff]  ;;  %v814_v43 = vld [vmem:[%s17518_s30 + $0x10f8] sm:$0xff] }
 0x1bc   : > { %5778 = vmatprep.subr.mxu0 %v600_v44  ;;  %5849 = vmatprep.subr.mxu1 %v602_v45  ;;  %v811_v44 = vld [vmem:[%s17518_s30 + $0x10e0] sm:$0xff]  ;;  %v813_v45 = vld [vmem:[%s17518_s30 + $0x10f0] sm:$0xff] }
 0x1bd   : > { %5779 = vmatpush1.msra.mxu0 %v599_v60  ;;  %5850 = vmatpush1.msra.mxu1 %v601_v46  ;;  %v616_v60 = vld [vmem:[%s17518_s30 + $0xac8] sm:$0xff]  ;;  %v618_v46 = vld [vmem:[%s17518_s30 + $0xad8] sm:$0xff] }
 0x1be   : > { %5780 = vmatprep.subr.mxu0 %v404_v47  ;;  %5851 = vmatprep.subr.mxu1 %v406_v48  ;;  %v615_v47 = vld [vmem:[%s17518_s30 + $0xac0] sm:$0xff]  ;;  %v617_v48 = vld [vmem:[%s17518_s30 + $0xad0] sm:$0xff] }
 0x1bf   : > { %5781 = vmatpush1.msra.mxu0 %v403_v49  ;;  %5814 = vmatprep.mubr.f32.mxu0 %v21430_v0  ;;  %v420_v49 = vld [vmem:[%s17518_s30 + $0x4a8] sm:$0xff] }
 0x1c0   : > { %5852 = vmatpush1.msra.mxu1 %v405_v50  ;;  %5885 = vmatprep.mubr.f32.mxu1 %v21430_v0  ;;  %v422_v50 = vld [vmem:[%s17518_s30 + $0x4b8] sm:$0xff] }
 0x1c1   : > { %16940 = vmatmul.mubr.msk.f32.vlgmr.msra.gmra.mxu0 %vm1060_vm0, %v18201_v52  ;;  %16941 = vmatmul.mubr.msk.f32.vlgmr.msra.gmra.mxu1 %vm1060_vm0, %v18201_v52 }
 0x1c2   : > { %5916 = vmatprep.subr.mxu0 %v996_v51  ;;  %5987 = vmatprep.subr.mxu1 %v998_v53  ;;  %v419_v51 = vld [vmem:[%s17518_s30 + $0x4a0] sm:$0xff]  ;;  %v421_v53 = vld [vmem:[%s17518_s30 + $0x4b0] sm:$0xff] }
 0x1c3   : > { %5917 = vmatpush1.msra.mxu0 %v995_v18  ;;  %5988 = vmatpush1.msra.mxu1 %v997_v54  ;;  %v1012_v18 = vld [vmem:[%s17518_s30 + $0x1728] sm:$0xff]  ;;  %v1014_v54 = vld [vmem:[%s17518_s30 + $0x1738] sm:$0xff] }
 0x1c4   : > { %5918 = vmatprep.subr.mxu0 %v800_v55  ;;  %5989 = vmatprep.subr.mxu1 %v802_v56  ;;  %v1011_v55 = vld [vmem:[%s17518_s30 + $0x1720] sm:$0xff]  ;;  %v1013_v56 = vld [vmem:[%s17518_s30 + $0x1730] sm:$0xff] }
 0x1c5   : > { %5919 = vmatpush1.msra.mxu0 %v799_v57  ;;  %5990 = vmatpush1.msra.mxu1 %v801_v58  ;;  %v816_v57 = vld [vmem:[%s17518_s30 + $0x1108] sm:$0xff]  ;;  %v818_v58 = vld [vmem:[%s17518_s30 + $0x1118] sm:$0xff] }
 0x1c6   : > { %5920 = vmatprep.subr.mxu0 %v604_v59  ;;  %5991 = vmatprep.subr.mxu1 %v606_v61  ;;  %v815_v59 = vld [vmem:[%s17518_s30 + $0x1100] sm:$0xff]  ;;  %v817_v61 = vld [vmem:[%s17518_s30 + $0x1110] sm:$0xff] }
 0x1c7   : > { %5921 = vmatpush1.msra.mxu0 %v603_v62  ;;  %5992 = vmatpush1.msra.mxu1 %v605_v63  ;;  %v620_v62 = vld [vmem:[%s17518_s30 + $0xae8] sm:$0xff]  ;;  %v622_v63 = vld [vmem:[%s17518_s30 + $0xaf8] sm:$0xff] }
 0x1c8   : > { %5922 = vmatprep.subr.mxu0 %v408_v1  ;;  %5993 = vmatprep.subr.mxu1 %v410_v2  ;;  %v619_v1 = vld [vmem:[%s17518_s30 + $0xae0] sm:$0xff]  ;;  %v621_v2 = vld [vmem:[%s17518_s30 + $0xaf0] sm:$0xff] }
 0x1c9   : > { %5923 = vmatpush1.msra.mxu0 %v407_v3  ;;  %5956 = vmatprep.mubr.f32.mxu0 %v21430_v0  ;;  %v424_v3 = vld [vmem:[%s17518_s30 + $0x4c8] sm:$0xff] }
 0x1ca   : > { %5994 = vmatpush1.msra.mxu1 %v409_v4  ;;  %6027 = vmatprep.mubr.f32.mxu1 %v21430_v0  ;;  %v426_v4 = vld [vmem:[%s17518_s30 + $0x4d8] sm:$0xff] }
 0x1cb   : > { %16942 = vmatmul.mubr.msk.f32.vlgmr.msra.gmra.mxu0 %vm1060_vm0, %v18201_v52  ;;  %16943 = vmatmul.mubr.msk.f32.vlgmr.msra.gmra.mxu1 %vm1060_vm0, %v18201_v52 }
 0x1cc   : > { %6058 = vmatprep.subr.mxu0 %v1000_v5  ;;  %6129 = vmatprep.subr.mxu1 %v1002_v6  ;;  %v423_v5 = vld [vmem:[%s17518_s30 + $0x4c0] sm:$0xff]  ;;  %v425_v6 = vld [vmem:[%s17518_s30 + $0x4d0] sm:$0xff] }
 0x1cd   : > { %6059 = vmatpush1.msra.mxu0 %v999_v7  ;;  %6130 = vmatpush1.msra.mxu1 %v1001_v8  ;;  %v1016_v7 = vld [vmem:[%s17518_s30 + $0x1748] sm:$0xff]  ;;  %v1018_v8 = vld [vmem:[%s17518_s30 + $0x1758] sm:$0xff] }
 0x1ce   : > { %6060 = vmatprep.subr.mxu0 %v804_v9  ;;  %6131 = vmatprep.subr.mxu1 %v806_v10  ;;  %v1015_v9 = vld [vmem:[%s17518_s30 + $0x1740] sm:$0xff]  ;;  %v1017_v10 = vld [vmem:[%s17518_s30 + $0x1750] sm:$0xff] }
 0x1cf   : > { %6061 = vmatpush1.msra.mxu0 %v803_v11  ;;  %6132 = vmatpush1.msra.mxu1 %v805_v12  ;;  %v820_v11 = vld [vmem:[%s17518_s30 + $0x1128] sm:$0xff]  ;;  %v822_v12 = vld [vmem:[%s17518_s30 + $0x1138] sm:$0xff] }
 0x1d0   : > { %6062 = vmatprep.subr.mxu0 %v608_v13  ;;  %6133 = vmatprep.subr.mxu1 %v610_v14  ;;  %v819_v13 = vld [vmem:[%s17518_s30 + $0x1120] sm:$0xff]  ;;  %v821_v14 = vld [vmem:[%s17518_s30 + $0x1130] sm:$0xff] }
 0x1d1   : > { %6063 = vmatpush1.msra.mxu0 %v607_v15  ;;  %6134 = vmatpush1.msra.mxu1 %v609_v16  ;;  %v624_v15 = vld [vmem:[%s17518_s30 + $0xb08] sm:$0xff]  ;;  %v626_v16 = vld [vmem:[%s17518_s30 + $0xb18] sm:$0xff] }
 0x1d2   : > { %6064 = vmatprep.subr.mxu0 %v412_v17  ;;  %6135 = vmatprep.subr.mxu1 %v414_v19  ;;  %v623_v17 = vld [vmem:[%s17518_s30 + $0xb00] sm:$0xff]  ;;  %v625_v19 = vld [vmem:[%s17518_s30 + $0xb10] sm:$0xff] }
 0x1d3   : > { %6065 = vmatpush1.msra.mxu0 %v411_v20  ;;  %6098 = vmatprep.mubr.f32.mxu0 %v21430_v0  ;;  %v428_v20 = vld [vmem:[%s17518_s30 + $0x4e8] sm:$0xff] }
 0x1d4   : > { %6136 = vmatpush1.msra.mxu1 %v413_v21  ;;  %6169 = vmatprep.mubr.f32.mxu1 %v21430_v0  ;;  %v430_v21 = vld [vmem:[%s17518_s30 + $0x4f8] sm:$0xff] }
 0x1d5   : > { %16944 = vmatmul.mubr.msk.f32.vlgmr.msra.gmra.mxu0 %vm1060_vm0, %v18201_v52  ;;  %16945 = vmatmul.mubr.msk.f32.vlgmr.msra.gmra.mxu1 %vm1060_vm0, %v18201_v52 }
 0x1d6   : > { %6200 = vmatprep.subr.mxu0 %v1004_v22  ;;  %6271 = vmatprep.subr.mxu1 %v1006_v23  ;;  %v427_v22 = vld [vmem:[%s17518_s30 + $0x4e0] sm:$0xff]  ;;  %v429_v23 = vld [vmem:[%s17518_s30 + $0x4f0] sm:$0xff] }
 0x1d7   : > { %6201 = vmatpush1.msra.mxu0 %v1003_v24  ;;  %6272 = vmatpush1.msra.mxu1 %v1005_v25  ;;  %v18418_v24 = vpop.f32.mrf.mxu0  ;;  %v1020_v25 = vld [vmem:[%s17518_s30 + $0x1768] sm:$0xff] }
 0x1d8   : > { %6202 = vmatprep.subr.mxu0 %v808_v26  ;;  %6273 = vmatprep.subr.mxu1 %v810_v27  ;;  %v18421_v26 = vpop.f32.mrf.mxu1  ;;  %v1022_v27 = vld [vmem:[%s17518_s30 + $0x1778] sm:$0xff] }
 0x1d9   : > { %6203 = vmatpush1.msra.mxu0 %v807_v28  ;;  %6274 = vmatpush1.msra.mxu1 %v809_v29  ;;  %v1019_v28 = vld [vmem:[%s17518_s30 + $0x1760] sm:$0xff]  ;;  %v1021_v29 = vld [vmem:[%s17518_s30 + $0x1770] sm:$0xff] }
 0x1da   : > { %6204 = vmatprep.subr.mxu0 %v612_v30  ;;  %6275 = vmatprep.subr.mxu1 %v614_v31  ;;  %v824_v30 = vld [vmem:[%s17518_s30 + $0x1148] sm:$0xff]  ;;  %v826_v31 = vld [vmem:[%s17518_s30 + $0x1158] sm:$0xff] }
 0x1db   : > { %6205 = vmatpush1.msra.mxu0 %v611_v32  ;;  %6276 = vmatpush1.msra.mxu1 %v613_v33  ;;  %v823_v32 = vld [vmem:[%s17518_s30 + $0x1140] sm:$0xff]  ;;  %v18435_v33 = vpop.f32.mrf.mxu0 }
 0x1dc   : > { %6206 = vmatprep.subr.mxu0 %v416_v34  ;;  %6277 = vmatprep.subr.mxu1 %v418_v35  ;;  %v825_v34 = vld [vmem:[%s17518_s30 + $0x1150] sm:$0xff]  ;;  %v628_v35 = vld [vmem:[%s17518_s30 + $0xb28] sm:$0xff] }
 0x1dd   : > { %6207 = vmatpush1.msra.mxu0 %v415_v36  ;;  %6240 = vmatprep.mubr.f32.mxu0 %v21430_v0  ;;  %v18439_v36 = vpop.f32.mrf.mxu1 }
 0x1de   : > { %6278 = vmatpush1.msra.mxu1 %v417_v37  ;;  %6311 = vmatprep.mubr.f32.mxu1 %v21430_v0  ;;  %v630_v37 = vld [vmem:[%s17518_s30 + $0xb38] sm:$0xff] }
 0x1df   : > { %16946 = vmatmul.mubr.msk.f32.vlgmr.msra.gmra.mxu0 %vm1060_vm0, %v18201_v52  ;;  %16947 = vmatmul.mubr.msk.f32.vlgmr.msra.gmra.mxu1 %vm1060_vm0, %v18201_v52 }
 0x1e0   : > { %6342 = vmatprep.subr.mxu0 %v1008_v38  ;;  %6413 = vmatprep.subr.mxu1 %v1010_v39  ;;  %v627_v38 = vld [vmem:[%s17518_s30 + $0xb20] sm:$0xff]  ;;  %v18443_v39 = vpop.f32.mrf.mxu0 }
 0x1e1   : > { %6343 = vmatpush1.msra.mxu0 %v1007_v40  ;;  %6414 = vmatpush1.msra.mxu1 %v1009_v41  ;;  %v629_v40 = vld [vmem:[%s17518_s30 + $0xb30] sm:$0xff]  ;;  %v432_v41 = vld [vmem:[%s17518_s30 + $0x508] sm:$0xff] }
 0x1e2   : > { %6344 = vmatprep.subr.mxu0 %v812_v42  ;;  %6415 = vmatprep.subr.mxu1 %v814_v43  ;;  %v18447_v42 = vpop.f32.mrf.mxu1  ;;  %v434_v43 = vld [vmem:[%s17518_s30 + $0x518] sm:$0xff] }
 0x1e3   : > { %6345 = vmatpush1.msra.mxu0 %v811_v44  ;;  %6416 = vmatpush1.msra.mxu1 %v813_v45  ;;  %v431_v44 = vld [vmem:[%s17518_s30 + $0x500] sm:$0xff]  ;;  %v433_v45 = vld [vmem:[%s17518_s30 + $0x510] sm:$0xff] }
 0x1e4   : > { %6346 = vmatprep.subr.mxu0 %v616_v60  ;;  %6417 = vmatprep.subr.mxu1 %v618_v46  ;;  %v18452_v60 = vpop.f32.mrf.mxu0  ;;  %v1024_v46 = vld [vmem:[%s17518_s30 + $0x1788] sm:$0xff] }
 0x1e5   : > { %6347 = vmatpush1.msra.mxu0 %v615_v47  ;;  %6418 = vmatpush1.msra.mxu1 %v617_v48  ;;  %v18455_v47 = vpop.f32.mrf.mxu1  ;;  %v1026_v48 = vld [vmem:[%s17518_s30 + $0x1798] sm:$0xff] }
 0x1e6   : > { %6348 = vmatprep.subr.mxu0 %v420_v49  ;;  %6419 = vmatprep.subr.mxu1 %v422_v50  ;;  %v1023_v49 = vld [vmem:[%s17518_s30 + $0x1780] sm:$0xff]  ;;  %v18460_v50 = vpop.f32.mrf.mxu0 }
 0x1e7   : > { %6349 = vmatpush1.msra.mxu0 %v419_v51  ;;  %6382 = vmatprep.mubr.f32.mxu0 %v21430_v0  ;;  %v1025_v51 = vld [vmem:[%s17518_s30 + $0x1790] sm:$0xff] }
 0x1e8   : > { %6420 = vmatpush1.msra.mxu1 %v421_v53  ;;  %6453 = vmatprep.mubr.f32.mxu1 %v21430_v0  ;;  %v828_v53 = vld [vmem:[%s17518_s30 + $0x1168] sm:$0xff] }
 0x1e9   : > { %16948 = vmatmul.mubr.msk.f32.vlgmr.msra.gmra.mxu0 %vm1060_vm0, %v18201_v52  ;;  %16949 = vmatmul.mubr.msk.f32.vlgmr.msra.gmra.mxu1 %vm1060_vm0, %v18201_v52 }
 0x1ea   : > { %6484 = vmatprep.subr.mxu0 %v1012_v18  ;;  %6555 = vmatprep.subr.mxu1 %v1014_v54  ;;  %v18467_v18 = vpop.f32.mrf.mxu1  ;;  %v830_v54 = vld [vmem:[%s17518_s30 + $0x1178] sm:$0xff] }
 0x1eb   : > { %6485 = vmatpush1.msra.mxu0 %v1011_v55  ;;  %6556 = vmatpush1.msra.mxu1 %v1013_v56  ;;  %v827_v55 = vld [vmem:[%s17518_s30 + $0x1160] sm:$0xff]  ;;  %v829_v56 = vld [vmem:[%s17518_s30 + $0x1170] sm:$0xff] }
 0x1ec   : > { %6486 = vmatprep.subr.mxu0 %v816_v57  ;;  %6557 = vmatprep.subr.mxu1 %v818_v58  ;;  %v632_v57 = vld [vmem:[%s17518_s30 + $0xb48] sm:$0xff]  ;;  %v634_v58 = vld [vmem:[%s17518_s30 + $0xb58] sm:$0xff] }
 0x1ed   : > { %6487 = vmatpush1.msra.mxu0 %v815_v59  ;;  %6558 = vmatpush1.msra.mxu1 %v817_v61  ;;  %v631_v59 = vld [vmem:[%s17518_s30 + $0xb40] sm:$0xff]  ;;  %v18477_v61 = vpop.f32.mrf.mxu0 }
 0x1ee   : > { %6488 = vmatprep.subr.mxu0 %v620_v62  ;;  %6559 = vmatprep.subr.mxu1 %v622_v63  ;;  %v633_v62 = vld [vmem:[%s17518_s30 + $0xb50] sm:$0xff]  ;;  %v436_v63 = vld [vmem:[%s17518_s30 + $0x528] sm:$0xff] }
 0x1ef   : > { %6489 = vmatpush1.msra.mxu0 %v619_v1  ;;  %6560 = vmatpush1.msra.mxu1 %v621_v2  ;;  %v18481_v1 = vpop.f32.mrf.mxu1  ;;  %v438_v2 = vld [vmem:[%s17518_s30 + $0x538] sm:$0xff] }
 0x1f0   : > { %6490 = vmatprep.subr.mxu0 %v424_v3  ;;  %6561 = vmatprep.subr.mxu1 %v426_v4  ;;  %v435_v3 = vld [vmem:[%s17518_s30 + $0x520] sm:$0xff]  ;;  %v18485_v4 = vpop.f32.mrf.mxu0 }
 0x1f1   : > { %6491 = vmatpush1.msra.mxu0 %v423_v5  ;;  %6524 = vmatprep.mubr.f32.mxu0 %v21430_v0  ;;  %v437_v5 = vld [vmem:[%s17518_s30 + $0x530] sm:$0xff] }
 0x1f2   : > { %6562 = vmatpush1.msra.mxu1 %v425_v6  ;;  %6595 = vmatprep.mubr.f32.mxu1 %v21430_v0  ;;  %v18488_v6 = vpop.f32.mrf.mxu1 }
 0x1f3   : > { %16950 = vmatmul.mubr.msk.f32.vlgmr.msra.gmra.mxu0 %vm1060_vm0, %v18201_v52  ;;  %16951 = vmatmul.mubr.msk.f32.vlgmr.msra.gmra.mxu1 %vm1060_vm0, %v18201_v52 }
 0x1f4   : > { %6626 = vmatprep.subr.mxu0 %v1016_v7  ;;  %6697 = vmatprep.subr.mxu1 %v1018_v8  ;;  %v1028_v7 = vld [vmem:[%s17518_s30 + $0x17a8] sm:$0xff]  ;;  %v1030_v8 = vld [vmem:[%s17518_s30 + $0x17b8] sm:$0xff] }
 0x1f5   : > { %6627 = vmatpush1.msra.mxu0 %v1015_v9  ;;  %6698 = vmatpush1.msra.mxu1 %v1017_v10  ;;  %v1027_v9 = vld [vmem:[%s17518_s30 + $0x17a0] sm:$0xff]  ;;  %v18494_v10 = vpop.f32.mrf.mxu0 }
 0x1f6   : > { %6628 = vmatprep.subr.mxu0 %v820_v11  ;;  %6699 = vmatprep.subr.mxu1 %v822_v12  ;;  %v1029_v11 = vld [vmem:[%s17518_s30 + $0x17b0] sm:$0xff]  ;;  %v832_v12 = vld [vmem:[%s17518_s30 + $0x1188] sm:$0xff] }
 0x1f7   : > { %6629 = vmatpush1.msra.mxu0 %v819_v13  ;;  %6700 = vmatpush1.msra.mxu1 %v821_v14  ;;  %v18501_v13 = vpop.f32.mrf.mxu1  ;;  %v834_v14 = vld [vmem:[%s17518_s30 + $0x1198] sm:$0xff] }
 0x1f8   : > { %6630 = vmatprep.subr.mxu0 %v624_v15  ;;  %6701 = vmatprep.subr.mxu1 %v626_v16  ;;  %v831_v15 = vld [vmem:[%s17518_s30 + $0x1180] sm:$0xff]  ;;  %v18507_v16 = vpop.f32.mrf.mxu0 }
 0x1f9   : > { %6631 = vmatpush1.msra.mxu0 %v623_v17  ;;  %6702 = vmatpush1.msra.mxu1 %v625_v19  ;;  %v833_v17 = vld [vmem:[%s17518_s30 + $0x1190] sm:$0xff]  ;;  %v636_v19 = vld [vmem:[%s17518_s30 + $0xb68] sm:$0xff] }
 0x1fa   : > { %6632 = vmatprep.subr.mxu0 %v428_v20  ;;  %6703 = vmatprep.subr.mxu1 %v430_v21  ;;  %v18511_v20 = vpop.f32.mrf.mxu1  ;;  %v638_v21 = vld [vmem:[%s17518_s30 + $0xb78] sm:$0xff] }
 0x1fb   : > { %6633 = vmatpush1.msra.mxu0 %v427_v22  ;;  %6666 = vmatprep.mubr.f32.mxu0 %v21430_v0  ;;  %v635_v22 = vld [vmem:[%s17518_s30 + $0xb60] sm:$0xff] }
 0x1fc   : > { %6704 = vmatpush1.msra.mxu1 %v429_v23  ;;  %6737 = vmatprep.mubr.f32.mxu1 %v21430_v0  ;;  %v637_v23 = vld [vmem:[%s17518_s30 + $0xb70] sm:$0xff] }
 0x1fd   : > { %16952 = vmatmul.mubr.msk.f32.vlgmr.msra.gmra.mxu0 %vm1060_vm0, %v18201_v52  ;;  %16953 = vmatmul.mubr.msk.f32.vlgmr.msra.gmra.mxu1 %vm1060_vm0, %v18201_v52 }
 0x1fe   : > { %6768 = vmatprep.subr.mxu0 %v1020_v25  ;;  %6839 = vmatprep.subr.mxu1 %v1022_v27  ;;  %v440_v25 = vld [vmem:[%s17518_s30 + $0x548] sm:$0xff]  ;;  %v442_v27 = vld [vmem:[%s17518_s30 + $0x558] sm:$0xff] }
 0x1ff   : > { %6769 = vmatpush1.msra.mxu0 %v1019_v28  ;;  %6840 = vmatpush1.msra.mxu1 %v1021_v29  ;;  %v439_v28 = vld [vmem:[%s17518_s30 + $0x540] sm:$0xff]  ;;  %v18519_v29 = vpop.f32.mrf.mxu0 }
 0x200   : > { %6770 = vmatprep.subr.mxu0 %v824_v30  ;;  %6841 = vmatprep.subr.mxu1 %v826_v31  ;;  %v441_v30 = vld [vmem:[%s17518_s30 + $0x550] sm:$0xff]  ;;  %v18522_v31 = vpop.f32.mrf.mxu1 }
 0x201   : > { %6771 = vmatpush1.msra.mxu0 %v823_v32  ;;  %6842 = vmatpush1.msra.mxu1 %v825_v34  ;;  %v18524_v32 = vpop.f32.mrf.mxu0  ;;  %v1032_v34 = vld [vmem:[%s17518_s30 + $0x17c8] sm:$0xff] }
 0x202   : > { %6772 = vmatprep.subr.mxu0 %v628_v35  ;;  %6843 = vmatprep.subr.mxu1 %v630_v37  ;;  %v18527_v35 = vpop.f32.mrf.mxu1  ;;  %v1034_v37 = vld [vmem:[%s17518_s30 + $0x17d8] sm:$0xff] }
 0x203   : > { %6773 = vmatpush1.msra.mxu0 %v627_v38  ;;  %6844 = vmatpush1.msra.mxu1 %v629_v40  ;;  %v1031_v38 = vld [vmem:[%s17518_s30 + $0x17c0] sm:$0xff]  ;;  %v1033_v40 = vld [vmem:[%s17518_s30 + $0x17d0] sm:$0xff] }
 0x204   : > { %6774 = vmatprep.subr.mxu0 %v432_v41  ;;  %6845 = vmatprep.subr.mxu1 %v434_v43  ;;  %v836_v41 = vld [vmem:[%s17518_s30 + $0x11a8] sm:$0xff]  ;;  %v838_v43 = vld [vmem:[%s17518_s30 + $0x11b8] sm:$0xff] }
 0x205   : > { %6775 = vmatpush1.msra.mxu0 %v431_v44  ;;  %6808 = vmatprep.mubr.f32.mxu0 %v21430_v0  ;;  %v835_v44 = vld [vmem:[%s17518_s30 + $0x11a0] sm:$0xff] }
 0x206   : > { %6846 = vmatpush1.msra.mxu1 %v433_v45  ;;  %6879 = vmatprep.mubr.f32.mxu1 %v21430_v0  ;;  %v18541_v45 = vpop.f32.mrf.mxu0 }
 0x207   : > { %16954 = vmatmul.mubr.msk.f32.vlgmr.msra.gmra.mxu0 %vm1060_vm0, %v18201_v52  ;;  %16955 = vmatmul.mubr.msk.f32.vlgmr.msra.gmra.mxu1 %vm1060_vm0, %v18201_v52 }
 0x208   : > { %6910 = vmatprep.subr.mxu0 %v1024_v46  ;;  %6981 = vmatprep.subr.mxu1 %v1026_v48  ;;  %v837_v46 = vld [vmem:[%s17518_s30 + $0x11b0] sm:$0xff]  ;;  %v640_v48 = vld [vmem:[%s17518_s30 + $0xb88] sm:$0xff] }
 0x209   : > { %6911 = vmatpush1.msra.mxu0 %v1023_v49  ;;  %6982 = vmatpush1.msra.mxu1 %v1025_v51  ;;  %v18545_v49 = vpop.f32.mrf.mxu1  ;;  %v642_v51 = vld [vmem:[%s17518_s30 + $0xb98] sm:$0xff] }
 0x20a   : > { %6912 = vmatprep.subr.mxu0 %v828_v53  ;;  %6983 = vmatprep.subr.mxu1 %v830_v54  ;;  %v18549_v53 = vpop.f32.mrf.mxu0  ;;  %v641_v54 = vld [vmem:[%s17518_s30 + $0xb90] sm:$0xff] }
 0x20b   : > { %6913 = vmatpush1.msra.mxu0 %v827_v55  ;;  %6984 = vmatpush1.msra.mxu1 %v829_v56  ;;  %v444_v55 = vld [vmem:[%s17518_s30 + $0x568] sm:$0xff]  ;;  %v18553_v56 = vpop.f32.mrf.mxu1 }
 0x20c   : > { %6914 = vmatprep.subr.mxu0 %v632_v57  ;;  %6985 = vmatprep.subr.mxu1 %v634_v58  ;;  %v446_v57 = vld [vmem:[%s17518_s30 + $0x578] sm:$0xff]  ;;  %v443_v58 = vld [vmem:[%s17518_s30 + $0x560] sm:$0xff] }
 0x20d   : > { %6915 = vmatpush1.msra.mxu0 %v631_v59  ;;  %6986 = vmatpush1.msra.mxu1 %v633_v62  ;;  %v445_v59 = vld [vmem:[%s17518_s30 + $0x570] sm:$0xff]  ;;  %v18558_v62 = vpop.f32.mrf.mxu0 }
 0x20e   : > { %6916 = vmatprep.subr.mxu0 %v436_v63  ;;  %6987 = vmatprep.subr.mxu1 %v438_v2  ;;  %v1036_v63 = vld [vmem:[%s17518_s30 + $0x17e8] sm:$0xff]  ;;  %v18561_v2 = vpop.f32.mrf.mxu1 }
 0x20f   : > { %6917 = vmatpush1.msra.mxu0 %v435_v3  ;;  %6950 = vmatprep.mubr.f32.mxu0 %v21430_v0  ;;  %v1038_v3 = vld [vmem:[%s17518_s30 + $0x17f8] sm:$0xff] }
 0x210   : > { %6988 = vmatpush1.msra.mxu1 %v437_v5  ;;  %7021 = vmatprep.mubr.f32.mxu1 %v21430_v0  ;;  %v1035_v5 = vld [vmem:[%s17518_s30 + $0x17e0] sm:$0xff] }
 0x211   : > { %16956 = vmatmul.mubr.msk.f32.vlgmr.msra.gmra.mxu0 %vm1060_vm0, %v18201_v52  ;;  %16957 = vmatmul.mubr.msk.f32.vlgmr.msra.gmra.mxu1 %vm1060_vm0, %v18201_v52 }
 0x212   : > { %7052 = vmatprep.subr.mxu0 %v1028_v7  ;;  %7123 = vmatprep.subr.mxu1 %v1030_v8  ;;  %v18566_v7 = vpop.f32.mrf.mxu0  ;;  %v18569_v8 = vld [vmem:[#allocation7] sm:$0xff] }
 0x213   : > { %7053 = vmatpush1.msra.mxu0 %v1027_v9  ;;  %7124 = vmatpush1.msra.mxu1 %v1029_v11  ;;  %v1037_v9 = vld [vmem:[%s17518_s30 + $0x17f0] sm:$0xff]  ;;  %v840_v11 = vld [vmem:[%s17518_s30 + $0x11c8] sm:$0xff] }
 0x214   : > { %7054 = vmatprep.subr.mxu0 %v832_v12  ;;  %7125 = vmatprep.subr.mxu1 %v834_v14  ;;  %v18575_v12 = vpop.f32.mrf.mxu1  ;;  %v842_v14 = vld [vmem:[%s17518_s30 + $0x11d8] sm:$0xff] }
 0x215   : > { %7055 = vmatpush1.msra.mxu0 %v831_v15  ;;  %7126 = vmatpush1.msra.mxu1 %v833_v17  ;;  %v839_v15 = vld [vmem:[%s17518_s30 + $0x11c0] sm:$0xff]  ;;  %v841_v17 = vld [vmem:[%s17518_s30 + $0x11d0] sm:$0xff] }
 0x216   : > { %7056 = vmatprep.subr.mxu0 %v636_v19  ;;  %7127 = vmatprep.subr.mxu1 %v638_v21  ;;  %v644_v19 = vld [vmem:[%s17518_s30 + $0xba8] sm:$0xff]  ;;  %v646_v21 = vld [vmem:[%s17518_s30 + $0xbb8] sm:$0xff] }
 0x217   : > { %7057 = vmatpush1.msra.mxu0 %v635_v22  ;;  %7128 = vmatpush1.msra.mxu1 %v637_v23  ;;  %v643_v22 = vld [vmem:[%s17518_s30 + $0xba0] sm:$0xff]  ;;  %v18585_v23 = vpop.f32.mrf.mxu0 }
 0x218   : > { %7058 = vmatprep.subr.mxu0 %v440_v25  ;;  %7129 = vmatprep.subr.mxu1 %v442_v27  ;;  %v645_v25 = vld [vmem:[%s17518_s30 + $0xbb0] sm:$0xff]  ;;  %v448_v27 = vld [vmem:[%s17518_s30 + $0x588] sm:$0xff] }
 0x219   : > { %7059 = vmatpush1.msra.mxu0 %v439_v28  ;;  %7092 = vmatprep.mubr.f32.mxu0 %v21430_v0  ;;  %v18589_v28 = vpop.f32.mrf.mxu1 }
 0x21a   : > { %7130 = vmatpush1.msra.mxu1 %v441_v30  ;;  %7163 = vmatprep.mubr.f32.mxu1 %v21430_v0  ;;  %v450_v30 = vld [vmem:[%s17518_s30 + $0x598] sm:$0xff] }
 0x21b   : > { %16958 = vmatmul.mubr.msk.f32.vlgmr.msra.gmra.mxu0 %vm1060_vm0, %v18201_v52  ;;  %16959 = vmatmul.mubr.msk.f32.vlgmr.msra.gmra.mxu1 %vm1060_vm0, %v18201_v52  ;;  %v639_v52 = vld [vmem:[%s17518_s30 + $0xb80] sm:$0xff] }
 0x21c   : > { %7194 = vmatprep.subr.mxu0 %v1032_v34  ;;  %7265 = vmatprep.subr.mxu1 %v1034_v37  ;;  %v447_v34 = vld [vmem:[%s17518_s30 + $0x580] sm:$0xff]  ;;  %v18593_v37 = vpop.f32.mrf.mxu0 }
 0x21d   : > { %7195 = vmatpush1.msra.mxu0 %v1031_v38  ;;  %7266 = vmatpush1.msra.mxu1 %v1033_v40  ;;  %v449_v38 = vld [vmem:[%s17518_s30 + $0x590] sm:$0xff]  ;;  %v18596_v40 = vpop.f32.mrf.mxu1 }
 0x21e   : > { %7196 = vmatprep.subr.mxu0 %v836_v41  ;;  %7267 = vmatprep.subr.mxu1 %v838_v43  ;;  %v1040_v41 = vld [vmem:[%s17518_s30 + $0x1808] sm:$0xff]  ;;  %v1042_v43 = vld [vmem:[%s17518_s30 + $0x1818] sm:$0xff] }
 0x21f   : > { %7197 = vmatpush1.msra.mxu0 %v835_v44  ;;  %7268 = vmatpush1.msra.mxu1 %v837_v46  ;;  %v1039_v44 = vld [vmem:[%s17518_s30 + $0x1800] sm:$0xff]  ;;  %v18602_v46 = vpop.f32.mrf.mxu0 }
 0x220   : > { %7198 = vmatprep.subr.mxu0 %v640_v48  ;;  %7269 = vmatprep.subr.mxu1 %v642_v51  ;;  %v1041_v48 = vld [vmem:[%s17518_s30 + $0x1810] sm:$0xff]  ;;  %v844_v51 = vld [vmem:[%s17518_s30 + $0x11e8] sm:$0xff] }
 0x221   : > { %7199 = vmatpush1.msra.mxu0 %v639_v52  ;;  %7270 = vmatpush1.msra.mxu1 %v641_v54  ;;  %v18609_v52 = vpop.f32.mrf.mxu1  ;;  %v846_v54 = vld [vmem:[%s17518_s30 + $0x11f8] sm:$0xff] }
 0x222   : > { %7200 = vmatprep.subr.mxu0 %v444_v55  ;;  %7271 = vmatprep.subr.mxu1 %v446_v57  ;;  %v843_v55 = vld [vmem:[%s17518_s30 + $0x11e0] sm:$0xff]  ;;  %v18615_v57 = vpop.f32.mrf.mxu0 }
 0x223   : > { %7201 = vmatpush1.msra.mxu0 %v443_v58  ;;  %7234 = vmatprep.mubr.f32.mxu0 %v21430_v0  ;;  %v845_v58 = vld [vmem:[%s17518_s30 + $0x11f0] sm:$0xff] }
 0x224   : > { %7272 = vmatpush1.msra.mxu1 %v445_v59  ;;  %7305 = vmatprep.mubr.f32.mxu1 %v21430_v0  ;;  %v648_v59 = vld [vmem:[%s17518_s30 + $0xbc8] sm:$0xff] }
 0x225   : > { %16960 = vmatmul.mubr.msk.f32.vlgmr.msra.gmra.mxu0 %vm1060_vm0, %v18569_v8  ;;  %16961 = vmatmul.mubr.msk.f32.vlgmr.msra.gmra.mxu1 %vm1060_vm0, %v18569_v8 }
 0x226   : > { %7336 = vmatprep.subr.mxu0 %v1036_v63  ;;  %7407 = vmatprep.subr.mxu1 %v1038_v3  ;;  %v18619_v63 = vpop.f32.mrf.mxu1  ;;  %v650_v3 = vld [vmem:[%s17518_s30 + $0xbd8] sm:$0xff] }
 0x227   : > { %7337 = vmatpush1.msra.mxu0 %v1035_v5  ;;  %7408 = vmatpush1.msra.mxu1 %v1037_v9  ;;  %v647_v5 = vld [vmem:[%s17518_s30 + $0xbc0] sm:$0xff]  ;;  %v649_v9 = vld [vmem:[%s17518_s30 + $0xbd0] sm:$0xff] }
 0x228   : > { %7338 = vmatprep.subr.mxu0 %v840_v11  ;;  %7409 = vmatprep.subr.mxu1 %v842_v14  ;;  %v452_v11 = vld [vmem:[%s17518_s30 + $0x5a8] sm:$0xff]  ;;  %v454_v14 = vld [vmem:[%s17518_s30 + $0x5b8] sm:$0xff] }
 0x229   : > { %7339 = vmatpush1.msra.mxu0 %v839_v15  ;;  %7410 = vmatpush1.msra.mxu1 %v841_v17  ;;  %v451_v15 = vld [vmem:[%s17518_s30 + $0x5a0] sm:$0xff]  ;;  %v18627_v17 = vpop.f32.mrf.mxu0 }
 0x22a   : > { %7340 = vmatprep.subr.mxu0 %v644_v19  ;;  %7411 = vmatprep.subr.mxu1 %v646_v21  ;;  %v453_v19 = vld [vmem:[%s17518_s30 + $0x5b0] sm:$0xff]  ;;  %v18630_v21 = vpop.f32.mrf.mxu1 }
 0x22b   : > { %7341 = vmatpush1.msra.mxu0 %v643_v22  ;;  %7412 = vmatpush1.msra.mxu1 %v645_v25  ;;  %21489 = vst [vmem:[#allocation13_spill] sm:$0xff] %v18630_v21  ;;  %v18632_v22 = vpop.f32.mrf.mxu0  ;;  %v1044_v25 = vld [vmem:[%s17518_s30 + $0x1828] sm:$0xff] }
 0x22c   : > { %7342 = vmatprep.subr.mxu0 %v448_v27  ;;  %7413 = vmatprep.subr.mxu1 %v450_v30  ;;  %21490 = vst [vmem:[#allocation14_spill] sm:$0xff] %v18632_v22  ;;  %v18635_v27 = vpop.f32.mrf.mxu1  ;;  %v1046_v30 = vld [vmem:[%s17518_s30 + $0x1838] sm:$0xff]  ;;  %v8302_v22 = vld [vmem:[%s17525_s8 + $0x2a0] sm:$0xff] }
 0x22d   : > { %7343 = vmatpush1.msra.mxu0 %v447_v34  ;;  %7376 = vmatprep.mubr.f32.mxu0 %v21430_v0  ;;  %21491 = vst [vmem:[#allocation15_spill] sm:$0xff] %v18635_v27  ;;  %v1043_v34 = vld [vmem:[%s17518_s30 + $0x1820] sm:$0xff] }
 0x22e   : > { %7414 = vmatpush1.msra.mxu1 %v449_v38  ;;  %7447 = vmatprep.mubr.f32.mxu1 %v21430_v0  ;;  %v1045_v38 = vld [vmem:[%s17518_s30 + $0x1830] sm:$0xff] }
 0x22f   : > { %16962 = vmatmul.mubr.msk.f32.vlgmr.msra.gmra.mxu0 %vm1060_vm0, %v18569_v8  ;;  %16963 = vmatmul.mubr.msk.f32.vlgmr.msra.gmra.mxu1 %vm1060_vm0, %v18569_v8 }
 0x230   : > { %7478 = vmatprep.subr.mxu0 %v1040_v41  ;;  %7549 = vmatprep.subr.mxu1 %v1042_v43  ;;  %v848_v41 = vld [vmem:[%s17518_s30 + $0x1208] sm:$0xff]  ;;  %v850_v43 = vld [vmem:[%s17518_s30 + $0x1218] sm:$0xff] }
 0x231   : > { %7479 = vmatpush1.msra.mxu0 %v1039_v44  ;;  %7550 = vmatpush1.msra.mxu1 %v1041_v48  ;;  %v847_v44 = vld [vmem:[%s17518_s30 + $0x1200] sm:$0xff]  ;;  %v18649_v48 = vpop.f32.mrf.mxu0 }
 0x232   : > { %7480 = vmatprep.subr.mxu0 %v844_v51  ;;  %7551 = vmatprep.subr.mxu1 %v846_v54  ;;  %21492 = vst [vmem:[#allocation16_spill] sm:$0xff] %v18649_v48  ;;  %v849_v51 = vld [vmem:[%s17518_s30 + $0x1210] sm:$0xff]  ;;  %v652_v54 = vld [vmem:[%s17518_s30 + $0xbe8] sm:$0xff] }
 0x233   : > { %7481 = vmatpush1.msra.mxu0 %v843_v55  ;;  %7552 = vmatpush1.msra.mxu1 %v845_v58  ;;  %v18653_v55 = vpop.f32.mrf.mxu1  ;;  %v654_v58 = vld [vmem:[%s17518_s30 + $0xbf8] sm:$0xff]  ;;  %v8303_v48 = vld [vmem:[%s17525_s8 + $0x2a8] sm:$0xff] }
 0x234   : > { %7482 = vmatprep.subr.mxu0 %v648_v59  ;;  %7553 = vmatprep.subr.mxu1 %v650_v3  ;;  %21493 = vst [vmem:[#allocation17_spill] sm:$0xff] %v18653_v55  ;;  %v651_v59 = vld [vmem:[%s17518_s30 + $0xbe0] sm:$0xff]  ;;  %v18657_v3 = vpop.f32.mrf.mxu0 }
 0x235   : > { %7483 = vmatpush1.msra.mxu0 %v647_v5  ;;  %7554 = vmatpush1.msra.mxu1 %v649_v9  ;;  %21494 = vst [vmem:[#allocation18_spill] sm:$0xff] %v18657_v3  ;;  %v653_v5 = vld [vmem:[%s17518_s30 + $0xbf0] sm:$0xff]  ;;  %v456_v9 = vld [vmem:[%s17518_s30 + $0x5c8] sm:$0xff]  ;;  %v8298_v3 = vld [vmem:[%s17525_s8 + $0x280] sm:$0xff] }
 0x236   : > { %7484 = vmatprep.subr.mxu0 %v452_v11  ;;  %7555 = vmatprep.subr.mxu1 %v454_v14  ;;  %v18661_v11 = vpop.f32.mrf.mxu1  ;;  %v458_v14 = vld [vmem:[%s17518_s30 + $0x5d8] sm:$0xff] }
 0x237   : > { %7485 = vmatpush1.msra.mxu0 %v451_v15  ;;  %7518 = vmatprep.mubr.f32.mxu0 %v21430_v0  ;;  %21495 = vst [vmem:[#allocation19_spill] sm:$0xff] %v18661_v11  ;;  %v455_v15 = vld [vmem:[%s17518_s30 + $0x5c0] sm:$0xff]  ;;  %v8301_v11 = vld [vmem:[%s17525_s8 + $0x298] sm:$0xff] }
 0x238   : > { %7556 = vmatpush1.msra.mxu1 %v453_v19  ;;  %7589 = vmatprep.mubr.f32.mxu1 %v21430_v0  ;;  %v457_v19 = vld [vmem:[%s17518_s30 + $0x5d0] sm:$0xff] }
 0x239   : > { %16964 = vmatmul.mubr.msk.f32.vlgmr.msra.gmra.mxu0 %vm1060_vm0, %v18569_v8  ;;  %16965 = vmatmul.mubr.msk.f32.vlgmr.msra.gmra.mxu1 %vm1060_vm0, %v18569_v8 }
 0x23a   : > { %7620 = vmatprep.subr.mxu0 %v1044_v25  ;;  %7691 = vmatprep.subr.mxu1 %v1046_v30  ;;  %v18666_v25 = vpop.f32.mrf.mxu0  ;;  %v1048_v30 = vld [vmem:[%s17518_s30 + $0x1848] sm:$0xff] }
 0x23b   : > { %7621 = vmatpush1.msra.mxu0 %v1043_v34  ;;  %7692 = vmatpush1.msra.mxu1 %v1045_v38  ;;  %21496 = vst [vmem:[#allocation20_spill] sm:$0xff] %v18666_v25  ;;  %v18669_v34 = vpop.f32.mrf.mxu1  ;;  %v1050_v38 = vld [vmem:[%s17518_s30 + $0x1858] sm:$0xff] }
 0x23c   : > { %7622 = vmatprep.subr.mxu0 %v848_v41  ;;  %7693 = vmatprep.subr.mxu1 %v850_v43  ;;  %21497 = vst [vmem:[#allocation21_spill] sm:$0xff] %v18669_v34  ;;  %v1047_v41 = vld [vmem:[%s17518_s30 + $0x1840] sm:$0xff]  ;;  %v18674_v43 = vpop.f32.mrf.mxu0 }
 0x23d   : > { %7623 = vmatpush1.msra.mxu0 %v847_v44  ;;  %7694 = vmatpush1.msra.mxu1 %v849_v51  ;;  %21498 = vst [vmem:[#allocation22_spill] sm:$0xff] %v18674_v43  ;;  %v1049_v44 = vld [vmem:[%s17518_s30 + $0x1850] sm:$0xff]  ;;  %v852_v51 = vld [vmem:[%s17518_s30 + $0x1228] sm:$0xff]  ;;  %v8494_v34 = vld [vmem:[%s17525_s8 + $0x8a0] sm:$0xff] }
 0x23e   : > { %7624 = vmatprep.subr.mxu0 %v652_v54  ;;  %7695 = vmatprep.subr.mxu1 %v654_v58  ;;  %v18681_v54 = vpop.f32.mrf.mxu1  ;;  %v854_v58 = vld [vmem:[%s17518_s30 + $0x1238] sm:$0xff]  ;;  %v464_v43 = vld [vmem:[%s17518_s30 + $0x608] sm:$0xff] }
 0x23f   : > { %7625 = vmatpush1.msra.mxu0 %v651_v59  ;;  %7696 = vmatpush1.msra.mxu1 %v653_v5  ;;  %21499 = vst [vmem:[#allocation23_spill] sm:$0xff] %v18681_v54  ;;  %v851_v59 = vld [vmem:[%s17518_s30 + $0x1220] sm:$0xff]  ;;  %v853_v5 = vld [vmem:[%s17518_s30 + $0x1230] sm:$0xff] }
 0x240   : > { %7626 = vmatprep.subr.mxu0 %v456_v9  ;;  %7697 = vmatprep.subr.mxu1 %v458_v14  ;;  %v656_v9 = vld [vmem:[%s17518_s30 + $0xc08] sm:$0xff]  ;;  %v658_v14 = vld [vmem:[%s17518_s30 + $0xc18] sm:$0xff]  ;;  %v18695_v54 = vpop.f32.mrf.mxu1 }
 0x241   : > { %7627 = vmatpush1.msra.mxu0 %v455_v15  ;;  %7660 = vmatprep.mubr.f32.mxu0 %v21430_v0  ;;  %v655_v15 = vld [vmem:[%s17518_s30 + $0xc00] sm:$0xff]  ;;  %21501 = vst [vmem:[#allocation25_spill] sm:$0xff] %v18695_v54 }
 0x242   : > { %7698 = vmatpush1.msra.mxu1 %v457_v19  ;;  %7731 = vmatprep.mubr.f32.mxu1 %v21430_v0  ;;  %v18691_v19 = vpop.f32.mrf.mxu0  ;;  %v657_v0 = vld [vmem:[%s17518_s30 + $0xc10] sm:$0xff] }
 0x243   : > { %16966 = vmatmul.mubr.msk.f32.vlgmr.msra.gmra.mxu0 %vm1060_vm0, %v18569_v8  ;;  %16967 = vmatmul.mubr.msk.f32.vlgmr.msra.gmra.mxu1 %vm1060_vm0, %v18569_v8  ;;  %21500 = vst [vmem:[#allocation24_spill] sm:$0xff] %v18691_v19  ;;  %v659_v19 = vld [vmem:[%s17518_s30 + $0xc20] sm:$0xff] }
 0x244   : > { %7762 = vmatprep.subr.mxu0 %v1048_v30  ;;  %7833 = vmatprep.subr.mxu1 %v1050_v38  ;;  %v460_v30 = vld [vmem:[%s17518_s30 + $0x5e8] sm:$0xff]  ;;  %v462_v38 = vld [vmem:[%s17518_s30 + $0x5f8] sm:$0xff] }
 0x245   : > { %7763 = vmatpush1.msra.mxu0 %v1047_v41  ;;  %7834 = vmatpush1.msra.mxu1 %v1049_v44  ;;  %v459_v41 = vld [vmem:[%s17518_s30 + $0x5e0] sm:$0xff]  ;;  %v18699_v44 = vpop.f32.mrf.mxu0 }
 0x246   : > { %7764 = vmatprep.subr.mxu0 %v852_v51  ;;  %7835 = vmatprep.subr.mxu1 %v854_v58  ;;  %21502 = vst [vmem:[#allocation26_spill] sm:$0xff] %v18699_v44  ;;  %v461_v51 = vld [vmem:[%s17518_s30 + $0x5f0] sm:$0xff]  ;;  %v18702_v58 = vpop.f32.mrf.mxu1 }
 0x247   : > { %7765 = vmatpush1.msra.mxu0 %v851_v59  ;;  %7836 = vmatpush1.msra.mxu1 %v853_v5  ;;  %21503 = vst [vmem:[#allocation27_spill] sm:$0xff] %v18702_v58  ;;  %v1052_v59 = vld [vmem:[%s17518_s30 + $0x1868] sm:$0xff]  ;;  %v21504_v5 = vmov 0.0   ;;  %v18708_v44 = vpop.f32.mrf.mxu0 }
 0x248   : > { %7766 = vmatprep.subr.mxu0 %v656_v9  ;;  %7837 = vmatprep.subr.mxu1 %v658_v14  ;;  %v1054_v9 = vld [vmem:[%s17518_s30 + $0x1878] sm:$0xff]  ;;  %v1051_v14 = vld [vmem:[%s17518_s30 + $0x1860] sm:$0xff]  ;;  %21505 = vst [vmem:[#allocation28_spill] sm:$0xff] %v18708_v44  ;;  %v857_v44 = vld [vmem:[%s17518_s30 + $0x1250] sm:$0xff] }
 0x249   : > { %7767 = vmatpush1.msra.mxu0 %v655_v15  ;;  %7838 = vmatpush1.msra.mxu1 %v657_v0  ;;  %v1053_v0 = vld [vmem:[%s17518_s30 + $0x1870] sm:$0xff]  ;;  %v856_v15 = vld [vmem:[%s17518_s30 + $0x1248] sm:$0xff] }
 0x24a   : > { %7768 = vmatprep.subr.mxu0 %v460_v30  ;;  %7839 = vmatprep.subr.mxu1 %v462_v38  ;;  %v18715_v30 = vpop.f32.mrf.mxu1  ;;  %v858_v38 = vld [vmem:[%s17518_s30 + $0x1258] sm:$0xff]  ;;  %v660_v58 = vld [vmem:[%s17518_s30 + $0xc28] sm:$0xff] }
 0x24b   : > { %7769 = vmatpush1.msra.mxu0 %v459_v41  ;;  %7802 = vmatprep.mubr.f32.mxu0 %v21504_v5  ;;  %21506 = vst [vmem:[#allocation29_spill] sm:$0xff] %v18715_v30  ;;  %v855_v41 = vld [vmem:[%s17518_s30 + $0x1240] sm:$0xff]  ;;  %v662_v30 = vld [vmem:[%s17518_s30 + $0xc38] sm:$0xff] }
 0x24c   : > { %7840 = vmatpush1.msra.mxu1 %v461_v51  ;;  %7873 = vmatprep.mubr.f32.mxu1 %v21504_v5  ;;  %v18721_v51 = vpop.f32.mrf.mxu0  ;;  %v18725_v54 = vpop.f32.mrf.mxu1 }
 0x24d   : > { %16968 = vmatmul.mubr.msk.f32.vlgmr.msra.gmra.mxu0 %vm1060_vm0, %v18569_v8  ;;  %16969 = vmatmul.mubr.msk.f32.vlgmr.msra.gmra.mxu1 %vm1060_vm0, %v18569_v8  ;;  %21507 = vst [vmem:[#allocation30_spill] sm:$0xff] %v18721_v51  ;;  %21508 = vst [vmem:[#allocation31_spill] sm:$0xff] %v18725_v54  ;;  %v466_v51 = vld [vmem:[%s17518_s30 + $0x618] sm:$0xff]  ;;  %v8416_v54 = vld [vmem:[%s17525_s8 + $0x630] sm:$0xff] }
 0x24e   : > { %7904 = vmatprep.subr.mxu0 %v1052_v59  ;;  %7975 = vmatprep.subr.mxu1 %v1054_v9  ;;  %v661_v59 = vld [vmem:[%s17518_s30 + $0xc30] sm:$0xff]  ;;  %v463_v9 = vld [vmem:[%s17518_s30 + $0x600] sm:$0xff] }
 0x24f   : > { %7905 = vmatpush1.msra.mxu0 %v1051_v14  ;;  %7976 = vmatpush1.msra.mxu1 %v1053_v0  ;;  %v18733_v14 = vpop.f32.mrf.mxu0  ;;  %v465_v0 = vld [vmem:[%s17518_s30 + $0x610] sm:$0xff] }
 0x250   : > { %7906 = vmatprep.subr.mxu0 %v856_v15  ;;  %7977 = vmatprep.subr.mxu1 %v858_v38  ;;  %21509 = vst [vmem:[#allocation32_spill] sm:$0xff] %v18733_v14  ;;  %v18736_v15 = vpop.f32.mrf.mxu1  ;;  %v8414_v14 = vld [vmem:[%s17525_s8 + $0x620] sm:$0xff] }
 0x251   : > { %7907 = vmatpush1.msra.mxu0 %v855_v41  ;;  %7978 = vmatpush1.msra.mxu1 %v857_v44  ;;  %21510 = vst [vmem:[#allocation33_spill] sm:$0xff] %v18736_v15  ;;  %v18738_v38 = vpop.f32.mrf.mxu0  ;;  %v8807_v44 = vld [vmem:[%s17525_s8 + $0x1268] sm:$0xff]  ;;  %v8417_v15 = vld [vmem:[%s17525_s8 + $0x638] sm:$0xff] }
 0x252   : > { %7908 = vmatprep.subr.mxu0 %v660_v58  ;;  %7979 = vmatprep.subr.mxu1 %v662_v30  ;;  %21511 = vst [vmem:[#allocation34_spill] sm:$0xff] %v18738_v38  ;;  %v18741_v58 = vpop.f32.mrf.mxu1  ;;  %v8806_v30 = vld [vmem:[%s17525_s8 + $0x1260] sm:$0xff]  ;;  %v8611_v41 = vld [vmem:[%s17525_s8 + $0xc48] sm:$0xff] }
 0x253   : > { %7909 = vmatpush1.msra.mxu0 %v659_v19  ;;  %7980 = vmatpush1.msra.mxu1 %v661_v59  ;;  %21512 = vst [vmem:[#allocation35_spill] sm:$0xff] %v18741_v58  ;;  %v8809_v19 = vld [vmem:[%s17525_s8 + $0x1278] sm:$0xff]  ;;  %v8610_v59 = vld [vmem:[%s17525_s8 + $0xc40] sm:$0xff]  ;;  %v8415_v58 = vld [vmem:[%s17525_s8 + $0x628] sm:$0xff] }
 0x254   : > { %7910 = vmatprep.subr.mxu0 %v464_v43  ;;  %7981 = vmatprep.subr.mxu1 %v466_v51  ;;  %v8808_v43 = vld [vmem:[%s17525_s8 + $0x1270] sm:$0xff]  ;;  %v8613_v51 = vld [vmem:[%s17525_s8 + $0xc58] sm:$0xff]  ;;  %v18759_v38 = vpop.f32.mrf.mxu1 }
 0x255   : > { %7911 = vmatpush1.msra.mxu0 %v463_v9  ;;  %7944 = vmatprep.mubr.f32.mxu0 %v21504_v5  ;;  %v18755_v9 = vpop.f32.mrf.mxu0  ;;  %21514 = vst [vmem:[#allocation37_spill] sm:$0xff] %v18759_v38  ;;  %v8218_v38 = vld [vmem:[%s17525_s8] sm:$0xff] }
 0x256   : > { %7982 = vmatpush1.msra.mxu1 %v465_v0  ;;  %8015 = vmatprep.mubr.f32.mxu1 %v21504_v5  ;;  %21513 = vst [vmem:[#allocation36_spill] sm:$0xff] %v18755_v9  ;;  %v8612_v0 = vld [vmem:[%s17525_s8 + $0xc50] sm:$0xff]  ;;  %v8219_v9 = vld [vmem:[%s17525_s8 + $0x8] sm:$0xff] }
 0x257   : > { %16970 = vmatmul.mubr.msk.f32.vlgmr.msra.gmra.mxu0 %vm1060_vm0, %v18569_v8  ;;  %16971 = vmatmul.mubr.msk.f32.vlgmr.msra.gmra.mxu1 %vm1060_vm0, %v18569_v8 }
 0x258   : > { %9026 = vmatprep.subr.mxu0 %v8807_v44  ;;  %9097 = vmatprep.subr.mxu1 %v8809_v19  ;;  %v18763_v44 = vpop.f32.mrf.mxu0  ;;  %v18767_v19 = vpop.f32.mrf.mxu1 }
 0x259   : > { %9027 = vmatpush1.msra.mxu0 %v8806_v30  ;;  %9098 = vmatpush1.msra.mxu1 %v8808_v43  ;;  %21515 = vst [vmem:[#allocation38_spill] sm:$0xff] %v18763_v44  ;;  %21516 = vst [vmem:[#allocation39_spill] sm:$0xff] %v18767_v19  ;;  %v8221_v30 = vld [vmem:[%s17525_s8 + $0x18] sm:$0xff]  ;;  %v8220_v43 = vld [vmem:[%s17525_s8 + $0x10] sm:$0xff] }
 0x25a   : > { %9028 = vmatprep.subr.mxu0 %v8611_v41  ;;  %9099 = vmatprep.subr.mxu1 %v8613_v51  ;;  %v18772_v41 = vpop.f32.mrf.mxu0  ;;  %v8811_v51 = vld [vmem:[%s17525_s8 + $0x1288] sm:$0xff]  ;;  %v8420_v19 = vld [vmem:[%s17525_s8 + $0x650] sm:$0xff] }
 0x25b   : > { %9029 = vmatpush1.msra.mxu0 %v8610_v59  ;;  %9100 = vmatpush1.msra.mxu1 %v8612_v0  ;;  %21517 = vst [vmem:[#allocation40_spill] sm:$0xff] %v18772_v41  ;;  %v18775_v59 = vpop.f32.mrf.mxu1  ;;  %v8617_v0 = vld [vmem:[%s17525_s8 + $0xc78] sm:$0xff]  ;;  %v8418_v41 = vld [vmem:[%s17525_s8 + $0x640] sm:$0xff] }
 0x25c   : > { %9030 = vmatprep.subr.mxu0 %v8415_v58  ;;  %9101 = vmatprep.subr.mxu1 %v8417_v15  ;;  %21518 = vst [vmem:[#allocation41_spill] sm:$0xff] %v18775_v59  ;;  %v8810_v15 = vld [vmem:[%s17525_s8 + $0x1280] sm:$0xff]  ;;  %v18780_v58 = vpop.f32.mrf.mxu0  ;;  %v8421_v59 = vld [vmem:[%s17525_s8 + $0x658] sm:$0xff] }
 0x25d   : > { %9031 = vmatpush1.msra.mxu0 %v8414_v14  ;;  %9102 = vmatpush1.msra.mxu1 %v8416_v54  ;;  %v8813_v14 = vld [vmem:[%s17525_s8 + $0x1298] sm:$0xff]  ;;  %21519 = vst [vmem:[#allocation42_spill] sm:$0xff] %v18780_v58  ;;  %v8812_v54 = vld [vmem:[%s17525_s8 + $0x1290] sm:$0xff]  ;;  %v8419_v58 = vld [vmem:[%s17525_s8 + $0x648] sm:$0xff] }
 0x25e   : > { %9032 = vmatprep.subr.mxu0 %v8219_v9  ;;  %9103 = vmatprep.subr.mxu1 %v8221_v30  ;;  %v18787_v9 = vpop.f32.mrf.mxu1  ;;  %v8614_v30 = vld [vmem:[%s17525_s8 + $0xc60] sm:$0xff] }
 0x25f   : > { %9033 = vmatpush1.msra.mxu0 %v8218_v38  ;;  %9066 = vmatprep.mubr.f32.mxu0 %v21504_v5  ;;  %v8615_v38 = vld [vmem:[%s17525_s8 + $0xc68] sm:$0xff]  ;;  %21520 = vst [vmem:[#allocation43_spill] sm:$0xff] %v18787_v9  ;;  %v18797_v9 = vpop.f32.mrf.mxu0 }
 0x260   : > { %9104 = vmatpush1.msra.mxu1 %v8220_v43  ;;  %9137 = vmatprep.mubr.f32.mxu1 %v21504_v5  ;;  %v8616_v43 = vld [vmem:[%s17525_s8 + $0xc70] sm:$0xff]  ;;  %21521 = vst [vmem:[#allocation44_spill] sm:$0xff] %v18797_v9  ;;  %v18801_v44 = vpop.f32.mrf.mxu1 }
 0x261   : > { %16972 = vmatmul.mubr.msk.f32.vlgmr.msra.gmra.mxu0 %vm1060_vm0, %v18569_v8  ;;  %16973 = vmatmul.mubr.msk.f32.vlgmr.msra.gmra.mxu1 %vm1060_vm0, %v18569_v8  ;;  %21522 = vst [vmem:[#allocation45_spill] sm:$0xff] %v18801_v44  ;;  %v8423_v44 = vld [vmem:[%s17525_s8 + $0x668] sm:$0xff] }
 0x262   : > { %9168 = vmatprep.subr.mxu0 %v8811_v51  ;;  %9239 = vmatprep.subr.mxu1 %v8813_v14  ;;  %v8223_v51 = vld [vmem:[%s17525_s8 + $0x28] sm:$0xff]  ;;  %v8225_v14 = vld [vmem:[%s17525_s8 + $0x38] sm:$0xff] }
 0x263   : > { %9169 = vmatpush1.msra.mxu0 %v8810_v15  ;;  %9240 = vmatpush1.msra.mxu1 %v8812_v54  ;;  %v8222_v15 = vld [vmem:[%s17525_s8 + $0x20] sm:$0xff]  ;;  %v18805_v54 = vpop.f32.mrf.mxu0 }
 0x264   : > { %9170 = vmatprep.subr.mxu0 %v8615_v38  ;;  %9241 = vmatprep.subr.mxu1 %v8617_v0  ;;  %21523 = vst [vmem:[#allocation46_spill] sm:$0xff] %v18805_v54  ;;  %v8224_v38 = vld [vmem:[%s17525_s8 + $0x30] sm:$0xff]  ;;  %v18808_v0 = vpop.f32.mrf.mxu1  ;;  %v8227_v54 = vld [vmem:[%s17525_s8 + $0x48] sm:$0xff] }
 0x265   : > { %9171 = vmatpush1.msra.mxu0 %v8614_v30  ;;  %9242 = vmatpush1.msra.mxu1 %v8616_v43  ;;  %21524 = vst [vmem:[#allocation47_spill] sm:$0xff] %v18808_v0  ;;  %v8815_v30 = vld [vmem:[%s17525_s8 + $0x12a8] sm:$0xff]  ;;  %v18814_v43 = vpop.f32.mrf.mxu0  ;;  %v8422_v0 = vld [vmem:[%s17525_s8 + $0x660] sm:$0xff] }
 0x266   : > { %9172 = vmatprep.subr.mxu0 %v8419_v58  ;;  %9243 = vmatprep.subr.mxu1 %v8421_v59  ;;  %v8817_v58 = vld [vmem:[%s17525_s8 + $0x12b8] sm:$0xff]  ;;  %v8814_v59 = vld [vmem:[%s17525_s8 + $0x12a0] sm:$0xff]  ;;  %21525 = vst [vmem:[#allocation48_spill] sm:$0xff] %v18814_v43  ;;  %v8620_v43 = vld [vmem:[%s17525_s8 + $0xc90] sm:$0xff] }
 0x267   : > { %9173 = vmatpush1.msra.mxu0 %v8418_v41  ;;  %9244 = vmatpush1.msra.mxu1 %v8420_v19  ;;  %v8816_v19 = vld [vmem:[%s17525_s8 + $0x12b0] sm:$0xff]  ;;  %v8619_v41 = vld [vmem:[%s17525_s8 + $0xc88] sm:$0xff] }
 0x268   : > { %9174 = vmatprep.subr.mxu0 %v8223_v51  ;;  %9245 = vmatprep.subr.mxu1 %v8225_v14  ;;  %v18821_v51 = vpop.f32.mrf.mxu1  ;;  %v8621_v14 = vld [vmem:[%s17525_s8 + $0xc98] sm:$0xff] }
 0x269   : > { %9175 = vmatpush1.msra.mxu0 %v8222_v15  ;;  %9208 = vmatprep.mubr.f32.mxu0 %v21504_v5  ;;  %21526 = vst [vmem:[#allocation49_spill] sm:$0xff] %v18821_v51  ;;  %v8618_v15 = vld [vmem:[%s17525_s8 + $0xc80] sm:$0xff]  ;;  %v8425_v51 = vld [vmem:[%s17525_s8 + $0x678] sm:$0xff] }
 0x26a   : > { %9246 = vmatpush1.msra.mxu1 %v8224_v38  ;;  %9279 = vmatprep.mubr.f32.mxu1 %v21504_v5  ;;  %v18827_v38 = vpop.f32.mrf.mxu0  ;;  %v18831_v9 = vpop.f32.mrf.mxu1 }
 0x26b   : > { %16974 = vmatmul.mubr.msk.f32.vlgmr.msra.gmra.mxu0 %vm1060_vm0, %v18569_v8  ;;  %16975 = vmatmul.mubr.msk.f32.vlgmr.msra.gmra.mxu1 %vm1060_vm0, %v18569_v8  ;;  %21527 = vst [vmem:[#allocation50_spill] sm:$0xff] %v18827_v38  ;;  %21528 = vst [vmem:[#allocation51_spill] sm:$0xff] %v18831_v9  ;;  %v8229_v38 = vld [vmem:[%s17525_s8 + $0x58] sm:$0xff]  ;;  %v8428_v9 = vld [vmem:[%s17525_s8 + $0x690] sm:$0xff] }
 0x26c   : > { %9310 = vmatprep.subr.mxu0 %v8815_v30  ;;  %9381 = vmatprep.subr.mxu1 %v8817_v58  ;;  %v8424_v30 = vld [vmem:[%s17525_s8 + $0x670] sm:$0xff]  ;;  %v8226_v58 = vld [vmem:[%s17525_s8 + $0x40] sm:$0xff] }
 0x26d   : > { %9311 = vmatpush1.msra.mxu0 %v8814_v59  ;;  %9382 = vmatpush1.msra.mxu1 %v8816_v19  ;;  %v18839_v59 = vpop.f32.mrf.mxu0  ;;  %v8228_v19 = vld [vmem:[%s17525_s8 + $0x50] sm:$0xff] }
 0x26e   : > { %9312 = vmatprep.subr.mxu0 %v8619_v41  ;;  %9383 = vmatprep.subr.mxu1 %v8621_v14  ;;  %21529 = vst [vmem:[#allocation52_spill] sm:$0xff] %v18839_v59  ;;  %v18842_v41 = vpop.f32.mrf.mxu1 }
 0x26f   : > { %9313 = vmatpush1.msra.mxu0 %v8618_v15  ;;  %9384 = vmatpush1.msra.mxu1 %v8620_v43  ;;  %21530 = vst [vmem:[#allocation53_spill] sm:$0xff] %v18842_v41  ;;  %v18844_v14 = vpop.f32.mrf.mxu0  ;;  %v8623_v15 = vld [vmem:[%s17525_s8 + $0xca8] sm:$0xff] }
 0x270   : > { %9314 = vmatprep.subr.mxu0 %v8423_v44  ;;  %9385 = vmatprep.subr.mxu1 %v8425_v51  ;;  %21531 = vst [vmem:[#allocation54_spill] sm:$0xff] %v18844_v14  ;;  %v8819_v44 = vld [vmem:[%s17525_s8 + $0x12c8] sm:$0xff]  ;;  %v18847_v43 = vpop.f32.mrf.mxu1  ;;  %v8818_v51 = vld [vmem:[%s17525_s8 + $0x12c0] sm:$0xff] }
 0x271   : > { %9315 = vmatpush1.msra.mxu0 %v8422_v0  ;;  %9386 = vmatpush1.msra.mxu1 %v8424_v30  ;;  %21532 = vst [vmem:[#allocation55_spill] sm:$0xff] %v18847_v43  ;;  %v8821_v0 = vld [vmem:[%s17525_s8 + $0x12d8] sm:$0xff]  ;;  %v8622_v30 = vld [vmem:[%s17525_s8 + $0xca0] sm:$0xff]  ;;  %v8427_v41 = vld [vmem:[%s17525_s8 + $0x688] sm:$0xff] }
 0x272   : > { %9316 = vmatprep.subr.mxu0 %v8227_v54  ;;  %9387 = vmatprep.subr.mxu1 %v8229_v38  ;;  %v8820_v54 = vld [vmem:[%s17525_s8 + $0x12d0] sm:$0xff]  ;;  %v8625_v38 = vld [vmem:[%s17525_s8 + $0xcb8] sm:$0xff]  ;;  %v18865_v59 = vpop.f32.mrf.mxu1  ;;  %v8426_v14 = vld [vmem:[%s17525_s8 + $0x680] sm:$0xff] }
 0x273   : > { %9317 = vmatpush1.msra.mxu0 %v8226_v58  ;;  %9350 = vmatprep.mubr.f32.mxu0 %v21504_v5  ;;  %v18861_v58 = vpop.f32.mrf.mxu0  ;;  %21534 = vst [vmem:[#allocation57_spill] sm:$0xff] %v18865_v59  ;;  %v8429_v43 = vld [vmem:[%s17525_s8 + $0x698] sm:$0xff]  ;;  %v8230_v59 = vld [vmem:[%s17525_s8 + $0x60] sm:$0xff] }
 0x274   : > { %9388 = vmatpush1.msra.mxu1 %v8228_v19  ;;  %9421 = vmatprep.mubr.f32.mxu1 %v21504_v5  ;;  %21533 = vst [vmem:[#allocation56_spill] sm:$0xff] %v18861_v58  ;;  %v8624_v19 = vld [vmem:[%s17525_s8 + $0xcb0] sm:$0xff]  ;;  %v8231_v58 = vld [vmem:[%s17525_s8 + $0x68] sm:$0xff] }
 0x275   : > { %16976 = vmatmul.mubr.msk.f32.vlgmr.msra.gmra.mxu0 %vm1060_vm0, %v18569_v8  ;;  %16977 = vmatmul.mubr.msk.f32.vlgmr.msra.gmra.mxu1 %vm1060_vm0, %v18569_v8 }
 0x276   : > { %9452 = vmatprep.subr.mxu0 %v8819_v44  ;;  %9523 = vmatprep.subr.mxu1 %v8821_v0  ;;  %v18869_v44 = vpop.f32.mrf.mxu0  ;;  %v18873_v0 = vpop.f32.mrf.mxu1 }
 0x277   : > { %9453 = vmatpush1.msra.mxu0 %v8818_v51  ;;  %9524 = vmatpush1.msra.mxu1 %v8820_v54  ;;  %21535 = vst [vmem:[#allocation58_spill] sm:$0xff] %v18869_v44  ;;  %21536 = vst [vmem:[#allocation59_spill] sm:$0xff] %v18873_v0  ;;  %v8233_v51 = vld [vmem:[%s17525_s8 + $0x78] sm:$0xff]  ;;  %v8232_v54 = vld [vmem:[%s17525_s8 + $0x70] sm:$0xff] }
 0x278   : > { %9454 = vmatprep.subr.mxu0 %v8623_v15  ;;  %9525 = vmatprep.subr.mxu1 %v8625_v38  ;;  %v18878_v15 = vpop.f32.mrf.mxu0  ;;  %v8823_v38 = vld [vmem:[%s17525_s8 + $0x12e8] sm:$0xff]  ;;  %v8432_v0 = vld [vmem:[%s17525_s8 + $0x6b0] sm:$0xff] }
 0x279   : > { %9455 = vmatpush1.msra.mxu0 %v8622_v30  ;;  %9526 = vmatpush1.msra.mxu1 %v8624_v19  ;;  %21537 = vst [vmem:[#allocation60_spill] sm:$0xff] %v18878_v15  ;;  %v18881_v30 = vpop.f32.mrf.mxu1  ;;  %v8629_v19 = vld [vmem:[%s17525_s8 + $0xcd8] sm:$0xff] }
 0x27a   : > { %9456 = vmatprep.subr.mxu0 %v8427_v41  ;;  %9527 = vmatprep.subr.mxu1 %v8429_v43  ;;  %21538 = vst [vmem:[#allocation61_spill] sm:$0xff] %v18881_v30  ;;  %v8825_v41 = vld [vmem:[%s17525_s8 + $0x12f8] sm:$0xff]  ;;  %v18886_v43 = vpop.f32.mrf.mxu0  ;;  %v8431_v30 = vld [vmem:[%s17525_s8 + $0x6a8] sm:$0xff] }
 0x27b   : > { %9457 = vmatpush1.msra.mxu0 %v8426_v14  ;;  %9528 = vmatpush1.msra.mxu1 %v8428_v9  ;;  %v8822_v14 = vld [vmem:[%s17525_s8 + $0x12e0] sm:$0xff]  ;;  %21539 = vst [vmem:[#allocation62_spill] sm:$0xff] %v18886_v43  ;;  %v8824_v9 = vld [vmem:[%s17525_s8 + $0x12f0] sm:$0xff]  ;;  %v8433_v15 = vld [vmem:[%s17525_s8 + $0x6b8] sm:$0xff] }
 0x27c   : > { %9458 = vmatprep.subr.mxu0 %v8231_v58  ;;  %9529 = vmatprep.subr.mxu1 %v8233_v51  ;;  %v18893_v58 = vpop.f32.mrf.mxu1  ;;  %v8626_v51 = vld [vmem:[%s17525_s8 + $0xcc0] sm:$0xff] }
 0x27d   : > { %9459 = vmatpush1.msra.mxu0 %v8230_v59  ;;  %9492 = vmatprep.mubr.f32.mxu0 %v21504_v5  ;;  %v8627_v59 = vld [vmem:[%s17525_s8 + $0xcc8] sm:$0xff]  ;;  %21540 = vst [vmem:[#allocation63_spill] sm:$0xff] %v18893_v58  ;;  %v8430_v43 = vld [vmem:[%s17525_s8 + $0x6a0] sm:$0xff]  ;;  %v18903_v58 = vpop.f32.mrf.mxu0 }
 0x27e   : > { %9530 = vmatpush1.msra.mxu1 %v8232_v54  ;;  %9563 = vmatprep.mubr.f32.mxu1 %v21504_v5  ;;  %v8628_v54 = vld [vmem:[%s17525_s8 + $0xcd0] sm:$0xff]  ;;  %21541 = vst [vmem:[#allocation64_spill] sm:$0xff] %v18903_v58  ;;  %v18907_v44 = vpop.f32.mrf.mxu1 }
 0x27f   : > { %16978 = vmatmul.mubr.msk.f32.vlgmr.msra.gmra.mxu0 %vm1060_vm0, %v18569_v8  ;;  %16979 = vmatmul.mubr.msk.f32.vlgmr.msra.gmra.mxu1 %vm1060_vm0, %v18569_v8  ;;  %21542 = vst [vmem:[#allocation65_spill] sm:$0xff] %v18907_v44  ;;  %v8435_v44 = vld [vmem:[%s17525_s8 + $0x6c8] sm:$0xff] }
 0x280   : > { %9594 = vmatprep.subr.mxu0 %v8823_v38  ;;  %9665 = vmatprep.subr.mxu1 %v8825_v41  ;;  %v8235_v38 = vld [vmem:[%s17525_s8 + $0x88] sm:$0xff]  ;;  %v8237_v41 = vld [vmem:[%s17525_s8 + $0x98] sm:$0xff] }
 0x281   : > { %9595 = vmatpush1.msra.mxu0 %v8822_v14  ;;  %9666 = vmatpush1.msra.mxu1 %v8824_v9  ;;  %v8234_v14 = vld [vmem:[%s17525_s8 + $0x80] sm:$0xff]  ;;  %v18911_v9 = vpop.f32.mrf.mxu0 }
 0x282   : > { %9596 = vmatprep.subr.mxu0 %v8627_v59  ;;  %9667 = vmatprep.subr.mxu1 %v8629_v19  ;;  %21543 = vst [vmem:[#allocation66_spill] sm:$0xff] %v18911_v9  ;;  %v8236_v59 = vld [vmem:[%s17525_s8 + $0x90] sm:$0xff]  ;;  %v18914_v19 = vpop.f32.mrf.mxu1  ;;  %v8239_v9 = vld [vmem:[%s17525_s8 + $0xa8] sm:$0xff] }
 0x283   : > { %9597 = vmatpush1.msra.mxu0 %v8626_v51  ;;  %9668 = vmatpush1.msra.mxu1 %v8628_v54  ;;  %21544 = vst [vmem:[#allocation67_spill] sm:$0xff] %v18914_v19  ;;  %v8827_v51 = vld [vmem:[%s17525_s8 + $0x1308] sm:$0xff]  ;;  %v18920_v54 = vpop.f32.mrf.mxu0  ;;  %v8434_v19 = vld [vmem:[%s17525_s8 + $0x6c0] sm:$0xff] }
 0x284   : > { %9598 = vmatprep.subr.mxu0 %v8431_v30  ;;  %9669 = vmatprep.subr.mxu1 %v8433_v15  ;;  %v8829_v30 = vld [vmem:[%s17525_s8 + $0x1318] sm:$0xff]  ;;  %v8826_v15 = vld [vmem:[%s17525_s8 + $0x1300] sm:$0xff]  ;;  %21545 = vst [vmem:[#allocation68_spill] sm:$0xff] %v18920_v54  ;;  %v8632_v54 = vld [vmem:[%s17525_s8 + $0xcf0] sm:$0xff] }
 0x285   : > { %9599 = vmatpush1.msra.mxu0 %v8430_v43  ;;  %9670 = vmatpush1.msra.mxu1 %v8432_v0  ;;  %v8828_v0 = vld [vmem:[%s17525_s8 + $0x1310] sm:$0xff]  ;;  %v8631_v43 = vld [vmem:[%s17525_s8 + $0xce8] sm:$0xff] }
 0x286   : > { %9600 = vmatprep.subr.mxu0 %v8235_v38  ;;  %9671 = vmatprep.subr.mxu1 %v8237_v41  ;;  %v18927_v38 = vpop.f32.mrf.mxu1  ;;  %v8633_v41 = vld [vmem:[%s17525_s8 + $0xcf8] sm:$0xff] }
 0x287   : > { %9601 = vmatpush1.msra.mxu0 %v8234_v14  ;;  %9634 = vmatprep.mubr.f32.mxu0 %v21504_v5  ;;  %21546 = vst [vmem:[#allocation69_spill] sm:$0xff] %v18927_v38  ;;  %v8630_v14 = vld [vmem:[%s17525_s8 + $0xce0] sm:$0xff]  ;;  %v8437_v38 = vld [vmem:[%s17525_s8 + $0x6d8] sm:$0xff] }
 0x288   : > { %9672 = vmatpush1.msra.mxu1 %v8236_v59  ;;  %9705 = vmatprep.mubr.f32.mxu1 %v21504_v5  ;;  %v18933_v59 = vpop.f32.mrf.mxu0  ;;  %v18937_v58 = vpop.f32.mrf.mxu1 }
 0x289   : > { %16980 = vmatmul.mubr.msk.f32.vlgmr.msra.gmra.mxu0 %vm1060_vm0, %v18569_v8  ;;  %16981 = vmatmul.mubr.msk.f32.vlgmr.msra.gmra.mxu1 %vm1060_vm0, %v18569_v8  ;;  %21547 = vst [vmem:[#allocation70_spill] sm:$0xff] %v18933_v59  ;;  %21548 = vst [vmem:[#allocation71_spill] sm:$0xff] %v18937_v58  ;;  %v8241_v59 = vld [vmem:[%s17525_s8 + $0xb8] sm:$0xff] }
 0x28a   : > { %9736 = vmatprep.subr.mxu0 %v8827_v51  ;;  %9807 = vmatprep.subr.mxu1 %v8829_v30  ;;  %v8436_v51 = vld [vmem:[%s17525_s8 + $0x6d0] sm:$0xff]  ;;  %v8238_v30 = vld [vmem:[%s17525_s8 + $0xa0] sm:$0xff] }
 0x28b   : > { %9737 = vmatpush1.msra.mxu0 %v8826_v15  ;;  %9808 = vmatpush1.msra.mxu1 %v8828_v0  ;;  %v18945_v15 = vpop.f32.mrf.mxu0  ;;  %v8240_v0 = vld [vmem:[%s17525_s8 + $0xb0] sm:$0xff] }
 0x28c   : > { %9738 = vmatprep.subr.mxu0 %v8631_v43  ;;  %9809 = vmatprep.subr.mxu1 %v8633_v41  ;;  %21549 = vst [vmem:[#allocation72_spill] sm:$0xff] %v18945_v15  ;;  %v18948_v43 = vpop.f32.mrf.mxu1 }
 0x28d   : > { %9739 = vmatpush1.msra.mxu0 %v8630_v14  ;;  %9810 = vmatpush1.msra.mxu1 %v8632_v54  ;;  %21550 = vst [vmem:[#allocation73_spill] sm:$0xff] %v18948_v43  ;;  %v18950_v41 = vpop.f32.mrf.mxu0  ;;  %v8635_v14 = vld [vmem:[%s17525_s8 + $0xd08] sm:$0xff] }
 0x28e   : > { %9740 = vmatprep.subr.mxu0 %v8435_v44  ;;  %9811 = vmatprep.subr.mxu1 %v8437_v38  ;;  %21551 = vst [vmem:[#allocation74_spill] sm:$0xff] %v18950_v41  ;;  %v8831_v44 = vld [vmem:[%s17525_s8 + $0x1328] sm:$0xff]  ;;  %v18953_v54 = vpop.f32.mrf.mxu1  ;;  %v8830_v38 = vld [vmem:[%s17525_s8 + $0x1320] sm:$0xff]  ;;  %v8440_v41 = vld [vmem:[%s17525_s8 + $0x6f0] sm:$0xff] }
 0x28f   : > { %9741 = vmatpush1.msra.mxu0 %v8434_v19  ;;  %9812 = vmatpush1.msra.mxu1 %v8436_v51  ;;  %21552 = vst [vmem:[#allocation75_spill] sm:$0xff] %v18953_v54  ;;  %v8833_v19 = vld [vmem:[%s17525_s8 + $0x1338] sm:$0xff]  ;;  %v8634_v51 = vld [vmem:[%s17525_s8 + $0xd00] sm:$0xff]  ;;  %v8439_v43 = vld [vmem:[%s17525_s8 + $0x6e8] sm:$0xff] }
 0x290   : > { %9742 = vmatprep.subr.mxu0 %v8239_v9  ;;  %9813 = vmatprep.subr.mxu1 %v8241_v59  ;;  %v8832_v9 = vld [vmem:[%s17525_s8 + $0x1330] sm:$0xff]  ;;  %v8637_v59 = vld [vmem:[%s17525_s8 + $0xd18] sm:$0xff]  ;;  %v18971_v15 = vpop.f32.mrf.mxu1 }
 0x291   : > { %9743 = vmatpush1.msra.mxu0 %v8238_v30  ;;  %9776 = vmatprep.mubr.f32.mxu0 %v21504_v5  ;;  %v18967_v30 = vpop.f32.mrf.mxu0  ;;  %21554 = vst [vmem:[#allocation77_spill] sm:$0xff] %v18971_v15  ;;  %v8441_v54 = vld [vmem:[%s17525_s8 + $0x6f8] sm:$0xff]  ;;  %v8242_v15 = vld [vmem:[%s17525_s8 + $0xc0] sm:$0xff] }
 0x292   : > { %9814 = vmatpush1.msra.mxu1 %v8240_v0  ;;  %9847 = vmatprep.mubr.f32.mxu1 %v21504_v5  ;;  %21553 = vst [vmem:[#allocation76_spill] sm:$0xff] %v18967_v30  ;;  %v8636_v0 = vld [vmem:[%s17525_s8 + $0xd10] sm:$0xff]  ;;  %v8243_v30 = vld [vmem:[%s17525_s8 + $0xc8] sm:$0xff] }
 0x293   : > { %16982 = vmatmul.mubr.msk.f32.vlgmr.msra.gmra.mxu0 %vm1060_vm0, %v18569_v8  ;;  %16983 = vmatmul.mubr.msk.f32.vlgmr.msra.gmra.mxu1 %vm1060_vm0, %v18569_v8  ;;  %v8438_v8 = vld [vmem:[%s17525_s8 + $0x6e0] sm:$0xff] }
 0x294   : > { %9878 = vmatprep.subr.mxu0 %v8831_v44  ;;  %9949 = vmatprep.subr.mxu1 %v8833_v19  ;;  %v18975_v44 = vpop.f32.mrf.mxu0  ;;  %v18979_v19 = vpop.f32.mrf.mxu1 }
 0x295   : > { %9879 = vmatpush1.msra.mxu0 %v8830_v38  ;;  %9950 = vmatpush1.msra.mxu1 %v8832_v9  ;;  %21555 = vst [vmem:[#allocation78_spill] sm:$0xff] %v18975_v44  ;;  %21556 = vst [vmem:[#allocation79_spill] sm:$0xff] %v18979_v19  ;;  %v8245_v38 = vld [vmem:[%s17525_s8 + $0xd8] sm:$0xff]  ;;  %v8244_v9 = vld [vmem:[%s17525_s8 + $0xd0] sm:$0xff] }
 0x296   : > { %9880 = vmatprep.subr.mxu0 %v8635_v14  ;;  %9951 = vmatprep.subr.mxu1 %v8637_v59  ;;  %v18984_v14 = vpop.f32.mrf.mxu0  ;;  %v8835_v59 = vld [vmem:[%s17525_s8 + $0x1348] sm:$0xff]  ;;  %v8442_v19 = vld [vmem:[%s17525_s8 + $0x700] sm:$0xff]  ;;  %v8444_v44 = vld [vmem:[%s17525_s8 + $0x710] sm:$0xff] }
 0x297   : > { %9881 = vmatpush1.msra.mxu0 %v8634_v51  ;;  %9952 = vmatpush1.msra.mxu1 %v8636_v0  ;;  %21557 = vst [vmem:[#allocation80_spill] sm:$0xff] %v18984_v14  ;;  %v18987_v51 = vpop.f32.mrf.mxu1  ;;  %v8443_v14 = vld [vmem:[%s17525_s8 + $0x708] sm:$0xff] }
 0x298   : > { %9882 = vmatprep.subr.mxu0 %v8439_v43  ;;  %9953 = vmatprep.subr.mxu1 %v8441_v54  ;;  %21558 = vst [vmem:[#allocation81_spill] sm:$0xff] %v18987_v51  ;;  %v8837_v43 = vld [vmem:[%s17525_s8 + $0x1358] sm:$0xff]  ;;  %v8834_v54 = vld [vmem:[%s17525_s8 + $0x1340] sm:$0xff]  ;;  %v18992_v0 = vpop.f32.mrf.mxu0  ;;  %v8640_v51 = vld [vmem:[%s17525_s8 + $0xd30] sm:$0xff] }
 0x299   : > { %9883 = vmatpush1.msra.mxu0 %v8438_v8  ;;  %9954 = vmatpush1.msra.mxu1 %v8440_v41  ;;  %21559 = vst [vmem:[#allocation82_spill] sm:$0xff] %v18992_v0  ;;  %v18995_v41 = vld [vmem:[#allocation7] sm:$0xff]  ;;  %v19001_v8 = vpop.f32.mrf.mxu1  ;;  %v8445_v0 = vld [vmem:[%s17525_s8 + $0x718] sm:$0xff] }
 0x29a   : > { %9884 = vmatprep.subr.mxu0 %v8243_v30  ;;  %9955 = vmatprep.subr.mxu1 %v8245_v38  ;;  %v8639_v30 = vld [vmem:[%s17525_s8 + $0xd28] sm:$0xff]  ;;  %21560 = vst [vmem:[#allocation83_spill] sm:$0xff] %v19001_v8  ;;  %v8641_v38 = vld [vmem:[%s17525_s8 + $0xd38] sm:$0xff]  ;;  %v19011_v8 = vpop.f32.mrf.mxu0 }
 0x29b   : > { %9885 = vmatpush1.msra.mxu0 %v8242_v15  ;;  %9918 = vmatprep.mubr.f32.mxu0 %v21504_v5  ;;  %v8836_v15 = vld [vmem:[%s17525_s8 + $0x1350] sm:$0xff]  ;;  %21561 = vst [vmem:[#allocation84_spill] sm:$0xff] %v19011_v8  ;;  %v19015_v58 = vpop.f32.mrf.mxu1 }
 0x29c   : > { %9956 = vmatpush1.msra.mxu1 %v8244_v9  ;;  %9989 = vmatprep.mubr.f32.mxu1 %v21504_v5  ;;  %v8638_v9 = vld [vmem:[%s17525_s8 + $0xd20] sm:$0xff]  ;;  %21562 = vst [vmem:[#allocation85_spill] sm:$0xff] %v19015_v58  ;;  %v8447_v58 = vld [vmem:[%s17525_s8 + $0x728] sm:$0xff] }
 0x29d   : > { %16984 = vmatmul.mubr.msk.f32.vlgmr.msra.gmra.mxu0 %vm1060_vm0, %v18995_v41  ;;  %16985 = vmatmul.mubr.msk.f32.vlgmr.msra.gmra.mxu1 %vm1060_vm0, %v18995_v41 }
 0x29e   : > { %10020 = vmatprep.subr.mxu0 %v8835_v59  ;;  %10091 = vmatprep.subr.mxu1 %v8837_v43  ;;  %v8247_v59 = vld [vmem:[%s17525_s8 + $0xe8] sm:$0xff]  ;;  %v8249_v43 = vld [vmem:[%s17525_s8 + $0xf8] sm:$0xff] }
 0x29f   : > { %10021 = vmatpush1.msra.mxu0 %v8834_v54  ;;  %10092 = vmatpush1.msra.mxu1 %v8836_v15  ;;  %v8246_v54 = vld [vmem:[%s17525_s8 + $0xe0] sm:$0xff]  ;;  %v19019_v15 = vpop.f32.mrf.mxu0 }
 0x2a0   : > { %10022 = vmatprep.subr.mxu0 %v8639_v30  ;;  %10093 = vmatprep.subr.mxu1 %v8641_v38  ;;  %21563 = vst [vmem:[#allocation86_spill] sm:$0xff] %v19019_v15  ;;  %v8248_v30 = vld [vmem:[%s17525_s8 + $0xf0] sm:$0xff]  ;;  %v19022_v38 = vpop.f32.mrf.mxu1  ;;  %v8251_v15 = vld [vmem:[%s17525_s8 + $0x108] sm:$0xff] }
 0x2a1   : > { %10023 = vmatpush1.msra.mxu0 %v8638_v9  ;;  %10094 = vmatpush1.msra.mxu1 %v8640_v51  ;;  %21564 = vst [vmem:[#allocation87_spill] sm:$0xff] %v19022_v38  ;;  %v8839_v51 = vld [vmem:[%s17525_s8 + $0x1368] sm:$0xff]  ;;  %v19028_v9 = vpop.f32.mrf.mxu0  ;;  %v8446_v38 = vld [vmem:[%s17525_s8 + $0x720] sm:$0xff] }
 0x2a2   : > { %10024 = vmatprep.subr.mxu0 %v8443_v14  ;;  %10095 = vmatprep.subr.mxu1 %v8445_v0  ;;  %v8841_v14 = vld [vmem:[%s17525_s8 + $0x1378] sm:$0xff]  ;;  %v8838_v0 = vld [vmem:[%s17525_s8 + $0x1360] sm:$0xff]  ;;  %21565 = vst [vmem:[#allocation88_spill] sm:$0xff] %v19028_v9  ;;  %v8644_v9 = vld [vmem:[%s17525_s8 + $0xd50] sm:$0xff] }
 0x2a3   : > { %10025 = vmatpush1.msra.mxu0 %v8442_v19  ;;  %10096 = vmatpush1.msra.mxu1 %v8444_v44  ;;  %v8840_v44 = vld [vmem:[%s17525_s8 + $0x1370] sm:$0xff]  ;;  %v8643_v19 = vld [vmem:[%s17525_s8 + $0xd48] sm:$0xff] }
 0x2a4   : > { %10026 = vmatprep.subr.mxu0 %v8247_v59  ;;  %10097 = vmatprep.subr.mxu1 %v8249_v43  ;;  %v19035_v59 = vpop.f32.mrf.mxu1  ;;  %v8645_v43 = vld [vmem:[%s17525_s8 + $0xd58] sm:$0xff] }
 0x2a5   : > { %10027 = vmatpush1.msra.mxu0 %v8246_v54  ;;  %10060 = vmatprep.mubr.f32.mxu0 %v21504_v5  ;;  %21566 = vst [vmem:[#allocation89_spill] sm:$0xff] %v19035_v59  ;;  %v8642_v54 = vld [vmem:[%s17525_s8 + $0xd40] sm:$0xff]  ;;  %v8449_v59 = vld [vmem:[%s17525_s8 + $0x738] sm:$0xff] }
 0x2a6   : > { %10098 = vmatpush1.msra.mxu1 %v8248_v30  ;;  %10131 = vmatprep.mubr.f32.mxu1 %v21504_v5  ;;  %v19041_v30 = vpop.f32.mrf.mxu0  ;;  %v19045_v8 = vpop.f32.mrf.mxu1 }
 0x2a7   : > { %16986 = vmatmul.mubr.msk.f32.vlgmr.msra.gmra.mxu0 %vm1060_vm0, %v18995_v41  ;;  %16987 = vmatmul.mubr.msk.f32.vlgmr.msra.gmra.mxu1 %vm1060_vm0, %v18995_v41  ;;  %21567 = vst [vmem:[#allocation90_spill] sm:$0xff] %v19041_v30  ;;  %21568 = vst [vmem:[#allocation91_spill] sm:$0xff] %v19045_v8  ;;  %v8253_v30 = vld [vmem:[%s17525_s8 + $0x118] sm:$0xff]  ;;  %v8452_v8 = vld [vmem:[%s17525_s8 + $0x750] sm:$0xff] }
 0x2a8   : > { %10162 = vmatprep.subr.mxu0 %v8839_v51  ;;  %10233 = vmatprep.subr.mxu1 %v8841_v14  ;;  %v8448_v51 = vld [vmem:[%s17525_s8 + $0x730] sm:$0xff]  ;;  %v8250_v14 = vld [vmem:[%s17525_s8 + $0x100] sm:$0xff] }
 0x2a9   : > { %10163 = vmatpush1.msra.mxu0 %v8838_v0  ;;  %10234 = vmatpush1.msra.mxu1 %v8840_v44  ;;  %v19053_v0 = vpop.f32.mrf.mxu0  ;;  %v8252_v44 = vld [vmem:[%s17525_s8 + $0x110] sm:$0xff] }
 0x2aa   : > { %10164 = vmatprep.subr.mxu0 %v8643_v19  ;;  %10235 = vmatprep.subr.mxu1 %v8645_v43  ;;  %21569 = vst [vmem:[#allocation92_spill] sm:$0xff] %v19053_v0  ;;  %v19056_v19 = vpop.f32.mrf.mxu1 }
 0x2ab   : > { %10165 = vmatpush1.msra.mxu0 %v8642_v54  ;;  %10236 = vmatpush1.msra.mxu1 %v8644_v9  ;;  %21570 = vst [vmem:[#allocation93_spill] sm:$0xff] %v19056_v19  ;;  %v19058_v43 = vpop.f32.mrf.mxu0  ;;  %v8647_v54 = vld [vmem:[%s17525_s8 + $0xd68] sm:$0xff] }
 0x2ac   : > { %10166 = vmatprep.subr.mxu0 %v8447_v58  ;;  %10237 = vmatprep.subr.mxu1 %v8449_v59  ;;  %21571 = vst [vmem:[#allocation94_spill] sm:$0xff] %v19058_v43  ;;  %v8843_v58 = vld [vmem:[%s17525_s8 + $0x1388] sm:$0xff]  ;;  %v19061_v9 = vpop.f32.mrf.mxu1  ;;  %v8842_v59 = vld [vmem:[%s17525_s8 + $0x1380] sm:$0xff] }
 0x2ad   : > { %10167 = vmatpush1.msra.mxu0 %v8446_v38  ;;  %10238 = vmatpush1.msra.mxu1 %v8448_v51  ;;  %21572 = vst [vmem:[#allocation95_spill] sm:$0xff] %v19061_v9  ;;  %v8845_v38 = vld [vmem:[%s17525_s8 + $0x1398] sm:$0xff]  ;;  %v8646_v51 = vld [vmem:[%s17525_s8 + $0xd60] sm:$0xff]  ;;  %v8451_v19 = vld [vmem:[%s17525_s8 + $0x748] sm:$0xff] }
 0x2ae   : > { %10168 = vmatprep.subr.mxu0 %v8251_v15  ;;  %10239 = vmatprep.subr.mxu1 %v8253_v30  ;;  %v8844_v15 = vld [vmem:[%s17525_s8 + $0x1390] sm:$0xff]  ;;  %v8649_v30 = vld [vmem:[%s17525_s8 + $0xd78] sm:$0xff]  ;;  %v19079_v0 = vpop.f32.mrf.mxu1  ;;  %v8450_v43 = vld [vmem:[%s17525_s8 + $0x740] sm:$0xff] }
 0x2af   : > { %10169 = vmatpush1.msra.mxu0 %v8250_v14  ;;  %10202 = vmatprep.mubr.f32.mxu0 %v21504_v5  ;;  %v19075_v14 = vpop.f32.mrf.mxu0  ;;  %21574 = vst [vmem:[#allocation97_spill] sm:$0xff] %v19079_v0  ;;  %v8453_v9 = vld [vmem:[%s17525_s8 + $0x758] sm:$0xff]  ;;  %v8254_v0 = vld [vmem:[%s17525_s8 + $0x120] sm:$0xff] }
 0x2b0   : > { %10240 = vmatpush1.msra.mxu1 %v8252_v44  ;;  %10273 = vmatprep.mubr.f32.mxu1 %v21504_v5  ;;  %21573 = vst [vmem:[#allocation96_spill] sm:$0xff] %v19075_v14  ;;  %v8648_v44 = vld [vmem:[%s17525_s8 + $0xd70] sm:$0xff]  ;;  %v8255_v14 = vld [vmem:[%s17525_s8 + $0x128] sm:$0xff] }
 0x2b1   : > { %16988 = vmatmul.mubr.msk.f32.vlgmr.msra.gmra.mxu0 %vm1060_vm0, %v18995_v41  ;;  %16989 = vmatmul.mubr.msk.f32.vlgmr.msra.gmra.mxu1 %vm1060_vm0, %v18995_v41 }
 0x2b2   : > { %10304 = vmatprep.subr.mxu0 %v8843_v58  ;;  %10375 = vmatprep.subr.mxu1 %v8845_v38  ;;  %v19083_v58 = vpop.f32.mrf.mxu0  ;;  %v19087_v38 = vpop.f32.mrf.mxu1 }
 0x2b3   : > { %10305 = vmatpush1.msra.mxu0 %v8842_v59  ;;  %10376 = vmatpush1.msra.mxu1 %v8844_v15  ;;  %21575 = vst [vmem:[#allocation98_spill] sm:$0xff] %v19083_v58  ;;  %21576 = vst [vmem:[#allocation99_spill] sm:$0xff] %v19087_v38  ;;  %v8257_v59 = vld [vmem:[%s17525_s8 + $0x138] sm:$0xff]  ;;  %v8256_v15 = vld [vmem:[%s17525_s8 + $0x130] sm:$0xff] }
 0x2b4   : > { %10306 = vmatprep.subr.mxu0 %v8647_v54  ;;  %10377 = vmatprep.subr.mxu1 %v8649_v30  ;;  %v19092_v54 = vpop.f32.mrf.mxu0  ;;  %v8847_v30 = vld [vmem:[%s17525_s8 + $0x13a8] sm:$0xff]  ;;  %v8456_v38 = vld [vmem:[%s17525_s8 + $0x770] sm:$0xff] }
 0x2b5   : > { %10307 = vmatpush1.msra.mxu0 %v8646_v51  ;;  %10378 = vmatpush1.msra.mxu1 %v8648_v44  ;;  %21577 = vst [vmem:[#allocation100_spill] sm:$0xff] %v19092_v54  ;;  %v19095_v51 = vpop.f32.mrf.mxu1  ;;  %v8653_v44 = vld [vmem:[%s17525_s8 + $0xd98] sm:$0xff]  ;;  %v8454_v54 = vld [vmem:[%s17525_s8 + $0x760] sm:$0xff] }
 0x2b6   : > { %10308 = vmatprep.subr.mxu0 %v8451_v19  ;;  %10379 = vmatprep.subr.mxu1 %v8453_v9  ;;  %21578 = vst [vmem:[#allocation101_spill] sm:$0xff] %v19095_v51  ;;  %v8849_v19 = vld [vmem:[%s17525_s8 + $0x13b8] sm:$0xff]  ;;  %v19100_v9 = vpop.f32.mrf.mxu0 }
 0x2b7   : > { %10309 = vmatpush1.msra.mxu0 %v8450_v43  ;;  %10380 = vmatpush1.msra.mxu1 %v8452_v8  ;;  %v8846_v43 = vld [vmem:[%s17525_s8 + $0x13a0] sm:$0xff]  ;;  %21579 = vst [vmem:[#allocation102_spill] sm:$0xff] %v19100_v9  ;;  %v8848_v8 = vld [vmem:[%s17525_s8 + $0x13b0] sm:$0xff]  ;;  %v8455_v9 = vld [vmem:[%s17525_s8 + $0x768] sm:$0xff] }
 0x2b8   : > { %10310 = vmatprep.subr.mxu0 %v8255_v14  ;;  %10381 = vmatprep.subr.mxu1 %v8257_v59  ;;  %v19107_v14 = vpop.f32.mrf.mxu1  ;;  %v8650_v59 = vld [vmem:[%s17525_s8 + $0xd80] sm:$0xff]  ;;  %v8457_v51 = vld [vmem:[%s17525_s8 + $0x778] sm:$0xff] }
 0x2b9   : > { %10311 = vmatpush1.msra.mxu0 %v8254_v0  ;;  %10344 = vmatprep.mubr.f32.mxu0 %v21504_v5  ;;  %v8651_v0 = vld [vmem:[%s17525_s8 + $0xd88] sm:$0xff]  ;;  %21580 = vst [vmem:[#allocation103_spill] sm:$0xff] %v19107_v14  ;;  %v19117_v14 = vpop.f32.mrf.mxu0 }
 0x2ba   : > { %10382 = vmatpush1.msra.mxu1 %v8256_v15  ;;  %10415 = vmatprep.mubr.f32.mxu1 %v21504_v5  ;;  %v8652_v15 = vld [vmem:[%s17525_s8 + $0xd90] sm:$0xff]  ;;  %21581 = vst [vmem:[#allocation104_spill] sm:$0xff] %v19117_v14  ;;  %v19121_v58 = vpop.f32.mrf.mxu1  ;;  %v8263_v14 = vld [vmem:[%s17525_s8 + $0x168] sm:$0xff] }
 0x2bb   : > { %16990 = vmatmul.mubr.msk.f32.vlgmr.msra.gmra.mxu0 %vm1060_vm0, %v18995_v41  ;;  %16991 = vmatmul.mubr.msk.f32.vlgmr.msra.gmra.mxu1 %vm1060_vm0, %v18995_v41  ;;  %21582 = vst [vmem:[#allocation105_spill] sm:$0xff] %v19121_v58  ;;  %v8458_v58 = vld [vmem:[%s17525_s8 + $0x780] sm:$0xff] }
 0x2bc   : > { %10446 = vmatprep.subr.mxu0 %v8847_v30  ;;  %10517 = vmatprep.subr.mxu1 %v8849_v19  ;;  %v8259_v30 = vld [vmem:[%s17525_s8 + $0x148] sm:$0xff]  ;;  %v8261_v19 = vld [vmem:[%s17525_s8 + $0x158] sm:$0xff] }
 0x2bd   : > { %10447 = vmatpush1.msra.mxu0 %v8846_v43  ;;  %10518 = vmatpush1.msra.mxu1 %v8848_v8  ;;  %v8258_v43 = vld [vmem:[%s17525_s8 + $0x140] sm:$0xff]  ;;  %v19125_v8 = vpop.f32.mrf.mxu0 }
 0x2be   : > { %10448 = vmatprep.subr.mxu0 %v8651_v0  ;;  %10519 = vmatprep.subr.mxu1 %v8653_v44  ;;  %21583 = vst [vmem:[#allocation106_spill] sm:$0xff] %v19125_v8  ;;  %v8260_v0 = vld [vmem:[%s17525_s8 + $0x150] sm:$0xff]  ;;  %v19128_v44 = vpop.f32.mrf.mxu1 }
 0x2bf   : > { %10449 = vmatpush1.msra.mxu0 %v8650_v59  ;;  %10520 = vmatpush1.msra.mxu1 %v8652_v15  ;;  %21584 = vst [vmem:[#allocation107_spill] sm:$0xff] %v19128_v44  ;;  %v8851_v59 = vld [vmem:[%s17525_s8 + $0x13c8] sm:$0xff]  ;;  %v19134_v15 = vpop.f32.mrf.mxu0 }
 0x2c0   : > { %10450 = vmatprep.subr.mxu0 %v8455_v9  ;;  %10521 = vmatprep.subr.mxu1 %v8457_v51  ;;  %v8853_v9 = vld [vmem:[%s17525_s8 + $0x13d8] sm:$0xff]  ;;  %v8850_v51 = vld [vmem:[%s17525_s8 + $0x13c0] sm:$0xff]  ;;  %21585 = vst [vmem:[#allocation108_spill] sm:$0xff] %v19134_v15  ;;  %v8656_v15 = vld [vmem:[%s17525_s8 + $0xdb0] sm:$0xff] }
 0x2c1   : > { %10451 = vmatpush1.msra.mxu0 %v8454_v54  ;;  %10522 = vmatpush1.msra.mxu1 %v8456_v38  ;;  %v8852_v38 = vld [vmem:[%s17525_s8 + $0x13d0] sm:$0xff]  ;;  %v8655_v54 = vld [vmem:[%s17525_s8 + $0xda8] sm:$0xff] }
 0x2c2   : > { %10452 = vmatprep.subr.mxu0 %v8259_v30  ;;  %10523 = vmatprep.subr.mxu1 %v8261_v19  ;;  %v19141_v30 = vpop.f32.mrf.mxu1  ;;  %v8657_v19 = vld [vmem:[%s17525_s8 + $0xdb8] sm:$0xff]  ;;  %v8459_v44 = vld [vmem:[%s17525_s8 + $0x788] sm:$0xff] }
 0x2c3   : > { %10453 = vmatpush1.msra.mxu0 %v8258_v43  ;;  %10486 = vmatprep.mubr.f32.mxu0 %v21504_v5  ;;  %21586 = vst [vmem:[#allocation109_spill] sm:$0xff] %v19141_v30  ;;  %v8654_v43 = vld [vmem:[%s17525_s8 + $0xda0] sm:$0xff]  ;;  %v8461_v30 = vld [vmem:[%s17525_s8 + $0x798] sm:$0xff] }
 0x2c4   : > { %10524 = vmatpush1.msra.mxu1 %v8260_v0  ;;  %10557 = vmatprep.mubr.f32.mxu1 %v21504_v5  ;;  %v19147_v0 = vpop.f32.mrf.mxu0  ;;  %v19151_v8 = vpop.f32.mrf.mxu1 }
 0x2c5   : > { %16992 = vmatmul.mubr.msk.f32.vlgmr.msra.gmra.mxu0 %vm1060_vm0, %v18995_v41  ;;  %16993 = vmatmul.mubr.msk.f32.vlgmr.msra.gmra.mxu1 %vm1060_vm0, %v18995_v41  ;;  %21587 = vst [vmem:[#allocation110_spill] sm:$0xff] %v19147_v0  ;;  %21588 = vst [vmem:[#allocation111_spill] sm:$0xff] %v19151_v8  ;;  %v8265_v0 = vld [vmem:[%s17525_s8 + $0x178] sm:$0xff]  ;;  %v8464_v8 = vld [vmem:[%s17525_s8 + $0x7b0] sm:$0xff] }
 0x2c6   : > { %10588 = vmatprep.subr.mxu0 %v8851_v59  ;;  %10659 = vmatprep.subr.mxu1 %v8853_v9  ;;  %v8460_v59 = vld [vmem:[%s17525_s8 + $0x790] sm:$0xff]  ;;  %v8262_v9 = vld [vmem:[%s17525_s8 + $0x160] sm:$0xff] }
 0x2c7   : > { %10589 = vmatpush1.msra.mxu0 %v8850_v51  ;;  %10660 = vmatpush1.msra.mxu1 %v8852_v38  ;;  %v19159_v51 = vpop.f32.mrf.mxu0  ;;  %v8264_v38 = vld [vmem:[%s17525_s8 + $0x170] sm:$0xff] }
 0x2c8   : > { %10590 = vmatprep.subr.mxu0 %v8655_v54  ;;  %10661 = vmatprep.subr.mxu1 %v8657_v19  ;;  %21589 = vst [vmem:[#allocation112_spill] sm:$0xff] %v19159_v51  ;;  %v19162_v54 = vpop.f32.mrf.mxu1  ;;  %v8462_v51 = vld [vmem:[%s17525_s8 + $0x7a0] sm:$0xff] }
 0x2c9   : > { %10591 = vmatpush1.msra.mxu0 %v8654_v43  ;;  %10662 = vmatpush1.msra.mxu1 %v8656_v15  ;;  %21590 = vst [vmem:[#allocation113_spill] sm:$0xff] %v19162_v54  ;;  %v19164_v19 = vpop.f32.mrf.mxu0  ;;  %v8659_v43 = vld [vmem:[%s17525_s8 + $0xdc8] sm:$0xff]  ;;  %v8465_v54 = vld [vmem:[%s17525_s8 + $0x7b8] sm:$0xff] }
 0x2ca   : > { %10592 = vmatprep.subr.mxu0 %v8459_v44  ;;  %10663 = vmatprep.subr.mxu1 %v8461_v30  ;;  %21591 = vst [vmem:[#allocation114_spill] sm:$0xff] %v19164_v19  ;;  %v8855_v44 = vld [vmem:[%s17525_s8 + $0x13e8] sm:$0xff]  ;;  %v19167_v15 = vpop.f32.mrf.mxu1  ;;  %v8854_v30 = vld [vmem:[%s17525_s8 + $0x13e0] sm:$0xff] }
 0x2cb   : > { %10593 = vmatpush1.msra.mxu0 %v8458_v58  ;;  %10664 = vmatpush1.msra.mxu1 %v8460_v59  ;;  %21592 = vst [vmem:[#allocation115_spill] sm:$0xff] %v19167_v15  ;;  %v8857_v58 = vld [vmem:[%s17525_s8 + $0x13f8] sm:$0xff]  ;;  %v8658_v59 = vld [vmem:[%s17525_s8 + $0xdc0] sm:$0xff]  ;;  %v8463_v15 = vld [vmem:[%s17525_s8 + $0x7a8] sm:$0xff] }
 0x2cc   : > { %10594 = vmatprep.subr.mxu0 %v8263_v14  ;;  %10665 = vmatprep.subr.mxu1 %v8265_v0  ;;  %v8856_v14 = vld [vmem:[%s17525_s8 + $0x13f0] sm:$0xff]  ;;  %v8661_v0 = vld [vmem:[%s17525_s8 + $0xdd8] sm:$0xff]  ;;  %v19185_v19 = vpop.f32.mrf.mxu1 }
 0x2cd   : > { %10595 = vmatpush1.msra.mxu0 %v8262_v9  ;;  %10628 = vmatprep.mubr.f32.mxu0 %v21504_v5  ;;  %v19181_v9 = vpop.f32.mrf.mxu0  ;;  %21594 = vst [vmem:[#allocation117_spill] sm:$0xff] %v19185_v19  ;;  %v8266_v19 = vld [vmem:[%s17525_s8 + $0x180] sm:$0xff] }
 0x2ce   : > { %10666 = vmatpush1.msra.mxu1 %v8264_v38  ;;  %10699 = vmatprep.mubr.f32.mxu1 %v21504_v5  ;;  %21593 = vst [vmem:[#allocation116_spill] sm:$0xff] %v19181_v9  ;;  %v8660_v38 = vld [vmem:[%s17525_s8 + $0xdd0] sm:$0xff]  ;;  %v8267_v9 = vld [vmem:[%s17525_s8 + $0x188] sm:$0xff] }
 0x2cf   : > { %16994 = vmatmul.mubr.msk.f32.vlgmr.msra.gmra.mxu0 %vm1060_vm0, %v18995_v41  ;;  %16995 = vmatmul.mubr.msk.f32.vlgmr.msra.gmra.mxu1 %vm1060_vm0, %v18995_v41 }
 0x2d0   : > { %10730 = vmatprep.subr.mxu0 %v8855_v44  ;;  %10801 = vmatprep.subr.mxu1 %v8857_v58  ;;  %v19189_v44 = vpop.f32.mrf.mxu0  ;;  %v19193_v58 = vpop.f32.mrf.mxu1 }
 0x2d1   : > { %10731 = vmatpush1.msra.mxu0 %v8854_v30  ;;  %10802 = vmatpush1.msra.mxu1 %v8856_v14  ;;  %21595 = vst [vmem:[#allocation118_spill] sm:$0xff] %v19189_v44  ;;  %21596 = vst [vmem:[#allocation119_spill] sm:$0xff] %v19193_v58  ;;  %v8269_v30 = vld [vmem:[%s17525_s8 + $0x198] sm:$0xff]  ;;  %v8268_v14 = vld [vmem:[%s17525_s8 + $0x190] sm:$0xff] }
 0x2d2   : > { %10732 = vmatprep.subr.mxu0 %v8659_v43  ;;  %10803 = vmatprep.subr.mxu1 %v8661_v0  ;;  %v19198_v43 = vpop.f32.mrf.mxu0  ;;  %v8859_v0 = vld [vmem:[%s17525_s8 + $0x1408] sm:$0xff]  ;;  %v8468_v58 = vld [vmem:[%s17525_s8 + $0x7d0] sm:$0xff] }
 0x2d3   : > { %10733 = vmatpush1.msra.mxu0 %v8658_v59  ;;  %10804 = vmatpush1.msra.mxu1 %v8660_v38  ;;  %21597 = vst [vmem:[#allocation120_spill] sm:$0xff] %v19198_v43  ;;  %v19201_v59 = vpop.f32.mrf.mxu1  ;;  %v8665_v38 = vld [vmem:[%s17525_s8 + $0xdf8] sm:$0xff]  ;;  %v8466_v43 = vld [vmem:[%s17525_s8 + $0x7c0] sm:$0xff] }
 0x2d4   : > { %10734 = vmatprep.subr.mxu0 %v8463_v15  ;;  %10805 = vmatprep.subr.mxu1 %v8465_v54  ;;  %21598 = vst [vmem:[#allocation121_spill] sm:$0xff] %v19201_v59  ;;  %v8858_v54 = vld [vmem:[%s17525_s8 + $0x1400] sm:$0xff]  ;;  %v8663_v15 = vld [vmem:[%s17525_s8 + $0xde8] sm:$0xff]  ;;  %v8469_v59 = vld [vmem:[%s17525_s8 + $0x7d8] sm:$0xff] }
 0x2d5   : > { %10735 = vmatpush1.msra.mxu0 %v8462_v51  ;;  %10806 = vmatpush1.msra.mxu1 %v8464_v8  ;;  %v8861_v51 = vld [vmem:[%s17525_s8 + $0x1418] sm:$0xff]  ;;  %v19207_v8 = vpop.f32.mrf.mxu0 }
 0x2d6   : > { %10736 = vmatprep.subr.mxu0 %v8267_v9  ;;  %10807 = vmatprep.subr.mxu1 %v8269_v30  ;;  %21599 = vst [vmem:[#allocation122_spill] sm:$0xff] %v19207_v8  ;;  %v19213_v9 = vpop.f32.mrf.mxu1  ;;  %v8662_v30 = vld [vmem:[%s17525_s8 + $0xde0] sm:$0xff]  ;;  %v8467_v8 = vld [vmem:[%s17525_s8 + $0x7c8] sm:$0xff] }
 0x2d7   : > { %10737 = vmatpush1.msra.mxu0 %v8266_v19  ;;  %10770 = vmatprep.mubr.f32.mxu0 %v21504_v5  ;;  %v8860_v19 = vld [vmem:[%s17525_s8 + $0x1410] sm:$0xff]  ;;  %21600 = vst [vmem:[#allocation123_spill] sm:$0xff] %v19213_v9  ;;  %v19223_v9 = vpop.f32.mrf.mxu0 }
 0x2d8   : > { %10808 = vmatpush1.msra.mxu1 %v8268_v14  ;;  %10841 = vmatprep.mubr.f32.mxu1 %v21504_v5  ;;  %v8664_v14 = vld [vmem:[%s17525_s8 + $0xdf0] sm:$0xff]  ;;  %21601 = vst [vmem:[#allocation124_spill] sm:$0xff] %v19223_v9  ;;  %v19227_v44 = vpop.f32.mrf.mxu1  ;;  %v8275_v9 = vld [vmem:[%s17525_s8 + $0x1c8] sm:$0xff] }
 0x2d9   : > { %16996 = vmatmul.mubr.msk.f32.vlgmr.msra.gmra.mxu0 %vm1060_vm0, %v18995_v41  ;;  %16997 = vmatmul.mubr.msk.f32.vlgmr.msra.gmra.mxu1 %vm1060_vm0, %v18995_v41  ;;  %21602 = vst [vmem:[#allocation125_spill] sm:$0xff] %v19227_v44  ;;  %v8470_v44 = vld [vmem:[%s17525_s8 + $0x7e0] sm:$0xff] }
 0x2da   : > { %10872 = vmatprep.subr.mxu0 %v8859_v0  ;;  %10943 = vmatprep.subr.mxu1 %v8861_v51  ;;  %v8271_v0 = vld [vmem:[%s17525_s8 + $0x1a8] sm:$0xff]  ;;  %v8273_v51 = vld [vmem:[%s17525_s8 + $0x1b8] sm:$0xff] }
 0x2db   : > { %10873 = vmatpush1.msra.mxu0 %v8858_v54  ;;  %10944 = vmatpush1.msra.mxu1 %v8860_v19  ;;  %v8270_v54 = vld [vmem:[%s17525_s8 + $0x1a0] sm:$0xff]  ;;  %v8272_v19 = vld [vmem:[%s17525_s8 + $0x1b0] sm:$0xff] }
 0x2dc   : > { %10874 = vmatprep.subr.mxu0 %v8663_v15  ;;  %10945 = vmatprep.subr.mxu1 %v8665_v38  ;;  %v19232_v15 = vpop.f32.mrf.mxu0  ;;  %v19234_v38 = vpop.f32.mrf.mxu1 }
 0x2dd   : > { %10875 = vmatpush1.msra.mxu0 %v8662_v30  ;;  %10946 = vmatpush1.msra.mxu1 %v8664_v14  ;;  %21603 = vst [vmem:[#allocation126_spill] sm:$0xff] %v19232_v15  ;;  %21604 = vst [vmem:[#allocation127_spill] sm:$0xff] %v19234_v38  ;;  %v8863_v30 = vld [vmem:[%s17525_s8 + $0x1428] sm:$0xff] }
 0x2de   : > { %10876 = vmatprep.subr.mxu0 %v8467_v8  ;;  %10947 = vmatprep.subr.mxu1 %v8469_v59  ;;  %v8865_v59 = vld [vmem:[%s17525_s8 + $0x1438] sm:$0xff]  ;;  %v19244_v8 = vpop.f32.mrf.mxu0  ;;  %v8667_v14 = vld [vmem:[%s17525_s8 + $0xe08] sm:$0xff] }
 0x2df   : > { %10877 = vmatpush1.msra.mxu0 %v8466_v43  ;;  %10948 = vmatpush1.msra.mxu1 %v8468_v58  ;;  %v8862_v43 = vld [vmem:[%s17525_s8 + $0x1420] sm:$0xff]  ;;  %v8864_v58 = vld [vmem:[%s17525_s8 + $0x1430] sm:$0xff]  ;;  %21605 = vst [vmem:[#allocation128_spill] sm:$0xff] %v19244_v8  ;;  %v8471_v38 = vld [vmem:[%s17525_s8 + $0x7e8] sm:$0xff] }
 0x2e0   : > { %10878 = vmatprep.subr.mxu0 %v8271_v0  ;;  %10949 = vmatprep.subr.mxu1 %v8273_v51  ;;  %v19249_v0 = vpop.f32.mrf.mxu1  ;;  %v8669_v51 = vld [vmem:[%s17525_s8 + $0xe18] sm:$0xff]  ;;  %v19255_v15 = vpop.f32.mrf.mxu0 }
 0x2e1   : > { %10879 = vmatpush1.msra.mxu0 %v8270_v54  ;;  %10912 = vmatprep.mubr.f32.mxu0 %v21504_v5  ;;  %21606 = vst [vmem:[#allocation129_spill] sm:$0xff] %v19249_v0  ;;  %v8666_v54 = vld [vmem:[%s17525_s8 + $0xe00] sm:$0xff]  ;;  %21607 = vst [vmem:[#allocation130_spill] sm:$0xff] %v19255_v15  ;;  %v8473_v8 = vld [vmem:[%s17525_s8 + $0x7f8] sm:$0xff] }
 0x2e2   : > { %10950 = vmatpush1.msra.mxu1 %v8272_v19  ;;  %10983 = vmatprep.mubr.f32.mxu1 %v21504_v5  ;;  %v8668_v19 = vld [vmem:[%s17525_s8 + $0xe10] sm:$0xff] }
 0x2e3   : > { %16998 = vmatmul.mubr.msk.f32.vlgmr.msra.gmra.mxu0 %vm1060_vm0, %v18995_v41  ;;  %16999 = vmatmul.mubr.msk.f32.vlgmr.msra.gmra.mxu1 %vm1060_vm0, %v18995_v41  ;;  %v8472_v0 = vld [vmem:[%s17525_s8 + $0x7f0] sm:$0xff] }
 0x2e4   : > { %11014 = vmatprep.subr.mxu0 %v8863_v30  ;;  %11085 = vmatprep.subr.mxu1 %v8865_v59  ;;  %v19259_v30 = vpop.f32.mrf.mxu1  ;;  %v8277_v59 = vld [vmem:[%s17525_s8 + $0x1d8] sm:$0xff]  ;;  %v8276_v15 = vld [vmem:[%s17525_s8 + $0x1d0] sm:$0xff] }
 0x2e5   : > { %11015 = vmatpush1.msra.mxu0 %v8862_v43  ;;  %11086 = vmatpush1.msra.mxu1 %v8864_v58  ;;  %21608 = vst [vmem:[#allocation131_spill] sm:$0xff] %v19259_v30  ;;  %v8274_v43 = vld [vmem:[%s17525_s8 + $0x1c0] sm:$0xff]  ;;  %v19266_v58 = vpop.f32.mrf.mxu0  ;;  %v8279_v30 = vld [vmem:[%s17525_s8 + $0x1e8] sm:$0xff] }
 0x2e6   : > { %11016 = vmatprep.subr.mxu0 %v8667_v14  ;;  %11087 = vmatprep.subr.mxu1 %v8669_v51  ;;  %21609 = vst [vmem:[#allocation132_spill] sm:$0xff] %v19266_v58  ;;  %v19268_v14 = vpop.f32.mrf.mxu1 }
 0x2e7   : > { %11017 = vmatpush1.msra.mxu0 %v8666_v54  ;;  %11088 = vmatpush1.msra.mxu1 %v8668_v19  ;;  %21610 = vst [vmem:[#allocation133_spill] sm:$0xff] %v19268_v14  ;;  %v19271_v51 = vpop.f32.mrf.mxu0  ;;  %v8670_v19 = vld [vmem:[%s17525_s8 + $0xe20] sm:$0xff] }
 0x2e8   : > { %11018 = vmatprep.subr.mxu0 %v8471_v38  ;;  %11089 = vmatprep.subr.mxu1 %v8473_v8  ;;  %v8867_v38 = vld [vmem:[%s17525_s8 + $0x1448] sm:$0xff]  ;;  %21611 = vst [vmem:[#allocation134_spill] sm:$0xff] %v19271_v51  ;;  %v8866_v8 = vld [vmem:[%s17525_s8 + $0x1440] sm:$0xff]  ;;  %v19276_v54 = vpop.f32.mrf.mxu1  ;;  %v8477_v51 = vld [vmem:[%s17525_s8 + $0x818] sm:$0xff] }
 0x2e9   : > { %11019 = vmatpush1.msra.mxu0 %v8470_v44  ;;  %11090 = vmatpush1.msra.mxu1 %v8472_v0  ;;  %v8869_v44 = vld [vmem:[%s17525_s8 + $0x1458] sm:$0xff]  ;;  %21612 = vst [vmem:[#allocation135_spill] sm:$0xff] %v19276_v54  ;;  %v8671_v0 = vld [vmem:[%s17525_s8 + $0xe28] sm:$0xff]  ;;  %v19289_v54 = vpop.f32.mrf.mxu0  ;;  %v8474_v14 = vld [vmem:[%s17525_s8 + $0x800] sm:$0xff] }
 0x2ea   : > { %11020 = vmatprep.subr.mxu0 %v8275_v9  ;;  %11091 = vmatprep.subr.mxu1 %v8277_v59  ;;  %v8868_v9 = vld [vmem:[%s17525_s8 + $0x1450] sm:$0xff]  ;;  %21613 = vst [vmem:[#allocation136_spill] sm:$0xff] %v19289_v54  ;;  %v19293_v58 = vpop.f32.mrf.mxu1  ;;  %v8278_v54 = vld [vmem:[%s17525_s8 + $0x1e0] sm:$0xff] }
 0x2eb   : > { %11021 = vmatpush1.msra.mxu0 %v8274_v43  ;;  %11054 = vmatprep.mubr.f32.mxu0 %v21504_v5  ;;  %v8672_v59 = vld [vmem:[%s17525_s8 + $0xe30] sm:$0xff]  ;;  %v8475_v43 = vld [vmem:[%s17525_s8 + $0x808] sm:$0xff]  ;;  %21614 = vst [vmem:[#allocation137_spill] sm:$0xff] %v19293_v58 }
 0x2ec   : > { %11092 = vmatpush1.msra.mxu1 %v8276_v15  ;;  %11125 = vmatprep.mubr.f32.mxu1 %v21504_v5  ;;  %v8673_v15 = vld [vmem:[%s17525_s8 + $0xe38] sm:$0xff]  ;;  %v8283_v58 = vld [vmem:[%s17525_s8 + $0x208] sm:$0xff] }
 0x2ed   : > { %17000 = vmatmul.mubr.msk.f32.vlgmr.msra.gmra.mxu0 %vm1060_vm0, %v18995_v41  ;;  %17001 = vmatmul.mubr.msk.f32.vlgmr.msra.gmra.mxu1 %vm1060_vm0, %v18995_v41 }
 0x2ee   : > { %11156 = vmatprep.subr.mxu0 %v8867_v38  ;;  %11227 = vmatprep.subr.mxu1 %v8869_v44  ;;  %v8476_v38 = vld [vmem:[%s17525_s8 + $0x810] sm:$0xff]  ;;  %v19297_v44 = vpop.f32.mrf.mxu0 }
 0x2ef   : > { %11157 = vmatpush1.msra.mxu0 %v8866_v8  ;;  %11228 = vmatpush1.msra.mxu1 %v8868_v9  ;;  %21615 = vst [vmem:[#allocation138_spill] sm:$0xff] %v19297_v44  ;;  %v8281_v8 = vld [vmem:[%s17525_s8 + $0x1f8] sm:$0xff]  ;;  %v19301_v9 = vpop.f32.mrf.mxu1  ;;  %v8480_v44 = vld [vmem:[%s17525_s8 + $0x830] sm:$0xff] }
 0x2f0   : > { %11158 = vmatprep.subr.mxu0 %v8671_v0  ;;  %11229 = vmatprep.subr.mxu1 %v8673_v15  ;;  %21616 = vst [vmem:[#allocation139_spill] sm:$0xff] %v19301_v9  ;;  %v8280_v0 = vld [vmem:[%s17525_s8 + $0x1f0] sm:$0xff]  ;;  %v8871_v15 = vld [vmem:[%s17525_s8 + $0x1468] sm:$0xff]  ;;  %v8478_v9 = vld [vmem:[%s17525_s8 + $0x820] sm:$0xff] }
 0x2f1   : > { %11159 = vmatpush1.msra.mxu0 %v8670_v19  ;;  %11230 = vmatpush1.msra.mxu1 %v8672_v59  ;;  %v19305_v19 = vpop.f32.mrf.mxu0  ;;  %v8873_v59 = vld [vmem:[%s17525_s8 + $0x1478] sm:$0xff] }
 0x2f2   : > { %11160 = vmatprep.subr.mxu0 %v8475_v43  ;;  %11231 = vmatprep.subr.mxu1 %v8477_v51  ;;  %21617 = vst [vmem:[#allocation140_spill] sm:$0xff] %v19305_v19  ;;  %v8870_v51 = vld [vmem:[%s17525_s8 + $0x1460] sm:$0xff]  ;;  %v19310_v43 = vpop.f32.mrf.mxu1  ;;  %v8479_v19 = vld [vmem:[%s17525_s8 + $0x828] sm:$0xff] }
 0x2f3   : > { %11161 = vmatpush1.msra.mxu0 %v8474_v14  ;;  %11232 = vmatpush1.msra.mxu1 %v8476_v38  ;;  %21618 = vst [vmem:[#allocation141_spill] sm:$0xff] %v19310_v43  ;;  %v8675_v14 = vld [vmem:[%s17525_s8 + $0xe48] sm:$0xff]  ;;  %v8677_v38 = vld [vmem:[%s17525_s8 + $0xe58] sm:$0xff]  ;;  %v8676_v43 = vld [vmem:[%s17525_s8 + $0xe50] sm:$0xff] }
 0x2f4   : > { %11162 = vmatprep.subr.mxu0 %v8279_v30  ;;  %11233 = vmatprep.subr.mxu1 %v8281_v8  ;;  %v8872_v30 = vld [vmem:[%s17525_s8 + $0x1470] sm:$0xff]  ;;  %v8674_v8 = vld [vmem:[%s17525_s8 + $0xe40] sm:$0xff] }
 0x2f5   : > { %11163 = vmatpush1.msra.mxu0 %v8278_v54  ;;  %11196 = vmatprep.mubr.f32.mxu0 %v21504_v5  ;;  %v19317_v54 = vpop.f32.mrf.mxu0 }
 0x2f6   : > { %11234 = vmatpush1.msra.mxu1 %v8280_v0  ;;  %11267 = vmatprep.mubr.f32.mxu1 %v21504_v5  ;;  %21619 = vst [vmem:[#allocation142_spill] sm:$0xff] %v19317_v54  ;;  %v19323_v0 = vpop.f32.mrf.mxu1  ;;  %v8481_v54 = vld [vmem:[%s17525_s8 + $0x838] sm:$0xff] }
 0x2f7   : > { %17002 = vmatmul.mubr.msk.f32.vlgmr.msra.gmra.mxu0 %vm1060_vm0, %v18995_v41  ;;  %17003 = vmatmul.mubr.msk.f32.vlgmr.msra.gmra.mxu1 %vm1060_vm0, %v18995_v41  ;;  %21620 = vst [vmem:[#allocation143_spill] sm:$0xff] %v19323_v0 }
 0x2f8   : > { %11298 = vmatprep.subr.mxu0 %v8871_v15  ;;  %11369 = vmatprep.subr.mxu1 %v8873_v59  ;;  %v19331_v15 = vpop.f32.mrf.mxu0  ;;  %v8285_v59 = vld [vmem:[%s17525_s8 + $0x218] sm:$0xff]  ;;  %v19335_v0 = vpop.f32.mrf.mxu1 }
 0x2f9   : > { %11299 = vmatpush1.msra.mxu0 %v8870_v51  ;;  %11370 = vmatpush1.msra.mxu1 %v8872_v30  ;;  %21621 = vst [vmem:[#allocation144_spill] sm:$0xff] %v19331_v15  ;;  %v8282_v51 = vld [vmem:[%s17525_s8 + $0x200] sm:$0xff]  ;;  %21622 = vst [vmem:[#allocation145_spill] sm:$0xff] %v19335_v0  ;;  %v8284_v30 = vld [vmem:[%s17525_s8 + $0x210] sm:$0xff] }
 0x2fa   : > { %11300 = vmatprep.subr.mxu0 %v8675_v14  ;;  %11371 = vmatprep.subr.mxu1 %v8677_v38  ;;  %v19338_v14 = vpop.f32.mrf.mxu0  ;;  %v19340_v38 = vpop.f32.mrf.mxu1  ;;  %v8482_v0 = vld [vmem:[%s17525_s8 + $0x840] sm:$0xff]  ;;  %v8484_v15 = vld [vmem:[%s17525_s8 + $0x850] sm:$0xff] }
 0x2fb   : > { %11301 = vmatpush1.msra.mxu0 %v8674_v8  ;;  %11372 = vmatpush1.msra.mxu1 %v8676_v43  ;;  %21623 = vst [vmem:[#allocation146_spill] sm:$0xff] %v19338_v14  ;;  %21624 = vst [vmem:[#allocation147_spill] sm:$0xff] %v19340_v38  ;;  %v8877_v43 = vld [vmem:[%s17525_s8 + $0x1498] sm:$0xff]  ;;  %v8483_v38 = vld [vmem:[%s17525_s8 + $0x848] sm:$0xff] }
 0x2fc   : > { %11302 = vmatprep.subr.mxu0 %v8479_v19  ;;  %11373 = vmatprep.subr.mxu1 %v8481_v54  ;;  %v8875_v19 = vld [vmem:[%s17525_s8 + $0x1488] sm:$0xff]  ;;  %v19351_v54 = vpop.f32.mrf.mxu0  ;;  %v8681_v8 = vld [vmem:[%s17525_s8 + $0xe78] sm:$0xff] }
 0x2fd   : > { %11303 = vmatpush1.msra.mxu0 %v8478_v9  ;;  %11374 = vmatpush1.msra.mxu1 %v8480_v44  ;;  %v8874_v9 = vld [vmem:[%s17525_s8 + $0x1480] sm:$0xff]  ;;  %v8679_v44 = vld [vmem:[%s17525_s8 + $0xe68] sm:$0xff]  ;;  %21625 = vst [vmem:[#allocation148_spill] sm:$0xff] %v19351_v54  ;;  %v8485_v54 = vld [vmem:[%s17525_s8 + $0x858] sm:$0xff] }
 0x2fe   : > { %11304 = vmatprep.subr.mxu0 %v8283_v58  ;;  %11375 = vmatprep.subr.mxu1 %v8285_v59  ;;  %v8876_v58 = vld [vmem:[%s17525_s8 + $0x1490] sm:$0xff]  ;;  %v8678_v59 = vld [vmem:[%s17525_s8 + $0xe60] sm:$0xff]  ;;  %v19361_v14 = vpop.f32.mrf.mxu0 }
 0x2ff   : > { %11305 = vmatpush1.msra.mxu0 %v8282_v51  ;;  %11338 = vmatprep.mubr.f32.mxu0 %v21504_v5  ;;  %v19357_v51 = vpop.f32.mrf.mxu1  ;;  %21627 = vst [vmem:[#allocation150_spill] sm:$0xff] %v19361_v14  ;;  %v8288_v14 = vld [vmem:[%s17525_s8 + $0x230] sm:$0xff] }
 0x300   : > { %11376 = vmatpush1.msra.mxu1 %v8284_v30  ;;  %11409 = vmatprep.mubr.f32.mxu1 %v21504_v5  ;;  %21626 = vst [vmem:[#allocation149_spill] sm:$0xff] %v19357_v51  ;;  %v8680_v30 = vld [vmem:[%s17525_s8 + $0xe70] sm:$0xff]  ;;  %v8287_v51 = vld [vmem:[%s17525_s8 + $0x228] sm:$0xff] }
 0x301   : > { %17004 = vmatmul.mubr.msk.f32.vlgmr.msra.gmra.mxu0 %vm1060_vm0, %v18995_v41  ;;  %17005 = vmatmul.mubr.msk.f32.vlgmr.msra.gmra.mxu1 %vm1060_vm0, %v18995_v41 }
 0x302   : > { %11440 = vmatprep.subr.mxu0 %v8875_v19  ;;  %11511 = vmatprep.subr.mxu1 %v8877_v43  ;;  %v19365_v19 = vpop.f32.mrf.mxu1  ;;  %v8289_v43 = vld [vmem:[%s17525_s8 + $0x238] sm:$0xff] }
 0x303   : > { %11441 = vmatpush1.msra.mxu0 %v8874_v9  ;;  %11512 = vmatpush1.msra.mxu1 %v8876_v58  ;;  %21628 = vst [vmem:[#allocation151_spill] sm:$0xff] %v19365_v19  ;;  %v8286_v9 = vld [vmem:[%s17525_s8 + $0x220] sm:$0xff]  ;;  %v19372_v58 = vpop.f32.mrf.mxu0  ;;  %v8291_v19 = vld [vmem:[%s17525_s8 + $0x248] sm:$0xff] }
 0x304   : > { %11442 = vmatprep.subr.mxu0 %v8679_v44  ;;  %11513 = vmatprep.subr.mxu1 %v8681_v8  ;;  %21629 = vst [vmem:[#allocation152_spill] sm:$0xff] %v19372_v58  ;;  %v19374_v44 = vpop.f32.mrf.mxu1 }
 0x305   : > { %11443 = vmatpush1.msra.mxu0 %v8678_v59  ;;  %11514 = vmatpush1.msra.mxu1 %v8680_v30  ;;  %21630 = vst [vmem:[#allocation153_spill] sm:$0xff] %v19374_v44  ;;  %v19377_v8 = vpop.f32.mrf.mxu0  ;;  %v8682_v30 = vld [vmem:[%s17525_s8 + $0xe80] sm:$0xff] }
 0x306   : > { %11444 = vmatprep.subr.mxu0 %v8483_v38  ;;  %11515 = vmatprep.subr.mxu1 %v8485_v54  ;;  %v8879_v38 = vld [vmem:[%s17525_s8 + $0x14a8] sm:$0xff]  ;;  %21631 = vst [vmem:[#allocation154_spill] sm:$0xff] %v19377_v8  ;;  %v8878_v54 = vld [vmem:[%s17525_s8 + $0x14a0] sm:$0xff]  ;;  %v19382_v59 = vpop.f32.mrf.mxu1  ;;  %v8489_v8 = vld [vmem:[%s17525_s8 + $0x878] sm:$0xff] }
 0x307   : > { %11445 = vmatpush1.msra.mxu0 %v8482_v0  ;;  %11516 = vmatpush1.msra.mxu1 %v8484_v15  ;;  %v8881_v0 = vld [vmem:[%s17525_s8 + $0x14b8] sm:$0xff]  ;;  %21632 = vst [vmem:[#allocation155_spill] sm:$0xff] %v19382_v59  ;;  %v8880_v15 = vld [vmem:[%s17525_s8 + $0x14b0] sm:$0xff]  ;;  %v19395_v59 = vpop.f32.mrf.mxu0  ;;  %v8486_v44 = vld [vmem:[%s17525_s8 + $0x860] sm:$0xff] }
 0x308   : > { %11446 = vmatprep.subr.mxu0 %v8287_v51  ;;  %11517 = vmatprep.subr.mxu1 %v8289_v43  ;;  %v8683_v51 = vld [vmem:[%s17525_s8 + $0xe88] sm:$0xff]  ;;  %v8684_v43 = vld [vmem:[%s17525_s8 + $0xe90] sm:$0xff]  ;;  %21633 = vst [vmem:[#allocation156_spill] sm:$0xff] %v19395_v59  ;;  %v19399_v58 = vpop.f32.mrf.mxu1  ;;  %v8290_v59 = vld [vmem:[%s17525_s8 + $0x240] sm:$0xff] }
 0x309   : > { %11447 = vmatpush1.msra.mxu0 %v8286_v9  ;;  %11480 = vmatprep.mubr.f32.mxu0 %v21504_v5  ;;  %v8487_v9 = vld [vmem:[%s17525_s8 + $0x868] sm:$0xff]  ;;  %21634 = vst [vmem:[#allocation157_spill] sm:$0xff] %v19399_v58 }
 0x30a   : > { %11518 = vmatpush1.msra.mxu1 %v8288_v14  ;;  %11551 = vmatprep.mubr.f32.mxu1 %v21504_v5  ;;  %v8685_v14 = vld [vmem:[%s17525_s8 + $0xe98] sm:$0xff]  ;;  %v8295_v58 = vld [vmem:[%s17525_s8 + $0x268] sm:$0xff] }
 0x30b   : > { %17006 = vmatmul.mubr.msk.f32.vlgmr.msra.gmra.mxu0 %vm1060_vm0, %v18995_v41  ;;  %17007 = vmatmul.mubr.msk.f32.vlgmr.msra.gmra.mxu1 %vm1060_vm0, %v18995_v41 }
 0x30c   : > { %11582 = vmatprep.subr.mxu0 %v8879_v38  ;;  %11653 = vmatprep.subr.mxu1 %v8881_v0  ;;  %v8488_v38 = vld [vmem:[%s17525_s8 + $0x870] sm:$0xff]  ;;  %v19403_v0 = vpop.f32.mrf.mxu0 }
 0x30d   : > { %11583 = vmatpush1.msra.mxu0 %v8878_v54  ;;  %11654 = vmatpush1.msra.mxu1 %v8880_v15  ;;  %21635 = vst [vmem:[#allocation158_spill] sm:$0xff] %v19403_v0  ;;  %v8293_v54 = vld [vmem:[%s17525_s8 + $0x258] sm:$0xff]  ;;  %v19407_v15 = vpop.f32.mrf.mxu1  ;;  %v8492_v0 = vld [vmem:[%s17525_s8 + $0x890] sm:$0xff] }
 0x30e   : > { %11584 = vmatprep.subr.mxu0 %v8683_v51  ;;  %11655 = vmatprep.subr.mxu1 %v8685_v14  ;;  %21636 = vst [vmem:[#allocation159_spill] sm:$0xff] %v19407_v15  ;;  %v8292_v51 = vld [vmem:[%s17525_s8 + $0x250] sm:$0xff]  ;;  %v8883_v14 = vld [vmem:[%s17525_s8 + $0x14c8] sm:$0xff]  ;;  %v8490_v15 = vld [vmem:[%s17525_s8 + $0x880] sm:$0xff] }
 0x30f   : > { %11585 = vmatpush1.msra.mxu0 %v8682_v30  ;;  %11656 = vmatpush1.msra.mxu1 %v8684_v43  ;;  %v19411_v30 = vpop.f32.mrf.mxu0  ;;  %v8885_v43 = vld [vmem:[%s17525_s8 + $0x14d8] sm:$0xff] }
 0x310   : > { %11586 = vmatprep.subr.mxu0 %v8487_v9  ;;  %11657 = vmatprep.subr.mxu1 %v8489_v8  ;;  %21637 = vst [vmem:[#allocation160_spill] sm:$0xff] %v19411_v30  ;;  %v8882_v9 = vld [vmem:[%s17525_s8 + $0x14c0] sm:$0xff]  ;;  %v19416_v8 = vpop.f32.mrf.mxu1  ;;  %v8491_v30 = vld [vmem:[%s17525_s8 + $0x888] sm:$0xff] }
 0x311   : > { %11587 = vmatpush1.msra.mxu0 %v8486_v44  ;;  %11658 = vmatpush1.msra.mxu1 %v8488_v38  ;;  %21638 = vst [vmem:[#allocation161_spill] sm:$0xff] %v19416_v8  ;;  %v8687_v44 = vld [vmem:[%s17525_s8 + $0xea8] sm:$0xff]  ;;  %v19425_v38 = vld [vmem:[#allocation7] sm:$0xff] }
 0x312   : > { %11588 = vmatprep.subr.mxu0 %v8291_v19  ;;  %11659 = vmatprep.subr.mxu1 %v8293_v54  ;;  %v8884_v19 = vld [vmem:[%s17525_s8 + $0x14d0] sm:$0xff]  ;;  %v8689_v54 = vld [vmem:[%s17525_s8 + $0xeb8] sm:$0xff]  ;;  %v19431_v8 = vpop.f32.mrf.mxu1 }
 0x313   : > { %11589 = vmatpush1.msra.mxu0 %v8290_v59  ;;  %11622 = vmatprep.mubr.f32.mxu0 %v21504_v5  ;;  %v19423_v59 = vpop.f32.mrf.mxu0  ;;  %21640 = vst [vmem:[#allocation163_spill] sm:$0xff] %v19431_v8  ;;  %v8297_v8 = vld [vmem:[%s17525_s8 + $0x278] sm:$0xff] }
 0x314   : > { %11660 = vmatpush1.msra.mxu1 %v8292_v51  ;;  %11693 = vmatprep.mubr.f32.mxu1 %v21504_v5  ;;  %21639 = vst [vmem:[#allocation162_spill] sm:$0xff] %v19423_v59  ;;  %v8686_v51 = vld [vmem:[%s17525_s8 + $0xea0] sm:$0xff]  ;;  %v8493_v59 = vld [vmem:[%s17525_s8 + $0x898] sm:$0xff] }
 0x315   : > { %17008 = vmatmul.mubr.msk.f32.vlgmr.msra.gmra.mxu0 %vm1060_vm0, %v18995_v41  ;;  %17009 = vmatmul.mubr.msk.f32.vlgmr.msra.gmra.mxu1 %vm1060_vm0, %v19425_v38  ;;  %v8688_v41 = vld [vmem:[%s17525_s8 + $0xeb0] sm:$0xff] }
 0x316   : > { %11724 = vmatprep.subr.mxu0 %v8883_v14  ;;  %11795 = vmatprep.subr.mxu1 %v8885_v43  ;;  %v19439_v14 = vpop.f32.mrf.mxu0  ;;  %v8294_v43 = vld [vmem:[%s17525_s8 + $0x260] sm:$0xff] }
 0x317   : > { %11725 = vmatpush1.msra.mxu0 %v8882_v9  ;;  %11796 = vmatpush1.msra.mxu1 %v8884_v19  ;;  %21641 = vst [vmem:[#allocation164_spill] sm:$0xff] %v19439_v14  ;;  %v19443_v9 = vpop.f32.mrf.mxu1  ;;  %v8296_v19 = vld [vmem:[%s17525_s8 + $0x270] sm:$0xff] }
 0x318   : > { %11726 = vmatprep.subr.mxu0 %v8687_v44  ;;  %11797 = vmatprep.subr.mxu1 %v8689_v54  ;;  %21642 = vst [vmem:[#allocation165_spill] sm:$0xff] %v19443_v9  ;;  %v19446_v44 = vpop.f32.mrf.mxu0  ;;  %v8495_v9 = vld [vmem:[%s17525_s8 + $0x8a8] sm:$0xff] }
 0x319   : > { %11727 = vmatpush1.msra.mxu0 %v8686_v51  ;;  %11798 = vmatpush1.msra.mxu1 %v8688_v41  ;;  %21643 = vst [vmem:[#allocation166_spill] sm:$0xff] %v19446_v44  ;;  %v19448_v54 = vpop.f32.mrf.mxu1  ;;  %v19450_v51 = vpop.permute.xlu0 %1057  ;;  %v8692_v44 = vld [vmem:[%s17525_s8 + $0xed0] sm:$0xff] }
 0x31a   : > { %11728 = vmatprep.subr.mxu0 %v8491_v30  ;;  %11799 = vmatprep.subr.mxu1 %v8493_v59  ;;  %21644 = vst [vmem:[#allocation167_spill] sm:$0xff] %v19448_v54  ;;  %v8887_v30 = vld [vmem:[%s17525_s8 + $0x14e8] sm:$0xff]  ;;  %v8886_v59 = vld [vmem:[%s17525_s8 + $0x14e0] sm:$0xff]  ;;  %v19461_v41 = vpop.f32.mrf.mxu0  ;;  %v1131_v54 = vadd.f32 %v18418_v24, %v19450_v51  ;;  %v1202_v14 = vadd.f32 %v18421_v26, %v19450_v51  ;;  %v8496_v24 = vld [vmem:[%s17525_s8 + $0x8b0] sm:$0xff] }
 0x31b   : > { %11729 = vmatpush1.msra.mxu0 %v8490_v15  ;;  %11800 = vmatpush1.msra.mxu1 %v8492_v0  ;;  %v8889_v15 = vld [vmem:[%s17525_s8 + $0x14f8] sm:$0xff]  ;;  %v8691_v0 = vld [vmem:[%s17525_s8 + $0xec8] sm:$0xff]  ;;  %21645 = vst [vmem:[#allocation168_spill] sm:$0xff] %v19461_v41 }
 0x31c   : > { %11730 = vmatprep.subr.mxu0 %v8295_v58  ;;  %11801 = vmatprep.subr.mxu1 %v8297_v8  ;;  %v8888_v58 = vld [vmem:[%s17525_s8 + $0x14f0] sm:$0xff]  ;;  %v8693_v8 = vld [vmem:[%s17525_s8 + $0xed8] sm:$0xff]  ;;  %v8022_v26 = vmax.f32 %v1131_v54, 0.0 }
 0x31d   : > { %11731 = vmatpush1.msra.mxu0 %v8294_v43  ;;  %11764 = vmatprep.mubr.f32.mxu0 %v21504_v5  ;;  %v8690_v43 = vld [vmem:[%s17525_s8 + $0xec0] sm:$0xff] }
 0x31e   : > { %11802 = vmatpush1.msra.mxu1 %v8296_v19  ;;  %11835 = vmatprep.mubr.f32.mxu1 %v21504_v5  ;;  %v19467_v19 = vpop.f32.mrf.mxu1 }
 0x31f   : > { %17010 = vmatmul.mubr.msk.f32.vlgmr.msra.gmra.mxu0 %vm1060_vm0, %v19425_v38  ;;  %17011 = vmatmul.mubr.msk.f32.vlgmr.msra.gmra.mxu1 %vm1060_vm0, %v19425_v38  ;;  %21646 = vst [vmem:[#allocation169_spill] sm:$0xff] %v19467_v19 }
 0x320   : > { %11866 = vmatprep.subr.mxu0 %v8887_v30  ;;  %11937 = vmatprep.subr.mxu1 %v8889_v15  ;;  %v8497_v30 = vld [vmem:[%s17525_s8 + $0x8b8] sm:$0xff]  ;;  %v8299_v15 = vld [vmem:[%s17525_s8 + $0x288] sm:$0xff] }
 0x321   : > { %11867 = vmatpush1.msra.mxu0 %v8886_v59  ;;  %v9068_v41 = vpop.f32.mrf.mxu0  ;;  %11938 = vmatpush1.msra.mxu1 %v8888_v58  ;;  %v9139_v25 = vpop.f32.mrf.mxu1 }
 0x322   : > { %11868 = vmatprep.subr.mxu0 %v8691_v0  ;;  %v9069_v19 = vadd.f32 %v9068_v41, %v19450_v51  ;;  %11939 = vmatprep.subr.mxu1 %v8693_v8  ;;  %v9140_v59 = vadd.f32 %v9139_v25, %v19450_v51  ;;  %v8300_v0 = vld [vmem:[%s17525_s8 + $0x290] sm:$0xff]  ;;  %v8024_v41 = vmax.f32 %v1202_v14, 0.0  ;;  %v8890_v14 = vld [vmem:[%s17525_s8 + $0x1500] sm:$0xff] }
 0x323   : > { %11869 = vmatpush1.msra.mxu0 %v8690_v43  ;;  %11940 = vmatpush1.msra.mxu1 %v8692_v44  ;;  %v9070_v8 = vpop.f32.mrf.mxu0  ;;  %v9141_v25 = vpop.f32.mrf.mxu1 }
 0x324   : > { %11870 = vmatprep.subr.mxu0 %v8495_v9  ;;  %v15960_v58 = vmax.f32 %v9069_v19, 0.0  ;;  %11941 = vmatprep.subr.mxu1 %v8497_v30  ;;  %v15962_v55 = vmax.f32 %v9140_v59, 0.0  ;;  %v8891_v9 = vld [vmem:[%s17525_s8 + $0x1508] sm:$0xff]  ;;  %v9071_v54 = vadd.f32 %v9070_v8, %v19450_v51  ;;  %v1133_v19 = vadd.f32 %v18435_v33, %v19450_v51  ;;  %v8697_v33 = vld [vmem:[%s17525_s8 + $0xef8] sm:$0xff]  ;;  %v8498_v8 = vld [vmem:[%s17525_s8 + $0x8c0] sm:$0xff] }
 0x325   : > { %11871 = vmatpush1.msra.mxu0 %v8494_v34  ;;  %11942 = vmatpush1.msra.mxu1 %v8496_v24  ;;  %v8893_v34 = vld [vmem:[%s17525_s8 + $0x1518] sm:$0xff]  ;;  %v9142_v30 = vadd.f32 %v9141_v25, %v19450_v51  ;;  %v1273_v24 = vadd.f32 %v18443_v39, %v19450_v51  ;;  %v1275_v59 = vadd.f32 %v18452_v60, %v19450_v51 }
 0x326   : > { %11872 = vmatprep.subr.mxu0 %v8299_v15  ;;  %v19484_v43 = vsub.f32 %v8022_v26, %v15960_v58  ;;  %11943 = vmatprep.subr.mxu1 %v8301_v11  ;;  %v19487_v44 = vsub.f32 %v8024_v41, %v15962_v55  ;;  %v1204_v11 = vadd.f32 %v18439_v36, %v19450_v51  ;;  %v8892_v55 = vld [vmem:[%s17525_s8 + $0x1510] sm:$0xff]  ;;  %v8694_v36 = vld [vmem:[%s17525_s8 + $0xee0] sm:$0xff]  ;;  %v8499_v58 = vld [vmem:[%s17525_s8 + $0x8c8] sm:$0xff]  ;;  %v15961_v25 = vmax.f32 %v9071_v54, 0.0 }
 0x327   : > { %11873 = vmatpush1.msra.mxu0 %v8298_v3  ;;  %11906 = vmatprep.mubr.f32.mxu0 %v21504_v5  ;;  %v8695_v3 = vld [vmem:[%s17525_s8 + $0xee8] sm:$0xff]  ;;  %v1344_v15 = vadd.f32 %v18447_v42, %v19450_v51  ;;  %v8696_v26 = vld [vmem:[%s17525_s8 + $0xef0] sm:$0xff]  ;;  %v8501_v41 = vld [vmem:[%s17525_s8 + $0x8d8] sm:$0xff]  ;;  %v15963_v27 = vmax.f32 %v9142_v30, 0.0  ;;  %v19525_v54 = vadd.f32 %v18460_v50, %v19450_v51  ;;  %v8027_v30 = vmax.f32 %v1275_v59, 0.0 }
 0x328   : > { %11944 = vmatpush1.msra.mxu1 %v8300_v0  ;;  %11977 = vmatprep.mubr.f32.mxu1 %v21504_v5  ;;  %v1346_v0 = vadd.f32 %v18455_v47, %v19450_v51 }
 0x329   : > { %17012 = vmatmul.mubr.msk.f32.vlgmr.msra.gmra.mxu0 %vm1060_vm0, %v19425_v38  ;;  %17013 = vmatmul.mubr.msk.f32.vlgmr.msra.gmra.mxu1 %vm1060_vm0, %v19425_v38 }
 0x32a   : > { %12008 = vmatprep.subr.mxu0 %v8891_v9  ;;  %12079 = vmatprep.subr.mxu1 %v8893_v34  ;;  %v8023_v9 = vmax.f32 %v1133_v19, 0.0  ;;  %v8025_v34 = vmax.f32 %v1204_v11, 0.0  ;;  %v8029_v50 = vmax.f32 %v1346_v0, 0.0  ;;  %v8894_v0 = vld [vmem:[%s17525_s8 + $0x1520] sm:$0xff] }
 0x32b   : > { %12009 = vmatpush1.msra.mxu0 %v8890_v14  ;;  %v9210_v39 = vpop.f32.mrf.mxu0  ;;  %12080 = vmatpush1.msra.mxu1 %v8892_v55  ;;  %v9281_v60 = vpop.f32.mrf.mxu1  ;;  %v8500_v14 = vld [vmem:[%s17525_s8 + $0x8d0] sm:$0xff] }
 0x32c   : > { %12010 = vmatprep.subr.mxu0 %v8695_v3  ;;  %v9211_v42 = vadd.f32 %v9210_v39, %v19450_v51  ;;  %12081 = vmatprep.subr.mxu1 %v8697_v33  ;;  %v9282_v47 = vadd.f32 %v9281_v60, %v19450_v51  ;;  %v8026_v3 = vmax.f32 %v1273_v24, 0.0  ;;  %v8305_v39 = vld [vmem:[%s17525_s8 + $0x2b8] sm:$0xff]  ;;  %v8304_v60 = vld [vmem:[%s17525_s8 + $0x2b0] sm:$0xff]  ;;  %v16159_v59 = vsub.f32 %v8025_v34, %v15963_v27 }
 0x32d   : > { %12011 = vmatpush1.msra.mxu0 %v8694_v36  ;;  %v9212_v55 = vpop.f32.mrf.mxu0  ;;  %12082 = vmatpush1.msra.mxu1 %v8696_v26  ;;  %v9283_v33 = vpop.f32.mrf.mxu1  ;;  %v8028_v36 = vmax.f32 %v1344_v15, 0.0  ;;  %v16157_v26 = vsub.f32 %v8023_v9, %v15961_v25  ;;  %v8895_v15 = vld [vmem:[%s17525_s8 + $0x1528] sm:$0xff]  ;;  %v16352_v25 = vmul.f32 %v19484_v43, %v19484_v43  ;;  %v16354_v27 = vmul.f32 %v19487_v44, %v19487_v44  ;;  %v8701_v43 = vld [vmem:[%s17525_s8 + $0xf18] sm:$0xff] }
 0x32e   : > { %12012 = vmatprep.subr.mxu0 %v8499_v58  ;;  %v15964_v19 = vmax.f32 %v9211_v42, 0.0  ;;  %v9213_v11 = vadd.f32 %v9212_v55, %v19450_v51  ;;  %12083 = vmatprep.subr.mxu1 %v8501_v41  ;;  %v15966_v21 = vmax.f32 %v9282_v47, 0.0  ;;  %v9284_v24 = vadd.f32 %v9283_v33, %v19450_v51  ;;  %v8698_v47 = vld [vmem:[%s17525_s8 + $0xf00] sm:$0xff]  ;;  %v8503_v33 = vld [vmem:[%s17525_s8 + $0x8e8] sm:$0xff] }
 0x32f   : > { %12013 = vmatpush1.msra.mxu0 %v8498_v8  ;;  %12084 = vmatpush1.msra.mxu1 %v8500_v14  ;;  %v19534_v55 = vadd.f32 %v18467_v18, %v19450_v51  ;;  %v16355_v44 = vmul.f32 %v16159_v59, %v16159_v59  ;;  %v1488_v59 = vadd.f32 %v18481_v1, %v19450_v51 }
 0x330   : > { %12014 = vmatprep.subr.mxu0 %v8303_v48  ;;  %v16160_v58 = vsub.f32 %v8026_v3, %v15964_v19  ;;  %v15965_v42 = vmax.f32 %v9213_v11, 0.0  ;;  %12085 = vmatprep.subr.mxu1 %v8305_v39  ;;  %v16162_v41 = vsub.f32 %v8028_v36, %v15966_v21  ;;  %v15967_v8 = vmax.f32 %v9284_v24, 0.0  ;;  %v8897_v48 = vld [vmem:[%s17525_s8 + $0x1538] sm:$0xff]  ;;  %v8896_v21 = vld [vmem:[%s17525_s8 + $0x1530] sm:$0xff] }
 0x331   : > { %12015 = vmatpush1.msra.mxu0 %v8302_v22  ;;  %12048 = vmatprep.mubr.f32.mxu0 %v21504_v5  ;;  %v8699_v22 = vld [vmem:[%s17525_s8 + $0xf08] sm:$0xff]  ;;  %v16353_v3 = vmul.f32 %v16157_v26, %v16157_v26  ;;  %v8700_v11 = vld [vmem:[%s17525_s8 + $0xf10] sm:$0xff]  ;;  %v1417_v24 = vadd.f32 %v18477_v61, %v19450_v51  ;;  %v8502_v26 = vld [vmem:[%s17525_s8 + $0x8e0] sm:$0xff] }
 0x332   : > { %12086 = vmatpush1.msra.mxu1 %v8304_v60  ;;  %v16356_v18 = vmul.f32 %v16160_v58, %v16160_v58  ;;  %v16161_v9 = vsub.f32 %v8027_v30, %v15965_v42  ;;  %12119 = vmatprep.mubr.f32.mxu1 %v21504_v5  ;;  %v16358_v34 = vmul.f32 %v16162_v41, %v16162_v41  ;;  %v8504_v41 = vld [vmem:[%s17525_s8 + $0x8f0] sm:$0xff] }
 0x333   : > { %17014 = vmatmul.mubr.msk.f32.vlgmr.msra.gmra.mxu0 %vm1060_vm0, %v19425_v38  ;;  %v16163_v14 = vsub.f32 %v8029_v50, %v15967_v8  ;;  %17015 = vmatmul.mubr.msk.f32.vlgmr.msra.gmra.mxu1 %vm1060_vm0, %v19425_v38  ;;  %v8505_v50 = vld [vmem:[%s17525_s8 + $0x8f8] sm:$0xff]  ;;  %v8307_v8 = vld [vmem:[%s17525_s8 + $0x2c8] sm:$0xff] }
 0x334   : > { %12150 = vmatprep.subr.mxu0 %v8895_v15  ;;  %v19553_v39 = vadd.f32 %v16356_v18, %v16352_v25  ;;  %v16357_v19 = vmul.f32 %v16161_v9, %v16161_v9  ;;  %12221 = vmatprep.subr.mxu1 %v8897_v48  ;;  %v19557_v36 = vadd.f32 %v16358_v34, %v16354_v27  ;;  %v8030_v25 = vmax.f32 %v19525_v54, 0.0  ;;  %v8309_v18 = vld [vmem:[%s17525_s8 + $0x2d8] sm:$0xff]  ;;  %v8306_v9 = vld [vmem:[%s17525_s8 + $0x2c0] sm:$0xff]  ;;  %v8308_v34 = vld [vmem:[%s17525_s8 + $0x2d0] sm:$0xff] }
 0x335   : > { %12151 = vmatpush1.msra.mxu0 %v8894_v0  ;;  %v16359_v30 = vmul.f32 %v16163_v14, %v16163_v14  ;;  %v9352_v60 = vpop.f32.mrf.mxu0  ;;  %12222 = vmatpush1.msra.mxu1 %v8896_v21  ;;  %v9423_v15 = vpop.f32.mrf.mxu1  ;;  %v8032_v27 = vmax.f32 %v19534_v55, 0.0  ;;  %v8031_v54 = vmax.f32 %v1417_v24, 0.0 }
 0x336   : > { %12152 = vmatprep.subr.mxu0 %v8699_v22  ;;  %v19563_v58 = vadd.f32 %v16357_v19, %v16353_v3  ;;  %v9353_v42 = vadd.f32 %v9352_v60, %v19450_v51  ;;  %12223 = vmatprep.subr.mxu1 %v8701_v43  ;;  %v9424_v48 = vadd.f32 %v9423_v15, %v19450_v51  ;;  %v8033_v19 = vmax.f32 %v1488_v59, 0.0 }
 0x337   : > { %12153 = vmatpush1.msra.mxu0 %v8698_v47  ;;  %v19570_v61 = vadd.f32 %v16359_v30, %v16355_v44  ;;  %v9354_v0 = vpop.f32.mrf.mxu0  ;;  %12224 = vmatpush1.msra.mxu1 %v8700_v11  ;;  %v9425_v1 = vpop.f32.mrf.mxu1  ;;  %v8899_v11 = vld [vmem:[%s17525_s8 + $0x1548] sm:$0xff]  ;;  %v8901_v44 = vld [vmem:[%s17525_s8 + $0x1558] sm:$0xff]  ;;  %v8898_v30 = vld [vmem:[%s17525_s8 + $0x1540] sm:$0xff]  ;;  %v1557_v59 = vadd.f32 %v18485_v4, %v19450_v51 }
 0x338   : > { %12154 = vmatprep.subr.mxu0 %v8503_v33  ;;  %v15968_v21 = vmax.f32 %v9353_v42, 0.0  ;;  %v9355_v22 = vadd.f32 %v9354_v0, %v19450_v51  ;;  %12225 = vmatprep.subr.mxu1 %v8505_v50  ;;  %v15970_v14 = vmax.f32 %v9424_v48, 0.0  ;;  %v9426_v43 = vadd.f32 %v9425_v1, %v19450_v51  ;;  %v8900_v50 = vld [vmem:[%s17525_s8 + $0x1550] sm:$0xff]  ;;  %v8507_v4 = vld [vmem:[%s17525_s8 + $0x908] sm:$0xff] }
 0x339   : > { %12155 = vmatpush1.msra.mxu0 %v8502_v26  ;;  %12226 = vmatpush1.msra.mxu1 %v8504_v41  ;;  %v8703_v26 = vld [vmem:[%s17525_s8 + $0xf28] sm:$0xff]  ;;  %v8705_v41 = vld [vmem:[%s17525_s8 + $0xf38] sm:$0xff]  ;;  %v1559_v1 = vadd.f32 %v18494_v10, %v19450_v51 }
 0x33a   : > { %12156 = vmatprep.subr.mxu0 %v8307_v8  ;;  %v16164_v47 = vsub.f32 %v8030_v25, %v15968_v21  ;;  %v15969_v3 = vmax.f32 %v9355_v22, 0.0  ;;  %12227 = vmatprep.subr.mxu1 %v8309_v18  ;;  %v16166_v55 = vsub.f32 %v8032_v27, %v15970_v14  ;;  %v15971_v33 = vmax.f32 %v9426_v43, 0.0  ;;  %v8702_v8 = vld [vmem:[%s17525_s8 + $0xf20] sm:$0xff]  ;;  %v8704_v18 = vld [vmem:[%s17525_s8 + $0xf30] sm:$0xff]  ;;  %v8311_v10 = vld [vmem:[%s17525_s8 + $0x2e8] sm:$0xff] }
 0x33b   : > { %12157 = vmatpush1.msra.mxu0 %v8306_v9  ;;  %12190 = vmatprep.mubr.f32.mxu0 %v21504_v5  ;;  %v1628_v25 = vadd.f32 %v18488_v6, %v19450_v51  ;;  %v8506_v27 = vld [vmem:[%s17525_s8 + $0x900] sm:$0xff]  ;;  %v8508_v43 = vld [vmem:[%s17525_s8 + $0x910] sm:$0xff] }
 0x33c   : > { %12228 = vmatpush1.msra.mxu1 %v8308_v34  ;;  %v16360_v60 = vmul.f32 %v16164_v47, %v16164_v47  ;;  %v16165_v24 = vsub.f32 %v8031_v54, %v15969_v3  ;;  %12261 = vmatprep.mubr.f32.mxu1 %v21504_v5  ;;  %v16362_v42 = vmul.f32 %v16166_v55, %v16166_v55 }
 0x33d   : > { %17016 = vmatmul.mubr.msk.f32.vlgmr.msra.gmra.mxu0 %vm1060_vm0, %v19425_v38  ;;  %v16167_v15 = vsub.f32 %v8033_v19, %v15971_v33  ;;  %17017 = vmatmul.mubr.msk.f32.vlgmr.msra.gmra.mxu1 %vm1060_vm0, %v19425_v38  ;;  %v8034_v19 = vmax.f32 %v1557_v59, 0.0 }
 0x33e   : > { %12292 = vmatprep.subr.mxu0 %v8899_v11  ;;  %v19596_v48 = vadd.f32 %v19553_v39, %v16360_v60  ;;  %v16361_v0 = vmul.f32 %v16165_v24, %v16165_v24  ;;  %12363 = vmatprep.subr.mxu1 %v8901_v44  ;;  %v19603_v9 = vadd.f32 %v19557_v36, %v16362_v42  ;;  %v8509_v39 = vld [vmem:[%s17525_s8 + $0x918] sm:$0xff]  ;;  %v8310_v11 = vld [vmem:[%s17525_s8 + $0x2e0] sm:$0xff]  ;;  %v8036_v44 = vmax.f32 %v1628_v25, 0.0 }
 0x33f   : > { %12293 = vmatpush1.msra.mxu0 %v8898_v30  ;;  %v16363_v21 = vmul.f32 %v16167_v15, %v16167_v15  ;;  %v9494_v22 = vpop.f32.mrf.mxu0  ;;  %12364 = vmatpush1.msra.mxu1 %v8900_v50  ;;  %v9565_v14 = vpop.f32.mrf.mxu1  ;;  %v1630_v36 = vadd.f32 %v18501_v13, %v19450_v51  ;;  %v8312_v30 = vld [vmem:[%s17525_s8 + $0x2f0] sm:$0xff]  ;;  %v8035_v24 = vmax.f32 %v1559_v1, 0.0  ;;  %v8903_v15 = vld [vmem:[%s17525_s8 + $0x1568] sm:$0xff] }
 0x340   : > { %12294 = vmatprep.subr.mxu0 %v8703_v26  ;;  %v19610_v6 = vadd.f32 %v19563_v58, %v16361_v0  ;;  %v9495_v34 = vadd.f32 %v9494_v22, %v19450_v51  ;;  %12365 = vmatprep.subr.mxu1 %v8705_v41  ;;  %v9566_v47 = vadd.f32 %v9565_v14, %v19450_v51  ;;  %v8313_v58 = vld [vmem:[%s17525_s8 + $0x2f8] sm:$0xff]  ;;  %v8902_v0 = vld [vmem:[%s17525_s8 + $0x1560] sm:$0xff] }
 0x341   : > { %12295 = vmatpush1.msra.mxu0 %v8702_v8  ;;  %v19618_v54 = vadd.f32 %v19570_v61, %v16363_v21  ;;  %v9496_v3 = vpop.f32.mrf.mxu0  ;;  %12366 = vmatpush1.msra.mxu1 %v8704_v18  ;;  %v9567_v13 = vpop.f32.mrf.mxu1  ;;  %v8037_v42 = vmax.f32 %v1630_v36, 0.0  ;;  %v8905_v8 = vld [vmem:[%s17525_s8 + $0x1578] sm:$0xff]  ;;  %v8707_v21 = vld [vmem:[%s17525_s8 + $0xf48] sm:$0xff] }
 0x342   : > { %12296 = vmatprep.subr.mxu0 %v8507_v4  ;;  %v15972_v55 = vmax.f32 %v9495_v34, 0.0  ;;  %v9497_v33 = vadd.f32 %v9496_v3, %v19450_v51  ;;  %12367 = vmatprep.subr.mxu1 %v8509_v39  ;;  %v15974_v61 = vmax.f32 %v9566_v47, 0.0  ;;  %v9568_v60 = vadd.f32 %v9567_v13, %v19450_v51  ;;  %v8904_v4 = vld [vmem:[%s17525_s8 + $0x1570] sm:$0xff]  ;;  %v8706_v34 = vld [vmem:[%s17525_s8 + $0xf40] sm:$0xff] }
 0x343   : > { %12297 = vmatpush1.msra.mxu0 %v8506_v27  ;;  %12368 = vmatpush1.msra.mxu1 %v8508_v43  ;;  %v1699_v39 = vadd.f32 %v18507_v16, %v19450_v51  ;;  %v8709_v27 = vld [vmem:[%s17525_s8 + $0xf58] sm:$0xff]  ;;  %v1770_v43 = vadd.f32 %v18511_v20, %v19450_v51  ;;  %v8511_v16 = vld [vmem:[%s17525_s8 + $0x928] sm:$0xff]  ;;  %v8512_v13 = vld [vmem:[%s17525_s8 + $0x930] sm:$0xff] }
 0x344   : > { %12298 = vmatprep.subr.mxu0 %v8311_v10  ;;  %v16168_v50 = vsub.f32 %v8034_v19, %v15972_v55  ;;  %v15973_v26 = vmax.f32 %v9497_v33, 0.0  ;;  %12369 = vmatprep.subr.mxu1 %v8313_v58  ;;  %v16170_v59 = vsub.f32 %v8036_v44, %v15974_v61  ;;  %v15975_v41 = vmax.f32 %v9568_v60, 0.0  ;;  %v8708_v10 = vld [vmem:[%s17525_s8 + $0xf50] sm:$0xff] }
 0x345   : > { %12299 = vmatpush1.msra.mxu0 %v8310_v11  ;;  %12332 = vmatprep.mubr.f32.mxu0 %v21504_v5  ;;  %v1701_v58 = vadd.f32 %v18519_v29, %v19450_v51  ;;  %v8510_v11 = vld [vmem:[%s17525_s8 + $0x920] sm:$0xff]  ;;  %v8315_v29 = vld [vmem:[%s17525_s8 + $0x308] sm:$0xff]  ;;  %v8038_v60 = vmax.f32 %v1699_v39, 0.0 }
 0x346   : > { %12370 = vmatpush1.msra.mxu1 %v8312_v30  ;;  %v16364_v25 = vmul.f32 %v16168_v50, %v16168_v50  ;;  %v16169_v18 = vsub.f32 %v8035_v24, %v15973_v26  ;;  %12403 = vmatprep.mubr.f32.mxu1 %v21504_v5  ;;  %v16366_v22 = vmul.f32 %v16170_v59, %v16170_v59  ;;  %v8314_v24 = vld [vmem:[%s17525_s8 + $0x300] sm:$0xff] }
 0x347   : > { %17018 = vmatmul.mubr.msk.f32.vlgmr.msra.gmra.mxu0 %vm1060_vm0, %v19425_v38  ;;  %v16171_v1 = vsub.f32 %v8037_v42, %v15975_v41  ;;  %17019 = vmatmul.mubr.msk.f32.vlgmr.msra.gmra.mxu1 %vm1060_vm0, %v19425_v38  ;;  %v8040_v42 = vmax.f32 %v1770_v43, 0.0  ;;  %v8039_v41 = vmax.f32 %v1701_v58, 0.0 }
 0x348   : > { %12434 = vmatprep.subr.mxu0 %v8903_v15  ;;  %v19642_v14 = vadd.f32 %v19596_v48, %v16364_v25  ;;  %v16365_v36 = vmul.f32 %v16169_v18, %v16169_v18  ;;  %12505 = vmatprep.subr.mxu1 %v8905_v8  ;;  %v19649_v47 = vadd.f32 %v19603_v9, %v16366_v22  ;;  %v8513_v48 = vld [vmem:[%s17525_s8 + $0x938] sm:$0xff]  ;;  %v8316_v15 = vld [vmem:[%s17525_s8 + $0x310] sm:$0xff]  ;;  %v8907_v18 = vld [vmem:[%s17525_s8 + $0x1588] sm:$0xff] }
 0x349   : > { %12435 = vmatpush1.msra.mxu0 %v8902_v0  ;;  %v16367_v3 = vmul.f32 %v16171_v1, %v16171_v1  ;;  %v9636_v19 = vpop.f32.mrf.mxu0  ;;  %12506 = vmatpush1.msra.mxu1 %v8904_v4  ;;  %v9707_v33 = vpop.f32.mrf.mxu1  ;;  %v1772_v9 = vadd.f32 %v18522_v31, %v19450_v51  ;;  %v8909_v22 = vld [vmem:[%s17525_s8 + $0x1598] sm:$0xff]  ;;  %v8906_v1 = vld [vmem:[%s17525_s8 + $0x1580] sm:$0xff] }
 0x34a   : > { %12436 = vmatprep.subr.mxu0 %v8707_v21  ;;  %v19656_v20 = vadd.f32 %v19610_v6, %v16365_v36  ;;  %v9637_v55 = vadd.f32 %v9636_v19, %v19450_v51  ;;  %12507 = vmatprep.subr.mxu1 %v8709_v27  ;;  %v9708_v30 = vadd.f32 %v9707_v33, %v19450_v51  ;;  %v8317_v6 = vld [vmem:[%s17525_s8 + $0x318] sm:$0xff]  ;;  %v8711_v36 = vld [vmem:[%s17525_s8 + $0xf68] sm:$0xff]  ;;  %v8710_v19 = vld [vmem:[%s17525_s8 + $0xf60] sm:$0xff] }
 0x34b   : > { %12437 = vmatpush1.msra.mxu0 %v8706_v34  ;;  %v19664_v44 = vadd.f32 %v19618_v54, %v16367_v3  ;;  %v9638_v61 = vpop.f32.mrf.mxu0  ;;  %12508 = vmatpush1.msra.mxu1 %v8708_v10  ;;  %v9709_v31 = vpop.f32.mrf.mxu1  ;;  %v8041_v25 = vmax.f32 %v1772_v9, 0.0  ;;  %v8908_v34 = vld [vmem:[%s17525_s8 + $0x1590] sm:$0xff]  ;;  %v8713_v3 = vld [vmem:[%s17525_s8 + $0xf78] sm:$0xff] }
 0x34c   : > { %12438 = vmatprep.subr.mxu0 %v8511_v16  ;;  %v15976_v50 = vmax.f32 %v9637_v55, 0.0  ;;  %v9639_v26 = vadd.f32 %v9638_v61, %v19450_v51  ;;  %12509 = vmatprep.subr.mxu1 %v8513_v48  ;;  %v15978_v54 = vmax.f32 %v9708_v30, 0.0  ;;  %v9710_v59 = vadd.f32 %v9709_v31, %v19450_v51  ;;  %v8712_v55 = vld [vmem:[%s17525_s8 + $0xf70] sm:$0xff]  ;;  %v8514_v30 = vld [vmem:[%s17525_s8 + $0x940] sm:$0xff] }
 0x34d   : > { %12439 = vmatpush1.msra.mxu0 %v8510_v11  ;;  %12510 = vmatpush1.msra.mxu1 %v8512_v13  ;;  %v1841_v16 = vadd.f32 %v18524_v32, %v19450_v51  ;;  %v1912_v11 = vadd.f32 %v18527_v35, %v19450_v51  ;;  %v8515_v32 = vld [vmem:[%s17525_s8 + $0x948] sm:$0xff] }
 0x34e   : > { %12440 = vmatprep.subr.mxu0 %v8315_v29  ;;  %v16172_v8 = vsub.f32 %v8038_v60, %v15976_v50  ;;  %v15977_v0 = vmax.f32 %v9639_v26, 0.0  ;;  %12511 = vmatprep.subr.mxu1 %v8317_v6  ;;  %v16174_v4 = vsub.f32 %v8040_v42, %v15978_v54  ;;  %v15979_v21 = vmax.f32 %v9710_v59, 0.0  ;;  %v8516_v6 = vld [vmem:[%s17525_s8 + $0x950] sm:$0xff]  ;;  %v8318_v42 = vld [vmem:[%s17525_s8 + $0x320] sm:$0xff] }
 0x34f   : > { %12441 = vmatpush1.msra.mxu0 %v8314_v24  ;;  %12474 = vmatprep.mubr.f32.mxu0 %v21504_v5  ;;  %v1843_v29 = vadd.f32 %v18541_v45, %v19450_v51  ;;  %v8319_v45 = vld [vmem:[%s17525_s8 + $0x328] sm:$0xff]  ;;  %v8042_v31 = vmax.f32 %v1841_v16, 0.0  ;;  %v8044_v59 = vmax.f32 %v1912_v11, 0.0  ;;  %v8714_v11 = vld [vmem:[%s17525_s8 + $0xf80] sm:$0xff] }
 0x350   : > { %12512 = vmatpush1.msra.mxu1 %v8316_v15  ;;  %v16368_v39 = vmul.f32 %v16172_v8, %v16172_v8  ;;  %v16173_v27 = vsub.f32 %v8039_v41, %v15977_v0  ;;  %12545 = vmatprep.mubr.f32.mxu1 %v21504_v5  ;;  %v16370_v43 = vmul.f32 %v16174_v4, %v16174_v4  ;;  %v8320_v41 = vld [vmem:[%s17525_s8 + $0x330] sm:$0xff] }
 0x351   : > { %17020 = vmatmul.mubr.msk.f32.vlgmr.msra.gmra.mxu0 %vm1060_vm0, %v19425_v38  ;;  %v16175_v10 = vsub.f32 %v8041_v25, %v15979_v21  ;;  %17021 = vmatmul.mubr.msk.f32.vlgmr.msra.gmra.mxu1 %vm1060_vm0, %v19425_v38  ;;  %v8043_v0 = vmax.f32 %v1843_v29, 0.0  ;;  %v8911_v21 = vld [vmem:[%s17525_s8 + $0x15a8] sm:$0xff] }
 0x352   : > { %12576 = vmatprep.subr.mxu0 %v8907_v18  ;;  %v19688_v58 = vadd.f32 %v19642_v14, %v16368_v39  ;;  %v16369_v48 = vmul.f32 %v16173_v27, %v16173_v27  ;;  %12647 = vmatprep.subr.mxu1 %v8909_v22  ;;  %v19695_v33 = vadd.f32 %v19649_v47, %v16370_v43  ;;  %v8517_v14 = vld [vmem:[%s17525_s8 + $0x958] sm:$0xff]  ;;  %v8910_v27 = vld [vmem:[%s17525_s8 + $0x15a0] sm:$0xff]  ;;  %v8912_v43 = vld [vmem:[%s17525_s8 + $0x15b0] sm:$0xff] }
 0x353   : > { %12577 = vmatpush1.msra.mxu0 %v8906_v1  ;;  %v16371_v9 = vmul.f32 %v16175_v10, %v16175_v10  ;;  %v9778_v13 = vpop.f32.mrf.mxu0  ;;  %12648 = vmatpush1.msra.mxu1 %v8908_v34  ;;  %v9849_v60 = vpop.f32.mrf.mxu1  ;;  %v1914_v47 = vadd.f32 %v18545_v49, %v19450_v51  ;;  %v8913_v39 = vld [vmem:[%s17525_s8 + $0x15b8] sm:$0xff]  ;;  %v8715_v10 = vld [vmem:[%s17525_s8 + $0xf88] sm:$0xff] }
 0x354   : > { %12578 = vmatprep.subr.mxu0 %v8711_v36  ;;  %v19702_v35 = vadd.f32 %v19656_v20, %v16369_v48  ;;  %v9779_v61 = vadd.f32 %v9778_v13, %v19450_v51  ;;  %12649 = vmatprep.subr.mxu1 %v8713_v3  ;;  %v9850_v50 = vadd.f32 %v9849_v60, %v19450_v51  ;;  %v8321_v20 = vld [vmem:[%s17525_s8 + $0x338] sm:$0xff]  ;;  %v8716_v13 = vld [vmem:[%s17525_s8 + $0xf90] sm:$0xff]  ;;  %v8518_v60 = vld [vmem:[%s17525_s8 + $0x960] sm:$0xff] }
 0x355   : > { %12579 = vmatpush1.msra.mxu0 %v8710_v19  ;;  %v19710_v24 = vadd.f32 %v19664_v44, %v16371_v9  ;;  %v9780_v26 = vpop.f32.mrf.mxu0  ;;  %12650 = vmatpush1.msra.mxu1 %v8712_v55  ;;  %v9851_v49 = vpop.f32.mrf.mxu1  ;;  %v8045_v4 = vmax.f32 %v1914_v47, 0.0  ;;  %v1983_v19 = vadd.f32 %v18549_v53, %v19450_v51  ;;  %v8717_v48 = vld [vmem:[%s17525_s8 + $0xf98] sm:$0xff]  ;;  %v2054_v9 = vadd.f32 %v18553_v56, %v19450_v51  ;;  %v8519_v53 = vld [vmem:[%s17525_s8 + $0x968] sm:$0xff] }
 0x356   : > { %12580 = vmatprep.subr.mxu0 %v8515_v32  ;;  %v15980_v15 = vmax.f32 %v9779_v61, 0.0  ;;  %v9781_v54 = vadd.f32 %v9780_v26, %v19450_v51  ;;  %12651 = vmatprep.subr.mxu1 %v8517_v14  ;;  %v15982_v44 = vmax.f32 %v9850_v50, 0.0  ;;  %v9852_v8 = vadd.f32 %v9851_v49, %v19450_v51 }
 0x357   : > { %12581 = vmatpush1.msra.mxu0 %v8514_v30  ;;  %12652 = vmatpush1.msra.mxu1 %v8516_v6  ;;  %v1985_v61 = vadd.f32 %v18558_v62, %v19450_v51  ;;  %v8323_v62 = vld [vmem:[%s17525_s8 + $0x348] sm:$0xff]  ;;  %v8048_v49 = vmax.f32 %v2054_v9, 0.0  ;;  %v8720_v9 = vld [vmem:[%s17525_s8 + $0xfb0] sm:$0xff] }
 0x358   : > { %12582 = vmatprep.subr.mxu0 %v8319_v45  ;;  %v16176_v25 = vsub.f32 %v8042_v31, %v15980_v15  ;;  %v15981_v18 = vmax.f32 %v9781_v54, 0.0  ;;  %12653 = vmatprep.subr.mxu1 %v8321_v20  ;;  %v16178_v22 = vsub.f32 %v8044_v59, %v15982_v44  ;;  %v15983_v1 = vmax.f32 %v9852_v8, 0.0  ;;  %v8520_v45 = vld [vmem:[%s17525_s8 + $0x970] sm:$0xff] }
 0x359   : > { %12583 = vmatpush1.msra.mxu0 %v8318_v42  ;;  %12616 = vmatprep.mubr.f32.mxu0 %v21504_v5  ;;  %v8046_v20 = vmax.f32 %v1983_v19, 0.0  ;;  %v8322_v42 = vld [vmem:[%s17525_s8 + $0x340] sm:$0xff]  ;;  %v8324_v59 = vld [vmem:[%s17525_s8 + $0x350] sm:$0xff]  ;;  %v8047_v44 = vmax.f32 %v1985_v61, 0.0 }
 0x35a   : > { %12654 = vmatpush1.msra.mxu1 %v8320_v41  ;;  %v16372_v34 = vmul.f32 %v16176_v25, %v16176_v25  ;;  %v16177_v36 = vsub.f32 %v8043_v0, %v15981_v18  ;;  %12687 = vmatprep.mubr.f32.mxu1 %v21504_v5  ;;  %v16374_v16 = vmul.f32 %v16178_v22, %v16178_v22  ;;  %v8915_v18 = vld [vmem:[%s17525_s8 + $0x15c8] sm:$0xff]  ;;  %v8917_v22 = vld [vmem:[%s17525_s8 + $0x15d8] sm:$0xff]  ;;  %v8718_v19 = vld [vmem:[%s17525_s8 + $0xfa0] sm:$0xff] }
 0x35b   : > { %17022 = vmatmul.mubr.msk.f32.vlgmr.msra.gmra.mxu0 %vm1060_vm0, %v19425_v38  ;;  %v16179_v3 = vsub.f32 %v8045_v4, %v15983_v1  ;;  %17023 = vmatmul.mubr.msk.f32.vlgmr.msra.gmra.mxu1 %vm1060_vm0, %v19425_v38  ;;  %v8914_v1 = vld [vmem:[%s17525_s8 + $0x15c0] sm:$0xff] }
 0x35c   : > { %12718 = vmatprep.subr.mxu0 %v8911_v21  ;;  %v19734_v55 = vadd.f32 %v19688_v58, %v16372_v34  ;;  %v16373_v32 = vmul.f32 %v16177_v36, %v16177_v36  ;;  %12789 = vmatprep.subr.mxu1 %v8913_v39  ;;  %v19741_v29 = vadd.f32 %v19695_v33, %v16374_v16  ;;  %v8521_v58 = vld [vmem:[%s17525_s8 + $0x978] sm:$0xff]  ;;  %v8916_v34 = vld [vmem:[%s17525_s8 + $0x15d0] sm:$0xff]  ;;  %v8719_v36 = vld [vmem:[%s17525_s8 + $0xfa8] sm:$0xff] }
 0x35d   : > { %12719 = vmatpush1.msra.mxu0 %v8910_v27  ;;  %v16375_v14 = vmul.f32 %v16179_v3, %v16179_v3  ;;  %v9920_v30 = vpop.f32.mrf.mxu0  ;;  %12790 = vmatpush1.msra.mxu1 %v8912_v43  ;;  %v9991_v6 = vpop.f32.mrf.mxu1  ;;  %v2056_v33 = vadd.f32 %v18561_v2, %v19450_v51  ;;  %v2125_v16 = vadd.f32 %v18566_v7, %v19450_v51  ;;  %v8721_v3 = vld [vmem:[%s17525_s8 + $0xfb8] sm:$0xff]  ;;  %v8523_v7 = vld [vmem:[%s17525_s8 + $0x988] sm:$0xff] }
 0x35e   : > { %12720 = vmatprep.subr.mxu0 %v8715_v10  ;;  %v19748_v56 = vadd.f32 %v19702_v35, %v16373_v32  ;;  %v9921_v47 = vadd.f32 %v9920_v30, %v19450_v51  ;;  %12791 = vmatprep.subr.mxu1 %v8717_v48  ;;  %v9992_v26 = vadd.f32 %v9991_v6, %v19450_v51  ;;  %v8325_v35 = vld [vmem:[%s17525_s8 + $0x358] sm:$0xff]  ;;  %v8522_v30 = vld [vmem:[%s17525_s8 + $0x980] sm:$0xff] }
 0x35f   : > { %12721 = vmatpush1.msra.mxu0 %v8714_v11  ;;  %v19756_v50 = vadd.f32 %v19710_v24, %v16375_v14  ;;  %v9922_v31 = vpop.f32.mrf.mxu0  ;;  %12792 = vmatpush1.msra.mxu1 %v8716_v13  ;;  %v9993_v2 = vpop.f32.mrf.mxu1  ;;  %v8049_v25 = vmax.f32 %v2056_v33, 0.0  ;;  %v2196_v32 = vadd.f32 %v18575_v12, %v19450_v51  ;;  %v2127_v14 = vadd.f32 %v18585_v23, %v19450_v51  ;;  %v8327_v23 = vld [vmem:[%s17525_s8 + $0x368] sm:$0xff] }
 0x360   : > { %12722 = vmatprep.subr.mxu0 %v8519_v53  ;;  %v15984_v15 = vmax.f32 %v9921_v47, 0.0  ;;  %v9923_v54 = vadd.f32 %v9922_v31, %v19450_v51  ;;  %12793 = vmatprep.subr.mxu1 %v8521_v58  ;;  %v15986_v24 = vmax.f32 %v9992_v26, 0.0  ;;  %v9994_v41 = vadd.f32 %v9993_v2, %v19450_v51 }
 0x361   : > { %12723 = vmatpush1.msra.mxu0 %v8518_v60  ;;  %12794 = vmatpush1.msra.mxu1 %v8520_v45  ;;  %v8524_v60 = vld [vmem:[%s17525_s8 + $0x990] sm:$0xff]  ;;  %v8050_v45 = vmax.f32 %v2125_v16, 0.0 }
 0x362   : > { %12724 = vmatprep.subr.mxu0 %v8323_v62  ;;  %v16180_v8 = vsub.f32 %v8046_v20, %v15984_v15  ;;  %v15985_v0 = vmax.f32 %v9923_v54, 0.0  ;;  %12795 = vmatprep.subr.mxu1 %v8325_v35  ;;  %v16182_v4 = vsub.f32 %v8048_v49, %v15986_v24  ;;  %v15987_v21 = vmax.f32 %v9994_v41, 0.0  ;;  %v8326_v62 = vld [vmem:[%s17525_s8 + $0x360] sm:$0xff]  ;;  %v8328_v35 = vld [vmem:[%s17525_s8 + $0x370] sm:$0xff] }
 0x363   : > { %12725 = vmatpush1.msra.mxu0 %v8322_v42  ;;  %12758 = vmatprep.mubr.f32.mxu0 %v21504_v5  ;;  %v8052_v20 = vmax.f32 %v2196_v32, 0.0  ;;  %v8051_v15 = vmax.f32 %v2127_v14, 0.0  ;;  %v8724_v16 = vld [vmem:[%s17525_s8 + $0xfd0] sm:$0xff]  ;;  %v2269_v32 = vadd.f32 %v18602_v46, %v19450_v51  ;;  %v8331_v46 = vld [vmem:[%s17525_s8 + $0x388] sm:$0xff] }
 0x364   : > { %12796 = vmatpush1.msra.mxu1 %v8324_v59  ;;  %v16376_v39 = vmul.f32 %v16180_v8, %v16180_v8  ;;  %v16181_v27 = vsub.f32 %v8047_v44, %v15985_v0  ;;  %12829 = vmatprep.mubr.f32.mxu1 %v21504_v5  ;;  %v16378_v43 = vmul.f32 %v16182_v4, %v16182_v4  ;;  %v8919_v59 = vld [vmem:[%s17525_s8 + $0x15e8] sm:$0xff]  ;;  %v8921_v44 = vld [vmem:[%s17525_s8 + $0x15f8] sm:$0xff]  ;;  %v8918_v8 = vld [vmem:[%s17525_s8 + $0x15e0] sm:$0xff] }
 0x365   : > { %17024 = vmatmul.mubr.msk.f32.vlgmr.msra.gmra.mxu0 %vm1060_vm0, %v19425_v38  ;;  %v16183_v10 = vsub.f32 %v8049_v25, %v15987_v21  ;;  %17025 = vmatmul.mubr.msk.f32.vlgmr.msra.gmra.mxu1 %vm1060_vm0, %v19425_v38  ;;  %v8920_v4 = vld [vmem:[%s17525_s8 + $0x15f0] sm:$0xff]  ;;  %v8723_v21 = vld [vmem:[%s17525_s8 + $0xfc8] sm:$0xff] }
 0x366   : > { %12860 = vmatprep.subr.mxu0 %v8915_v18  ;;  %v19780_v48 = vadd.f32 %v19734_v55, %v16376_v39  ;;  %v16377_v11 = vmul.f32 %v16181_v27, %v16181_v27  ;;  %12931 = vmatprep.subr.mxu1 %v8917_v22  ;;  %v19787_v38 = vadd.f32 %v19741_v29, %v16378_v43  ;;  %v8525_v55 = vld [vmem:[%s17525_s8 + $0x998] sm:$0xff]  ;;  %v19815_v18 = vld [vmem:[#allocation7] sm:$0xff] }
 0x367   : > { %12861 = vmatpush1.msra.mxu0 %v8914_v1  ;;  %v16379_v13 = vmul.f32 %v16183_v10, %v16183_v10  ;;  %v10062_v53 = vpop.f32.mrf.mxu0  ;;  %12932 = vmatpush1.msra.mxu1 %v8916_v34  ;;  %v10133_v58 = vpop.f32.mrf.mxu1  ;;  %v2198_v29 = vadd.f32 %v18589_v28, %v19450_v51  ;;  %v2267_v39 = vadd.f32 %v18593_v37, %v19450_v51  ;;  %v8725_v27 = vld [vmem:[%s17525_s8 + $0xfd8] sm:$0xff]  ;;  %v8722_v34 = vld [vmem:[%s17525_s8 + $0xfc0] sm:$0xff]  ;;  %v8527_v37 = vld [vmem:[%s17525_s8 + $0x9a8] sm:$0xff] }
 0x368   : > { %12862 = vmatprep.subr.mxu0 %v8719_v36  ;;  %v19794_v12 = vadd.f32 %v19748_v56, %v16377_v11  ;;  %v10063_v61 = vadd.f32 %v10062_v53, %v19450_v51  ;;  %12933 = vmatprep.subr.mxu1 %v8721_v3  ;;  %v10134_v6 = vadd.f32 %v10133_v58, %v19450_v51  ;;  %v8329_v56 = vld [vmem:[%s17525_s8 + $0x378] sm:$0xff]  ;;  %v8528_v53 = vld [vmem:[%s17525_s8 + $0x9b0] sm:$0xff]  ;;  %v8330_v58 = vld [vmem:[%s17525_s8 + $0x380] sm:$0xff] }
 0x369   : > { %12863 = vmatpush1.msra.mxu0 %v8718_v19  ;;  %v19802_v47 = vadd.f32 %v19756_v50, %v16379_v13  ;;  %v10064_v33 = vpop.f32.mrf.mxu0  ;;  %12934 = vmatpush1.msra.mxu1 %v8720_v9  ;;  %v10135_v28 = vpop.f32.mrf.mxu1  ;;  %v8053_v49 = vmax.f32 %v2198_v29, 0.0  ;;  %v2338_v10 = vadd.f32 %v18596_v40, %v19450_v51  ;;  %v8526_v9 = vld [vmem:[%s17525_s8 + $0x9a0] sm:$0xff] }
 0x36a   : > { %12864 = vmatprep.subr.mxu0 %v8523_v7  ;;  %v15988_v26 = vmax.f32 %v10063_v61, 0.0  ;;  %v10065_v31 = vadd.f32 %v10064_v33, %v19450_v51  ;;  %12935 = vmatprep.subr.mxu1 %v8525_v55  ;;  %v15990_v50 = vmax.f32 %v10134_v6, 0.0  ;;  %v10136_v42 = vadd.f32 %v10135_v28, %v19450_v51  ;;  %v8332_v6 = vld [vmem:[%s17525_s8 + $0x390] sm:$0xff] }
 0x36b   : > { %12865 = vmatpush1.msra.mxu0 %v8522_v30  ;;  %12936 = vmatpush1.msra.mxu1 %v8524_v60  ;;  %v8054_v61 = vmax.f32 %v2267_v39, 0.0  ;;  %v2411_v39 = vadd.f32 %v18627_v17, %v19450_v51  ;;  %v8335_v17 = vld [vmem:[%s17525_s8 + $0x3a8] sm:$0xff] }
 0x36c   : > { %12866 = vmatprep.subr.mxu0 %v8327_v23  ;;  %v16184_v54 = vsub.f32 %v8050_v45, %v15988_v26  ;;  %v15989_v2 = vmax.f32 %v10065_v31, 0.0  ;;  %12937 = vmatprep.subr.mxu1 %v8329_v56  ;;  %v16186_v24 = vsub.f32 %v8052_v20, %v15990_v50  ;;  %v15991_v41 = vmax.f32 %v10136_v42, 0.0  ;;  %v8923_v31 = vld [vmem:[%s17525_s8 + $0x1608] sm:$0xff]  ;;  %v8922_v50 = vld [vmem:[%s17525_s8 + $0x1600] sm:$0xff] }
 0x36d   : > { %12867 = vmatpush1.msra.mxu0 %v8326_v62  ;;  %12900 = vmatprep.mubr.f32.mxu0 %v21504_v5  ;;  %v8056_v23 = vmax.f32 %v2338_v10, 0.0  ;;  %v8055_v45 = vmax.f32 %v2269_v32, 0.0  ;;  %v21647_v10 = vld [vmem:[#allocation13_spill] sm:$0xff] }
 0x36e   : > { %12938 = vmatpush1.msra.mxu1 %v8328_v35  ;;  %v16380_v0 = vmul.f32 %v16184_v54, %v16184_v54  ;;  %v16185_v25 = vsub.f32 %v8051_v15, %v15989_v2  ;;  %12971 = vmatprep.mubr.f32.mxu1 %v21504_v5  ;;  %v16382_v22 = vmul.f32 %v16186_v24, %v16186_v24  ;;  %v8925_v35 = vld [vmem:[%s17525_s8 + $0x1618] sm:$0xff]  ;;  %v8924_v54 = vld [vmem:[%s17525_s8 + $0x1610] sm:$0xff]  ;;  %v8727_v2 = vld [vmem:[%s17525_s8 + $0xfe8] sm:$0xff] }
 0x36f   : > { %17026 = vmatmul.mubr.msk.f32.vlgmr.msra.gmra.mxu0 %vm1060_vm0, %v19815_v18  ;;  %v16187_v1 = vsub.f32 %v8053_v49, %v15991_v41  ;;  %17027 = vmatmul.mubr.msk.f32.vlgmr.msra.gmra.mxu1 %vm1060_vm0, %v19815_v18  ;;  %v2409_v24 = vadd.f32 %v18615_v57, %v19450_v51  ;;  %v8729_v41 = vld [vmem:[%s17525_s8 + $0xff8] sm:$0xff]  ;;  %v8531_v57 = vld [vmem:[%s17525_s8 + $0x9c8] sm:$0xff] }
 0x370   : > { %13002 = vmatprep.subr.mxu0 %v8919_v59  ;;  %v19828_v36 = vadd.f32 %v19780_v48, %v16380_v0  ;;  %v16381_v43 = vmul.f32 %v16185_v25, %v16185_v25  ;;  %13073 = vmatprep.subr.mxu1 %v8921_v44  ;;  %v19835_v3 = vadd.f32 %v19787_v38, %v16382_v22  ;;  %v8529_v48 = vld [vmem:[%s17525_s8 + $0x9b8] sm:$0xff]  ;;  %v8726_v44 = vld [vmem:[%s17525_s8 + $0xfe0] sm:$0xff] }
 0x371   : > { %13003 = vmatpush1.msra.mxu0 %v8918_v8  ;;  %v16383_v19 = vmul.f32 %v16187_v1, %v16187_v1  ;;  %v10204_v11 = vpop.f32.mrf.mxu0  ;;  %13074 = vmatpush1.msra.mxu1 %v8920_v4  ;;  %v10275_v13 = vpop.f32.mrf.mxu1  ;;  %v2340_v38 = vadd.f32 %v18609_v52, %v19450_v51  ;;  %v2480_v25 = vadd.f32 %v18619_v63, %v19450_v51  ;;  %v8728_v4 = vld [vmem:[%s17525_s8 + $0xff0] sm:$0xff]  ;;  %v8058_v32 = vmax.f32 %v2409_v24, 0.0 }
 0x372   : > { %13004 = vmatprep.subr.mxu0 %v8723_v21  ;;  %v19842_v40 = vadd.f32 %v19794_v12, %v16381_v43  ;;  %v10205_v7 = vadd.f32 %v10204_v11, %v19450_v51  ;;  %13075 = vmatprep.subr.mxu1 %v8725_v27  ;;  %v10276_v55 = vadd.f32 %v10275_v13, %v19450_v51  ;;  %v8333_v12 = vld [vmem:[%s17525_s8 + $0x398] sm:$0xff] }
 0x373   : > { %13005 = vmatpush1.msra.mxu0 %v8722_v34  ;;  %v19850_v14 = vadd.f32 %v19802_v47, %v16383_v19  ;;  %v10206_v30 = vpop.f32.mrf.mxu0  ;;  %13076 = vmatpush1.msra.mxu1 %v8724_v16  ;;  %v10277_v52 = vpop.f32.mrf.mxu1  ;;  %v8057_v26 = vmax.f32 %v2340_v38, 0.0  ;;  %v8533_v27 = vld [vmem:[%s17525_s8 + $0x9d8] sm:$0xff]  ;;  %v8530_v34 = vld [vmem:[%s17525_s8 + $0x9c0] sm:$0xff]  ;;  %v2482_v16 = vadd.f32 %v21647_v10, %v19450_v51  ;;  %v8060_v38 = vmax.f32 %v2480_v25, 0.0 }
 0x374   : > { %13006 = vmatprep.subr.mxu0 %v8527_v37  ;;  %v15992_v29 = vmax.f32 %v10205_v7, 0.0  ;;  %v10207_v60 = vadd.f32 %v10206_v30, %v19450_v51  ;;  %13077 = vmatprep.subr.mxu1 %v8529_v48  ;;  %v15994_v47 = vmax.f32 %v10276_v55, 0.0  ;;  %v10278_v33 = vadd.f32 %v10277_v52, %v19450_v51  ;;  %v8532_v37 = vld [vmem:[%s17525_s8 + $0x9d0] sm:$0xff]  ;;  %v8337_v48 = vld [vmem:[%s17525_s8 + $0x3b8] sm:$0xff]  ;;  %v8338_v10 = vld [vmem:[%s17525_s8 + $0x3c0] sm:$0xff] }
 0x375   : > { %13007 = vmatpush1.msra.mxu0 %v8526_v9  ;;  %13078 = vmatpush1.msra.mxu1 %v8528_v53  ;;  %v8334_v9 = vld [vmem:[%s17525_s8 + $0x3a0] sm:$0xff]  ;;  %v8336_v53 = vld [vmem:[%s17525_s8 + $0x3b0] sm:$0xff]  ;;  %v8059_v55 = vmax.f32 %v2411_v39, 0.0  ;;  %v8929_v52 = vld [vmem:[%s17525_s8 + $0x1638] sm:$0xff] }
 0x376   : > { %13008 = vmatprep.subr.mxu0 %v8331_v46  ;;  %v16188_v56 = vsub.f32 %v8054_v61, %v15992_v29  ;;  %v15993_v62 = vmax.f32 %v10207_v60, 0.0  ;;  %13079 = vmatprep.subr.mxu1 %v8333_v12  ;;  %v16190_v28 = vsub.f32 %v8056_v23, %v15994_v47  ;;  %v15995_v20 = vmax.f32 %v10278_v33, 0.0  ;;  %v8926_v23 = vld [vmem:[%s17525_s8 + $0x1620] sm:$0xff]  ;;  %v8928_v33 = vld [vmem:[%s17525_s8 + $0x1630] sm:$0xff]  ;;  %v8339_v39 = vld [vmem:[%s17525_s8 + $0x3c8] sm:$0xff] }
 0x377   : > { %13009 = vmatpush1.msra.mxu0 %v8330_v58  ;;  %13042 = vmatprep.mubr.f32.mxu0 %v21504_v5  ;;  %v8061_v12 = vmax.f32 %v2482_v16, 0.0  ;;  %v8927_v58 = vld [vmem:[%s17525_s8 + $0x1628] sm:$0xff] }
 0x378   : > { %13080 = vmatpush1.msra.mxu1 %v8332_v6  ;;  %v16384_v42 = vmul.f32 %v16188_v56, %v16188_v56  ;;  %v16189_v15 = vsub.f32 %v8055_v45, %v15993_v62  ;;  %13113 = vmatprep.mubr.f32.mxu1 %v21504_v5  ;;  %v16386_v49 = vmul.f32 %v16190_v28, %v16190_v28  ;;  %v8731_v45 = vld [vmem:[%s17525_s8 + $0x1008] sm:$0xff]  ;;  %v8733_v28 = vld [vmem:[%s17525_s8 + $0x1018] sm:$0xff] }
 0x379   : > { %17028 = vmatmul.mubr.msk.f32.vlgmr.msra.gmra.mxu0 %vm1060_vm0, %v19815_v18  ;;  %v16191_v59 = vsub.f32 %v8057_v26, %v15995_v20  ;;  %17029 = vmatmul.mubr.msk.f32.vlgmr.msra.gmra.mxu1 %vm1060_vm0, %v19815_v18  ;;  %v21648_v26 = vld [vmem:[#allocation14_spill] sm:$0xff]  ;;  %v8730_v20 = vld [vmem:[%s17525_s8 + $0x1000] sm:$0xff] }
 0x37a   : > { %13144 = vmatprep.subr.mxu0 %v8923_v31  ;;  %v19874_v8 = vadd.f32 %v19828_v36, %v16384_v42  ;;  %v16385_v0 = vmul.f32 %v16189_v15, %v16189_v15  ;;  %13215 = vmatprep.subr.mxu1 %v8925_v35  ;;  %v19881_v21 = vadd.f32 %v19835_v3, %v16386_v49  ;;  %v21649_v42 = vld [vmem:[#allocation15_spill] sm:$0xff] }
 0x37b   : > { %13145 = vmatpush1.msra.mxu0 %v8922_v50  ;;  %v16387_v22 = vmul.f32 %v16191_v59, %v16191_v59  ;;  %v10346_v1 = vpop.f32.mrf.mxu0  ;;  %13216 = vmatpush1.msra.mxu1 %v8924_v54  ;;  %v10417_v43 = vpop.f32.mrf.mxu1  ;;  %v2551_v31 = vadd.f32 %v21648_v26, %v19450_v51  ;;  %v2622_v15 = vadd.f32 %v21649_v42, %v19450_v51  ;;  %v8732_v54 = vld [vmem:[%s17525_s8 + $0x1010] sm:$0xff]  ;;  %v8539_v26 = vld [vmem:[%s17525_s8 + $0xa08] sm:$0xff] }
 0x37c   : > { %13146 = vmatprep.subr.mxu0 %v8727_v2  ;;  %v19888_v63 = vadd.f32 %v19842_v40, %v16385_v0  ;;  %v10347_v36 = vadd.f32 %v10346_v1, %v19450_v51  ;;  %13217 = vmatprep.subr.mxu1 %v8729_v41  ;;  %v10418_v19 = vadd.f32 %v10417_v43, %v19450_v51  ;;  %v8535_v2 = vld [vmem:[%s17525_s8 + $0x9e8] sm:$0xff]  ;;  %v8534_v0 = vld [vmem:[%s17525_s8 + $0x9e0] sm:$0xff]  ;;  %v8536_v1 = vld [vmem:[%s17525_s8 + $0x9f0] sm:$0xff] }
 0x37d   : > { %13147 = vmatpush1.msra.mxu0 %v8726_v44  ;;  %v19896_v3 = vadd.f32 %v19850_v14, %v16387_v22  ;;  %v10348_v11 = vpop.f32.mrf.mxu0  ;;  %13218 = vmatpush1.msra.mxu1 %v8728_v4  ;;  %v10419_v13 = vpop.f32.mrf.mxu1  ;;  %v21650_v41 = vld [vmem:[#allocation16_spill] sm:$0xff]  ;;  %v8062_v43 = vmax.f32 %v2551_v31, 0.0 }
 0x37e   : > { %13148 = vmatprep.subr.mxu0 %v8531_v57  ;;  %v15996_v40 = vmax.f32 %v10347_v36, 0.0  ;;  %v10349_v7 = vadd.f32 %v10348_v11, %v19450_v51  ;;  %13219 = vmatprep.subr.mxu1 %v8533_v27  ;;  %v15998_v46 = vmax.f32 %v10418_v19, 0.0  ;;  %v10420_v14 = vadd.f32 %v10419_v13, %v19450_v51  ;;  %v8340_v11 = vld [vmem:[%s17525_s8 + $0x3d0] sm:$0xff]  ;;  %v8931_v13 = vld [vmem:[%s17525_s8 + $0x1648] sm:$0xff] }
 0x37f   : > { %13149 = vmatpush1.msra.mxu0 %v8530_v34  ;;  %13220 = vmatpush1.msra.mxu1 %v8532_v37  ;;  %v2553_v44 = vadd.f32 %v21650_v41, %v19450_v51  ;;  %v8064_v19 = vmax.f32 %v2622_v15, 0.0  ;;  %v8538_v15 = vld [vmem:[%s17525_s8 + $0xa00] sm:$0xff]  ;;  %v8540_v41 = vld [vmem:[%s17525_s8 + $0xa10] sm:$0xff] }
 0x380   : > { %13150 = vmatprep.subr.mxu0 %v8335_v17  ;;  %v16192_v30 = vsub.f32 %v8058_v32, %v15996_v40  ;;  %v15997_v61 = vmax.f32 %v10349_v7, 0.0  ;;  %13221 = vmatprep.subr.mxu1 %v8337_v48  ;;  %v16194_v29 = vsub.f32 %v8060_v38, %v15998_v46  ;;  %v15999_v60 = vmax.f32 %v10420_v14, 0.0  ;;  %v8933_v46 = vld [vmem:[%s17525_s8 + $0x1658] sm:$0xff]  ;;  %v8930_v14 = vld [vmem:[%s17525_s8 + $0x1640] sm:$0xff] }
 0x381   : > { %13151 = vmatpush1.msra.mxu0 %v8334_v9  ;;  %13184 = vmatprep.mubr.f32.mxu0 %v21504_v5  ;;  %v8063_v48 = vmax.f32 %v2553_v44, 0.0  ;;  %v8343_v44 = vld [vmem:[%s17525_s8 + $0x3e8] sm:$0xff] }
 0x382   : > { %13222 = vmatpush1.msra.mxu1 %v8336_v53  ;;  %v16388_v6 = vmul.f32 %v16192_v30, %v16192_v30  ;;  %v16193_v47 = vsub.f32 %v8059_v55, %v15997_v61  ;;  %13255 = vmatprep.mubr.f32.mxu1 %v21504_v5  ;;  %v16390_v56 = vmul.f32 %v16194_v29, %v16194_v29  ;;  %v8932_v61 = vld [vmem:[%s17525_s8 + $0x1650] sm:$0xff] }
 0x383   : > { %17030 = vmatmul.mubr.msk.f32.vlgmr.msra.gmra.mxu0 %vm1060_vm0, %v19815_v18  ;;  %v16195_v62 = vsub.f32 %v8061_v12, %v15999_v60  ;;  %17031 = vmatmul.mubr.msk.f32.vlgmr.msra.gmra.mxu1 %vm1060_vm0, %v19815_v18  ;;  %v8735_v12 = vld [vmem:[%s17525_s8 + $0x1028] sm:$0xff]  ;;  %v21652_v60 = vld [vmem:[#allocation18_spill] sm:$0xff] }
 0x384   : > { %13286 = vmatprep.subr.mxu0 %v8927_v58  ;;  %v19920_v35 = vadd.f32 %v19874_v8, %v16388_v6  ;;  %v16389_v50 = vmul.f32 %v16193_v47, %v16193_v47  ;;  %13357 = vmatprep.subr.mxu1 %v8929_v52  ;;  %v19927_v49 = vadd.f32 %v19881_v21, %v16390_v56  ;;  %v8537_v8 = vld [vmem:[%s17525_s8 + $0x9f8] sm:$0xff]  ;;  %v21651_v21 = vld [vmem:[#allocation17_spill] sm:$0xff]  ;;  %v8734_v6 = vld [vmem:[%s17525_s8 + $0x1020] sm:$0xff] }
 0x385   : > { %13287 = vmatpush1.msra.mxu0 %v8926_v23  ;;  %v16391_v59 = vmul.f32 %v16195_v62, %v16195_v62  ;;  %v10488_v24 = vpop.f32.mrf.mxu0  ;;  %13358 = vmatpush1.msra.mxu1 %v8928_v33  ;;  %v10559_v57 = vpop.f32.mrf.mxu1  ;;  %v2624_v22 = vadd.f32 %v21651_v21, %v19450_v51  ;;  %v2693_v52 = vadd.f32 %v21652_v60, %v19450_v51  ;;  %v8737_v23 = vld [vmem:[%s17525_s8 + $0x1038] sm:$0xff]  ;;  %v8736_v62 = vld [vmem:[%s17525_s8 + $0x1030] sm:$0xff]  ;;  %v8342_v21 = vld [vmem:[%s17525_s8 + $0x3e0] sm:$0xff] }
 0x386   : > { %13288 = vmatprep.subr.mxu0 %v8731_v45  ;;  %v19934_v25 = vadd.f32 %v19888_v63, %v16389_v50  ;;  %v10489_v4 = vadd.f32 %v10488_v24, %v19450_v51  ;;  %13359 = vmatprep.subr.mxu1 %v8733_v28  ;;  %v10560_v34 = vadd.f32 %v10559_v57, %v19450_v51  ;;  %v8341_v63 = vld [vmem:[%s17525_s8 + $0x3d8] sm:$0xff]  ;;  %v21654_v50 = vld [vmem:[#allocation20_spill] sm:$0xff] }
 0x387   : > { %13289 = vmatpush1.msra.mxu0 %v8730_v20  ;;  %v19942_v27 = vadd.f32 %v19896_v3, %v16391_v59  ;;  %v10490_v36 = vpop.f32.mrf.mxu0  ;;  %13360 = vmatpush1.msra.mxu1 %v8732_v54  ;;  %v10561_v17 = vpop.f32.mrf.mxu1  ;;  %v8065_v7 = vmax.f32 %v2624_v22, 0.0  ;;  %v21653_v45 = vld [vmem:[#allocation19_spill] sm:$0xff]  ;;  %v2695_v42 = vadd.f32 %v21654_v50, %v19450_v51  ;;  %v8066_v57 = vmax.f32 %v2693_v52, 0.0  ;;  %v8543_v60 = vld [vmem:[%s17525_s8 + $0xa28] sm:$0xff]  ;;  %v8544_v50 = vld [vmem:[%s17525_s8 + $0xa30] sm:$0xff] }
 0x388   : > { %13290 = vmatprep.subr.mxu0 %v8535_v2  ;;  %v16000_v16 = vmax.f32 %v10489_v4, 0.0  ;;  %v10491_v37 = vadd.f32 %v10490_v36, %v19450_v51  ;;  %13361 = vmatprep.subr.mxu1 %v8537_v8  ;;  %v16002_v3 = vmax.f32 %v10560_v34, 0.0  ;;  %v10562_v32 = vadd.f32 %v10561_v17, %v19450_v51  ;;  %v8344_v36 = vld [vmem:[%s17525_s8 + $0x3f0] sm:$0xff]  ;;  %v8935_v17 = vld [vmem:[%s17525_s8 + $0x1668] sm:$0xff] }
 0x389   : > { %13291 = vmatpush1.msra.mxu0 %v8534_v0  ;;  %13362 = vmatpush1.msra.mxu1 %v8536_v1  ;;  %v2764_v56 = vadd.f32 %v21653_v45, %v19450_v51 }
 0x38a   : > { %13292 = vmatprep.subr.mxu0 %v8339_v39  ;;  %v16196_v9 = vsub.f32 %v8062_v43, %v16000_v16  ;;  %v16001_v40 = vmax.f32 %v10491_v37, 0.0  ;;  %13363 = vmatprep.subr.mxu1 %v8341_v63  ;;  %v16198_v38 = vsub.f32 %v8064_v19, %v16002_v3  ;;  %v16003_v53 = vmax.f32 %v10562_v32, 0.0  ;;  %v8937_v3 = vld [vmem:[%s17525_s8 + $0x1678] sm:$0xff]  ;;  %v8934_v32 = vld [vmem:[%s17525_s8 + $0x1660] sm:$0xff] }
 0x38b   : > { %13293 = vmatpush1.msra.mxu0 %v8338_v10  ;;  %13326 = vmatprep.mubr.f32.mxu0 %v21504_v5  ;;  %v8068_v34 = vmax.f32 %v2764_v56, 0.0  ;;  %v8067_v63 = vmax.f32 %v2695_v42, 0.0  ;;  %v8542_v56 = vld [vmem:[%s17525_s8 + $0xa20] sm:$0xff]  ;;  %v8347_v42 = vld [vmem:[%s17525_s8 + $0x408] sm:$0xff] }
 0x38c   : > { %13364 = vmatpush1.msra.mxu1 %v8340_v11  ;;  %v16392_v55 = vmul.f32 %v16196_v9, %v16196_v9  ;;  %v16197_v30 = vsub.f32 %v8063_v48, %v16001_v40  ;;  %13397 = vmatprep.mubr.f32.mxu1 %v21504_v5  ;;  %v16394_v58 = vmul.f32 %v16198_v38, %v16198_v38  ;;  %v8936_v40 = vld [vmem:[%s17525_s8 + $0x1670] sm:$0xff] }
 0x38d   : > { %17032 = vmatmul.mubr.msk.f32.vlgmr.msra.gmra.mxu0 %vm1060_vm0, %v19815_v18  ;;  %v16199_v29 = vsub.f32 %v8065_v7, %v16003_v53  ;;  %17033 = vmatmul.mubr.msk.f32.vlgmr.msra.gmra.mxu1 %vm1060_vm0, %v19815_v18  ;;  %v8739_v7 = vld [vmem:[%s17525_s8 + $0x1048] sm:$0xff]  ;;  %v21656_v53 = vld [vmem:[#allocation22_spill] sm:$0xff] }
 0x38e   : > { %13428 = vmatprep.subr.mxu0 %v8931_v13  ;;  %v19966_v47 = vadd.f32 %v19920_v35, %v16392_v55  ;;  %v16393_v33 = vmul.f32 %v16197_v30, %v16197_v30  ;;  %13499 = vmatprep.subr.mxu1 %v8933_v46  ;;  %v19973_v31 = vadd.f32 %v19927_v49, %v16394_v58  ;;  %v8541_v35 = vld [vmem:[%s17525_s8 + $0xa18] sm:$0xff]  ;;  %v21655_v49 = vld [vmem:[#allocation21_spill] sm:$0xff]  ;;  %v8738_v55 = vld [vmem:[%s17525_s8 + $0x1040] sm:$0xff] }
 0x38f   : > { %13429 = vmatpush1.msra.mxu0 %v8930_v14  ;;  %v16395_v28 = vmul.f32 %v16199_v29, %v16199_v29  ;;  %v10630_v20 = vpop.f32.mrf.mxu0  ;;  %13500 = vmatpush1.msra.mxu1 %v8932_v61  ;;  %v10701_v59 = vpop.f32.mrf.mxu1  ;;  %v2766_v24 = vadd.f32 %v21655_v49, %v19450_v51  ;;  %v2835_v46 = vadd.f32 %v21656_v53, %v19450_v51  ;;  %v8741_v14 = vld [vmem:[%s17525_s8 + $0x1058] sm:$0xff]  ;;  %v8740_v29 = vld [vmem:[%s17525_s8 + $0x1050] sm:$0xff]  ;;  %v8346_v49 = vld [vmem:[%s17525_s8 + $0x400] sm:$0xff] }
 0x390   : > { %13430 = vmatprep.subr.mxu0 %v8735_v12  ;;  %v19980_v54 = vadd.f32 %v19934_v25, %v16393_v33  ;;  %v10631_v2 = vadd.f32 %v10630_v20, %v19450_v51  ;;  %13501 = vmatprep.subr.mxu1 %v8737_v23  ;;  %v10702_v0 = vadd.f32 %v10701_v59, %v19450_v51  ;;  %v8345_v25 = vld [vmem:[%s17525_s8 + $0x3f8] sm:$0xff]  ;;  %v21658_v33 = vld [vmem:[#allocation24_spill] sm:$0xff] }
 0x391   : > { %13431 = vmatpush1.msra.mxu0 %v8734_v6  ;;  %v19988_v8 = vadd.f32 %v19942_v27, %v16395_v28  ;;  %v10632_v4 = vpop.f32.mrf.mxu0  ;;  %13502 = vmatpush1.msra.mxu1 %v8736_v62  ;;  %v10703_v39 = vpop.f32.mrf.mxu1  ;;  %v8069_v37 = vmax.f32 %v2766_v24, 0.0  ;;  %v21657_v12 = vld [vmem:[#allocation23_spill] sm:$0xff]  ;;  %v2837_v45 = vadd.f32 %v21658_v33, %v19450_v51  ;;  %v8070_v59 = vmax.f32 %v2835_v46, 0.0  ;;  %v8547_v53 = vld [vmem:[%s17525_s8 + $0xa48] sm:$0xff]  ;;  %v8548_v33 = vld [vmem:[%s17525_s8 + $0xa50] sm:$0xff] }
 0x392   : > { %13432 = vmatprep.subr.mxu0 %v8539_v26  ;;  %v16004_v22 = vmax.f32 %v10631_v2, 0.0  ;;  %v10633_v1 = vadd.f32 %v10632_v4, %v19450_v51  ;;  %13503 = vmatprep.subr.mxu1 %v8541_v35  ;;  %v16006_v27 = vmax.f32 %v10702_v0, 0.0  ;;  %v10704_v43 = vadd.f32 %v10703_v39, %v19450_v51  ;;  %v8348_v4 = vld [vmem:[%s17525_s8 + $0x410] sm:$0xff]  ;;  %v8939_v39 = vld [vmem:[%s17525_s8 + $0x1688] sm:$0xff] }
 0x393   : > { %13433 = vmatpush1.msra.mxu0 %v8538_v15  ;;  %13504 = vmatpush1.msra.mxu1 %v8540_v41  ;;  %v2906_v58 = vadd.f32 %v21657_v12, %v19450_v51 }
 0x394   : > { %13434 = vmatprep.subr.mxu0 %v8343_v44  ;;  %v16200_v10 = vsub.f32 %v8066_v57, %v16004_v22  ;;  %v16005_v16 = vmax.f32 %v10633_v1, 0.0  ;;  %13505 = vmatprep.subr.mxu1 %v8345_v25  ;;  %v16202_v19 = vsub.f32 %v8068_v34, %v16006_v27  ;;  %v16007_v11 = vmax.f32 %v10704_v43, 0.0  ;;  %v8941_v27 = vld [vmem:[%s17525_s8 + $0x1698] sm:$0xff]  ;;  %v8938_v43 = vld [vmem:[%s17525_s8 + $0x1680] sm:$0xff] }
 0x395   : > { %13435 = vmatpush1.msra.mxu0 %v8342_v21  ;;  %13468 = vmatprep.mubr.f32.mxu0 %v21504_v5  ;;  %v8072_v0 = vmax.f32 %v2906_v58, 0.0  ;;  %v8071_v25 = vmax.f32 %v2837_v45, 0.0  ;;  %v8546_v58 = vld [vmem:[%s17525_s8 + $0xa40] sm:$0xff]  ;;  %v8351_v45 = vld [vmem:[%s17525_s8 + $0x428] sm:$0xff] }
 0x396   : > { %13506 = vmatpush1.msra.mxu1 %v8344_v36  ;;  %v16396_v48 = vmul.f32 %v16200_v10, %v16200_v10  ;;  %v16201_v9 = vsub.f32 %v8067_v63, %v16005_v16  ;;  %13539 = vmatprep.mubr.f32.mxu1 %v21504_v5  ;;  %v16398_v13 = vmul.f32 %v16202_v19, %v16202_v19  ;;  %v8940_v16 = vld [vmem:[%s17525_s8 + $0x1690] sm:$0xff] }
 0x397   : > { %17034 = vmatmul.mubr.msk.f32.vlgmr.msra.gmra.mxu0 %vm1060_vm0, %v19815_v18  ;;  %v16203_v38 = vsub.f32 %v8069_v37, %v16007_v11  ;;  %17035 = vmatmul.mubr.msk.f32.vlgmr.msra.gmra.mxu1 %vm1060_vm0, %v19815_v18  ;;  %v8743_v37 = vld [vmem:[%s17525_s8 + $0x1068] sm:$0xff]  ;;  %v21660_v11 = vld [vmem:[#allocation26_spill] sm:$0xff] }
 0x398   : > { %13570 = vmatprep.subr.mxu0 %v8935_v17  ;;  %v20012_v30 = vadd.f32 %v19966_v47, %v16396_v48  ;;  %v16397_v61 = vmul.f32 %v16201_v9, %v16201_v9  ;;  %13641 = vmatprep.subr.mxu1 %v8937_v3  ;;  %v20019_v52 = vadd.f32 %v19973_v31, %v16398_v13  ;;  %v8545_v47 = vld [vmem:[%s17525_s8 + $0xa38] sm:$0xff]  ;;  %v21659_v31 = vld [vmem:[#allocation25_spill] sm:$0xff]  ;;  %v8742_v48 = vld [vmem:[%s17525_s8 + $0x1060] sm:$0xff] }
 0x399   : > { %13571 = vmatpush1.msra.mxu0 %v8934_v32  ;;  %v16399_v23 = vmul.f32 %v16203_v38, %v16203_v38  ;;  %v10772_v6 = vpop.f32.mrf.mxu0  ;;  %13642 = vmatpush1.msra.mxu1 %v8936_v40  ;;  %v10843_v28 = vpop.f32.mrf.mxu1  ;;  %v2908_v20 = vadd.f32 %v21659_v31, %v19450_v51  ;;  %v2977_v3 = vadd.f32 %v21660_v11, %v19450_v51  ;;  %v8745_v32 = vld [vmem:[%s17525_s8 + $0x1078] sm:$0xff]  ;;  %v8744_v38 = vld [vmem:[%s17525_s8 + $0x1070] sm:$0xff]  ;;  %v8350_v31 = vld [vmem:[%s17525_s8 + $0x420] sm:$0xff] }
 0x39a   : > { %13572 = vmatprep.subr.mxu0 %v8739_v7  ;;  %v20026_v62 = vadd.f32 %v19980_v54, %v16397_v61  ;;  %v10773_v26 = vadd.f32 %v10772_v6, %v19450_v51  ;;  %13643 = vmatprep.subr.mxu1 %v8741_v14  ;;  %v10844_v15 = vadd.f32 %v10843_v28, %v19450_v51  ;;  %v8349_v54 = vld [vmem:[%s17525_s8 + $0x418] sm:$0xff]  ;;  %v21662_v61 = vld [vmem:[#allocation28_spill] sm:$0xff] }
 0x39b   : > { %13573 = vmatpush1.msra.mxu0 %v8738_v55  ;;  %v20034_v35 = vadd.f32 %v19988_v8, %v16399_v23  ;;  %v10774_v2 = vpop.f32.mrf.mxu0  ;;  %13644 = vmatpush1.msra.mxu1 %v8740_v29  ;;  %v10845_v44 = vpop.f32.mrf.mxu1  ;;  %v8073_v1 = vmax.f32 %v2908_v20, 0.0  ;;  %v21661_v7 = vld [vmem:[#allocation27_spill] sm:$0xff]  ;;  %v2979_v12 = vadd.f32 %v21662_v61, %v19450_v51  ;;  %v8074_v28 = vmax.f32 %v2977_v3, 0.0  ;;  %v8551_v11 = vld [vmem:[%s17525_s8 + $0xa68] sm:$0xff]  ;;  %v8552_v61 = vld [vmem:[%s17525_s8 + $0xa70] sm:$0xff] }
 0x39c   : > { %13574 = vmatprep.subr.mxu0 %v8543_v60  ;;  %v16008_v24 = vmax.f32 %v10773_v26, 0.0  ;;  %v10775_v41 = vadd.f32 %v10774_v2, %v19450_v51  ;;  %13645 = vmatprep.subr.mxu1 %v8545_v47  ;;  %v16010_v8 = vmax.f32 %v10844_v15, 0.0  ;;  %v10846_v57 = vadd.f32 %v10845_v44, %v19450_v51  ;;  %v8352_v2 = vld [vmem:[%s17525_s8 + $0x430] sm:$0xff]  ;;  %v8943_v44 = vld [vmem:[%s17525_s8 + $0x16a8] sm:$0xff] }
 0x39d   : > { %13575 = vmatpush1.msra.mxu0 %v8542_v56  ;;  %13646 = vmatpush1.msra.mxu1 %v8544_v50  ;;  %v3048_v13 = vadd.f32 %v21661_v7, %v19450_v51 }
 0x39e   : > { %13576 = vmatprep.subr.mxu0 %v8347_v42  ;;  %v16204_v21 = vsub.f32 %v8070_v59, %v16008_v24  ;;  %v16009_v22 = vmax.f32 %v10775_v41, 0.0  ;;  %13647 = vmatprep.subr.mxu1 %v8349_v54  ;;  %v16206_v34 = vsub.f32 %v8072_v0, %v16010_v8  ;;  %v16011_v36 = vmax.f32 %v10846_v57, 0.0  ;;  %v8945_v8 = vld [vmem:[%s17525_s8 + $0x16b8] sm:$0xff]  ;;  %v8942_v57 = vld [vmem:[%s17525_s8 + $0x16a0] sm:$0xff] }
 0x39f   : > { %13577 = vmatpush1.msra.mxu0 %v8346_v49  ;;  %13610 = vmatprep.mubr.f32.mxu0 %v21504_v5  ;;  %v8076_v15 = vmax.f32 %v3048_v13, 0.0  ;;  %v8075_v54 = vmax.f32 %v2979_v12, 0.0  ;;  %v8550_v13 = vld [vmem:[%s17525_s8 + $0xa60] sm:$0xff]  ;;  %v8355_v12 = vld [vmem:[%s17525_s8 + $0x448] sm:$0xff] }
 0x3a0   : > { %13648 = vmatpush1.msra.mxu1 %v8348_v4  ;;  %v16400_v63 = vmul.f32 %v16204_v21, %v16204_v21  ;;  %v16205_v10 = vsub.f32 %v8071_v25, %v16009_v22  ;;  %13681 = vmatprep.mubr.f32.mxu1 %v21504_v5  ;;  %v16402_v17 = vmul.f32 %v16206_v34, %v16206_v34  ;;  %v8944_v22 = vld [vmem:[%s17525_s8 + $0x16b0] sm:$0xff] }
 0x3a1   : > { %17036 = vmatmul.mubr.msk.f32.vlgmr.msra.gmra.mxu0 %vm1060_vm0, %v19815_v18  ;;  %v16207_v19 = vsub.f32 %v8073_v1, %v16011_v36  ;;  %17037 = vmatmul.mubr.msk.f32.vlgmr.msra.gmra.mxu1 %vm1060_vm0, %v19815_v18  ;;  %v8747_v1 = vld [vmem:[%s17525_s8 + $0x1088] sm:$0xff]  ;;  %v21664_v36 = vld [vmem:[#allocation30_spill] sm:$0xff] }
 0x3a2   : > { %13712 = vmatprep.subr.mxu0 %v8939_v39  ;;  %v20058_v9 = vadd.f32 %v20012_v30, %v16400_v63  ;;  %v16401_v40 = vmul.f32 %v16205_v10, %v16205_v10  ;;  %13783 = vmatprep.subr.mxu1 %v8941_v27  ;;  %v20065_v46 = vadd.f32 %v20019_v52, %v16402_v17  ;;  %v8549_v30 = vld [vmem:[%s17525_s8 + $0xa58] sm:$0xff]  ;;  %v21663_v52 = vld [vmem:[#allocation29_spill] sm:$0xff]  ;;  %v8746_v63 = vld [vmem:[%s17525_s8 + $0x1080] sm:$0xff] }
 0x3a3   : > { %13713 = vmatpush1.msra.mxu0 %v8938_v43  ;;  %v16403_v14 = vmul.f32 %v16207_v19, %v16207_v19  ;;  %v10914_v55 = vpop.f32.mrf.mxu0  ;;  %13784 = vmatpush1.msra.mxu1 %v8940_v16  ;;  %v10985_v23 = vpop.f32.mrf.mxu1  ;;  %v3050_v6 = vadd.f32 %v21663_v52, %v19450_v51  ;;  %v3119_v27 = vadd.f32 %v21664_v36, %v19450_v51  ;;  %v8749_v43 = vld [vmem:[%s17525_s8 + $0x1098] sm:$0xff]  ;;  %v8748_v19 = vld [vmem:[%s17525_s8 + $0x1090] sm:$0xff]  ;;  %v8354_v52 = vld [vmem:[%s17525_s8 + $0x440] sm:$0xff] }
 0x3a4   : > { %13714 = vmatprep.subr.mxu0 %v8743_v37  ;;  %v20072_v29 = vadd.f32 %v20026_v62, %v16401_v40  ;;  %v10915_v60 = vadd.f32 %v10914_v55, %v19450_v51  ;;  %13785 = vmatprep.subr.mxu1 %v8745_v32  ;;  %v10986_v56 = vadd.f32 %v10985_v23, %v19450_v51  ;;  %v8353_v62 = vld [vmem:[%s17525_s8 + $0x438] sm:$0xff]  ;;  %v21666_v40 = vld [vmem:[#allocation32_spill] sm:$0xff] }
 0x3a5   : > { %13715 = vmatpush1.msra.mxu0 %v8742_v48  ;;  %v20080_v47 = vadd.f32 %v20034_v35, %v16403_v14  ;;  %v10916_v26 = vpop.f32.mrf.mxu0  ;;  %13786 = vmatpush1.msra.mxu1 %v8744_v38  ;;  %v10987_v42 = vpop.f32.mrf.mxu1  ;;  %v8077_v41 = vmax.f32 %v3050_v6, 0.0  ;;  %v21665_v37 = vld [vmem:[#allocation31_spill] sm:$0xff]  ;;  %v3121_v7 = vadd.f32 %v21666_v40, %v19450_v51  ;;  %v8078_v23 = vmax.f32 %v3119_v27, 0.0  ;;  %v8555_v36 = vld [vmem:[%s17525_s8 + $0xa88] sm:$0xff] }
 0x3a6   : > { %13716 = vmatprep.subr.mxu0 %v8547_v53  ;;  %v16012_v20 = vmax.f32 %v10915_v60, 0.0  ;;  %v10917_v50 = vadd.f32 %v10916_v26, %v19450_v51  ;;  %13787 = vmatprep.subr.mxu1 %v8549_v30  ;;  %v16014_v35 = vmax.f32 %v10986_v56, 0.0  ;;  %v10988_v59 = vadd.f32 %v10987_v42, %v19450_v51  ;;  %v8356_v26 = vld [vmem:[%s17525_s8 + $0x450] sm:$0xff]  ;;  %v8947_v42 = vld [vmem:[%s17525_s8 + $0x16c8] sm:$0xff] }
 0x3a7   : > { %13717 = vmatpush1.msra.mxu0 %v8546_v58  ;;  %13788 = vmatpush1.msra.mxu1 %v8548_v33  ;;  %v3190_v17 = vadd.f32 %v21665_v37, %v19450_v51  ;;  %v8554_v37 = vld [vmem:[%s17525_s8 + $0xa80] sm:$0xff]  ;;  %v8359_v40 = vld [vmem:[%s17525_s8 + $0x468] sm:$0xff] }
 0x3a8   : > { %13718 = vmatprep.subr.mxu0 %v8351_v45  ;;  %v16208_v49 = vsub.f32 %v8074_v28, %v16012_v20  ;;  %v16013_v24 = vmax.f32 %v10917_v50, 0.0  ;;  %13789 = vmatprep.subr.mxu1 %v8353_v62  ;;  %v16210_v0 = vsub.f32 %v8076_v15, %v16014_v35  ;;  %v16015_v4 = vmax.f32 %v10988_v59, 0.0  ;;  %v8949_v35 = vld [vmem:[%s17525_s8 + $0x16d8] sm:$0xff]  ;;  %v8946_v59 = vld [vmem:[%s17525_s8 + $0x16c0] sm:$0xff] }
 0x3a9   : > { %13719 = vmatpush1.msra.mxu0 %v8350_v31  ;;  %13752 = vmatprep.mubr.f32.mxu0 %v21504_v5  ;;  %v8080_v56 = vmax.f32 %v3190_v17, 0.0  ;;  %v8079_v62 = vmax.f32 %v3121_v7, 0.0 }
 0x3aa   : > { %13790 = vmatpush1.msra.mxu1 %v8352_v2  ;;  %v16404_v25 = vmul.f32 %v16208_v49, %v16208_v49  ;;  %v16209_v21 = vsub.f32 %v8075_v54, %v16013_v24  ;;  %13823 = vmatprep.mubr.f32.mxu1 %v21504_v5  ;;  %v16406_v39 = vmul.f32 %v16210_v0, %v16210_v0  ;;  %v8948_v24 = vld [vmem:[%s17525_s8 + $0x16d0] sm:$0xff] }
 0x3ab   : > { %17038 = vmatmul.mubr.msk.f32.vlgmr.msra.gmra.mxu0 %vm1060_vm0, %v19815_v18  ;;  %v16211_v34 = vsub.f32 %v8077_v41, %v16015_v4  ;;  %17039 = vmatmul.mubr.msk.f32.vlgmr.msra.gmra.mxu1 %vm1060_vm0, %v19815_v18  ;;  %v8751_v41 = vld [vmem:[%s17525_s8 + $0x10a8] sm:$0xff]  ;;  %v21668_v4 = vld [vmem:[#allocation34_spill] sm:$0xff] }
 0x3ac   : > { %13854 = vmatprep.subr.mxu0 %v8943_v44  ;;  %v20104_v10 = vadd.f32 %v20058_v9, %v16404_v25  ;;  %v16405_v16 = vmul.f32 %v16209_v21, %v16209_v21  ;;  %13925 = vmatprep.subr.mxu1 %v8945_v8  ;;  %v20111_v3 = vadd.f32 %v20065_v46, %v16406_v39  ;;  %v8553_v9 = vld [vmem:[%s17525_s8 + $0xa78] sm:$0xff]  ;;  %v21667_v46 = vld [vmem:[#allocation33_spill] sm:$0xff]  ;;  %v8750_v25 = vld [vmem:[%s17525_s8 + $0x10a0] sm:$0xff] }
 0x3ad   : > { %13855 = vmatpush1.msra.mxu0 %v8942_v57  ;;  %v16407_v32 = vmul.f32 %v16211_v34, %v16211_v34  ;;  %v11056_v48 = vpop.f32.mrf.mxu0  ;;  %13926 = vmatpush1.msra.mxu1 %v8944_v22  ;;  %v11127_v14 = vpop.f32.mrf.mxu1  ;;  %v3192_v55 = vadd.f32 %v21667_v46, %v19450_v51  ;;  %v3261_v8 = vadd.f32 %v21668_v4, %v19450_v51  ;;  %v8753_v57 = vld [vmem:[%s17525_s8 + $0x10b8] sm:$0xff]  ;;  %v8752_v34 = vld [vmem:[%s17525_s8 + $0x10b0] sm:$0xff]  ;;  %v8559_v4 = vld [vmem:[%s17525_s8 + $0xaa8] sm:$0xff] }
 0x3ae   : > { %13856 = vmatprep.subr.mxu0 %v8747_v1  ;;  %v20118_v38 = vadd.f32 %v20072_v29, %v16405_v16  ;;  %v11057_v53 = vadd.f32 %v11056_v48, %v19450_v51  ;;  %13927 = vmatprep.subr.mxu1 %v8749_v43  ;;  %v11128_v58 = vadd.f32 %v11127_v14, %v19450_v51  ;;  %v8357_v29 = vld [vmem:[%s17525_s8 + $0x458] sm:$0xff]  ;;  %v8556_v48 = vld [vmem:[%s17525_s8 + $0xa90] sm:$0xff]  ;;  %v8358_v14 = vld [vmem:[%s17525_s8 + $0x460] sm:$0xff] }
 0x3af   : > { %13857 = vmatpush1.msra.mxu0 %v8746_v63  ;;  %v20126_v30 = vadd.f32 %v20080_v47, %v16407_v32  ;;  %v11058_v60 = vpop.f32.mrf.mxu0  ;;  %13928 = vmatpush1.msra.mxu1 %v8748_v19  ;;  %v11129_v45 = vpop.f32.mrf.mxu1  ;;  %v8081_v50 = vmax.f32 %v3192_v55, 0.0  ;;  %v21669_v1 = vld [vmem:[#allocation35_spill] sm:$0xff]  ;;  %v21670_v63 = vld [vmem:[#allocation36_spill] sm:$0xff] }
 0x3b0   : > { %13858 = vmatprep.subr.mxu0 %v8551_v11  ;;  %v16016_v6 = vmax.f32 %v11057_v53, 0.0  ;;  %v11059_v33 = vadd.f32 %v11058_v60, %v19450_v51  ;;  %13929 = vmatprep.subr.mxu1 %v8553_v9  ;;  %v16018_v47 = vmax.f32 %v11128_v58, 0.0  ;;  %v11130_v28 = vadd.f32 %v11129_v45, %v19450_v51  ;;  %v8360_v58 = vld [vmem:[%s17525_s8 + $0x470] sm:$0xff] }
 0x3b1   : > { %13859 = vmatpush1.msra.mxu0 %v8550_v13  ;;  %13930 = vmatpush1.msra.mxu1 %v8552_v61  ;;  %v3332_v39 = vadd.f32 %v21669_v1, %v19450_v51  ;;  %v3263_v16 = vadd.f32 %v21670_v63, %v19450_v51  ;;  %v8082_v53 = vmax.f32 %v3261_v8, 0.0  ;;  %v8560_v63 = vld [vmem:[%s17525_s8 + $0xab0] sm:$0xff] }
 0x3b2   : > { %13860 = vmatprep.subr.mxu0 %v8355_v12  ;;  %v16212_v31 = vsub.f32 %v8078_v23, %v16016_v6  ;;  %v16017_v20 = vmax.f32 %v11059_v33, 0.0  ;;  %13931 = vmatprep.subr.mxu1 %v8357_v29  ;;  %v16214_v15 = vsub.f32 %v8080_v56, %v16018_v47  ;;  %v16019_v2 = vmax.f32 %v11130_v28, 0.0  ;;  %v8951_v33 = vld [vmem:[%s17525_s8 + $0x16e8] sm:$0xff]  ;;  %v8950_v47 = vld [vmem:[%s17525_s8 + $0x16e0] sm:$0xff] }
 0x3b3   : > { %13861 = vmatpush1.msra.mxu0 %v8354_v52  ;;  %13894 = vmatprep.mubr.f32.mxu0 %v21504_v5  ;;  %v8084_v12 = vmax.f32 %v3332_v39, 0.0  ;;  %v8083_v23 = vmax.f32 %v3263_v16, 0.0  ;;  %v8558_v39 = vld [vmem:[%s17525_s8 + $0xaa0] sm:$0xff]  ;;  %v8363_v16 = vld [vmem:[%s17525_s8 + $0x488] sm:$0xff] }
 0x3b4   : > { %13932 = vmatpush1.msra.mxu1 %v8356_v26  ;;  %v16408_v54 = vmul.f32 %v16212_v31, %v16212_v31  ;;  %v16213_v49 = vsub.f32 %v8079_v62, %v16017_v20  ;;  %13965 = vmatprep.mubr.f32.mxu1 %v21504_v5  ;;  %v16410_v44 = vmul.f32 %v16214_v15, %v16214_v15  ;;  %v8953_v26 = vld [vmem:[%s17525_s8 + $0x16f8] sm:$0xff]  ;;  %v20185_v31 = vld [vmem:[#allocation7] sm:$0xff]  ;;  %v8952_v20 = vld [vmem:[%s17525_s8 + $0x16f0] sm:$0xff] }
 0x3b5   : > { %17040 = vmatmul.mubr.msk.f32.vlgmr.msra.gmra.mxu0 %vm1060_vm0, %v19815_v18  ;;  %v16215_v0 = vsub.f32 %v8081_v50, %v16019_v2  ;;  %17041 = vmatmul.mubr.msk.f32.vlgmr.msra.gmra.mxu1 %vm1060_vm0, %v19815_v18  ;;  %v8755_v50 = vld [vmem:[%s17525_s8 + $0x10c8] sm:$0xff]  ;;  %v21672_v2 = vld [vmem:[#allocation38_spill] sm:$0xff] }
 0x3b6   : > { %13996 = vmatprep.subr.mxu0 %v8947_v42  ;;  %v20150_v21 = vadd.f32 %v20104_v10, %v16408_v54  ;;  %v16409_v22 = vmul.f32 %v16213_v49, %v16213_v49  ;;  %14067 = vmatprep.subr.mxu1 %v8949_v35  ;;  %v20157_v18 = vadd.f32 %v20111_v3, %v16410_v44  ;;  %v8557_v10 = vld [vmem:[%s17525_s8 + $0xa98] sm:$0xff]  ;;  %v21671_v3 = vld [vmem:[#allocation37_spill] sm:$0xff]  ;;  %v8754_v54 = vld [vmem:[%s17525_s8 + $0x10c0] sm:$0xff] }
 0x3b7   : > { %13997 = vmatpush1.msra.mxu0 %v8946_v59  ;;  %v16411_v27 = vmul.f32 %v16215_v0, %v16215_v0  ;;  %v11198_v43 = vpop.f32.mrf.mxu0  ;;  %14068 = vmatpush1.msra.mxu1 %v8948_v24  ;;  %v11269_v11 = vpop.f32.mrf.mxu1  ;;  %v3334_v32 = vadd.f32 %v21671_v3, %v19450_v51  ;;  %v3403_v35 = vadd.f32 %v21672_v2, %v19450_v51  ;;  %v8757_v59 = vld [vmem:[%s17525_s8 + $0x10d8] sm:$0xff]  ;;  %v8756_v0 = vld [vmem:[%s17525_s8 + $0x10d0] sm:$0xff]  ;;  %v8362_v3 = vld [vmem:[%s17525_s8 + $0x480] sm:$0xff] }
 0x3b8   : > { %13998 = vmatprep.subr.mxu0 %v8751_v41  ;;  %v20164_v17 = vadd.f32 %v20118_v38, %v16409_v22  ;;  %v11199_v19 = vadd.f32 %v11198_v43, %v19450_v51  ;;  %14069 = vmatprep.subr.mxu1 %v8753_v57  ;;  %v11270_v9 = vadd.f32 %v11269_v11, %v19450_v51  ;;  %v8361_v38 = vld [vmem:[%s17525_s8 + $0x478] sm:$0xff]  ;;  %v21674_v22 = vld [vmem:[#allocation40_spill] sm:$0xff] }
 0x3b9   : > { %13999 = vmatpush1.msra.mxu0 %v8750_v25  ;;  %v20172_v7 = vadd.f32 %v20126_v30, %v16411_v27  ;;  %v11200_v13 = vpop.f32.mrf.mxu0  ;;  %14070 = vmatpush1.msra.mxu1 %v8752_v34  ;;  %v11271_v61 = vpop.f32.mrf.mxu1  ;;  %v8085_v6 = vmax.f32 %v3334_v32, 0.0  ;;  %v21673_v41 = vld [vmem:[#allocation39_spill] sm:$0xff]  ;;  %v3405_v1 = vadd.f32 %v21674_v22, %v19450_v51  ;;  %v8086_v11 = vmax.f32 %v3403_v35, 0.0  ;;  %v8563_v2 = vld [vmem:[%s17525_s8 + $0xac8] sm:$0xff] }
 0x3ba   : > { %14000 = vmatprep.subr.mxu0 %v8555_v36  ;;  %v16020_v46 = vmax.f32 %v11199_v19, 0.0  ;;  %v11201_v55 = vadd.f32 %v11200_v13, %v19450_v51  ;;  %14071 = vmatprep.subr.mxu1 %v8557_v10  ;;  %v16022_v30 = vmax.f32 %v11270_v9, 0.0  ;;  %v11272_v60 = vadd.f32 %v11271_v61, %v19450_v51  ;;  %v8364_v13 = vld [vmem:[%s17525_s8 + $0x490] sm:$0xff]  ;;  %v8955_v61 = vld [vmem:[%s17525_s8 + $0x1708] sm:$0xff] }
 0x3bb   : > { %14001 = vmatpush1.msra.mxu0 %v8554_v37  ;;  %14072 = vmatpush1.msra.mxu1 %v8556_v48  ;;  %v3474_v44 = vadd.f32 %v21673_v41, %v19450_v51 }
 0x3bc   : > { %14002 = vmatprep.subr.mxu0 %v8359_v40  ;;  %v16216_v29 = vsub.f32 %v8082_v53, %v16020_v46  ;;  %v16021_v52 = vmax.f32 %v11201_v55, 0.0  ;;  %14073 = vmatprep.subr.mxu1 %v8361_v38  ;;  %v16218_v45 = vsub.f32 %v8084_v12, %v16022_v30  ;;  %v16023_v56 = vmax.f32 %v11272_v60, 0.0  ;;  %v8957_v30 = vld [vmem:[%s17525_s8 + $0x1718] sm:$0xff]  ;;  %v8954_v60 = vld [vmem:[%s17525_s8 + $0x1700] sm:$0xff] }
 0x3bd   : > { %14003 = vmatpush1.msra.mxu0 %v8358_v14  ;;  %14036 = vmatprep.mubr.f32.mxu0 %v21504_v5  ;;  %v8088_v9 = vmax.f32 %v3474_v44, 0.0  ;;  %v8087_v38 = vmax.f32 %v3405_v1, 0.0  ;;  %v8369_v1 = vld [vmem:[%s17525_s8 + $0x4b8] sm:$0xff] }
 0x3be   : > { %14074 = vmatpush1.msra.mxu1 %v8360_v58  ;;  %v16412_v28 = vmul.f32 %v16216_v29, %v16216_v29  ;;  %v16217_v62 = vsub.f32 %v8083_v23, %v16021_v52  ;;  %14107 = vmatprep.mubr.f32.mxu1 %v21504_v5  ;;  %v16414_v42 = vmul.f32 %v16218_v45, %v16218_v45  ;;  %v8956_v52 = vld [vmem:[%s17525_s8 + $0x1710] sm:$0xff] }
 0x3bf   : > { %17042 = vmatmul.mubr.msk.f32.vlgmr.msra.gmra.mxu0 %vm1060_vm0, %v20185_v31  ;;  %v16219_v15 = vsub.f32 %v8085_v6, %v16023_v56  ;;  %17043 = vmatmul.mubr.msk.f32.vlgmr.msra.gmra.mxu1 %vm1060_vm0, %v20185_v31  ;;  %v8759_v6 = vld [vmem:[%s17525_s8 + $0x10e8] sm:$0xff]  ;;  %v21676_v56 = vld [vmem:[#allocation42_spill] sm:$0xff] }
 0x3c0   : > { %14138 = vmatprep.subr.mxu0 %v8951_v33  ;;  %v20198_v49 = vadd.f32 %v20150_v21, %v16412_v28  ;;  %v16413_v24 = vmul.f32 %v16217_v62, %v16217_v62  ;;  %14209 = vmatprep.subr.mxu1 %v8953_v26  ;;  %v20205_v8 = vadd.f32 %v20157_v18, %v16414_v42  ;;  %v8561_v21 = vld [vmem:[%s17525_s8 + $0xab8] sm:$0xff]  ;;  %v21675_v18 = vld [vmem:[#allocation41_spill] sm:$0xff]  ;;  %v8758_v28 = vld [vmem:[%s17525_s8 + $0x10e0] sm:$0xff] }
 0x3c1   : > { %14139 = vmatpush1.msra.mxu0 %v8950_v47  ;;  %v16415_v57 = vmul.f32 %v16219_v15, %v16219_v15  ;;  %v11340_v25 = vpop.f32.mrf.mxu0  ;;  %14210 = vmatpush1.msra.mxu1 %v8952_v20  ;;  %v11411_v27 = vpop.f32.mrf.mxu1  ;;  %v3476_v43 = vadd.f32 %v21675_v18, %v19450_v51  ;;  %v3545_v26 = vadd.f32 %v21676_v56, %v19450_v51  ;;  %v8761_v47 = vld [vmem:[%s17525_s8 + $0x10f8] sm:$0xff]  ;;  %v8760_v15 = vld [vmem:[%s17525_s8 + $0x10f0] sm:$0xff] }
 0x3c2   : > { %14140 = vmatprep.subr.mxu0 %v8755_v50  ;;  %v20212_v34 = vadd.f32 %v20164_v17, %v16413_v24  ;;  %v11341_v36 = vadd.f32 %v11340_v25, %v19450_v51  ;;  %14211 = vmatprep.subr.mxu1 %v8757_v59  ;;  %v11412_v37 = vadd.f32 %v11411_v27, %v19450_v51  ;;  %v8365_v17 = vld [vmem:[%s17525_s8 + $0x498] sm:$0xff] }
 0x3c3   : > { %14141 = vmatpush1.msra.mxu0 %v8754_v54  ;;  %v20220_v10 = vadd.f32 %v20172_v7, %v16415_v57  ;;  %v11342_v19 = vpop.f32.mrf.mxu0  ;;  %14212 = vmatpush1.msra.mxu1 %v8756_v0  ;;  %v11413_v40 = vpop.f32.mrf.mxu1  ;;  %v8089_v55 = vmax.f32 %v3476_v43, 0.0  ;;  %v21677_v50 = vld [vmem:[#allocation43_spill] sm:$0xff]  ;;  %v8367_v57 = vld [vmem:[%s17525_s8 + $0x4a8] sm:$0xff]  ;;  %v8090_v22 = vmax.f32 %v3545_v26, 0.0 }
 0x3c4   : > { %14142 = vmatprep.subr.mxu0 %v8559_v4  ;;  %v16024_v32 = vmax.f32 %v11341_v36, 0.0  ;;  %v11343_v48 = vadd.f32 %v11342_v19, %v19450_v51  ;;  %14213 = vmatprep.subr.mxu1 %v8561_v21  ;;  %v16026_v7 = vmax.f32 %v11412_v37, 0.0  ;;  %v11414_v53 = vadd.f32 %v11413_v40, %v19450_v51  ;;  %v8565_v24 = vld [vmem:[%s17525_s8 + $0xad8] sm:$0xff]  ;;  %v8564_v4 = vld [vmem:[%s17525_s8 + $0xad0] sm:$0xff]  ;;  %v8366_v21 = vld [vmem:[%s17525_s8 + $0x4a0] sm:$0xff] }
 0x3c5   : > { %14143 = vmatpush1.msra.mxu0 %v8558_v39  ;;  %14214 = vmatpush1.msra.mxu1 %v8560_v63  ;;  %v3616_v42 = vadd.f32 %v21677_v50, %v19450_v51  ;;  %v8368_v36 = vld [vmem:[%s17525_s8 + $0x4b0] sm:$0xff]  ;;  %v8959_v43 = vld [vmem:[%s17525_s8 + $0x1728] sm:$0xff]  ;;  %v8765_v40 = vld [vmem:[%s17525_s8 + $0x1118] sm:$0xff] }
 0x3c6   : > { %14144 = vmatprep.subr.mxu0 %v8363_v16  ;;  %v16220_v14 = vsub.f32 %v8086_v11, %v16024_v32  ;;  %v16025_v46 = vmax.f32 %v11343_v48, 0.0  ;;  %14215 = vmatprep.subr.mxu1 %v8365_v17  ;;  %v16222_v12 = vsub.f32 %v8088_v9, %v16026_v7  ;;  %v16027_v58 = vmax.f32 %v11414_v53, 0.0  ;;  %v8961_v16 = vld [vmem:[%s17525_s8 + $0x1738] sm:$0xff]  ;;  %v8960_v19 = vld [vmem:[%s17525_s8 + $0x1730] sm:$0xff]  ;;  %v8763_v11 = vld [vmem:[%s17525_s8 + $0x1108] sm:$0xff] }
 0x3c7   : > { %14145 = vmatpush1.msra.mxu0 %v8362_v3  ;;  %14178 = vmatprep.mubr.f32.mxu0 %v21504_v5  ;;  %v21678_v32 = vld [vmem:[#allocation46_spill] sm:$0xff]  ;;  %v8762_v9 = vld [vmem:[%s17525_s8 + $0x1100] sm:$0xff] }
 0x3c8   : > { %14216 = vmatpush1.msra.mxu1 %v8364_v13  ;;  %v16416_v23 = vmul.f32 %v16220_v14, %v16220_v14  ;;  %v16221_v29 = vsub.f32 %v8087_v38, %v16025_v46  ;;  %14249 = vmatprep.mubr.f32.mxu1 %v21504_v5  ;;  %v16418_v33 = vmul.f32 %v16222_v12, %v16222_v12  ;;  %v21679_v53 = vld [vmem:[#allocation47_spill] sm:$0xff]  ;;  %v8764_v14 = vld [vmem:[%s17525_s8 + $0x1110] sm:$0xff]  ;;  %v8567_v46 = vld [vmem:[%s17525_s8 + $0xae8] sm:$0xff] }
 0x3c9   : > { %17044 = vmatmul.mubr.msk.f32.vlgmr.msra.gmra.mxu0 %vm1060_vm0, %v20185_v31  ;;  %v16223_v45 = vsub.f32 %v8089_v55, %v16027_v58  ;;  %17045 = vmatmul.mubr.msk.f32.vlgmr.msra.gmra.mxu1 %vm1060_vm0, %v20185_v31  ;;  %v3687_v48 = vadd.f32 %v21678_v32, %v19450_v51  ;;  %v3758_v38 = vadd.f32 %v21679_v53, %v19450_v51  ;;  %v8569_v12 = vld [vmem:[%s17525_s8 + $0xaf8] sm:$0xff]  ;;  %v8566_v58 = vld [vmem:[%s17525_s8 + $0xae0] sm:$0xff]  ;;  %v8967_v53 = vld [vmem:[%s17525_s8 + $0x1768] sm:$0xff] }
 0x3ca   : > { %14280 = vmatprep.subr.mxu0 %v8955_v61  ;;  %v16612_v62 = vadd.f32 %v20198_v49, %v16416_v23  ;;  %v16417_v20 = vmul.f32 %v16221_v29, %v16221_v29  ;;  %14351 = vmatprep.subr.mxu1 %v8957_v30  ;;  %v16614_v35 = vadd.f32 %v20205_v8, %v16418_v33  ;;  %v8562_v49 = vld [vmem:[%s17525_s8 + $0xac0] sm:$0xff]  ;;  %v8568_v23 = vld [vmem:[%s17525_s8 + $0xaf0] sm:$0xff]  ;;  %v8371_v29 = vld [vmem:[%s17525_s8 + $0x4c8] sm:$0xff] }
 0x3cb   : > { %14281 = vmatpush1.msra.mxu0 %v8954_v60  ;;  %v16419_v59 = vmul.f32 %v16223_v45, %v16223_v45  ;;  %v11482_v54 = vpop.f32.mrf.mxu0  ;;  %14352 = vmatpush1.msra.mxu1 %v8956_v52  ;;  %v11553_v0 = vpop.f32.mrf.mxu1  ;;  %v8373_v33 = vld [vmem:[%s17525_s8 + $0x4d8] sm:$0xff]  ;;  %v8370_v45 = vld [vmem:[%s17525_s8 + $0x4c0] sm:$0xff]  ;;  %v8096_v26 = vmax.f32 %v3758_v38, 0.0 }
 0x3cc   : > { %14282 = vmatprep.subr.mxu0 %v8759_v6  ;;  %v20252_v41 = vadd.f32 %v20212_v34, %v16417_v20  ;;  %v11483_v44 = vadd.f32 %v11482_v54, %v19450_v51  ;;  %14353 = vmatprep.subr.mxu1 %v8761_v47  ;;  %v11554_v25 = vadd.f32 %v11553_v0, %v19450_v51  ;;  %v8092_v34 = vmax.f32 %v3616_v42, 0.0  ;;  %v8372_v47 = vld [vmem:[%s17525_s8 + $0x4d0] sm:$0xff]  ;;  %v8963_v20 = vld [vmem:[%s17525_s8 + $0x1748] sm:$0xff]  ;;  %v8965_v42 = vld [vmem:[%s17525_s8 + $0x1758] sm:$0xff] }
 0x3cd   : > { %14283 = vmatpush1.msra.mxu0 %v8758_v28  ;;  %v20258_v8 = vadd.f32 %v20220_v10, %v16419_v59  ;;  %14354 = vmatpush1.msra.mxu1 %v8760_v15  ;;  %v8958_v10 = vld [vmem:[%s17525_s8 + $0x1720] sm:$0xff]  ;;  %v20273_v3 = vpop.f32.mrf.mxu0  ;;  %v20281_v7 = vpop.f32.mrf.mxu1  ;;  %v8094_v6 = vmax.f32 %v3687_v48, 0.0  ;;  %v8767_v59 = vld [vmem:[%s17525_s8 + $0x1128] sm:$0xff]  ;;  %v8769_v0 = vld [vmem:[%s17525_s8 + $0x1138] sm:$0xff] }
 0x3ce   : > { %14284 = vmatprep.subr.mxu0 %v8563_v2  ;;  %v16028_v39 = vmax.f32 %v11483_v44, 0.0  ;;  %14355 = vmatprep.subr.mxu1 %v8565_v24  ;;  %v16030_v27 = vmax.f32 %v11554_v25, 0.0  ;;  %v8962_v15 = vld [vmem:[%s17525_s8 + $0x1740] sm:$0xff] }
 0x3cf   : > { %14285 = vmatpush1.msra.mxu0 %v8562_v49  ;;  %14356 = vmatpush1.msra.mxu1 %v8564_v4  ;;  %v21680_v49 = vld [vmem:[#allocation50_spill] sm:$0xff]  ;;  %v8766_v4 = vld [vmem:[%s17525_s8 + $0x1120] sm:$0xff] }
 0x3d0   : > { %14286 = vmatprep.subr.mxu0 %v8367_v57  ;;  %v16224_v18 = vsub.f32 %v8090_v22, %v16028_v39  ;;  %14357 = vmatprep.subr.mxu1 %v8369_v1  ;;  %v16226_v63 = vsub.f32 %v8092_v34, %v16030_v27  ;;  %v3829_v44 = vadd.f32 %v21680_v49, %v19450_v51  ;;  %v21681_v22 = vld [vmem:[#allocation51_spill] sm:$0xff]  ;;  %v8571_v39 = vld [vmem:[%s17525_s8 + $0xb08] sm:$0xff] }
 0x3d1   : > { %14287 = vmatpush1.msra.mxu0 %v8366_v21  ;;  %14320 = vmatprep.mubr.f32.mxu0 %v21504_v5  ;;  %v3900_v1 = vadd.f32 %v21681_v22, %v19450_v51  ;;  %v8768_v21 = vld [vmem:[%s17525_s8 + $0x1130] sm:$0xff]  ;;  %v8573_v27 = vld [vmem:[%s17525_s8 + $0xb18] sm:$0xff] }
 0x3d2   : > { %14358 = vmatpush1.msra.mxu1 %v8368_v36  ;;  %v16420_v37 = vmul.f32 %v16224_v18, %v16224_v18  ;;  %14391 = vmatprep.mubr.f32.mxu1 %v21504_v5  ;;  %v16422_v17 = vmul.f32 %v16226_v63, %v16226_v63  ;;  %v8570_v18 = vld [vmem:[%s17525_s8 + $0xb00] sm:$0xff]  ;;  %v8381_v49 = vld [vmem:[%s17525_s8 + $0x518] sm:$0xff] }
 0x3d3   : > { %17046 = vmatmul.mubr.msk.f32.vlgmr.msra.gmra.mxu0 %vm1060_vm0, %v20185_v31  ;;  %17047 = vmatmul.mubr.msk.f32.vlgmr.msra.gmra.mxu1 %vm1060_vm0, %v20185_v31  ;;  %v8100_v48 = vmax.f32 %v3900_v1, 0.0 }
 0x3d4   : > { %14422 = vmatprep.subr.mxu0 %v8959_v43  ;;  %v16616_v13 = vadd.f32 %v16612_v62, %v16420_v37  ;;  %14493 = vmatprep.subr.mxu1 %v8961_v16  ;;  %v16618_v55 = vadd.f32 %v16614_v35, %v16422_v17  ;;  %v8964_v35 = vld [vmem:[%s17525_s8 + $0x1750] sm:$0xff]  ;;  %v8374_v17 = vld [vmem:[%s17525_s8 + $0x4e0] sm:$0xff] }
 0x3d5   : > { %14423 = vmatpush1.msra.mxu0 %v8958_v10  ;;  %v11624_v61 = vpop.f32.mrf.mxu0  ;;  %14494 = vmatpush1.msra.mxu1 %v8960_v19  ;;  %v11695_v60 = vpop.f32.mrf.mxu1  ;;  %v8572_v16 = vld [vmem:[%s17525_s8 + $0xb10] sm:$0xff]  ;;  %v8375_v10 = vld [vmem:[%s17525_s8 + $0x4e8] sm:$0xff]  ;;  %v8098_v19 = vmax.f32 %v3829_v44, 0.0  ;;  %v8378_v44 = vld [vmem:[%s17525_s8 + $0x500] sm:$0xff] }
 0x3d6   : > { %14424 = vmatprep.subr.mxu0 %v8763_v11  ;;  %v11625_v30 = vadd.f32 %v11624_v61, %v19450_v51  ;;  %14495 = vmatprep.subr.mxu1 %v8765_v40  ;;  %v11696_v52 = vadd.f32 %v11695_v60, %v19450_v51  ;;  %v8377_v11 = vld [vmem:[%s17525_s8 + $0x4f8] sm:$0xff]  ;;  %v8376_v40 = vld [vmem:[%s17525_s8 + $0x4f0] sm:$0xff] }
 0x3d7   : > { %14425 = vmatpush1.msra.mxu0 %v8762_v9  ;;  %14496 = vmatpush1.msra.mxu1 %v8764_v14  ;;  %v20305_v24 = vpop.f32.mrf.mxu0  ;;  %v20313_v25 = vpop.f32.mrf.mxu1  ;;  %v8969_v14 = vld [vmem:[%s17525_s8 + $0x1778] sm:$0xff]  ;;  %v8968_v61 = vld [vmem:[%s17525_s8 + $0x1770] sm:$0xff] }
 0x3d8   : > { %14426 = vmatprep.subr.mxu0 %v8567_v46  ;;  %v16032_v56 = vmax.f32 %v11625_v30, 0.0  ;;  %14497 = vmatprep.subr.mxu1 %v8569_v12  ;;  %v16034_v28 = vmax.f32 %v11696_v52, 0.0  ;;  %v8966_v46 = vld [vmem:[%s17525_s8 + $0x1760] sm:$0xff]  ;;  %v8771_v12 = vld [vmem:[%s17525_s8 + $0x1148] sm:$0xff]  ;;  %v21682_v60 = vld [vmem:[#allocation54_spill] sm:$0xff] }
 0x3d9   : > { %14427 = vmatpush1.msra.mxu0 %v8566_v58  ;;  %14498 = vmatpush1.msra.mxu1 %v8568_v23  ;;  %v3971_v23 = vadd.f32 %v21682_v60, %v19450_v51  ;;  %v8770_v52 = vld [vmem:[%s17525_s8 + $0x1140] sm:$0xff] }
 0x3da   : > { %14428 = vmatprep.subr.mxu0 %v8371_v29  ;;  %v16228_v62 = vsub.f32 %v8094_v6, %v16032_v56  ;;  %14499 = vmatprep.subr.mxu1 %v8373_v33  ;;  %v16230_v50 = vsub.f32 %v8096_v26, %v16034_v28  ;;  %v8773_v29 = vld [vmem:[%s17525_s8 + $0x1158] sm:$0xff]  ;;  %v8772_v26 = vld [vmem:[%s17525_s8 + $0x1150] sm:$0xff] }
 0x3db   : > { %14429 = vmatpush1.msra.mxu0 %v8370_v45  ;;  %14462 = vmatprep.mubr.f32.mxu0 %v21504_v5  ;;  %v21683_v45 = vld [vmem:[#allocation55_spill] sm:$0xff] }
 0x3dc   : > { %14500 = vmatpush1.msra.mxu1 %v8372_v47  ;;  %v16424_v2 = vmul.f32 %v16228_v62, %v16228_v62  ;;  %14533 = vmatprep.mubr.f32.mxu1 %v21504_v5  ;;  %v16426_v54 = vmul.f32 %v16230_v50, %v16230_v50  ;;  %v4042_v56 = vadd.f32 %v21683_v45, %v19450_v51  ;;  %v8575_v47 = vld [vmem:[%s17525_s8 + $0xb28] sm:$0xff]  ;;  %v8574_v50 = vld [vmem:[%s17525_s8 + $0xb20] sm:$0xff] }
 0x3dd   : > { %17048 = vmatmul.mubr.msk.f32.vlgmr.msra.gmra.mxu0 %vm1060_vm0, %v20185_v31  ;;  %17049 = vmatmul.mubr.msk.f32.vlgmr.msra.gmra.mxu1 %vm1060_vm0, %v20185_v31 }
 0x3de   : > { %14564 = vmatprep.subr.mxu0 %v8963_v20  ;;  %v16620_v57 = vadd.f32 %v16616_v13, %v16424_v2  ;;  %14635 = vmatprep.subr.mxu1 %v8965_v42  ;;  %v16622_v34 = vadd.f32 %v16618_v55, %v16426_v54  ;;  %v8577_v20 = vld [vmem:[%s17525_s8 + $0xb38] sm:$0xff]  ;;  %v8576_v2 = vld [vmem:[%s17525_s8 + $0xb30] sm:$0xff]  ;;  %v8102_v54 = vmax.f32 %v3971_v23, 0.0 }
 0x3df   : > { %14565 = vmatpush1.msra.mxu0 %v8962_v15  ;;  %v11766_v36 = vpop.f32.mrf.mxu0  ;;  %14636 = vmatpush1.msra.mxu1 %v8964_v35  ;;  %v11837_v63 = vpop.f32.mrf.mxu1  ;;  %v8379_v35 = vld [vmem:[%s17525_s8 + $0x508] sm:$0xff] }
 0x3e0   : > { %14566 = vmatprep.subr.mxu0 %v8767_v59  ;;  %v11767_v43 = vadd.f32 %v11766_v36, %v19450_v51  ;;  %14637 = vmatprep.subr.mxu1 %v8769_v0  ;;  %v11838_v37 = vadd.f32 %v11837_v63, %v19450_v51  ;;  %v8970_v36 = vld [vmem:[%s17525_s8 + $0x1780] sm:$0xff] }
 0x3e1   : > { %14567 = vmatpush1.msra.mxu0 %v8766_v4  ;;  %14638 = vmatpush1.msra.mxu1 %v8768_v21  ;;  %v20337_v30 = vpop.f32.mrf.mxu0  ;;  %v20345_v33 = vpop.f32.mrf.mxu1  ;;  %v8104_v4 = vmax.f32 %v4042_v56, 0.0  ;;  %v8971_v21 = vld [vmem:[%s17525_s8 + $0x1788] sm:$0xff]  ;;  %v8384_v56 = vld [vmem:[%s17525_s8 + $0x530] sm:$0xff] }
 0x3e2   : > { %14568 = vmatprep.subr.mxu0 %v8571_v39  ;;  %v16036_v32 = vmax.f32 %v11767_v43, 0.0  ;;  %14639 = vmatprep.subr.mxu1 %v8573_v27  ;;  %v16038_v9 = vmax.f32 %v11838_v37, 0.0  ;;  %v8775_v43 = vld [vmem:[%s17525_s8 + $0x1168] sm:$0xff] }
 0x3e3   : > { %14569 = vmatpush1.msra.mxu0 %v8570_v18  ;;  %14640 = vmatpush1.msra.mxu1 %v8572_v16  ;;  %v8972_v18 = vld [vmem:[%s17525_s8 + $0x1790] sm:$0xff] }
 0x3e4   : > { %14570 = vmatprep.subr.mxu0 %v8375_v10  ;;  %v16232_v13 = vsub.f32 %v8098_v19, %v16036_v32  ;;  %14641 = vmatprep.subr.mxu1 %v8377_v11  ;;  %v16234_v38 = vsub.f32 %v8100_v48, %v16038_v9  ;;  %v21684_v10 = vld [vmem:[#allocation58_spill] sm:$0xff]  ;;  %v8774_v11 = vld [vmem:[%s17525_s8 + $0x1160] sm:$0xff] }
 0x3e5   : > { %14571 = vmatpush1.msra.mxu0 %v8374_v17  ;;  %14604 = vmatprep.mubr.f32.mxu0 %v21504_v5  ;;  %v4113_v37 = vadd.f32 %v21684_v10, %v19450_v51  ;;  %v8777_v19 = vld [vmem:[%s17525_s8 + $0x1178] sm:$0xff]  ;;  %v8776_v9 = vld [vmem:[%s17525_s8 + $0x1170] sm:$0xff] }
 0x3e6   : > { %14642 = vmatpush1.msra.mxu1 %v8376_v40  ;;  %v16428_v55 = vmul.f32 %v16232_v13, %v16232_v13  ;;  %14675 = vmatprep.mubr.f32.mxu1 %v21504_v5  ;;  %v16430_v58 = vmul.f32 %v16234_v38, %v16234_v38  ;;  %v21685_v48 = vld [vmem:[#allocation59_spill] sm:$0xff]  ;;  %v8579_v13 = vld [vmem:[%s17525_s8 + $0xb48] sm:$0xff]  ;;  %v8584_v10 = vld [vmem:[%s17525_s8 + $0xb70] sm:$0xff] }
 0x3e7   : > { %17050 = vmatmul.mubr.msk.f32.vlgmr.msra.gmra.mxu0 %vm1060_vm0, %v20185_v31  ;;  %17051 = vmatmul.mubr.msk.f32.vlgmr.msra.gmra.mxu1 %vm1060_vm0, %v20185_v31  ;;  %v4184_v40 = vadd.f32 %v21685_v48, %v19450_v51  ;;  %v8106_v23 = vmax.f32 %v4113_v37, 0.0  ;;  %v8387_v37 = vld [vmem:[%s17525_s8 + $0x548] sm:$0xff]  ;;  %v8386_v48 = vld [vmem:[%s17525_s8 + $0x540] sm:$0xff] }
 0x3e8   : > { %14706 = vmatprep.subr.mxu0 %v8967_v53  ;;  %v16624_v6 = vadd.f32 %v16620_v57, %v16428_v55  ;;  %14777 = vmatprep.subr.mxu1 %v8969_v14  ;;  %v16626_v28 = vadd.f32 %v16622_v34, %v16430_v58  ;;  %v8380_v57 = vld [vmem:[%s17525_s8 + $0x510] sm:$0xff]  ;;  %v8973_v34 = vld [vmem:[%s17525_s8 + $0x1798] sm:$0xff]  ;;  %v8383_v58 = vld [vmem:[%s17525_s8 + $0x528] sm:$0xff] }
 0x3e9   : > { %14707 = vmatpush1.msra.mxu0 %v8966_v46  ;;  %v11908_v62 = vpop.f32.mrf.mxu0  ;;  %14778 = vmatpush1.msra.mxu1 %v8968_v61  ;;  %v11979_v15 = vpop.f32.mrf.mxu1  ;;  %v8581_v14 = vld [vmem:[%s17525_s8 + $0xb58] sm:$0xff]  ;;  %v8578_v46 = vld [vmem:[%s17525_s8 + $0xb40] sm:$0xff]  ;;  %v8108_v45 = vmax.f32 %v4184_v40, 0.0 }
 0x3ea   : > { %14708 = vmatprep.subr.mxu0 %v8771_v12  ;;  %v11909_v42 = vadd.f32 %v11908_v62, %v19450_v51  ;;  %14779 = vmatprep.subr.mxu1 %v8773_v29  ;;  %v11980_v59 = vadd.f32 %v11979_v15, %v19450_v51  ;;  %v8580_v12 = vld [vmem:[%s17525_s8 + $0xb50] sm:$0xff]  ;;  %v8385_v29 = vld [vmem:[%s17525_s8 + $0x538] sm:$0xff] }
 0x3eb   : > { %14709 = vmatpush1.msra.mxu0 %v8770_v52  ;;  %14780 = vmatpush1.msra.mxu1 %v8772_v26  ;;  %v20369_v16 = vpop.f32.mrf.mxu0  ;;  %v20377_v32 = vpop.f32.mrf.mxu1  ;;  %v8382_v52 = vld [vmem:[%s17525_s8 + $0x520] sm:$0xff]  ;;  %v8976_v15 = vld [vmem:[%s17525_s8 + $0x17b0] sm:$0xff] }
 0x3ec   : > { %14710 = vmatprep.subr.mxu0 %v8575_v47  ;;  %v16040_v0 = vmax.f32 %v11909_v42, 0.0  ;;  %14781 = vmatprep.subr.mxu1 %v8577_v20  ;;  %v16042_v22 = vmax.f32 %v11980_v59, 0.0  ;;  %v8977_v20 = vld [vmem:[%s17525_s8 + $0x17b8] sm:$0xff] }
 0x3ed   : > { %14711 = vmatpush1.msra.mxu0 %v8574_v50  ;;  %14782 = vmatpush1.msra.mxu1 %v8576_v2  ;;  %v8974_v50 = vld [vmem:[%s17525_s8 + $0x17a0] sm:$0xff]  ;;  %v8779_v2 = vld [vmem:[%s17525_s8 + $0x1188] sm:$0xff] }
 0x3ee   : > { %14712 = vmatprep.subr.mxu0 %v8379_v35  ;;  %v16236_v1 = vsub.f32 %v8102_v54, %v16040_v0  ;;  %14783 = vmatprep.subr.mxu1 %v8381_v49  ;;  %v16238_v39 = vsub.f32 %v8104_v4, %v16042_v22  ;;  %v21686_v54 = vld [vmem:[#allocation62_spill] sm:$0xff]  ;;  %v8778_v0 = vld [vmem:[%s17525_s8 + $0x1180] sm:$0xff] }
 0x3ef   : > { %14713 = vmatpush1.msra.mxu0 %v8378_v44  ;;  %14746 = vmatprep.mubr.f32.mxu0 %v21504_v5  ;;  %v4255_v49 = vadd.f32 %v21686_v54, %v19450_v51  ;;  %v8781_v44 = vld [vmem:[%s17525_s8 + $0x1198] sm:$0xff] }
 0x3f0   : > { %14784 = vmatpush1.msra.mxu1 %v8380_v57  ;;  %v16432_v27 = vmul.f32 %v16236_v1, %v16236_v1  ;;  %14817 = vmatprep.mubr.f32.mxu1 %v21504_v5  ;;  %v16434_v63 = vmul.f32 %v16238_v39, %v16238_v39  ;;  %v21687_v22 = vld [vmem:[#allocation63_spill] sm:$0xff]  ;;  %v8583_v39 = vld [vmem:[%s17525_s8 + $0xb68] sm:$0xff] }
 0x3f1   : > { %17052 = vmatmul.mubr.msk.f32.vlgmr.msra.gmra.mxu0 %vm1060_vm0, %v20185_v31  ;;  %17053 = vmatmul.mubr.msk.f32.vlgmr.msra.gmra.mxu1 %vm1060_vm0, %v20185_v31  ;;  %v4326_v1 = vadd.f32 %v21687_v22, %v19450_v51 }
 0x3f2   : > { %14848 = vmatprep.subr.mxu0 %v8971_v21  ;;  %v16628_v17 = vadd.f32 %v16624_v6, %v16432_v27  ;;  %14919 = vmatprep.subr.mxu1 %v8973_v34  ;;  %v16630_v53 = vadd.f32 %v16626_v28, %v16434_v63  ;;  %v8975_v28 = vld [vmem:[%s17525_s8 + $0x17a8] sm:$0xff]  ;;  %v8780_v21 = vld [vmem:[%s17525_s8 + $0x1190] sm:$0xff]  ;;  %v8585_v27 = vld [vmem:[%s17525_s8 + $0xb78] sm:$0xff] }
 0x3f3   : > { %14849 = vmatpush1.msra.mxu0 %v8970_v36  ;;  %v12050_v38 = vpop.f32.mrf.mxu0  ;;  %14920 = vmatpush1.msra.mxu1 %v8972_v18  ;;  %v12121_v61 = vpop.f32.mrf.mxu1  ;;  %v8582_v18 = vld [vmem:[%s17525_s8 + $0xb60] sm:$0xff] }
 0x3f4   : > { %14850 = vmatprep.subr.mxu0 %v8775_v43  ;;  %v12051_v55 = vadd.f32 %v12050_v38, %v19450_v51  ;;  %14921 = vmatprep.subr.mxu1 %v8777_v19  ;;  %v12122_v60 = vadd.f32 %v12121_v61, %v19450_v51  ;;  %v8978_v61 = vld [vmem:[%s17525_s8 + $0x17c0] sm:$0xff] }
 0x3f5   : > { %14851 = vmatpush1.msra.mxu0 %v8774_v11  ;;  %14922 = vmatpush1.msra.mxu1 %v8776_v9  ;;  %v20401_v59 = vpop.f32.mrf.mxu0  ;;  %v20409_v57 = vpop.f32.mrf.mxu1  ;;  %v8110_v11 = vmax.f32 %v4255_v49, 0.0  ;;  %v8112_v9 = vmax.f32 %v4326_v1, 0.0  ;;  %v8393_v1 = vld [vmem:[%s17525_s8 + $0x578] sm:$0xff] }
 0x3f6   : > { %14852 = vmatprep.subr.mxu0 %v8579_v13  ;;  %v16044_v6 = vmax.f32 %v12051_v55, 0.0  ;;  %14923 = vmatprep.subr.mxu1 %v8581_v14  ;;  %v16046_v26 = vmax.f32 %v12122_v60, 0.0  ;;  %v8388_v13 = vld [vmem:[%s17525_s8 + $0x550] sm:$0xff]  ;;  %v8979_v14 = vld [vmem:[%s17525_s8 + $0x17c8] sm:$0xff]  ;;  %v8981_v55 = vld [vmem:[%s17525_s8 + $0x17d8] sm:$0xff] }
 0x3f7   : > { %14853 = vmatpush1.msra.mxu0 %v8578_v46  ;;  %14924 = vmatpush1.msra.mxu1 %v8580_v12  ;;  %v8783_v60 = vld [vmem:[%s17525_s8 + $0x11a8] sm:$0xff] }
 0x3f8   : > { %14854 = vmatprep.subr.mxu0 %v8383_v58  ;;  %v16240_v47 = vsub.f32 %v8106_v23, %v16044_v6  ;;  %14925 = vmatprep.subr.mxu1 %v8385_v29  ;;  %v16242_v62 = vsub.f32 %v8108_v45, %v16046_v26  ;;  %v8980_v58 = vld [vmem:[%s17525_s8 + $0x17d0] sm:$0xff]  ;;  %v8785_v45 = vld [vmem:[%s17525_s8 + $0x11b8] sm:$0xff] }
 0x3f9   : > { %14855 = vmatpush1.msra.mxu0 %v8382_v52  ;;  %14888 = vmatprep.mubr.f32.mxu0 %v21504_v5  ;;  %v21688_v52 = vld [vmem:[#allocation66_spill] sm:$0xff] }
 0x3fa   : > { %14926 = vmatpush1.msra.mxu1 %v8384_v56  ;;  %v16436_v42 = vmul.f32 %v16240_v47, %v16240_v47  ;;  %14959 = vmatprep.mubr.f32.mxu1 %v21504_v5  ;;  %v16438_v35 = vmul.f32 %v16242_v62, %v16242_v62  ;;  %v4397_v6 = vadd.f32 %v21688_v52, %v19450_v51  ;;  %v8782_v56 = vld [vmem:[%s17525_s8 + $0x11a0] sm:$0xff]  ;;  %v8593_v52 = vld [vmem:[%s17525_s8 + $0xbb8] sm:$0xff] }
 0x3fb   : > { %17054 = vmatmul.mubr.msk.f32.vlgmr.msra.gmra.mxu0 %vm1060_vm0, %v20185_v31  ;;  %17055 = vmatmul.mubr.msk.f32.vlgmr.msra.gmra.mxu1 %vm1060_vm0, %v20185_v31 }
 0x3fc   : > { %14990 = vmatprep.subr.mxu0 %v8975_v28  ;;  %v16632_v4 = vadd.f32 %v16628_v17, %v16436_v42  ;;  %15061 = vmatprep.subr.mxu1 %v8977_v20  ;;  %v16634_v34 = vadd.f32 %v16630_v53, %v16438_v35  ;;  %v8389_v17 = vld [vmem:[%s17525_s8 + $0x558] sm:$0xff]  ;;  %v8784_v20 = vld [vmem:[%s17525_s8 + $0x11b0] sm:$0xff]  ;;  %v8586_v35 = vld [vmem:[%s17525_s8 + $0xb80] sm:$0xff]  ;;  %v8114_v22 = vmax.f32 %v4397_v6, 0.0 }
 0x3fd   : > { %14991 = vmatpush1.msra.mxu0 %v8974_v50  ;;  %v12192_v36 = vpop.f32.mrf.mxu0  ;;  %15062 = vmatpush1.msra.mxu1 %v8976_v15  ;;  %v12263_v63 = vpop.f32.mrf.mxu1  ;;  %v21689_v28 = vld [vmem:[#allocation67_spill] sm:$0xff]  ;;  %v8587_v50 = vld [vmem:[%s17525_s8 + $0xb88] sm:$0xff] }
 0x3fe   : > { %14992 = vmatprep.subr.mxu0 %v8779_v2  ;;  %v12193_v43 = vadd.f32 %v12192_v36, %v19450_v51  ;;  %15063 = vmatprep.subr.mxu1 %v8781_v44  ;;  %v12264_v19 = vadd.f32 %v12263_v63, %v19450_v51  ;;  %v4468_v62 = vadd.f32 %v21689_v28, %v19450_v51  ;;  %v8589_v2 = vld [vmem:[%s17525_s8 + $0xb98] sm:$0xff]  ;;  %v8588_v44 = vld [vmem:[%s17525_s8 + $0xb90] sm:$0xff]  ;;  %v8590_v6 = vld [vmem:[%s17525_s8 + $0xba0] sm:$0xff] }
 0x3ff   : > { %14993 = vmatpush1.msra.mxu0 %v8778_v0  ;;  %15064 = vmatpush1.msra.mxu1 %v8780_v21  ;;  %v20433_v29 = vpop.f32.mrf.mxu0  ;;  %v20441_v47 = vpop.f32.mrf.mxu1  ;;  %v8391_v0 = vld [vmem:[%s17525_s8 + $0x568] sm:$0xff]  ;;  %v8390_v21 = vld [vmem:[%s17525_s8 + $0x560] sm:$0xff]  ;;  %v8392_v36 = vld [vmem:[%s17525_s8 + $0x570] sm:$0xff] }
 0x400   : > { %14994 = vmatprep.subr.mxu0 %v8583_v39  ;;  %v16048_v40 = vmax.f32 %v12193_v43, 0.0  ;;  %15065 = vmatprep.subr.mxu1 %v8585_v27  ;;  %v16050_v53 = vmax.f32 %v12264_v19, 0.0  ;;  %v8983_v43 = vld [vmem:[%s17525_s8 + $0x17e8] sm:$0xff] }
 0x401   : > { %14995 = vmatpush1.msra.mxu0 %v8582_v18  ;;  %15066 = vmatpush1.msra.mxu1 %v8584_v10  ;;  %v8985_v10 = vld [vmem:[%s17525_s8 + $0x17f8] sm:$0xff]  ;;  %v8395_v28 = vld [vmem:[%s17525_s8 + $0x588] sm:$0xff] }
 0x402   : > { %14996 = vmatprep.subr.mxu0 %v8387_v37  ;;  %v16244_v38 = vsub.f32 %v8110_v11, %v16048_v40  ;;  %15067 = vmatprep.subr.mxu1 %v8389_v17  ;;  %v16246_v46 = vsub.f32 %v8112_v9, %v16050_v53  ;;  %v8982_v37 = vld [vmem:[%s17525_s8 + $0x17e0] sm:$0xff]  ;;  %v8984_v11 = vld [vmem:[%s17525_s8 + $0x17f0] sm:$0xff]  ;;  %v8787_v17 = vld [vmem:[%s17525_s8 + $0x11c8] sm:$0xff] }
 0x403   : > { %14997 = vmatpush1.msra.mxu0 %v8386_v48  ;;  %15030 = vmatprep.mubr.f32.mxu0 %v21504_v5  ;;  %v21690_v9 = vld [vmem:[#allocation70_spill] sm:$0xff] }
 0x404   : > { %15068 = vmatpush1.msra.mxu1 %v8388_v13  ;;  %v16440_v12 = vmul.f32 %v16244_v38, %v16244_v38  ;;  %15101 = vmatprep.mubr.f32.mxu1 %v21504_v5  ;;  %v16442_v23 = vmul.f32 %v16246_v46, %v16246_v46  ;;  %v4539_v13 = vadd.f32 %v21690_v9, %v19450_v51  ;;  %v8789_v53 = vld [vmem:[%s17525_s8 + $0x11d8] sm:$0xff]  ;;  %v8786_v38 = vld [vmem:[%s17525_s8 + $0x11c0] sm:$0xff] }
 0x405   : > { %17056 = vmatmul.mubr.msk.f32.vlgmr.msra.gmra.mxu0 %vm1060_vm0, %v20185_v31  ;;  %17057 = vmatmul.mubr.msk.f32.vlgmr.msra.gmra.mxu1 %vm1060_vm0, %v20185_v31 }
 0x406   : > { %15132 = vmatprep.subr.mxu0 %v8979_v14  ;;  %v16636_v26 = vadd.f32 %v16632_v4, %v16440_v12  ;;  %15203 = vmatprep.subr.mxu1 %v8981_v55  ;;  %v16638_v42 = vadd.f32 %v16634_v34, %v16442_v23  ;;  %v8116_v34 = vmax.f32 %v4468_v62, 0.0  ;;  %v21691_v55 = vld [vmem:[#allocation71_spill] sm:$0xff]  ;;  %v8788_v12 = vld [vmem:[%s17525_s8 + $0x11d0] sm:$0xff] }
 0x407   : > { %15133 = vmatpush1.msra.mxu0 %v8978_v61  ;;  %v12334_v15 = vpop.f32.mrf.mxu0  ;;  %15204 = vmatpush1.msra.mxu1 %v8980_v58  ;;  %v12405_v49 = vpop.f32.mrf.mxu1  ;;  %v4610_v61 = vadd.f32 %v21691_v55, %v19450_v51  ;;  %v8591_v58 = vld [vmem:[%s17525_s8 + $0xba8] sm:$0xff]  ;;  %v8596_v55 = vld [vmem:[%s17525_s8 + $0xbd0] sm:$0xff] }
 0x408   : > { %15134 = vmatprep.subr.mxu0 %v8783_v60  ;;  %v12335_v54 = vadd.f32 %v12334_v15, %v19450_v51  ;;  %15205 = vmatprep.subr.mxu1 %v8785_v45  ;;  %v12406_v4 = vadd.f32 %v12405_v49, %v19450_v51 }
 0x409   : > { %15135 = vmatpush1.msra.mxu0 %v8782_v56  ;;  %15206 = vmatpush1.msra.mxu1 %v8784_v20  ;;  %v20465_v40 = vpop.f32.mrf.mxu0  ;;  %v20473_v46 = vpop.f32.mrf.mxu1  ;;  %v8118_v20 = vmax.f32 %v4539_v13, 0.0 }
 0x40a   : > { %15136 = vmatprep.subr.mxu0 %v8587_v50  ;;  %v16052_v39 = vmax.f32 %v12335_v54, 0.0  ;;  %15207 = vmatprep.subr.mxu1 %v8589_v2  ;;  %v16054_v27 = vmax.f32 %v12406_v4, 0.0  ;;  %v8397_v50 = vld [vmem:[%s17525_s8 + $0x598] sm:$0xff]  ;;  %v8120_v2 = vmax.f32 %v4610_v61, 0.0  ;;  %v8399_v61 = vld [vmem:[%s17525_s8 + $0x5a8] sm:$0xff] }
 0x40b   : > { %15137 = vmatpush1.msra.mxu0 %v8586_v35  ;;  %15208 = vmatpush1.msra.mxu1 %v8588_v44  ;;  %v8396_v35 = vld [vmem:[%s17525_s8 + $0x590] sm:$0xff]  ;;  %v8987_v44 = vld [vmem:[%s17525_s8 + $0x1808] sm:$0xff]  ;;  %v8989_v4 = vld [vmem:[%s17525_s8 + $0x1818] sm:$0xff] }
 0x40c   : > { %15138 = vmatprep.subr.mxu0 %v8391_v0  ;;  %v16248_v18 = vsub.f32 %v8114_v22, %v16052_v39  ;;  %15209 = vmatprep.subr.mxu1 %v8393_v1  ;;  %v16250_v63 = vsub.f32 %v8116_v34, %v16054_v27  ;;  %v8986_v22 = vld [vmem:[%s17525_s8 + $0x1800] sm:$0xff]  ;;  %v8791_v39 = vld [vmem:[%s17525_s8 + $0x11e8] sm:$0xff]  ;;  %v21692_v27 = vld [vmem:[#allocation74_spill] sm:$0xff] }
 0x40d   : > { %15139 = vmatpush1.msra.mxu0 %v8390_v21  ;;  %15172 = vmatprep.mubr.f32.mxu0 %v21504_v5  ;;  %v8988_v21 = vld [vmem:[%s17525_s8 + $0x1810] sm:$0xff] }
 0x40e   : > { %15210 = vmatpush1.msra.mxu1 %v8392_v36  ;;  %v16444_v19 = vmul.f32 %v16248_v18, %v16248_v18  ;;  %15243 = vmatprep.mubr.f32.mxu1 %v21504_v5  ;;  %v16446_v48 = vmul.f32 %v16250_v63, %v16250_v63  ;;  %v4681_v18 = vadd.f32 %v21692_v27, %v19450_v51  ;;  %v8790_v63 = vld [vmem:[%s17525_s8 + $0x11e0] sm:$0xff]  ;;  %v8796_v27 = vld [vmem:[%s17525_s8 + $0x1210] sm:$0xff] }
 0x40f   : > { %17058 = vmatmul.mubr.msk.f32.vlgmr.msra.gmra.mxu0 %vm1060_vm0, %v20185_v31  ;;  %17059 = vmatmul.mubr.msk.f32.vlgmr.msra.gmra.mxu1 %vm1060_vm0, %v20185_v31 }
 0x410   : > { %15274 = vmatprep.subr.mxu0 %v8983_v43  ;;  %v16640_v14 = vadd.f32 %v16636_v26, %v16444_v19  ;;  %15345 = vmatprep.subr.mxu1 %v8985_v10  ;;  %v16642_v60 = vadd.f32 %v16638_v42, %v16446_v48  ;;  %v8592_v26 = vld [vmem:[%s17525_s8 + $0xbb0] sm:$0xff]  ;;  %v8394_v42 = vld [vmem:[%s17525_s8 + $0x580] sm:$0xff]  ;;  %v8793_v43 = vld [vmem:[%s17525_s8 + $0x11f8] sm:$0xff] }
 0x411   : > { %15275 = vmatpush1.msra.mxu0 %v8982_v37  ;;  %v12476_v23 = vpop.f32.mrf.mxu0  ;;  %15346 = vmatpush1.msra.mxu1 %v8984_v11  ;;  %v12547_v56 = vpop.f32.mrf.mxu1  ;;  %v21693_v19 = vld [vmem:[#allocation75_spill] sm:$0xff]  ;;  %v8595_v48 = vld [vmem:[%s17525_s8 + $0xbc8] sm:$0xff] }
 0x412   : > { %15276 = vmatprep.subr.mxu0 %v8787_v17  ;;  %v12477_v45 = vadd.f32 %v12476_v23, %v19450_v51  ;;  %15347 = vmatprep.subr.mxu1 %v8789_v53  ;;  %v12548_v62 = vadd.f32 %v12547_v56, %v19450_v51  ;;  %v4752_v11 = vadd.f32 %v21693_v19, %v19450_v51  ;;  %v8792_v17 = vld [vmem:[%s17525_s8 + $0x11f0] sm:$0xff]  ;;  %v8594_v53 = vld [vmem:[%s17525_s8 + $0xbc0] sm:$0xff]  ;;  %v8601_v19 = vld [vmem:[%s17525_s8 + $0xbf8] sm:$0xff] }
 0x413   : > { %15277 = vmatpush1.msra.mxu0 %v8786_v38  ;;  %15348 = vmatpush1.msra.mxu1 %v8788_v12  ;;  %v20497_v36 = vpop.f32.mrf.mxu0  ;;  %v20505_v37 = vpop.f32.mrf.mxu1  ;;  %v8398_v23 = vld [vmem:[%s17525_s8 + $0x5a0] sm:$0xff] }
 0x414   : > { %15278 = vmatprep.subr.mxu0 %v8591_v58  ;;  %v16056_v15 = vmax.f32 %v12477_v45, 0.0  ;;  %15349 = vmatprep.subr.mxu1 %v8593_v52  ;;  %v16058_v54 = vmax.f32 %v12548_v62, 0.0  ;;  %v8122_v58 = vmax.f32 %v4681_v18, 0.0  ;;  %v8400_v45 = vld [vmem:[%s17525_s8 + $0x5b0] sm:$0xff]  ;;  %v8599_v18 = vld [vmem:[%s17525_s8 + $0xbe8] sm:$0xff] }
 0x415   : > { %15279 = vmatpush1.msra.mxu0 %v8590_v6  ;;  %15350 = vmatpush1.msra.mxu1 %v8592_v26  ;;  %v8124_v6 = vmax.f32 %v4752_v11, 0.0  ;;  %v8598_v11 = vld [vmem:[%s17525_s8 + $0xbe0] sm:$0xff] }
 0x416   : > { %15280 = vmatprep.subr.mxu0 %v8395_v28  ;;  %v16252_v49 = vsub.f32 %v8118_v20, %v16056_v15  ;;  %15351 = vmatprep.subr.mxu1 %v8397_v50  ;;  %v16254_v0 = vsub.f32 %v8120_v2, %v16058_v54  ;;  %v8991_v28 = vld [vmem:[%s17525_s8 + $0x1828] sm:$0xff]  ;;  %v8993_v20 = vld [vmem:[%s17525_s8 + $0x1838] sm:$0xff]  ;;  %v8990_v50 = vld [vmem:[%s17525_s8 + $0x1820] sm:$0xff] }
 0x417   : > { %15281 = vmatpush1.msra.mxu0 %v8394_v42  ;;  %15314 = vmatprep.mubr.f32.mxu0 %v21504_v5  ;;  %v20525_v15 = vld [vmem:[#allocation7] sm:$0xff]  ;;  %v8992_v2 = vld [vmem:[%s17525_s8 + $0x1830] sm:$0xff] }
 0x418   : > { %15352 = vmatpush1.msra.mxu1 %v8396_v35  ;;  %v16448_v1 = vmul.f32 %v16252_v49, %v16252_v49  ;;  %15385 = vmatprep.mubr.f32.mxu1 %v21504_v5  ;;  %v16450_v34 = vmul.f32 %v16254_v0, %v16254_v0  ;;  %v8795_v35 = vld [vmem:[%s17525_s8 + $0x1208] sm:$0xff] }
 0x419   : > { %17060 = vmatmul.mubr.msk.f32.vlgmr.msra.gmra.mxu0 %vm1060_vm0, %v20185_v31  ;;  %17061 = vmatmul.mubr.msk.f32.vlgmr.msra.gmra.mxu1 %vm1060_vm0, %v20185_v31  ;;  %v8597_v31 = vld [vmem:[%s17525_s8 + $0xbd8] sm:$0xff] }
 0x41a   : > { %15416 = vmatprep.subr.mxu0 %v8987_v44  ;;  %v16644_v10 = vadd.f32 %v16640_v14, %v16448_v1  ;;  %15487 = vmatprep.subr.mxu1 %v8989_v4  ;;  %v16646_v9 = vadd.f32 %v16642_v60, %v16450_v34  ;;  %v8401_v60 = vld [vmem:[%s17525_s8 + $0x5b8] sm:$0xff] }
 0x41b   : > { %15417 = vmatpush1.msra.mxu0 %v8986_v22  ;;  %v12618_v13 = vpop.f32.mrf.mxu0  ;;  %15488 = vmatpush1.msra.mxu1 %v8988_v21  ;;  %v12689_v14 = vpop.f32.mrf.mxu1  ;;  %v21694_v44 = vld [vmem:[#allocation78_spill] sm:$0xff]  ;;  %v8794_v22 = vld [vmem:[%s17525_s8 + $0x1200] sm:$0xff] }
 0x41c   : > { %15418 = vmatprep.subr.mxu0 %v8791_v39  ;;  %v12619_v38 = vadd.f32 %v12618_v13, %v19450_v51  ;;  %15489 = vmatprep.subr.mxu1 %v8793_v43  ;;  %v12690_v12 = vadd.f32 %v12689_v14, %v19450_v51  ;;  %v4823_v0 = vadd.f32 %v21694_v44, %v19450_v51  ;;  %v8797_v4 = vld [vmem:[%s17525_s8 + $0x1218] sm:$0xff]  ;;  %v8403_v13 = vld [vmem:[%s17525_s8 + $0x5c8] sm:$0xff] }
 0x41d   : > { %15419 = vmatpush1.msra.mxu0 %v8790_v63  ;;  %15490 = vmatpush1.msra.mxu1 %v8792_v17  ;;  %v20531_v49 = vpop.f32.mrf.mxu0  ;;  %v20539_v21 = vpop.f32.mrf.mxu1  ;;  %v21696_v39 = vld [vmem:[#allocation79_spill] sm:$0xff] }
 0x41e   : > { %15420 = vmatprep.subr.mxu0 %v8595_v48  ;;  %v16060_v52 = vmax.f32 %v12619_v38, 0.0  ;;  %15491 = vmatprep.subr.mxu1 %v8597_v31  ;;  %v16062_v56 = vmax.f32 %v12690_v12, 0.0  ;;  %21695 = vst [vmem:[#allocation13_spill] sm:$0xff] %v20539_v21  ;;  %v4894_v34 = vadd.f32 %v21696_v39, %v19450_v51  ;;  %v8600_v48 = vld [vmem:[%s17525_s8 + $0xbf0] sm:$0xff]  ;;  %v8402_v38 = vld [vmem:[%s17525_s8 + $0x5c0] sm:$0xff] }
 0x41f   : > { %15421 = vmatpush1.msra.mxu0 %v8594_v53  ;;  %15492 = vmatpush1.msra.mxu1 %v8596_v55  ;;  %v8126_v53 = vmax.f32 %v4823_v0, 0.0  ;;  %v21700_v44 = vld [vmem:[#allocation83_spill] sm:$0xff]  ;;  %v21819_v21 = vld [vmem:[#allocation133_spill] sm:$0xff] }
 0x420   : > { %15422 = vmatprep.subr.mxu0 %v8399_v61  ;;  %v16256_v26 = vsub.f32 %v8122_v58, %v16060_v52  ;;  %15493 = vmatprep.subr.mxu1 %v8401_v60  ;;  %v16258_v62 = vsub.f32 %v8124_v6, %v16062_v56  ;;  %v8128_v55 = vmax.f32 %v4894_v34, 0.0  ;;  %v8404_v61 = vld [vmem:[%s17525_s8 + $0x5d0] sm:$0xff]  ;;  %v8995_v60 = vld [vmem:[%s17525_s8 + $0x1848] sm:$0xff]  ;;  %v8997_v52 = vld [vmem:[%s17525_s8 + $0x1858] sm:$0xff]  ;;  %v5036_v0 = vadd.f32 %v21700_v44, %v19450_v51 }
 0x421   : > { %15423 = vmatpush1.msra.mxu0 %v8398_v23  ;;  %15456 = vmatprep.mubr.f32.mxu0 %v21504_v5  ;;  %v8994_v6 = vld [vmem:[%s17525_s8 + $0x1840] sm:$0xff]  ;;  %v8996_v56 = vld [vmem:[%s17525_s8 + $0x1850] sm:$0xff] }
 0x422   : > { %15494 = vmatpush1.msra.mxu1 %v8400_v45  ;;  %v16452_v42 = vmul.f32 %v16256_v26, %v16256_v26  ;;  %15527 = vmatprep.mubr.f32.mxu1 %v21504_v5  ;;  %v16454_v54 = vmul.f32 %v16258_v62, %v16258_v62  ;;  %v8799_v26 = vld [vmem:[%s17525_s8 + $0x1228] sm:$0xff]  ;;  %v8804_v44 = vld [vmem:[%s17525_s8 + $0x1250] sm:$0xff] }
 0x423   : > { %17062 = vmatmul.mubr.msk.f32.vlgmr.msra.gmra.mxu0 %vm1060_vm0, %v20525_v15  ;;  %17063 = vmatmul.mubr.msk.f32.vlgmr.msra.gmra.mxu1 %vm1060_vm0, %v20525_v15 }
 0x424   : > { %15558 = vmatprep.subr.mxu0 %v8991_v28  ;;  %v16648_v1 = vadd.f32 %v16644_v10, %v16452_v42  ;;  %15629 = vmatprep.subr.mxu1 %v8993_v20  ;;  %v16650_v43 = vadd.f32 %v16646_v9, %v16454_v54  ;;  %v8405_v9 = vld [vmem:[%s17525_s8 + $0x5d8] sm:$0xff] }
 0x425   : > { %15559 = vmatpush1.msra.mxu0 %v8990_v50  ;;  %v12760_v63 = vpop.f32.mrf.mxu0  ;;  %15630 = vmatpush1.msra.mxu1 %v8992_v2  ;;  %v12831_v17 = vpop.f32.mrf.mxu1  ;;  %v21698_v20 = vld [vmem:[#allocation82_spill] sm:$0xff]  ;;  %v8798_v2 = vld [vmem:[%s17525_s8 + $0x1220] sm:$0xff] }
 0x426   : > { %15560 = vmatprep.subr.mxu0 %v8795_v35  ;;  %v12761_v10 = vadd.f32 %v12760_v63, %v19450_v51  ;;  %15631 = vmatprep.subr.mxu1 %v8797_v4  ;;  %v12832_v31 = vadd.f32 %v12831_v17, %v19450_v51  ;;  %v4965_v50 = vadd.f32 %v21698_v20, %v19450_v51  ;;  %v8801_v42 = vld [vmem:[%s17525_s8 + $0x1238] sm:$0xff]  ;;  %v8800_v4 = vld [vmem:[%s17525_s8 + $0x1230] sm:$0xff] }
 0x427   : > { %15561 = vmatpush1.msra.mxu0 %v8794_v22  ;;  %15632 = vmatpush1.msra.mxu1 %v8796_v27  ;;  %v20563_v62 = vpop.f32.mrf.mxu0  ;;  %v20571_v54 = vpop.f32.mrf.mxu1  ;;  %v8603_v22 = vld [vmem:[%s17525_s8 + $0xc08] sm:$0xff]  ;;  %v8605_v27 = vld [vmem:[%s17525_s8 + $0xc18] sm:$0xff] }
 0x428   : > { %15562 = vmatprep.subr.mxu0 %v8599_v18  ;;  %v16064_v14 = vmax.f32 %v12761_v10, 0.0  ;;  %15633 = vmatprep.subr.mxu1 %v8601_v19  ;;  %v16066_v12 = vmax.f32 %v12832_v31, 0.0  ;;  %21697 = vst [vmem:[#allocation14_spill] sm:$0xff] %v20563_v62  ;;  %21699 = vst [vmem:[#allocation15_spill] sm:$0xff] %v20571_v54  ;;  %v8602_v18 = vld [vmem:[%s17525_s8 + $0xc00] sm:$0xff]  ;;  %v8604_v19 = vld [vmem:[%s17525_s8 + $0xc10] sm:$0xff] }
 0x429   : > { %15563 = vmatpush1.msra.mxu0 %v8598_v11  ;;  %15634 = vmatpush1.msra.mxu1 %v8600_v48  ;;  %v8407_v11 = vld [vmem:[%s17525_s8 + $0x5e8] sm:$0xff]  ;;  %v8130_v17 = vmax.f32 %v4965_v50, 0.0  ;;  %v8406_v48 = vld [vmem:[%s17525_s8 + $0x5e0] sm:$0xff]  ;;  %v8132_v31 = vmax.f32 %v5036_v0, 0.0 }
 0x42a   : > { %15564 = vmatprep.subr.mxu0 %v8403_v13  ;;  %v16260_v58 = vsub.f32 %v8126_v53, %v16064_v14  ;;  %15635 = vmatprep.subr.mxu1 %v8405_v9  ;;  %v16262_v23 = vsub.f32 %v8128_v55, %v16066_v12  ;;  %v8408_v53 = vld [vmem:[%s17525_s8 + $0x5f0] sm:$0xff]  ;;  %v8999_v14 = vld [vmem:[%s17525_s8 + $0x1868] sm:$0xff]  ;;  %v8998_v12 = vld [vmem:[%s17525_s8 + $0x1860] sm:$0xff] }
 0x42b   : > { %15565 = vmatpush1.msra.mxu0 %v8402_v38  ;;  %15598 = vmatprep.mubr.f32.mxu0 %v21504_v5  ;;  %v8607_v0 = vld [vmem:[%s17525_s8 + $0xc28] sm:$0xff] }
 0x42c   : > { %15636 = vmatpush1.msra.mxu1 %v8404_v61  ;;  %v16456_v45 = vmul.f32 %v16260_v58, %v16260_v58  ;;  %15669 = vmatprep.mubr.f32.mxu1 %v21504_v5  ;;  %v16458_v28 = vmul.f32 %v16262_v23, %v16262_v23  ;;  %v9001_v61 = vld [vmem:[%s17525_s8 + $0x1878] sm:$0xff]  ;;  %v8803_v23 = vld [vmem:[%s17525_s8 + $0x1248] sm:$0xff] }
 0x42d   : > { %17064 = vmatmul.mubr.msk.f32.vlgmr.msra.gmra.mxu0 %vm1060_vm0, %v20525_v15  ;;  %17065 = vmatmul.mubr.msk.f32.vlgmr.msra.gmra.mxu1 %vm1060_vm0, %v20525_v15  ;;  %v21817_v62 = vld [vmem:[#allocation132_spill] sm:$0xff] }
 0x42e   : > { %15700 = vmatprep.subr.mxu0 %v8995_v60  ;;  %v16652_v35 = vadd.f32 %v16648_v1, %v16456_v45  ;;  %15771 = vmatprep.subr.mxu1 %v8997_v52  ;;  %v16654_v39 = vadd.f32 %v16650_v43, %v16458_v28  ;;  %v8409_v43 = vld [vmem:[%s17525_s8 + $0x5f8] sm:$0xff]  ;;  %v9000_v60 = vld [vmem:[%s17525_s8 + $0x1870] sm:$0xff]  ;;  %v8802_v28 = vld [vmem:[%s17525_s8 + $0x1240] sm:$0xff] }
 0x42f   : > { %15701 = vmatpush1.msra.mxu0 %v8994_v6  ;;  %v12902_v34 = vpop.f32.mrf.mxu0  ;;  %15772 = vmatpush1.msra.mxu1 %v8996_v56  ;;  %v12973_v63 = vpop.f32.mrf.mxu1  ;;  %v21702_v45 = vld [vmem:[#allocation86_spill] sm:$0xff] }
 0x430   : > { %15702 = vmatprep.subr.mxu0 %v8799_v26  ;;  %v12903_v1 = vadd.f32 %v12902_v34, %v19450_v51  ;;  %15773 = vmatprep.subr.mxu1 %v8801_v42  ;;  %v12974_v10 = vadd.f32 %v12973_v63, %v19450_v51  ;;  %v5107_v56 = vadd.f32 %v21702_v45, %v19450_v51  ;;  %v8805_v26 = vld [vmem:[%s17525_s8 + $0x1258] sm:$0xff]  ;;  %v8411_v63 = vld [vmem:[%s17525_s8 + $0x608] sm:$0xff] }
 0x431   : > { %15703 = vmatpush1.msra.mxu0 %v8798_v2  ;;  %15774 = vmatpush1.msra.mxu1 %v8800_v4  ;;  %v20595_v6 = vpop.f32.mrf.mxu0  ;;  %v20603_v50 = vpop.f32.mrf.mxu1  ;;  %v21704_v42 = vld [vmem:[#allocation87_spill] sm:$0xff] }
 0x432   : > { %15704 = vmatprep.subr.mxu0 %v8603_v22  ;;  %v16068_v13 = vmax.f32 %v12903_v1, 0.0  ;;  %15775 = vmatprep.subr.mxu1 %v8605_v27  ;;  %v16070_v9 = vmax.f32 %v12974_v10, 0.0  ;;  %21701 = vst [vmem:[#allocation16_spill] sm:$0xff] %v20595_v6  ;;  %21703 = vst [vmem:[#allocation17_spill] sm:$0xff] %v20603_v50  ;;  %v5178_v2 = vadd.f32 %v21704_v42, %v19450_v51  ;;  %v8609_v34 = vld [vmem:[%s17525_s8 + $0xc38] sm:$0xff]  ;;  %v8606_v27 = vld [vmem:[%s17525_s8 + $0xc20] sm:$0xff] }
 0x433   : > { %15705 = vmatpush1.msra.mxu0 %v8602_v18  ;;  %15776 = vmatpush1.msra.mxu1 %v8604_v19  ;;  %v8608_v1 = vld [vmem:[%s17525_s8 + $0xc30] sm:$0xff]  ;;  %v8410_v10 = vld [vmem:[%s17525_s8 + $0x600] sm:$0xff] }
 0x434   : > { %15706 = vmatprep.subr.mxu0 %v8407_v11  ;;  %v16264_v38 = vsub.f32 %v8130_v17, %v16068_v13  ;;  %15777 = vmatprep.subr.mxu1 %v8409_v43  ;;  %v16266_v55 = vsub.f32 %v8132_v31, %v16070_v9  ;;  %v8134_v11 = vmax.f32 %v5107_v56, 0.0  ;;  %v8136_v43 = vmax.f32 %v5178_v2, 0.0  ;;  %v21710_v56 = vld [vmem:[#allocation91_spill] sm:$0xff]  ;;  %v21711_v42 = vld [vmem:[#allocation48_spill] sm:$0xff] }
 0x435   : > { %15707 = vmatpush1.msra.mxu0 %v8406_v48  ;;  %15740 = vmatprep.mubr.f32.mxu0 %v21504_v5  ;;  %v8412_v48 = vld [vmem:[%s17525_s8 + $0x610] sm:$0xff]  ;;  %v20642_v2 = vadd.f32 %v21711_v42, %v19450_v51  ;;  %v21731_v42 = vld [vmem:[#allocation76_spill] sm:$0xff] }
 0x436   : > { %15778 = vmatpush1.msra.mxu1 %v8408_v53  ;;  %v16460_v58 = vmul.f32 %v16264_v38, %v16264_v38  ;;  %15811 = vmatprep.mubr.f32.mxu1 %v21504_v5  ;;  %v16462_v52 = vmul.f32 %v16266_v55, %v16266_v55  ;;  %v21705_v38 = vld [vmem:[#allocation44_spill] sm:$0xff]  ;;  %v21706_v55 = vld [vmem:[#allocation45_spill] sm:$0xff] }
 0x437   : > { %17066 = vmatmul.mubr.msk.f32.vlgmr.msra.gmra.mxu0 %vm1060_vm0, %v20525_v15  ;;  %17067 = vmatmul.mubr.msk.f32.vlgmr.msra.gmra.mxu1 %vm1060_vm0, %v20525_v15 }
 0x438   : > { %15842 = vmatprep.subr.mxu0 %v8999_v14  ;;  %v16656_v20 = vadd.f32 %v16652_v35, %v16460_v58  ;;  %15913 = vmatprep.subr.mxu1 %v9001_v61  ;;  %v16658_v4 = vadd.f32 %v16654_v39, %v16462_v52  ;;  %v8413_v39 = vld [vmem:[%s17525_s8 + $0x618] sm:$0xff]  ;;  %v20621_v14 = vadd.f32 %v21705_v38, %v19450_v51 }
 0x439   : > { %15843 = vmatpush1.msra.mxu0 %v8998_v12  ;;  %v13044_v22 = vpop.f32.mrf.mxu0  ;;  %15914 = vmatpush1.msra.mxu1 %v9000_v60  ;;  %v13115_v18 = vpop.f32.mrf.mxu1  ;;  %v20625_v61 = vadd.f32 %v21706_v55, %v19450_v51  ;;  %v21708_v60 = vld [vmem:[#allocation90_spill] sm:$0xff] }
 0x43a   : > { %15844 = vmatprep.subr.mxu0 %v8803_v23  ;;  %v13045_v35 = vadd.f32 %v13044_v22, %v19450_v51  ;;  %15915 = vmatprep.subr.mxu1 %v8805_v26  ;;  %v13116_v19 = vadd.f32 %v13115_v18, %v19450_v51  ;;  %v5249_v23 = vadd.f32 %v21708_v60, %v19450_v51  ;;  %v21714_v18 = vld [vmem:[#allocation53_spill] sm:$0xff]  ;;  %v21719_v60 = vld [vmem:[#allocation64_spill] sm:$0xff] }
 0x43b   : > { %15845 = vmatpush1.msra.mxu0 %v8802_v28  ;;  %15916 = vmatpush1.msra.mxu1 %v8804_v44  ;;  %v20630_v58 = vpop.f32.mrf.mxu0  ;;  %v20636_v45 = vpop.f32.mrf.mxu1  ;;  %v5320_v26 = vadd.f32 %v21710_v56, %v19450_v51  ;;  %v21720_v56 = vld [vmem:[#allocation65_spill] sm:$0xff] }
 0x43c   : > { %15846 = vmatprep.subr.mxu0 %v8607_v0  ;;  %v16072_v17 = vmax.f32 %v13045_v35, 0.0  ;;  %15917 = vmatprep.subr.mxu1 %v8609_v34  ;;  %v16074_v13 = vmax.f32 %v13116_v19, 0.0  ;;  %21707 = vst [vmem:[#allocation18_spill] sm:$0xff] %v20630_v58  ;;  %21709 = vst [vmem:[#allocation19_spill] sm:$0xff] %v20636_v45  ;;  %v21739_v34 = vld [vmem:[#allocation84_spill] sm:$0xff]  ;;  %v21741_v22 = vld [vmem:[#allocation85_spill] sm:$0xff] }
 0x43d   : > { %15847 = vmatpush1.msra.mxu0 %v8606_v27  ;;  %15918 = vmatpush1.msra.mxu1 %v8608_v1  ;;  %v20658_v1 = vadd.f32 %v21714_v18, %v19450_v51  ;;  %v21743_v45 = vld [vmem:[#allocation88_spill] sm:$0xff]  ;;  %v21745_v58 = vld [vmem:[#allocation89_spill] sm:$0xff] }
 0x43e   : > { %15848 = vmatprep.subr.mxu0 %v8411_v63  ;;  %v16268_v31 = vsub.f32 %v8134_v11, %v16072_v17  ;;  %15919 = vmatprep.subr.mxu1 %v8413_v39  ;;  %v16270_v53 = vsub.f32 %v8136_v43, %v16074_v13  ;;  %v8138_v63 = vmax.f32 %v5249_v23, 0.0  ;;  %v21715_v11 = vld [vmem:[#allocation56_spill] sm:$0xff]  ;;  %v8140_v43 = vmax.f32 %v5320_v26, 0.0 }
 0x43f   : > { %15849 = vmatpush1.msra.mxu0 %v8410_v10  ;;  %15882 = vmatprep.mubr.f32.mxu0 %v21504_v5  ;;  %v20662_v39 = vadd.f32 %v21715_v11, %v19450_v51  ;;  %v21716_v10 = vld [vmem:[#allocation57_spill] sm:$0xff]  ;;  %v20680_v23 = vadd.f32 %v21719_v60, %v19450_v51  ;;  %v20684_v26 = vadd.f32 %v21720_v56, %v19450_v51 }
 0x440   : > { %15920 = vmatpush1.msra.mxu1 %v8412_v48  ;;  %v16464_v9 = vmul.f32 %v16268_v31, %v16268_v31  ;;  %15953 = vmatprep.mubr.f32.mxu1 %v21504_v5  ;;  %v16466_v12 = vmul.f32 %v16270_v53, %v16270_v53  ;;  %v20666_v17 = vadd.f32 %v21716_v10, %v19450_v51  ;;  %v21717_v31 = vld [vmem:[#allocation60_spill] sm:$0xff] }
 0x441   : > { %17068 = vmatmul.mubr.msk.f32.vlgmr.msra.gmra.mxu0 %vm1060_vm0, %v20525_v15  ;;  %17069 = vmatmul.mubr.msk.f32.vlgmr.msra.gmra.mxu1 %vm1060_vm0, %v20525_v15  ;;  %v21712_v15 = vld [vmem:[#allocation49_spill] sm:$0xff]  ;;  %v20671_v53 = vadd.f32 %v21717_v31, %v19450_v51  ;;  %v21724_v31 = vld [vmem:[#allocation94_spill] sm:$0xff]  ;;  %v20756_v50 = vadd.f32 %v21745_v58, %v19450_v51 }
 0x442   : > { %v16660_v52 = vadd.f32 %v16656_v20, %v16464_v9  ;;  %v16662_v28 = vadd.f32 %v16658_v4, %v16466_v12  ;;  %v20649_v20 = vadd.f32 %v21712_v15, %v19450_v51  ;;  %v21713_v4 = vld [vmem:[#allocation52_spill] sm:$0xff]  ;;  %v21718_v9 = vld [vmem:[#allocation61_spill] sm:$0xff] }
 0x443   : > { %v13186_v5 = vpop.f32.mrf.mxu0  ;;  %v13257_v0 = vpop.f32.mrf.mxu1  ;;  %v20654_v35 = vadd.f32 %v21713_v4, %v19450_v51  ;;  %v20675_v38 = vadd.f32 %v21718_v9, %v19450_v51  ;;  %v5391_v9 = vadd.f32 %v21724_v31, %v19450_v51  ;;  %v21729_v31 = vld [vmem:[#allocation73_spill] sm:$0xff]  ;;  %21746 = vst [vmem:[#allocation31_spill] sm:$0xff] %v20756_v50  ;;  %v21765_v50 = vld [vmem:[#allocation104_spill] sm:$0xff] }
 0x444   : > { %v13187_v44 = vadd.f32 %v13186_v5, %v19450_v51  ;;  %v13258_v27 = vadd.f32 %v13257_v0, %v19450_v51  ;;  %v21721_v0 = vld [vmem:[#allocation68_spill] sm:$0xff] }
 0x445   : > { %v20690_v15 = vadd.f32 %v21721_v0, %v19450_v51  ;;  %v20698_v10 = vpop.f32.mrf.mxu0  ;;  %v8142_v13 = vmax.f32 %v5391_v9, 0.0 }
 0x446   : > { %v16076_v19 = vmax.f32 %v13187_v44, 0.0  ;;  %v16078_v48 = vmax.f32 %v13258_v27, 0.0  ;;  %21723 = vst [vmem:[#allocation20_spill] sm:$0xff] %v20698_v10  ;;  %v21735_v44 = vld [vmem:[#allocation80_spill] sm:$0xff] }
 0x447   : > { %v20732_v12 = vadd.f32 %v21735_v44, %v19450_v51  ;;  %v21747_v44 = vld [vmem:[#allocation92_spill] sm:$0xff] }
 0x448   : > { %v16272_v55 = vsub.f32 %v8138_v63, %v16076_v19  ;;  %v16274_v5 = vsub.f32 %v8140_v43, %v16078_v48  ;;  %v21722_v63 = vld [vmem:[#allocation69_spill] sm:$0xff]  ;;  %v21727_v43 = vld [vmem:[#allocation72_spill] sm:$0xff]  ;;  %v20762_v10 = vadd.f32 %v21747_v44, %v19450_v51  ;;  %v21754_v44 = vld [vmem:[#allocation98_spill] sm:$0xff] }
 0x449   : > { %v20696_v19 = vadd.f32 %v21722_v63, %v19450_v51  ;;  %v21726_v63 = vld [vmem:[#allocation95_spill] sm:$0xff]  ;;  %v20713_v48 = vadd.f32 %v21727_v43, %v19450_v51  ;;  %21736 = vst [vmem:[#allocation26_spill] sm:$0xff] %v20732_v12 }
 0x44a   : > { %v16468_v27 = vmul.f32 %v16272_v55, %v16272_v55  ;;  %v16470_v11 = vmul.f32 %v16274_v5, %v16274_v5  ;;  %v20704_v55 = vpop.f32.mrf.mxu1  ;;  %v5462_v18 = vadd.f32 %v21726_v63, %v19450_v51  ;;  %v20723_v63 = vadd.f32 %v21731_v42, %v19450_v51  ;;  %21748 = vst [vmem:[#allocation32_spill] sm:$0xff] %v20762_v10 }
 0x44b   : > { %21725 = vst [vmem:[#allocation21_spill] sm:$0xff] %v20704_v55  ;;  %21728 = vst [vmem:[#allocation22_spill] sm:$0xff] %v20713_v48  ;;  %v20740_v42 = vadd.f32 %v21739_v34, %v19450_v51  ;;  %v21749_v34 = vld [vmem:[#allocation93_spill] sm:$0xff]  ;;  %v21791_v48 = vld [vmem:[#allocation119_spill] sm:$0xff] }
 0x44c   : > { %v16664_v60 = vadd.f32 %v16660_v52, %v16468_v27  ;;  %v16666_v5 = vadd.f32 %v16662_v28, %v16470_v11  ;;  %v20717_v52 = vadd.f32 %v21729_v31, %v19450_v51  ;;  %21732 = vst [vmem:[#allocation24_spill] sm:$0xff] %v20723_v63  ;;  %v21733_v28 = vld [vmem:[#allocation77_spill] sm:$0xff]  ;;  %v8144_v55 = vmax.f32 %v5462_v18, 0.0 }
 0x44d   : > { %v13328_v4 = vpop.f32.mrf.mxu0  ;;  %v13399_v56 = vpop.f32.mrf.mxu1  ;;  %v20727_v11 = vadd.f32 %v21733_v28, %v19450_v51  ;;  %v21737_v31 = vld [vmem:[#allocation81_spill] sm:$0xff]  ;;  %21740 = vst [vmem:[#allocation28_spill] sm:$0xff] %v20740_v42  ;;  %v20744_v28 = vadd.f32 %v21741_v22, %v19450_v51  ;;  %v21759_v42 = vld [vmem:[#allocation100_spill] sm:$0xff] }
 0x44e   : > { %21730 = vst [vmem:[#allocation23_spill] sm:$0xff] %v20717_v52  ;;  %v13329_v27 = vadd.f32 %v13328_v4, %v19450_v51  ;;  %v13400_v43 = vadd.f32 %v13399_v56, %v19450_v51  ;;  %v20736_v4 = vadd.f32 %v21737_v31, %v19450_v51  ;;  %v20750_v31 = vadd.f32 %v21743_v45, %v19450_v51 }
 0x44f   : > { %21734 = vst [vmem:[#allocation25_spill] sm:$0xff] %v20727_v11  ;;  %21742 = vst [vmem:[#allocation29_spill] sm:$0xff] %v20744_v28  ;;  %v20770_v11 = vpop.f32.mrf.mxu0 }
 0x450   : > { %21738 = vst [vmem:[#allocation27_spill] sm:$0xff] %v20736_v4  ;;  %v16080_v0 = vmax.f32 %v13329_v27, 0.0  ;;  %v16082_v56 = vmax.f32 %v13400_v43, 0.0  ;;  %21744 = vst [vmem:[#allocation30_spill] sm:$0xff] %v20750_v31  ;;  %v20768_v27 = vadd.f32 %v21749_v34, %v19450_v51  ;;  %v21756_v34 = vld [vmem:[#allocation97_spill] sm:$0xff]  ;;  %v20791_v4 = vadd.f32 %v21759_v42, %v19450_v51  ;;  %v21769_v42 = vld [vmem:[#allocation106_spill] sm:$0xff] }
 0x451   : > { %21751 = vst [vmem:[#allocation34_spill] sm:$0xff] %v20770_v11  ;;  %v20784_v28 = vadd.f32 %v21756_v34, %v19450_v51  ;;  %v21767_v34 = vld [vmem:[#allocation105_spill] sm:$0xff] }
 0x452   : > { %v16276_v9 = vsub.f32 %v8142_v13, %v16080_v0  ;;  %v16278_v22 = vsub.f32 %v8144_v55, %v16082_v56  ;;  %21750 = vst [vmem:[#allocation33_spill] sm:$0xff] %v20768_v27  ;;  %v21752_v56 = vld [vmem:[#allocation96_spill] sm:$0xff]  ;;  %v20779_v13 = vpop.f32.mrf.mxu1  ;;  %21760 = vst [vmem:[#allocation38_spill] sm:$0xff] %v20791_v4  ;;  %v20812_v27 = vadd.f32 %v21767_v34, %v19450_v51 }
 0x453   : > { %v20775_v43 = vadd.f32 %v21752_v56, %v19450_v51  ;;  %21755 = vst [vmem:[#allocation36_spill] sm:$0xff] %v20779_v13  ;;  %21757 = vst [vmem:[#allocation37_spill] sm:$0xff] %v20784_v28  ;;  %v21763_v13 = vld [vmem:[#allocation102_spill] sm:$0xff]  ;;  %v21778_v34 = vld [vmem:[#allocation112_spill] sm:$0xff] }
 0x454   : > { %v16472_v45 = vmul.f32 %v16276_v9, %v16276_v9  ;;  %v16474_v58 = vmul.f32 %v16278_v22, %v16278_v22  ;;  %v5533_v9 = vadd.f32 %v21754_v44, %v19450_v51  ;;  %v21758_v22 = vld [vmem:[#allocation99_spill] sm:$0xff]  ;;  %21768 = vst [vmem:[#allocation41_spill] sm:$0xff] %v20812_v27 }
 0x455   : > { %21753 = vst [vmem:[#allocation35_spill] sm:$0xff] %v20775_v43  ;;  %v5604_v11 = vadd.f32 %v21758_v22, %v19450_v51  ;;  %v5675_v22 = vadd.f32 %v21763_v13, %v19450_v51 }
 0x456   : > { %v16668_v18 = vadd.f32 %v16664_v60, %v16472_v45  ;;  %v16670_v55 = vadd.f32 %v16666_v5, %v16474_v58  ;;  %v21761_v60 = vld [vmem:[#allocation101_spill] sm:$0xff]  ;;  %v21764_v5 = vld [vmem:[#allocation103_spill] sm:$0xff]  ;;  %v8146_v10 = vmax.f32 %v5533_v9, 0.0  ;;  %v20818_v9 = vadd.f32 %v21769_v42, %v19450_v51 }
 0x457   : > { %v13470_v31 = vpop.f32.mrf.mxu0  ;;  %v20795_v45 = vadd.f32 %v21761_v60, %v19450_v51  ;;  %v13541_v0 = vpop.f32.mrf.mxu1  ;;  %v5746_v58 = vadd.f32 %v21764_v5, %v19450_v51  ;;  %v20807_v60 = vadd.f32 %v21765_v50, %v19450_v51  ;;  %v8148_v63 = vmax.f32 %v5604_v11, 0.0 }
 0x458   : > { %v13471_v44 = vadd.f32 %v13470_v31, %v19450_v51  ;;  %v13542_v56 = vadd.f32 %v13541_v0, %v19450_v51  ;;  %v8150_v50 = vmax.f32 %v5675_v22, 0.0  ;;  %v21773_v0 = vld [vmem:[#allocation109_spill] sm:$0xff] }
 0x459   : > { %21762 = vst [vmem:[#allocation39_spill] sm:$0xff] %v20795_v45  ;;  %21766 = vst [vmem:[#allocation40_spill] sm:$0xff] %v20807_v60  ;;  %v8152_v52 = vmax.f32 %v5746_v58, 0.0  ;;  %v20831_v5 = vadd.f32 %v21773_v0, %v19450_v51  ;;  %v21776_v58 = vld [vmem:[#allocation111_spill] sm:$0xff]  ;;  %v20847_v0 = vadd.f32 %v21778_v34, %v19450_v51 }
 0x45a   : > { %v16084_v12 = vmax.f32 %v13471_v44, 0.0  ;;  %v16086_v13 = vmax.f32 %v13542_v56, 0.0  ;;  %v21770_v44 = vld [vmem:[#allocation107_spill] sm:$0xff]  ;;  %v21771_v56 = vld [vmem:[#allocation108_spill] sm:$0xff] }
 0x45b   : > { %v20822_v31 = vadd.f32 %v21770_v44, %v19450_v51  ;;  %v20827_v28 = vadd.f32 %v21771_v56, %v19450_v51  ;;  %21774 = vst [vmem:[#allocation43_spill] sm:$0xff] %v20831_v5  ;;  %v20842_v44 = vpop.f32.mrf.mxu0  ;;  %21779 = vst [vmem:[#allocation47_spill] sm:$0xff] %v20847_v0  ;;  %v21784_v45 = vld [vmem:[#allocation115_spill] sm:$0xff] }
 0x45c   : > { %v16280_v43 = vsub.f32 %v8146_v10, %v16084_v12  ;;  %v16282_v11 = vsub.f32 %v8148_v63, %v16086_v13  ;;  %v21775_v10 = vld [vmem:[#allocation110_spill] sm:$0xff]  ;;  %v20840_v63 = vadd.f32 %v21776_v58, %v19450_v51  ;;  %21777 = vst [vmem:[#allocation46_spill] sm:$0xff] %v20842_v44  ;;  %v20862_v56 = vadd.f32 %v21784_v45, %v19450_v51  ;;  %v21787_v45 = vld [vmem:[#allocation117_spill] sm:$0xff] }
 0x45d   : > { %21772 = vst [vmem:[#allocation42_spill] sm:$0xff] %v20827_v28  ;;  %v20836_v22 = vadd.f32 %v21775_v10, %v19450_v51  ;;  %v20853_v10 = vpop.f32.mrf.mxu1  ;;  %v21783_v58 = vld [vmem:[#allocation114_spill] sm:$0xff]  ;;  %v20875_v6 = vadd.f32 %v21787_v45, %v19450_v51  ;;  %v20888_v28 = vadd.f32 %v21791_v48, %v19450_v51  ;;  %v21798_v48 = vld [vmem:[#allocation123_spill] sm:$0xff] }
 0x45e   : > { %v16476_v42 = vmul.f32 %v16280_v43, %v16280_v43  ;;  %v16478_v13 = vmul.f32 %v16282_v11, %v16282_v11  ;;  %v21780_v43 = vld [vmem:[#allocation113_spill] sm:$0xff]  ;;  %21782 = vst [vmem:[#allocation51_spill] sm:$0xff] %v20853_v10  ;;  %v20858_v11 = vadd.f32 %v21783_v58, %v19450_v51  ;;  %v21797_v58 = vld [vmem:[#allocation122_spill] sm:$0xff] }
 0x45f   : > { %v20851_v12 = vadd.f32 %v21780_v43, %v19450_v51  ;;  %21788 = vst [vmem:[#allocation55_spill] sm:$0xff] %v20875_v6  ;;  %21792 = vst [vmem:[#allocation59_spill] sm:$0xff] %v20888_v28  ;;  %v21795_v43 = vld [vmem:[#allocation121_spill] sm:$0xff] }
 0x460   : > { %v16672_v27 = vadd.f32 %v16668_v18, %v16476_v42  ;;  %v16674_v4 = vadd.f32 %v16670_v55, %v16478_v13  ;;  %v21785_v18 = vld [vmem:[#allocation116_spill] sm:$0xff] }
 0x461   : > { %21781 = vst [vmem:[#allocation50_spill] sm:$0xff] %v20851_v12  ;;  %v13612_v34 = vpop.f32.mrf.mxu0  ;;  %v20868_v42 = vadd.f32 %v21785_v18, %v19450_v51  ;;  %v13683_v10 = vpop.f32.mrf.mxu1  ;;  %v21789_v18 = vld [vmem:[#allocation118_spill] sm:$0xff]  ;;  %v21793_v13 = vld [vmem:[#allocation120_spill] sm:$0xff]  ;;  %v20902_v12 = vadd.f32 %v21797_v58, %v19450_v51 }
 0x462   : > { %v13613_v60 = vadd.f32 %v13612_v34, %v19450_v51  ;;  %v13684_v55 = vadd.f32 %v13683_v10, %v19450_v51  ;;  %v20882_v44 = vadd.f32 %v21789_v18, %v19450_v51  ;;  %v20893_v0 = vadd.f32 %v21793_v13, %v19450_v51  ;;  %v21799_v13 = vld [vmem:[#allocation124_spill] sm:$0xff]  ;;  %v21803_v58 = vld [vmem:[#allocation126_spill] sm:$0xff] }
 0x463   : > { %21786 = vst [vmem:[#allocation54_spill] sm:$0xff] %v20868_v42  ;;  %v20897_v18 = vadd.f32 %v21795_v43, %v19450_v51  ;;  %v20911_v54 = vadd.f32 %v21799_v13, %v19450_v51  ;;  %v21801_v43 = vld [vmem:[#allocation125_spill] sm:$0xff]  ;;  %v20920_v6 = vadd.f32 %v21803_v58, %v19450_v51  ;;  %v20926_v42 = vpop.f32.mrf.mxu0  ;;  %v20934_v28 = vpop.f32.mrf.mxu1  ;;  %v20959_v13 = vadd.f32 %v21817_v62, %v19450_v51 }
 0x464   : > { %21790 = vst [vmem:[#allocation58_spill] sm:$0xff] %v20882_v44  ;;  %v16088_v34 = vmax.f32 %v13613_v60, 0.0  ;;  %v16090_v45 = vmax.f32 %v13684_v55, 0.0  ;;  %21794 = vst [vmem:[#allocation62_spill] sm:$0xff] %v20893_v0  ;;  %v20906_v55 = vadd.f32 %v21798_v48, %v19450_v51  ;;  %v21805_v48 = vld [vmem:[#allocation127_spill] sm:$0xff] }
 0x465   : > { %21796 = vst [vmem:[#allocation63_spill] sm:$0xff] %v20897_v18  ;;  %21800 = vst [vmem:[#allocation66_spill] sm:$0xff] %v20911_v54  ;;  %v21822_v54 = vld [vmem:[#allocation135_spill] sm:$0xff] }
 0x466   : > { %v16284_v60 = vsub.f32 %v8150_v50, %v16088_v34  ;;  %v16286_v10 = vsub.f32 %v8152_v52, %v16090_v45  ;;  %v20915_v50 = vadd.f32 %v21801_v43, %v19450_v51  ;;  %21804 = vst [vmem:[#allocation70_spill] sm:$0xff] %v20920_v6  ;;  %v20924_v52 = vadd.f32 %v21805_v48, %v19450_v51  ;;  %v21808_v43 = vld [vmem:[#allocation128_spill] sm:$0xff]  ;;  %v21811_v48 = vld [vmem:[#allocation129_spill] sm:$0xff] }
 0x467   : > { %21807 = vst [vmem:[#allocation74_spill] sm:$0xff] %v20926_v42  ;;  %21810 = vst [vmem:[#allocation78_spill] sm:$0xff] %v20934_v28 }
 0x468   : > { %21802 = vst [vmem:[#allocation67_spill] sm:$0xff] %v20915_v50  ;;  %v16480_v34 = vmul.f32 %v16284_v60, %v16284_v60  ;;  %21806 = vst [vmem:[#allocation71_spill] sm:$0xff] %v20924_v52  ;;  %v16482_v45 = vmul.f32 %v16286_v10, %v16286_v10  ;;  %v20932_v60 = vadd.f32 %v21808_v43, %v19450_v51  ;;  %v21813_v43 = vld [vmem:[#allocation130_spill] sm:$0xff] }
 0x469   : > { %v20940_v10 = vadd.f32 %v21811_v48, %v19450_v51  ;;  %v20946_v18 = vadd.f32 %v21813_v43, %v19450_v51  ;;  %v21815_v48 = vld [vmem:[#allocation131_spill] sm:$0xff]  ;;  %21818 = vst [vmem:[#allocation86_spill] sm:$0xff] %v20959_v13  ;;  %v20966_v50 = vadd.f32 %v21819_v21, %v19450_v51 }
 0x46a   : > { %21809 = vst [vmem:[#allocation75_spill] sm:$0xff] %v20932_v60  ;;  %v16676_v5 = vadd.f32 %v16672_v27, %v16480_v34  ;;  %v16678_v42 = vadd.f32 %v16674_v4, %v16482_v45  ;;  %v20953_v0 = vadd.f32 %v21815_v48, %v19450_v51  ;;  %v11556_v48 = vadd.f32 %v20281_v7, %v19450_v51  ;;  %v21821_v60 = vld [vmem:[#allocation134_spill] sm:$0xff]  ;;  %v21826_v7 = vld [vmem:[#allocation137_spill] sm:$0xff] }
 0x46b   : > { %21812 = vst [vmem:[#allocation79_spill] sm:$0xff] %v20940_v10  ;;  %v13754_v44 = vpop.f32.mrf.mxu0  ;;  %21814 = vst [vmem:[#allocation82_spill] sm:$0xff] %v20946_v18  ;;  %v13825_v34 = vpop.f32.mrf.mxu1  ;;  %v20973_v62 = vadd.f32 %v21821_v60, %v19450_v51  ;;  %v21824_v10 = vld [vmem:[#allocation136_spill] sm:$0xff]  ;;  %v21828_v60 = vmax.f32 %v20822_v31, 0.0 }
 0x46c   : > { %v13755_v27 = vadd.f32 %v13754_v44, %v19450_v51  ;;  %21816 = vst [vmem:[#allocation83_spill] sm:$0xff] %v20953_v0  ;;  %v13826_v4 = vadd.f32 %v13825_v34, %v19450_v51  ;;  %v11485_v44 = vadd.f32 %v20273_v3, %v19450_v51  ;;  %21820 = vst [vmem:[#allocation87_spill] sm:$0xff] %v20966_v50  ;;  %v16031_v0 = vmax.f32 %v11556_v48, 0.0  ;;  %v21833_v48 = vld [vmem:[#allocation141_spill] sm:$0xff] }
 0x46d   : > { %v20977_v3 = vadd.f32 %v21822_v54, %v19450_v51  ;;  %v20984_v28 = vadd.f32 %v21824_v10, %v19450_v51  ;;  %v21829_v54 = vld [vmem:[#allocation138_spill] sm:$0xff]  ;;  %v21830_v10 = vld [vmem:[#allocation139_spill] sm:$0xff]  ;;  %v21002_v6 = vpop.f32.mrf.mxu0 }
 0x46e   : > { %v16092_v43 = vmax.f32 %v13755_v27, 0.0  ;;  %v16094_v34 = vmax.f32 %v13826_v4, 0.0  ;;  %v21823_v27 = vmax.f32 %v20818_v9, 0.0  ;;  %v20988_v4 = vadd.f32 %v21826_v7, %v19450_v51 }
 0x46f   : > { %21825 = vst [vmem:[#allocation44_spill] sm:$0xff] %v20984_v28  ;;  %v20995_v52 = vadd.f32 %v21829_v54, %v19450_v51  ;;  %v16029_v9 = vmax.f32 %v11485_v44, 0.0  ;;  %v21000_v21 = vadd.f32 %v21830_v10, %v19450_v51  ;;  %v21839_v28 = vld [vmem:[#allocation144_spill] sm:$0xff] }
 0x470   : > { %v16288_v58 = vsub.f32 %v21823_v27, %v16092_v43  ;;  %21827 = vst [vmem:[#allocation45_spill] sm:$0xff] %v20988_v4  ;;  %v16290_v45 = vsub.f32 %v21828_v60, %v16094_v34  ;;  %v21831_v60 = vld [vmem:[#allocation140_spill] sm:$0xff]  ;;  %v21835_v34 = vld [vmem:[#allocation142_spill] sm:$0xff]  ;;  %v21837_v4 = vld [vmem:[#allocation143_spill] sm:$0xff] }
 0x471   : > { %v21008_v54 = vadd.f32 %v21831_v60, %v19450_v51  ;;  %v21021_v13 = vadd.f32 %v21835_v34, %v19450_v51  ;;  %v21841_v34 = vmax.f32 %v20836_v22, 0.0 }
 0x472   : > { %v16484_v43 = vmul.f32 %v16288_v58, %v16288_v58  ;;  %v16486_v7 = vmul.f32 %v16290_v45, %v16290_v45  ;;  %v21010_v58 = vpop.f32.mrf.mxu1  ;;  %v21016_v45 = vadd.f32 %v21833_v48, %v19450_v51  ;;  %v21029_v48 = vadd.f32 %v21837_v4, %v19450_v51  ;;  %v21840_v4 = vld [vmem:[#allocation145_spill] sm:$0xff] }
 0x473   : > { %21832 = vst [vmem:[#allocation90_spill] sm:$0xff] %v21008_v54  ;;  %v21044_v10 = vadd.f32 %v21840_v4, %v19450_v51  ;;  %v11840_v4 = vadd.f32 %v20345_v33, %v19450_v51 }
 0x474   : > { %v16680_v44 = vadd.f32 %v16676_v5, %v16484_v43  ;;  %21834 = vst [vmem:[#allocation91_spill] sm:$0xff] %v21016_v45  ;;  %v16682_v18 = vadd.f32 %v16678_v42, %v16486_v7  ;;  %v21836_v5 = vmax.f32 %v20621_v14, 0.0  ;;  %v21838_v42 = vmax.f32 %v20625_v61, 0.0 }
 0x475   : > { %v13896_v50 = vpop.f32.mrf.mxu0  ;;  %v13967_v27 = vpop.f32.mrf.mxu1  ;;  %v21037_v14 = vadd.f32 %v21839_v28, %v19450_v51  ;;  %v11698_v61 = vadd.f32 %v20313_v25, %v19450_v51  ;;  %v11769_v28 = vadd.f32 %v20337_v30, %v19450_v51  ;;  %v21842_v45 = vmax.f32 %v20840_v63, 0.0 }
 0x476   : > { %v16225_v43 = vsub.f32 %v21836_v5, %v16029_v9  ;;  %v13897_v60 = vadd.f32 %v13896_v50, %v19450_v51  ;;  %v16227_v7 = vsub.f32 %v21838_v42, %v16031_v0  ;;  %v13968_v31 = vadd.f32 %v13967_v27, %v19450_v51 }
 0x477   : > { %v11627_v50 = vadd.f32 %v20305_v24, %v19450_v51  ;;  %v16035_v22 = vmax.f32 %v11698_v61, 0.0  ;;  %v16037_v63 = vmax.f32 %v11769_v28, 0.0  ;;  %v12124_v61 = vadd.f32 %v20409_v57, %v19450_v51 }
 0x478   : > { %v16096_v9 = vmax.f32 %v13897_v60, 0.0  ;;  %v16098_v0 = vmax.f32 %v13968_v31, 0.0  ;;  %v16421_v42 = vmul.f32 %v16225_v43, %v16225_v43  ;;  %v16423_v5 = vmul.f32 %v16227_v7, %v16227_v7 }
 0x479   : > { %v16033_v31 = vmax.f32 %v11627_v50, 0.0  ;;  %v11911_v43 = vadd.f32 %v20369_v16, %v19450_v51 }
 0x47a   : > { %v16292_v24 = vsub.f32 %v21841_v34, %v16096_v9  ;;  %v16294_v54 = vsub.f32 %v21842_v45, %v16098_v0  ;;  %v11982_v34 = vadd.f32 %v20377_v32, %v19450_v51  ;;  %v21064_v9 = vpop.f32.mrf.mxu0  ;;  %v16617_v33 = vadd.f32 %v20252_v41, %v16421_v42  ;;  %v21069_v0 = vpop.f32.mrf.mxu1 }
 0x47b   : > { %v12053_v45 = vadd.f32 %v20401_v59, %v19450_v51  ;;  %v16619_v16 = vadd.f32 %v20258_v8, %v16423_v5  ;;  %v16041_v60 = vmax.f32 %v11911_v43, 0.0  ;;  %v12195_v41 = vadd.f32 %v20433_v29, %v19450_v51 }
 0x47c   : > { %v16488_v27 = vmul.f32 %v16292_v24, %v16292_v24  ;;  %v16490_v7 = vmul.f32 %v16294_v54, %v16294_v54  ;;  %v16039_v24 = vmax.f32 %v11840_v4, 0.0  ;;  %v21843_v54 = vmax.f32 %v20642_v2, 0.0 }
 0x47d   : > { %v16043_v8 = vmax.f32 %v11982_v34, 0.0  ;;  %v12266_v5 = vadd.f32 %v20441_v47, %v19450_v51  ;;  %v16045_v28 = vmax.f32 %v12053_v45, 0.0  ;;  %v12337_v4 = vadd.f32 %v20465_v40, %v19450_v51 }
 0x47e   : > { %v16684_v50 = vadd.f32 %v16680_v44, %v16488_v27  ;;  %v16686_v30 = vadd.f32 %v16682_v18, %v16490_v7  ;;  %v16229_v25 = vsub.f32 %v21843_v54, %v16033_v31  ;;  %v21844_v27 = vmax.f32 %v20649_v20, 0.0 }
 0x47f   : > { %v14038_v32 = vpop.f32.mrf.mxu0  ;;  %v14109_v44 = vpop.f32.mrf.mxu1  ;;  %v21845_v18 = vmax.f32 %v20654_v35, 0.0  ;;  %v21846_v31 = vmax.f32 %v20658_v1, 0.0  ;;  %v16047_v7 = vmax.f32 %v12124_v61, 0.0  ;;  %v12408_v20 = vadd.f32 %v20473_v46, %v19450_v51 }
 0x480   : > { %v14039_v59 = vadd.f32 %v14038_v32, %v19450_v51  ;;  %v16231_v42 = vsub.f32 %v21844_v27, %v16035_v22  ;;  %v14110_v57 = vadd.f32 %v14109_v44, %v19450_v51  ;;  %v16425_v34 = vmul.f32 %v16229_v25, %v16229_v25 }
 0x481   : > { %v16233_v2 = vsub.f32 %v21845_v18, %v16037_v63  ;;  %v16235_v43 = vsub.f32 %v21846_v31, %v16039_v24  ;;  %v21847_v47 = vmax.f32 %v20662_v39, 0.0  ;;  %v16049_v54 = vmax.f32 %v12195_v41, 0.0 }
 0x482   : > { %v16100_v29 = vmax.f32 %v14039_v59, 0.0  ;;  %v16102_v22 = vmax.f32 %v14110_v57, 0.0  ;;  %v21848_v35 = vmax.f32 %v20858_v11, 0.0  ;;  %v16427_v45 = vmul.f32 %v16231_v42, %v16231_v42  ;;  %v21104_v42 = vpop.f32.mrf.mxu0 }
 0x483   : > { %v16237_v32 = vsub.f32 %v21847_v47, %v16041_v60  ;;  %v21849_v40 = vmax.f32 %v20666_v17, 0.0  ;;  %v16051_v44 = vmax.f32 %v12266_v5, 0.0  ;;  %v21850_v1 = vmax.f32 %v20862_v56, 0.0 }
 0x484   : > { %v16296_v63 = vsub.f32 %v21848_v35, %v16100_v29  ;;  %v16429_v61 = vmul.f32 %v16233_v2, %v16233_v2  ;;  %v21851_v46 = vmax.f32 %v20671_v53, 0.0  ;;  %v16053_v25 = vmax.f32 %v12337_v4, 0.0  ;;  %v21108_v2 = vpop.f32.mrf.mxu1 }
 0x485   : > { %v16239_v59 = vsub.f32 %v21849_v40, %v16043_v8  ;;  %v16298_v24 = vsub.f32 %v21850_v1, %v16102_v22  ;;  %v16431_v39 = vmul.f32 %v16235_v43, %v16235_v43  ;;  %v21852_v60 = vmax.f32 %v20675_v38, 0.0 }
 0x486   : > { %v16241_v27 = vsub.f32 %v21851_v46, %v16045_v28  ;;  %v16492_v57 = vmul.f32 %v16296_v63, %v16296_v63  ;;  %v16055_v11 = vmax.f32 %v12408_v20, 0.0  ;;  %v16621_v17 = vadd.f32 %v16617_v33, %v16425_v34 }
 0x487   : > { %v16243_v41 = vsub.f32 %v21852_v60, %v16047_v7  ;;  %v16494_v18 = vmul.f32 %v16298_v24, %v16298_v24  ;;  %v16433_v8 = vmul.f32 %v16237_v32, %v16237_v32  ;;  %v21853_v5 = vmax.f32 %v20680_v23, 0.0  ;;  %v21857_v24 = vld [vmem:[#allocation58_spill] sm:$0xff] }
 0x488   : > { %v16688_v29 = vadd.f32 %v16684_v50, %v16492_v57  ;;  %v16623_v53 = vadd.f32 %v16619_v16, %v16427_v45  ;;  %v16435_v28 = vmul.f32 %v16239_v59, %v16239_v59  ;;  %v21854_v4 = vmax.f32 %v20684_v26, 0.0  ;;  %v21859_v57 = vld [vmem:[#allocation13_spill] sm:$0xff] }
 0x489   : > { %v16245_v56 = vsub.f32 %v21853_v5, %v16049_v54  ;;  %v16690_v43 = vadd.f32 %v16686_v30, %v16494_v18  ;;  %v14180_v38 = vpop.f32.mrf.mxu0  ;;  %v16625_v7 = vadd.f32 %v16621_v17, %v16429_v61  ;;  %v16437_v20 = vmul.f32 %v16241_v27, %v16241_v27  ;;  %v14251_v34 = vpop.f32.mrf.mxu1 }
 0x48a   : > { %v16247_v31 = vsub.f32 %v21854_v4, %v16051_v44  ;;  %v21855_v22 = vmax.f32 %v20690_v15, 0.0  ;;  %v14181_v33 = vadd.f32 %v14180_v38, %v19450_v51  ;;  %v16627_v23 = vadd.f32 %v16623_v53, %v16431_v39  ;;  %v21860_v39 = vld [vmem:[#allocation59_spill] sm:$0xff] }
 0x48b   : > { %v16439_v32 = vmul.f32 %v16243_v41, %v16243_v41  ;;  %v21856_v50 = vmax.f32 %v20696_v19, 0.0  ;;  %v14252_v16 = vadd.f32 %v14251_v34, %v19450_v51  ;;  %v16629_v35 = vadd.f32 %v16625_v7, %v16433_v8  ;;  %v21134_v4 = vpop.f32.mrf.mxu0  ;;  %v21864_v7 = vld [vmem:[#allocation16_spill] sm:$0xff] }
 0x48c   : > { %v16249_v47 = vsub.f32 %v21855_v22, %v16053_v25  ;;  %v16441_v26 = vmul.f32 %v16245_v56, %v16245_v56  ;;  %v12479_v30 = vadd.f32 %v20497_v36, %v19450_v51  ;;  %v16104_v63 = vmax.f32 %v14181_v33, 0.0 }
 0x48d   : > { %v16251_v54 = vsub.f32 %v21856_v50, %v16055_v11  ;;  %v16631_v45 = vadd.f32 %v16627_v23, %v16435_v28  ;;  %v16443_v40 = vmul.f32 %v16247_v31, %v16247_v31  ;;  %v12550_v15 = vadd.f32 %v20505_v37, %v19450_v51  ;;  %v21862_v37 = vld [vmem:[#allocation14_spill] sm:$0xff]  ;;  %v21865_v23 = vld [vmem:[#allocation17_spill] sm:$0xff] }
 0x48e   : > { %v16106_v59 = vmax.f32 %v14252_v16, 0.0  ;;  %v16633_v44 = vadd.f32 %v16629_v35, %v16437_v20  ;;  %v16445_v1 = vmul.f32 %v16249_v47, %v16249_v47  ;;  %v12621_v19 = vadd.f32 %v20531_v49, %v19450_v51  ;;  %v21863_v49 = vld [vmem:[#allocation15_spill] sm:$0xff]  ;;  %v21138_v47 = vpop.f32.mrf.mxu1  ;;  %v21866_v16 = vld [vmem:[#allocation22_spill] sm:$0xff] }
 0x48f   : > { %v21858_v61 = vmax.f32 %v21857_v24, 0.0  ;;  %v16635_v27 = vadd.f32 %v16631_v45, %v16439_v32  ;;  %v16447_v25 = vmul.f32 %v16251_v54, %v16251_v54  ;;  %v12692_v36 = vadd.f32 %v21859_v57, %v19450_v51  ;;  %v21874_v57 = vld [vmem:[#allocation20_spill] sm:$0xff] }
 0x490   : > { %v21861_v60 = vmax.f32 %v21860_v39, 0.0  ;;  %v16637_v11 = vadd.f32 %v16633_v44, %v16441_v26  ;;  %v16057_v18 = vmax.f32 %v12479_v30, 0.0  ;;  %v12763_v17 = vadd.f32 %v21862_v37, %v19450_v51  ;;  %v21877_v37 = vld [vmem:[#allocation21_spill] sm:$0xff] }
 0x491   : > { %v16300_v46 = vsub.f32 %v21858_v61, %v16104_v63  ;;  %v16639_v5 = vadd.f32 %v16635_v27, %v16443_v40  ;;  %v16059_v56 = vmax.f32 %v12550_v15, 0.0  ;;  %v12834_v53 = vadd.f32 %v21863_v49, %v19450_v51  ;;  %v21868_v63 = vld [vmem:[#allocation18_spill] sm:$0xff]  ;;  %v21872_v61 = vld [vmem:[#allocation24_spill] sm:$0xff] }
 0x492   : > { %v16302_v41 = vsub.f32 %v21861_v60, %v16106_v59  ;;  %v16641_v31 = vadd.f32 %v16637_v11, %v16445_v1  ;;  %v16061_v38 = vmax.f32 %v12621_v19, 0.0  ;;  %v12905_v20 = vadd.f32 %v21864_v7, %v19450_v51  ;;  %v21871_v19 = vld [vmem:[#allocation19_spill] sm:$0xff]  ;;  %v21875_v60 = vld [vmem:[#allocation25_spill] sm:$0xff] }
 0x493   : > { %v16496_v8 = vmul.f32 %v16300_v46, %v16300_v46  ;;  %v16643_v33 = vadd.f32 %v16639_v5, %v16447_v25  ;;  %v16063_v34 = vmax.f32 %v12692_v36, 0.0  ;;  %v12976_v32 = vadd.f32 %v21865_v23, %v19450_v51  ;;  %v14322_v54 = vpop.f32.mrf.mxu0  ;;  %v14393_v15 = vpop.f32.mrf.mxu1  ;;  %v21881_v23 = vld [vmem:[#allocation27_spill] sm:$0xff] }
 0x494   : > { %v16498_v28 = vmul.f32 %v16302_v41, %v16302_v41  ;;  %v21867_v35 = vmax.f32 %v21866_v16, 0.0  ;;  %v16065_v30 = vmax.f32 %v12763_v17, 0.0  ;;  %v13047_v45 = vadd.f32 %v21868_v63, %v19450_v51 }
 0x495   : > { %v16692_v22 = vadd.f32 %v16688_v29, %v16496_v8  ;;  %v14323_v40 = vadd.f32 %v14322_v54, %v19450_v51  ;;  %v21869_v29 = vld [vmem:[#allocation23_spill] sm:$0xff]  ;;  %v16067_v1 = vmax.f32 %v12834_v53, 0.0  ;;  %v13118_v24 = vadd.f32 %v21871_v19, %v19450_v51 }
 0x496   : > { %v16694_v50 = vadd.f32 %v16690_v43, %v16498_v28  ;;  %v16253_v26 = vsub.f32 %v21867_v35, %v16057_v18  ;;  %v21870_v59 = vmax.f32 %v21869_v29, 0.0  ;;  %v14394_v43 = vadd.f32 %v14393_v15, %v19450_v51 }
 0x497   : > { %v21873_v46 = vmax.f32 %v21872_v61, 0.0  ;;  %v16069_v25 = vmax.f32 %v12905_v20, 0.0  ;;  %v13189_v36 = vadd.f32 %v21874_v57, %v19450_v51  ;;  %v16108_v39 = vmax.f32 %v14323_v40, 0.0  ;;  %v21884_v40 = vld [vmem:[#allocation28_spill] sm:$0xff] }
 0x498   : > { %v16255_v44 = vsub.f32 %v21870_v59, %v16059_v56  ;;  %v21876_v41 = vmax.f32 %v21875_v60, 0.0  ;;  %v16071_v18 = vmax.f32 %v12976_v32, 0.0  ;;  %v13260_v17 = vadd.f32 %v21877_v37, %v19450_v51  ;;  %v21878_v56 = vld [vmem:[#allocation26_spill] sm:$0xff] }
 0x499   : > { %v16257_v27 = vsub.f32 %v21873_v46, %v16061_v38  ;;  %v16110_v8 = vmax.f32 %v14394_v43, 0.0  ;;  %v16449_v5 = vmul.f32 %v16253_v26, %v16253_v26  ;;  %v21879_v49 = vmax.f32 %v21878_v56, 0.0  ;;  %v21892_v56 = vld [vmem:[#allocation32_spill] sm:$0xff] }
 0x49a   : > { %v16259_v11 = vsub.f32 %v21876_v41, %v16063_v34  ;;  %v16073_v28 = vmax.f32 %v13047_v45, 0.0  ;;  %v21880_v38 = vmax.f32 %v20902_v12, 0.0  ;;  %v16451_v20 = vmul.f32 %v16255_v44, %v16255_v44  ;;  %v21172_v44 = vpop.f32.mrf.mxu0 }
 0x49b   : > { %v16261_v53 = vsub.f32 %v21879_v49, %v16065_v30  ;;  %v21882_v54 = vmax.f32 %v21881_v23, 0.0  ;;  %v16075_v35 = vmax.f32 %v13118_v24, 0.0  ;;  %v21883_v34 = vmax.f32 %v20906_v55, 0.0  ;;  %v21886_v30 = vld [vmem:[#allocation29_spill] sm:$0xff]  ;;  %v21888_v24 = vld [vmem:[#allocation30_spill] sm:$0xff] }
 0x49c   : > { %v16304_v7 = vsub.f32 %v21880_v38, %v16108_v39  ;;  %v16453_v63 = vmul.f32 %v16257_v27, %v16257_v27  ;;  %v21885_v15 = vmax.f32 %v21884_v40, 0.0  ;;  %v16077_v26 = vmax.f32 %v13189_v36, 0.0  ;;  %v21176_v27 = vpop.f32.mrf.mxu1  ;;  %v21890_v36 = vld [vmem:[#allocation31_spill] sm:$0xff] }
 0x49d   : > { %v16263_v16 = vsub.f32 %v21882_v54, %v16067_v1  ;;  %v16306_v32 = vsub.f32 %v21883_v34, %v16110_v8  ;;  %v16455_v19 = vmul.f32 %v16259_v11, %v16259_v11  ;;  %v21887_v45 = vmax.f32 %v21886_v30, 0.0  ;;  %v14464_v8 = vpop.f32.mrf.mxu0  ;;  %v21899_v30 = vld [vmem:[#allocation70_spill] sm:$0xff] }
 0x49e   : > { %v16265_v29 = vsub.f32 %v21885_v15, %v16069_v25  ;;  %v16500_v59 = vmul.f32 %v16304_v7, %v16304_v7  ;;  %v16079_v12 = vmax.f32 %v13260_v17, 0.0  ;;  %v16645_v46 = vadd.f32 %v16641_v31, %v16449_v5  ;;  %v14535_v5 = vpop.f32.mrf.mxu1 }
 0x49f   : > { %v16267_v43 = vsub.f32 %v21887_v45, %v16071_v18  ;;  %v16502_v61 = vmul.f32 %v16306_v32, %v16306_v32  ;;  %v16457_v1 = vmul.f32 %v16261_v53, %v16261_v53  ;;  %v21889_v57 = vmax.f32 %v21888_v24, 0.0  ;;  %v21902_v24 = vld [vmem:[#allocation71_spill] sm:$0xff] }
 0x4a0   : > { %v16696_v39 = vadd.f32 %v16692_v22, %v16500_v59  ;;  %v16647_v60 = vadd.f32 %v16643_v33, %v16451_v20  ;;  %v16459_v25 = vmul.f32 %v16263_v16, %v16263_v16  ;;  %v21891_v41 = vmax.f32 %v21890_v36, 0.0  ;;  %v21894_v22 = vld [vmem:[#allocation33_spill] sm:$0xff]  ;;  %v21898_v59 = vld [vmem:[#allocation46_spill] sm:$0xff] }
 0x4a1   : > { %v16269_v55 = vsub.f32 %v21889_v57, %v16073_v28  ;;  %v16698_v37 = vadd.f32 %v16694_v50, %v16502_v61  ;;  %v16649_v18 = vadd.f32 %v16645_v46, %v16453_v63  ;;  %v16461_v17 = vmul.f32 %v16265_v29, %v16265_v29  ;;  %v21896_v50 = vld [vmem:[#allocation34_spill] sm:$0xff]  ;;  %v21897_v63 = vld [vmem:[#allocation36_spill] sm:$0xff]  ;;  %v21901_v46 = vld [vmem:[#allocation51_spill] sm:$0xff] }
 0x4a2   : > { %v16271_v11 = vsub.f32 %v21891_v41, %v16075_v35  ;;  %v21893_v49 = vmax.f32 %v21892_v56, 0.0  ;;  %v14465_v31 = vadd.f32 %v14464_v8, %v19450_v51  ;;  %v16651_v53 = vadd.f32 %v16647_v60, %v16455_v19  ;;  %v21904_v36 = vld [vmem:[#allocation74_spill] sm:$0xff] }
 0x4a3   : > { %v16463_v28 = vmul.f32 %v16267_v43, %v16267_v43  ;;  %v21895_v7 = vmax.f32 %v21894_v22, 0.0  ;;  %v14536_v33 = vadd.f32 %v14535_v5, %v19450_v51  ;;  %v16653_v20 = vadd.f32 %v16649_v18, %v16457_v1  ;;  %v21206_v22 = vpop.f32.mrf.mxu1 }
 0x4a4   : > { %v16273_v38 = vsub.f32 %v21893_v49, %v16077_v26  ;;  %v16465_v54 = vmul.f32 %v16269_v55, %v16269_v55  ;;  %v13331_v16 = vadd.f32 %v21896_v50, %v19450_v51  ;;  %v16112_v35 = vmax.f32 %v14465_v31, 0.0  ;;  %v21906_v50 = vld [vmem:[#allocation35_spill] sm:$0xff] }
 0x4a5   : > { %v16275_v23 = vsub.f32 %v21895_v7, %v16079_v12  ;;  %v16655_v34 = vadd.f32 %v16651_v53, %v16459_v25  ;;  %v16467_v32 = vmul.f32 %v16271_v11, %v16271_v11  ;;  %v13402_v40 = vadd.f32 %v21897_v63, %v19450_v51 }
 0x4a6   : > { %v16114_v15 = vmax.f32 %v14536_v33, 0.0  ;;  %v16657_v29 = vadd.f32 %v16653_v20, %v16461_v17  ;;  %v16469_v26 = vmul.f32 %v16273_v38, %v16273_v38  ;;  %v13473_v19 = vadd.f32 %v21898_v59, %v19450_v51  ;;  %v21905_v17 = vld [vmem:[#allocation78_spill] sm:$0xff]  ;;  %v21202_v38 = vpop.f32.mrf.mxu0 }
 0x4a7   : > { %v21900_v45 = vmax.f32 %v21899_v30, 0.0  ;;  %v16659_v12 = vadd.f32 %v16655_v34, %v16463_v28  ;;  %v16471_v61 = vmul.f32 %v16275_v23, %v16275_v23  ;;  %v13544_v1 = vadd.f32 %v21901_v46, %v19450_v51 }
 0x4a8   : > { %v21903_v57 = vmax.f32 %v21902_v24, 0.0  ;;  %v16661_v60 = vadd.f32 %v16657_v29, %v16465_v54  ;;  %v16081_v25 = vmax.f32 %v13331_v16, 0.0  ;;  %v13615_v41 = vadd.f32 %v21904_v36, %v19450_v51  ;;  %v14606_v54 = vpop.f32.mrf.mxu0  ;;  %v21916_v36 = vld [vmem:[#allocation82_spill] sm:$0xff] }
 0x4a9   : > { %v16308_v43 = vsub.f32 %v21900_v45, %v16112_v35  ;;  %v16663_v8 = vadd.f32 %v16659_v12, %v16467_v32  ;;  %v16083_v18 = vmax.f32 %v13402_v40, 0.0  ;;  %v13686_v56 = vadd.f32 %v21905_v17, %v19450_v51 }
 0x4aa   : > { %v16310_v55 = vsub.f32 %v21903_v57, %v16114_v15  ;;  %v16665_v31 = vadd.f32 %v16661_v60, %v16469_v26  ;;  %v16085_v5 = vmax.f32 %v13473_v19, 0.0  ;;  %v13757_v53 = vadd.f32 %v21002_v6, %v19450_v51  ;;  %v14677_v6 = vpop.f32.mrf.mxu1 }
 0x4ab   : > { %v16504_v11 = vmul.f32 %v16308_v43, %v16308_v43  ;;  %v16667_v7 = vadd.f32 %v16663_v8, %v16471_v61  ;;  %v16087_v23 = vmax.f32 %v13544_v1, 0.0  ;;  %v13828_v33 = vadd.f32 %v21010_v58, %v19450_v51  ;;  %v21912_v43 = vld [vmem:[#allocation39_spill] sm:$0xff] }
 0x4ac   : > { %v16506_v49 = vmul.f32 %v16310_v55, %v16310_v55  ;;  %v21907_v16 = vmax.f32 %v21906_v50, 0.0  ;;  %v16089_v34 = vmax.f32 %v13615_v41, 0.0  ;;  %v13899_v32 = vadd.f32 %v21064_v9, %v19450_v51 }
 0x4ad   : > { %v16700_v28 = vadd.f32 %v16696_v39, %v16504_v11  ;;  %v14607_v63 = vadd.f32 %v14606_v54, %v19450_v51  ;;  %v21908_v39 = vld [vmem:[#allocation37_spill] sm:$0xff]  ;;  %v16091_v29 = vmax.f32 %v13686_v56, 0.0  ;;  %v13970_v26 = vadd.f32 %v21069_v0, %v19450_v51  ;;  %v21914_v0 = vld [vmem:[#allocation40_spill] sm:$0xff] }
 0x4ae   : > { %v16702_v20 = vadd.f32 %v16698_v37, %v16506_v49  ;;  %v16277_v35 = vsub.f32 %v21907_v16, %v16081_v25  ;;  %v21909_v40 = vmax.f32 %v21908_v39, 0.0  ;;  %v14678_v58 = vadd.f32 %v14677_v6, %v19450_v51  ;;  %v21910_v37 = vld [vmem:[#allocation38_spill] sm:$0xff]  ;;  %v21920_v49 = vld [vmem:[#allocation83_spill] sm:$0xff] }
 0x4af   : > { %v21911_v59 = vmax.f32 %v21910_v37, 0.0  ;;  %v16093_v30 = vmax.f32 %v13757_v53, 0.0  ;;  %v14041_v45 = vadd.f32 %v21104_v42, %v19450_v51  ;;  %v16116_v9 = vmax.f32 %v14607_v63, 0.0 }
 0x4b0   : > { %v16279_v15 = vsub.f32 %v21909_v40, %v16083_v18  ;;  %v21913_v12 = vmax.f32 %v21912_v43, 0.0  ;;  %v16095_v46 = vmax.f32 %v13828_v33, 0.0  ;;  %v14112_v1 = vadd.f32 %v21108_v2, %v19450_v51  ;;  %v21918_v18 = vld [vmem:[#allocation41_spill] sm:$0xff]  ;;  %v21922_v33 = vld [vmem:[#allocation42_spill] sm:$0xff]  ;;  %v14608_v40 = vpop.f32.mrf.mxu0 }
 0x4b1   : > { %v16281_v19 = vsub.f32 %v21911_v59, %v16085_v5  ;;  %v16118_v24 = vmax.f32 %v14678_v58, 0.0  ;;  %v16473_v57 = vmul.f32 %v16277_v35, %v16277_v35  ;;  %v21915_v55 = vmax.f32 %v21914_v0, 0.0 }
 0x4b2   : > { %v16283_v61 = vsub.f32 %v21913_v12, %v16087_v23  ;;  %v16097_v25 = vmax.f32 %v13899_v32, 0.0  ;;  %v21917_v41 = vmax.f32 %v21916_v36, 0.0  ;;  %v16475_v8 = vmul.f32 %v16279_v15, %v16279_v15  ;;  %v21928_v12 = vld [vmem:[#allocation50_spill] sm:$0xff] }
 0x4b3   : > { %v16285_v60 = vsub.f32 %v21915_v55, %v16089_v34  ;;  %v21919_v42 = vmax.f32 %v21918_v18, 0.0  ;;  %v16099_v56 = vmax.f32 %v13970_v26, 0.0  ;;  %v21921_v5 = vmax.f32 %v21920_v49, 0.0  ;;  %v21924_v34 = vld [vmem:[#allocation43_spill] sm:$0xff] }
 0x4b4   : > { %v16312_v11 = vsub.f32 %v21917_v41, %v16116_v9  ;;  %v16477_v23 = vmul.f32 %v16281_v19, %v16281_v19  ;;  %v21923_v2 = vmax.f32 %v21922_v33, 0.0  ;;  %v16101_v50 = vmax.f32 %v14041_v45, 0.0  ;;  %v14679_v9 = vpop.f32.mrf.mxu1 }
 0x4b5   : > { %v16287_v17 = vsub.f32 %v21919_v42, %v16091_v29  ;;  %v16314_v53 = vsub.f32 %v21921_v5, %v16118_v24  ;;  %v16479_v35 = vmul.f32 %v16283_v61, %v16283_v61  ;;  %v21925_v32 = vmax.f32 %v21924_v34, 0.0  ;;  %v21926_v29 = vld [vmem:[#allocation47_spill] sm:$0xff]  ;;  %v14748_v61 = vpop.f32.mrf.mxu0 }
 0x4b6   : > { %v16289_v54 = vsub.f32 %v21923_v2, %v16093_v30  ;;  %v16508_v16 = vmul.f32 %v16312_v11, %v16312_v11  ;;  %v16103_v6 = vmax.f32 %v14112_v1, 0.0  ;;  %v16669_v15 = vadd.f32 %v16665_v31, %v16473_v57  ;;  %v14819_v57 = vpop.f32.mrf.mxu1 }
 0x4b7   : > { %v16291_v63 = vsub.f32 %v21925_v32, %v16095_v46  ;;  %v16510_v39 = vmul.f32 %v16314_v53, %v16314_v53  ;;  %v16481_v58 = vmul.f32 %v16285_v60, %v16285_v60  ;;  %v21927_v26 = vmax.f32 %v21926_v29, 0.0  ;;  %v21930_v46 = vld [vmem:[#allocation54_spill] sm:$0xff] }
 0x4b8   : > { %v16704_v59 = vadd.f32 %v16700_v28, %v16508_v16  ;;  %v16671_v19 = vadd.f32 %v16667_v7, %v16475_v8  ;;  %v16483_v43 = vmul.f32 %v16287_v17, %v16287_v17  ;;  %v21929_v30 = vmax.f32 %v21928_v12, 0.0 }
 0x4b9   : > { %v16293_v37 = vsub.f32 %v21927_v26, %v16097_v25  ;;  %v16706_v24 = vadd.f32 %v16702_v20, %v16510_v39  ;;  %v16673_v0 = vadd.f32 %v16669_v15, %v16477_v23  ;;  %v16485_v55 = vmul.f32 %v16289_v54, %v16289_v54  ;;  %v21932_v25 = vld [vmem:[#allocation55_spill] sm:$0xff] }
 0x4ba   : > { %v16295_v45 = vsub.f32 %v21929_v30, %v16099_v56  ;;  %v21931_v1 = vmax.f32 %v21930_v46, 0.0  ;;  %v14749_v31 = vadd.f32 %v14748_v61, %v19450_v51  ;;  %v16675_v60 = vadd.f32 %v16671_v19, %v16479_v35 }
 0x4bb   : > { %v16487_v41 = vmul.f32 %v16291_v63, %v16291_v63  ;;  %v21933_v28 = vmax.f32 %v21932_v25, 0.0  ;;  %v14820_v7 = vadd.f32 %v14819_v57, %v19450_v51  ;;  %v16677_v8 = vadd.f32 %v16673_v0, %v16481_v58  ;;  %v14750_v58 = vpop.f32.mrf.mxu0 }
 0x4bc   : > { %v16297_v36 = vsub.f32 %v21931_v1, %v16101_v50  ;;  %v16489_v18 = vmul.f32 %v16293_v37, %v16293_v37  ;;  %v14183_v20 = vadd.f32 %v21134_v4, %v19450_v51  ;;  %v16120_v42 = vmax.f32 %v14749_v31, 0.0 }
 0x4bd   : > { %v16299_v11 = vsub.f32 %v21933_v28, %v16103_v6  ;;  %v16679_v17 = vadd.f32 %v16675_v60, %v16483_v43  ;;  %v16491_v56 = vmul.f32 %v16295_v45, %v16295_v45  ;;  %v14254_v49 = vadd.f32 %v21138_v47, %v19450_v51  ;;  %v21936_v45 = vld [vmem:[#allocation62_spill] sm:$0xff] }
 0x4be   : > { %v16122_v5 = vmax.f32 %v14820_v7, 0.0  ;;  %v16681_v53 = vadd.f32 %v16677_v8, %v16485_v55  ;;  %v16493_v23 = vmul.f32 %v16297_v36, %v16297_v36  ;;  %v14325_v33 = vadd.f32 %v21172_v44, %v19450_v51  ;;  %v21938_v36 = vld [vmem:[#allocation63_spill] sm:$0xff] }
 0x4bf   : > { %v21934_v2 = vmax.f32 %v20973_v62, 0.0  ;;  %v16683_v50 = vadd.f32 %v16679_v17, %v16487_v41  ;;  %v16495_v16 = vmul.f32 %v16299_v11, %v16299_v11  ;;  %v14396_v4 = vadd.f32 %v21176_v27, %v19450_v51 }
 0x4c0   : > { %v21935_v35 = vmax.f32 %v20977_v3, 0.0  ;;  %v16685_v32 = vadd.f32 %v16681_v53, %v16489_v18  ;;  %v16105_v63 = vmax.f32 %v14183_v20, 0.0  ;;  %v14467_v47 = vadd.f32 %v21202_v38, %v19450_v51  ;;  %v14821_v3 = vpop.f32.mrf.mxu1  ;;  %v14890_v38 = vpop.f32.mrf.mxu0  ;;  %v21942_v18 = vld [vmem:[#allocation67_spill] sm:$0xff] }
 0x4c1   : > { %v16316_v54 = vsub.f32 %v21934_v2, %v16120_v42  ;;  %v16687_v39 = vadd.f32 %v16683_v50, %v16491_v56  ;;  %v16107_v15 = vmax.f32 %v14254_v49, 0.0  ;;  %v14538_v62 = vadd.f32 %v21206_v22, %v19450_v51  ;;  %v21944_v53 = vld [vmem:[#allocation75_spill] sm:$0xff] }
 0x4c2   : > { %v16318_v34 = vsub.f32 %v21935_v35, %v16122_v5  ;;  %v16689_v29 = vadd.f32 %v16685_v32, %v16493_v23  ;;  %v16109_v26 = vmax.f32 %v14325_v33, 0.0  ;;  %v14609_v27 = vadd.f32 %v14608_v40, %v19450_v51  ;;  %v14961_v1 = vpop.f32.mrf.mxu1 }
 0x4c3   : > { %v16512_v6 = vmul.f32 %v16316_v54, %v16316_v54  ;;  %v16691_v19 = vadd.f32 %v16687_v39, %v16495_v16  ;;  %v16111_v43 = vmax.f32 %v14396_v4, 0.0  ;;  %v14680_v12 = vadd.f32 %v14679_v9, %v19450_v51  ;;  %v14892_v9 = vpop.f32.mrf.mxu0  ;;  %v21947_v4 = vld [vmem:[#allocation79_spill] sm:$0xff]  ;;  %v21950_v39 = vld [vmem:[#allocation86_spill] sm:$0xff] }
 0x4c4   : > { %v16514_v44 = vmul.f32 %v16318_v34, %v16318_v34  ;;  %v21937_v61 = vmax.f32 %v21936_v45, 0.0  ;;  %v16113_v55 = vmax.f32 %v14467_v47, 0.0  ;;  %v14751_v22 = vadd.f32 %v14750_v58, %v19450_v51  ;;  %v14963_v8 = vpop.f32.mrf.mxu1 }
 0x4c5   : > { %v16708_v37 = vadd.f32 %v16704_v59, %v16512_v6  ;;  %v14891_v46 = vadd.f32 %v14890_v38, %v19450_v51  ;;  %v21939_v31 = vmax.f32 %v21938_v36, 0.0  ;;  %v16115_v59 = vmax.f32 %v14538_v62, 0.0 }
 0x4c6   : > { %v16710_v30 = vadd.f32 %v16706_v24, %v16514_v44  ;;  %v16301_v0 = vsub.f32 %v21937_v61, %v16105_v63  ;;  %v14822_v57 = vadd.f32 %v14821_v3, %v19450_v51  ;;  %v14962_v60 = vadd.f32 %v14961_v1, %v19450_v51  ;;  %v21940_v24 = vld [vmem:[#allocation66_spill] sm:$0xff]  ;;  %v21954_v61 = vld [vmem:[#allocation44_spill] sm:$0xff]  ;;  %v21956_v1 = vld [vmem:[#allocation45_spill] sm:$0xff] }
 0x4c7   : > { %v16303_v40 = vsub.f32 %v21939_v31, %v16107_v15  ;;  %v21941_v41 = vmax.f32 %v21940_v24, 0.0  ;;  %v16117_v28 = vmax.f32 %v14609_v27, 0.0  ;;  %v16124_v11 = vmax.f32 %v14891_v46, 0.0  ;;  %v21952_v27 = vld [vmem:[#allocation87_spill] sm:$0xff] }
 0x4c8   : > { %v14893_v7 = vadd.f32 %v14892_v9, %v19450_v51  ;;  %v21943_v20 = vmax.f32 %v21942_v18, 0.0  ;;  %v16119_v17 = vmax.f32 %v14680_v12, 0.0  ;;  %v16126_v56 = vmax.f32 %v14962_v60, 0.0  ;;  %v21958_v9 = vld [vmem:[#allocation90_spill] sm:$0xff] }
 0x4c9   : > { %v16305_v25 = vsub.f32 %v21941_v41, %v16109_v26  ;;  %v14964_v49 = vadd.f32 %v14963_v8, %v19450_v51  ;;  %v16497_v5 = vmul.f32 %v16301_v0, %v16301_v0  ;;  %v21945_v23 = vmax.f32 %v21944_v53, 0.0 }
 0x4ca   : > { %v16307_v42 = vsub.f32 %v21943_v20, %v16111_v43  ;;  %v16121_v2 = vmax.f32 %v14751_v22, 0.0  ;;  %v21946_v54 = vmax.f32 %v20995_v52, 0.0  ;;  %v16499_v16 = vmul.f32 %v16303_v40, %v16303_v40 }
 0x4cb   : > { %v16309_v33 = vsub.f32 %v21945_v23, %v16113_v55  ;;  %v21948_v35 = vmax.f32 %v21947_v4, 0.0  ;;  %v16123_v32 = vmax.f32 %v14822_v57, 0.0  ;;  %v21949_v63 = vmax.f32 %v21000_v21, 0.0 }
 0x4cc   : > { %v16320_v50 = vsub.f32 %v21946_v54, %v16124_v11  ;;  %v16501_v6 = vmul.f32 %v16305_v25, %v16305_v25  ;;  %v21951_v15 = vmax.f32 %v21950_v39, 0.0  ;;  %v16125_v58 = vmax.f32 %v14893_v7, 0.0  ;;  %v21960_v7 = vld [vmem:[#allocation91_spill] sm:$0xff] }
 0x4cd   : > { %v16311_v34 = vsub.f32 %v21948_v35, %v16115_v59  ;;  %v16322_v47 = vsub.f32 %v21949_v63, %v16126_v56  ;;  %v16503_v26 = vmul.f32 %v16307_v42, %v16307_v42  ;;  %v21953_v3 = vmax.f32 %v21952_v27, 0.0  ;;  %v15032_v59 = vpop.f32.mrf.mxu0 }
 0x4ce   : > { %v16313_v62 = vsub.f32 %v21951_v15, %v16117_v28  ;;  %v16516_v44 = vmul.f32 %v16320_v50, %v16320_v50  ;;  %v16127_v12 = vmax.f32 %v14964_v49, 0.0  ;;  %v16693_v38 = vadd.f32 %v16689_v29, %v16497_v5  ;;  %v15103_v29 = vpop.f32.mrf.mxu1 }
 0x4cf   : > { %v16315_v43 = vsub.f32 %v21953_v3, %v16119_v17  ;;  %v16518_v52 = vmul.f32 %v16322_v47, %v16322_v47  ;;  %v16505_v45 = vmul.f32 %v16309_v33, %v16309_v33  ;;  %v21955_v0 = vmax.f32 %v21954_v61, 0.0  ;;  %v15034_v18 = vpop.f32.mrf.mxu0 }
 0x4d0   : > { %v16712_v22 = vadd.f32 %v16708_v37, %v16516_v44  ;;  %v16695_v21 = vadd.f32 %v16691_v19, %v16499_v16  ;;  %v16507_v46 = vmul.f32 %v16311_v34, %v16311_v34  ;;  %v21957_v36 = vmax.f32 %v21956_v1, 0.0  ;;  %v15105_v56 = vpop.f32.mrf.mxu1  ;;  %v21969_v1 = vld [vmem:[#allocation149_spill] sm:$0xff] }
 0x4d1   : > { %v16317_v55 = vsub.f32 %v21955_v0, %v16121_v2  ;;  %v16714_v40 = vadd.f32 %v16710_v30, %v16518_v52  ;;  %v16697_v57 = vadd.f32 %v16693_v38, %v16501_v6  ;;  %v16509_v60 = vmul.f32 %v16313_v62, %v16313_v62  ;;  %v15174_v0 = vpop.f32.mrf.mxu0 }
 0x4d2   : > { %v16319_v31 = vsub.f32 %v21957_v36, %v16123_v32  ;;  %v21959_v24 = vmax.f32 %v21958_v9, 0.0  ;;  %v15033_v25 = vadd.f32 %v15032_v59, %v19450_v51  ;;  %v16699_v28 = vadd.f32 %v16695_v21, %v16503_v26 }
 0x4d3   : > { %v16511_v11 = vmul.f32 %v16315_v43, %v16315_v43  ;;  %v21961_v8 = vmax.f32 %v21960_v7, 0.0  ;;  %v15104_v19 = vadd.f32 %v15103_v29, %v19450_v51  ;;  %v16701_v20 = vadd.f32 %v16697_v57, %v16505_v45  ;;  %v15176_v59 = vpop.f32.mrf.mxu0 }
 0x4d4   : > { %v16321_v41 = vsub.f32 %v21959_v24, %v16125_v58  ;;  %v16513_v42 = vmul.f32 %v16317_v55, %v16317_v55  ;;  %v16128_v30 = vmax.f32 %v15033_v25, 0.0  ;;  %v15035_v17 = vadd.f32 %v15034_v18, %v19450_v51 }
 0x4d5   : > { %v16323_v37 = vsub.f32 %v21961_v8, %v16127_v12  ;;  %v16703_v49 = vadd.f32 %v16699_v28, %v16507_v46  ;;  %v16515_v5 = vmul.f32 %v16319_v31, %v16319_v31  ;;  %v16130_v53 = vmax.f32 %v15104_v19, 0.0  ;;  %v15245_v46 = vpop.f32.mrf.mxu1 }
 0x4d6   : > { %v15106_v23 = vadd.f32 %v15105_v56, %v19450_v51  ;;  %v16705_v33 = vadd.f32 %v16701_v20, %v16509_v60  ;;  %v16517_v2 = vmul.f32 %v16321_v41, %v16321_v41  ;;  %v21962_v54 = vmax.f32 %v21021_v13, 0.0  ;;  %v21966_v13 = vld [vmem:[#allocation146_spill] sm:$0xff] }
 0x4d7   : > { %v16129_v16 = vmax.f32 %v15035_v17, 0.0  ;;  %v16707_v4 = vadd.f32 %v16703_v49, %v16511_v11  ;;  %v16519_v35 = vmul.f32 %v16323_v37, %v16323_v37  ;;  %v21963_v34 = vmax.f32 %v21029_v48, 0.0  ;;  %v21967_v48 = vld [vmem:[#allocation147_spill] sm:$0xff]  ;;  %v15247_v9 = vpop.f32.mrf.mxu1 }
 0x4d8   : > { %v16324_v50 = vsub.f32 %v21962_v54, %v16128_v30  ;;  %v16131_v63 = vmax.f32 %v15106_v23, 0.0  ;;  %v16709_v47 = vadd.f32 %v16705_v33, %v16513_v42  ;;  %v21964_v39 = vmax.f32 %v21037_v14, 0.0  ;;  %v21968_v14 = vld [vmem:[#allocation148_spill] sm:$0xff]  ;;  %v21970_v30 = vld [vmem:[#allocation150_spill] sm:$0xff] }
 0x4d9   : > { %v16326_v32 = vsub.f32 %v21963_v34, %v16130_v53  ;;  %v16711_v62 = vadd.f32 %v16707_v4, %v16515_v5  ;;  %v21965_v58 = vmax.f32 %v21044_v10, 0.0  ;;  %v7237_v27 = vadd.f32 %v21966_v13, %v19450_v51  ;;  %v21971_v5 = vld [vmem:[#allocation151_spill] sm:$0xff]  ;;  %v21972_v54 = vld [vmem:[#allocation152_spill] sm:$0xff]  ;;  %v21973_v34 = vld [vmem:[#allocation153_spill] sm:$0xff] }
 0x4da   : > { %v16520_v6 = vmul.f32 %v16324_v50, %v16324_v50  ;;  %v16325_v15 = vsub.f32 %v21964_v39, %v16129_v16  ;;  %v16713_v3 = vadd.f32 %v16709_v47, %v16517_v2  ;;  %v7308_v12 = vadd.f32 %v21967_v48, %v19450_v51  ;;  %v15316_v2 = vpop.f32.mrf.mxu0 }
 0x4db   : > { %v16522_v44 = vmul.f32 %v16326_v32, %v16326_v32  ;;  %v16327_v26 = vsub.f32 %v21965_v58, %v16131_v63  ;;  %v16715_v38 = vadd.f32 %v16711_v62, %v16519_v35  ;;  %v7239_v55 = vadd.f32 %v21968_v14, %v19450_v51  ;;  %v15387_v35 = vpop.f32.mrf.mxu1  ;;  %v21974_v14 = vld [vmem:[#allocation154_spill] sm:$0xff] }
 0x4dc   : > { %v16716_v43 = vadd.f32 %v16712_v22, %v16520_v6  ;;  %v16521_v52 = vmul.f32 %v16325_v15, %v16325_v15  ;;  %v15175_v10 = vadd.f32 %v15174_v0, %v19450_v51  ;;  %v7310_v36 = vadd.f32 %v21969_v1, %v19450_v51  ;;  %v15318_v6 = vpop.f32.mrf.mxu0 }
 0x4dd   : > { %v16718_v45 = vadd.f32 %v16714_v40, %v16522_v44  ;;  %v16523_v61 = vmul.f32 %v16327_v26, %v16327_v26  ;;  %v15246_v22 = vadd.f32 %v15245_v46, %v19450_v51  ;;  %v8194_v57 = vmax.f32 %v7237_v27, 0.0  ;;  %v15389_v44 = vpop.f32.mrf.mxu1  ;;  %v21975_v46 = vld [vmem:[#allocation155_spill] sm:$0xff] }
 0x4de   : > { %v16717_v21 = vadd.f32 %v16713_v3, %v16521_v52  ;;  %v16132_v60 = vmax.f32 %v15175_v10, 0.0  ;;  %v15177_v40 = vadd.f32 %v15176_v59, %v19450_v51  ;;  %v8196_v24 = vmax.f32 %v7308_v12, 0.0  ;;  %v21976_v59 = vld [vmem:[#allocation156_spill] sm:$0xff] }
 0x4df   : > { %v16719_v31 = vadd.f32 %v16715_v38, %v16523_v61  ;;  %v16134_v41 = vmax.f32 %v15246_v22, 0.0  ;;  %v15248_v25 = vadd.f32 %v15247_v9, %v19450_v51  ;;  %v8195_v29 = vmax.f32 %v7239_v55, 0.0 }
 0x4e0   : > { %v16328_v28 = vsub.f32 %v8194_v57, %v16132_v60  ;;  %v16133_v11 = vmax.f32 %v15177_v40, 0.0  ;;  %v8197_v7 = vmax.f32 %v7310_v36, 0.0  ;;  %v7379_v17 = vadd.f32 %v21970_v30, %v19450_v51 }
 0x4e1   : > { %v16330_v8 = vsub.f32 %v8196_v24, %v16134_v41  ;;  %v16135_v37 = vmax.f32 %v15248_v25, 0.0  ;;  %v7450_v53 = vadd.f32 %v21971_v5, %v19450_v51  ;;  %v7381_v50 = vadd.f32 %v21972_v54, %v19450_v51  ;;  %v21977_v24 = vld [vmem:[#allocation157_spill] sm:$0xff]  ;;  %v21978_v54 = vld [vmem:[#allocation158_spill] sm:$0xff] }
 0x4e2   : > { %v16524_v19 = vmul.f32 %v16328_v28, %v16328_v28  ;;  %v16329_v18 = vsub.f32 %v8195_v29, %v16133_v11  ;;  %v15317_v4 = vadd.f32 %v15316_v2, %v19450_v51  ;;  %v7452_v32 = vadd.f32 %v21973_v34, %v19450_v51 }
 0x4e3   : > { %v16526_v20 = vmul.f32 %v16330_v8, %v16330_v8  ;;  %v16331_v42 = vsub.f32 %v8197_v7, %v16135_v37  ;;  %v15388_v47 = vadd.f32 %v15387_v35, %v19450_v51  ;;  %v8198_v39 = vmax.f32 %v7379_v17, 0.0  ;;  %v15458_v22 = vpop.f32.mrf.mxu0  ;;  %v15529_v9 = vpop.f32.mrf.mxu1  ;;  %v21979_v35 = vld [vmem:[#allocation159_spill] sm:$0xff] }
 0x4e4   : > { %v16720_v56 = vadd.f32 %v16716_v43, %v16524_v19  ;;  %v16525_v49 = vmul.f32 %v16329_v18, %v16329_v18  ;;  %v16136_v15 = vmax.f32 %v15317_v4, 0.0  ;;  %v15319_v62 = vadd.f32 %v15318_v6, %v19450_v51  ;;  %v21980_v6 = vld [vmem:[#allocation160_spill] sm:$0xff] }
 0x4e5   : > { %v16722_v23 = vadd.f32 %v16718_v45, %v16526_v20  ;;  %v16527_v33 = vmul.f32 %v16331_v42, %v16331_v42  ;;  %v8200_v58 = vmax.f32 %v7450_v53, 0.0  ;;  %v16138_v26 = vmax.f32 %v15388_v47, 0.0  ;;  %v15460_v28 = vpop.f32.mrf.mxu0  ;;  %v15531_v37 = vpop.f32.mrf.mxu1 }
 0x4e6   : > { %v16721_v16 = vadd.f32 %v16717_v21, %v16525_v49  ;;  %v15390_v13 = vadd.f32 %v15389_v44, %v19450_v51  ;;  %v8199_v27 = vmax.f32 %v7381_v50, 0.0  ;;  %v16332_v3 = vsub.f32 %v8198_v39, %v16136_v15 }
 0x4e7   : > { %v16723_v63 = vadd.f32 %v16719_v31, %v16527_v33  ;;  %v16137_v43 = vmax.f32 %v15319_v62, 0.0  ;;  %v8201_v52 = vmax.f32 %v7452_v32, 0.0  ;;  %v16334_v48 = vsub.f32 %v8200_v58, %v16138_v26  ;;  %v21981_v58 = vld [vmem:[#allocation161_spill] sm:$0xff] }
 0x4e8   : > { %v16139_v12 = vmax.f32 %v15390_v13, 0.0  ;;  %v16528_v38 = vmul.f32 %v16332_v3, %v16332_v3  ;;  %v7521_v55 = vadd.f32 %v21974_v14, %v19450_v51  ;;  %v7592_v1 = vadd.f32 %v21975_v46, %v19450_v51 }
 0x4e9   : > { %v16333_v45 = vsub.f32 %v8199_v27, %v16137_v43  ;;  %v16530_v61 = vmul.f32 %v16334_v48, %v16334_v48  ;;  %v7523_v57 = vadd.f32 %v21976_v59, %v19450_v51  ;;  %v15459_v40 = vadd.f32 %v15458_v22, %v19450_v51  ;;  %v21982_v59 = vld [vmem:[#allocation162_spill] sm:$0xff] }
 0x4ea   : > { %v16335_v0 = vsub.f32 %v8201_v52, %v16139_v12  ;;  %v16724_v21 = vadd.f32 %v16720_v56, %v16528_v38  ;;  %v7594_v41 = vadd.f32 %v21977_v24, %v19450_v51  ;;  %v15530_v29 = vadd.f32 %v15529_v9, %v19450_v51  ;;  %v21983_v9 = vld [vmem:[#allocation163_spill] sm:$0xff] }
 0x4eb   : > { %v16529_v10 = vmul.f32 %v16333_v45, %v16333_v45  ;;  %v16726_v36 = vadd.f32 %v16722_v23, %v16530_v61  ;;  %v8202_v11 = vmax.f32 %v7521_v55, 0.0  ;;  %v16140_v7 = vmax.f32 %v15459_v40, 0.0 }
 0x4ec   : > { %v16531_v31 = vmul.f32 %v16335_v0, %v16335_v0  ;;  %v15461_v8 = vadd.f32 %v15460_v28, %v19450_v51  ;;  %v8204_v19 = vmax.f32 %v7592_v1, 0.0  ;;  %v16142_v18 = vmax.f32 %v15530_v29, 0.0  ;;  %v21984_v28 = vld [vmem:[#allocation164_spill] sm:$0xff] }
 0x4ed   : > { %v16725_v60 = vadd.f32 %v16721_v16, %v16529_v10  ;;  %v15532_v20 = vadd.f32 %v15531_v37, %v19450_v51  ;;  %v8203_v42 = vmax.f32 %v7523_v57, 0.0  ;;  %v16336_v30 = vsub.f32 %v8202_v11, %v16140_v7  ;;  %v15600_v47 = vpop.f32.mrf.mxu0  ;;  %v15671_v44 = vpop.f32.mrf.mxu1 }
 0x4ee   : > { %v16727_v25 = vadd.f32 %v16723_v63, %v16531_v31  ;;  %v16141_v17 = vmax.f32 %v15461_v8, 0.0  ;;  %v8205_v56 = vmax.f32 %v7594_v41, 0.0  ;;  %v16338_v49 = vsub.f32 %v8204_v19, %v16142_v18  ;;  %v21985_v19 = vld [vmem:[#allocation165_spill] sm:$0xff] }
 0x4ef   : > { %v16143_v5 = vmax.f32 %v15532_v20, 0.0  ;;  %v16532_v53 = vmul.f32 %v16336_v30, %v16336_v30  ;;  %v7663_v50 = vadd.f32 %v21978_v54, %v19450_v51  ;;  %v7734_v34 = vadd.f32 %v21979_v35, %v19450_v51  ;;  %v15602_v3 = vpop.f32.mrf.mxu0  ;;  %v15673_v12 = vpop.f32.mrf.mxu1 }
 0x4f0   : > { %v16337_v23 = vsub.f32 %v8203_v42, %v16141_v17  ;;  %v16534_v33 = vmul.f32 %v16338_v49, %v16338_v49  ;;  %v7665_v39 = vadd.f32 %v21980_v6, %v19450_v51  ;;  %v15601_v62 = vadd.f32 %v15600_v47, %v19450_v51  ;;  %v21986_v6 = vld [vmem:[#allocation166_spill] sm:$0xff] }
 0x4f1   : > { %v16339_v2 = vsub.f32 %v8205_v56, %v16143_v5  ;;  %v16728_v16 = vadd.f32 %v16724_v21, %v16532_v53  ;;  %v7736_v26 = vadd.f32 %v21981_v58, %v19450_v51  ;;  %v15672_v27 = vadd.f32 %v15671_v44, %v19450_v51  ;;  %v21987_v44 = vld [vmem:[#allocation167_spill] sm:$0xff] }
 0x4f2   : > { %v16533_v4 = vmul.f32 %v16337_v23, %v16337_v23  ;;  %v16730_v32 = vadd.f32 %v16726_v36, %v16534_v33  ;;  %v8206_v43 = vmax.f32 %v7663_v50, 0.0  ;;  %v16144_v52 = vmax.f32 %v15601_v62, 0.0 }
 0x4f3   : > { %v16535_v63 = vmul.f32 %v16339_v2, %v16339_v2  ;;  %v15603_v48 = vadd.f32 %v15602_v3, %v19450_v51  ;;  %v8208_v38 = vmax.f32 %v7734_v34, 0.0  ;;  %v16146_v45 = vmax.f32 %v15672_v27, 0.0  ;;  %v21988_v3 = vld [vmem:[#allocation168_spill] sm:$0xff] }
 0x4f4   : > { %v16729_v15 = vadd.f32 %v16725_v60, %v16533_v4  ;;  %v15674_v61 = vadd.f32 %v15673_v12, %v19450_v51  ;;  %v8207_v0 = vmax.f32 %v7665_v39, 0.0  ;;  %v16340_v14 = vsub.f32 %v8206_v43, %v16144_v52 }
 0x4f5   : > { %v16731_v13 = vadd.f32 %v16727_v25, %v16535_v63  ;;  %v16145_v55 = vmax.f32 %v15603_v48, 0.0  ;;  %v8209_v21 = vmax.f32 %v7736_v26, 0.0  ;;  %v16342_v10 = vsub.f32 %v8208_v38, %v16146_v45  ;;  %v21989_v38 = vld [vmem:[#allocation169_spill] sm:$0xff] }
 0x4f6   : > { %v16147_v46 = vmax.f32 %v15674_v61, 0.0  ;;  %v16536_v1 = vmul.f32 %v16340_v14, %v16340_v14  ;;  %v7805_v57 = vadd.f32 %v21982_v59, %v19450_v51  ;;  %v7876_v24 = vadd.f32 %v21983_v9, %v19450_v51 }
 0x4f7   : > { %v16341_v36 = vsub.f32 %v8207_v0, %v16145_v55  ;;  %v16538_v31 = vmul.f32 %v16342_v10, %v16342_v10  ;;  %v15742_v29 = vpop.f32.mrf.mxu0  ;;  %v7807_v11 = vadd.f32 %v21984_v28, %v19450_v51  ;;  %v15813_v37 = vpop.f32.mrf.mxu1  ;;  %v7878_v18 = vadd.f32 %v21985_v19, %v19450_v51 }
 0x4f8   : > { %v16343_v22 = vsub.f32 %v8209_v21, %v16147_v46  ;;  %v16732_v60 = vadd.f32 %v16728_v16, %v16536_v1  ;;  %v15743_v8 = vadd.f32 %v15742_v29, %v19450_v51  ;;  %v15814_v42 = vadd.f32 %v15813_v37, %v19450_v51 }
 0x4f9   : > { %v16537_v40 = vmul.f32 %v16341_v36, %v16341_v36  ;;  %v16734_v41 = vadd.f32 %v16730_v32, %v16538_v31  ;;  %v15744_v30 = vpop.f32.mrf.mxu0  ;;  %v8210_v17 = vmax.f32 %v7805_v57, 0.0  ;;  %v15815_v5 = vpop.f32.mrf.mxu1  ;;  %v8212_v53 = vmax.f32 %v7876_v24, 0.0 }
 0x4fa   : > { %v16539_v25 = vmul.f32 %v16343_v22, %v16343_v22  ;;  %v16148_v56 = vmax.f32 %v15743_v8, 0.0  ;;  %v15745_v49 = vadd.f32 %v15744_v30, %v19450_v51  ;;  %v16150_v23 = vmax.f32 %v15814_v42, 0.0 }
 0x4fb   : > { %v16733_v7 = vadd.f32 %v16729_v15, %v16537_v40  ;;  %v15816_v33 = vadd.f32 %v15815_v5, %v19450_v51  ;;  %v8211_v2 = vmax.f32 %v7807_v11, 0.0  ;;  %v8213_v16 = vmax.f32 %v7878_v18, 0.0 }
 0x4fc   : > { %v16735_v20 = vadd.f32 %v16731_v13, %v16539_v25  ;;  %v16344_v54 = vsub.f32 %v8210_v17, %v16148_v56  ;;  %v16149_v50 = vmax.f32 %v15745_v49, 0.0  ;;  %v16346_v4 = vsub.f32 %v8212_v53, %v16150_v23 }
 0x4fd   : > { %v16151_v35 = vmax.f32 %v15816_v33, 0.0  ;;  %v7947_v39 = vadd.f32 %v21986_v6, %v19450_v51  ;;  %v8018_v58 = vadd.f32 %v21987_v44, %v19450_v51  ;;  %v7949_v43 = vadd.f32 %v21988_v3, %v19450_v51 }
 0x4fe   : > { %v16540_v34 = vmul.f32 %v16344_v54, %v16344_v54  ;;  %v16345_v32 = vsub.f32 %v8211_v2, %v16149_v50  ;;  %v16542_v63 = vmul.f32 %v16346_v4, %v16346_v4  ;;  %v8020_v45 = vadd.f32 %v21989_v38, %v19450_v51 }
 0x4ff   : > { %v16347_v47 = vsub.f32 %v8213_v16, %v16151_v35  ;;  %v8214_v55 = vmax.f32 %v7947_v39, 0.0  ;;  %v8216_v1 = vmax.f32 %v8018_v58, 0.0  ;;  %v8215_v22 = vmax.f32 %v7949_v43, 0.0 }
 0x500   : > { %v16736_v15 = vadd.f32 %v16732_v60, %v16540_v34  ;;  %v16541_v62 = vmul.f32 %v16345_v32, %v16345_v32  ;;  %v16738_v26 = vadd.f32 %v16734_v41, %v16542_v63  ;;  %v8217_v60 = vmax.f32 %v8020_v45, 0.0 }
 0x501   : > { %v16543_v13 = vmul.f32 %v16347_v47, %v16347_v47  ;;  %v15884_v27 = vpop.f32.mrf.mxu0  ;;  %v15955_v12 = vpop.f32.mrf.mxu1 }
 0x502   : > { %v16737_v52 = vadd.f32 %v16733_v7, %v16541_v62  ;;  %v15885_v48 = vadd.f32 %v15884_v27, %v19450_v51  ;;  %v15956_v0 = vadd.f32 %v15955_v12, %v19450_v51 }
 0x503   : > { %v16739_v61 = vadd.f32 %v16735_v20, %v16543_v13  ;;  %v15886_v14 = vpop.f32.mrf.mxu0  ;;  %v15957_v46 = vpop.f32.mrf.mxu1 }
 0x504   : > { %v16152_v21 = vmax.f32 %v15885_v48, 0.0  ;;  %v15887_v10 = vadd.f32 %v15886_v14, %v19450_v51  ;;  %v16154_v36 = vmax.f32 %v15956_v0, 0.0  ;;  %v15958_v31 = vadd.f32 %v15957_v46, %v19450_v51 }
 0x506   : > { %v16348_v59 = vsub.f32 %v8214_v55, %v16152_v21  ;;  %v16153_v57 = vmax.f32 %v15887_v10, 0.0  ;;  %v16350_v40 = vsub.f32 %v8216_v1, %v16154_v36  ;;  %v16155_v9 = vmax.f32 %v15958_v31, 0.0 }
 0x508   : > { %v16544_v24 = vmul.f32 %v16348_v59, %v16348_v59  ;;  %v16349_v41 = vsub.f32 %v8215_v22, %v16153_v57  ;;  %v16546_v25 = vmul.f32 %v16350_v40, %v16350_v40  ;;  %v16351_v29 = vsub.f32 %v8217_v60, %v16155_v9 }
 0x50a   : > { %v16740_v28 = vadd.f32 %v16736_v15, %v16544_v24  ;;  %v16545_v11 = vmul.f32 %v16349_v41, %v16349_v41  ;;  %v16742_v7 = vadd.f32 %v16738_v26, %v16546_v25  ;;  %v16547_v8 = vmul.f32 %v16351_v29, %v16351_v29 }
 0x50c   : > { %v16741_v37 = vadd.f32 %v16737_v52, %v16545_v11  ;;  %v16743_v19 = vadd.f32 %v16739_v61, %v16547_v8 }
 0x50e   : > { %v16744_v18 = vadd.f32 %v16741_v37, %v16740_v28  ;;  %v16745_v51 = vadd.f32 %v16743_v19, %v16742_v7 }
 0x510   : > { %v16746_v20 = vadd.f32 %v16745_v51, %v16744_v18 }
 0x512   : > { %v16747_v42 = vrot.slane %v16746_v20, 4 }
 0x514   : > { %v16748_v30 = vadd.f32 %v16747_v42, %v16746_v20 }
 0x516   : > { %v16749_v17 = vrot.slane %v16748_v30, 2 }
 0x518   : > { %v16750_v56 = vadd.f32 %v16749_v17, %v16748_v30 }
 0x51a   : > { %v16751_v49 = vrot.slane %v16750_v56, 1 }
 0x51c   : > { %v16752_v5 = vadd.f32 %v16751_v49, %v16750_v56 }
 0x51e   : > { %v16753_v53 = vmul.f32 0.0006377551, %v16752_v5 }
 0x520   : > { %16754 = vst [vmem:[%s266_s11] sm:$0x1] %v16753_v53 }
 0x521   : > { %17249 = shalt.err (!%p17246_p1)
}
 0x522   : > { %s17250_s20 = scalar_lea.hbm %s16766_s14, 16  ;;  %s17254_s30 = scalar_lea.hbm %s21426_s4, 32 }
 0x523   : > { %p17251_p6 = scmp.ne.s32.totalorder %s16766_s14, %s17250_s20  ;;  %p17255_p5 = scmp.lt.s32.totalorder %s16766_s14, %s21426_s4 }
 0x524   : > { %p17256_p13 = scmp.lt.s32.totalorder %s17254_s30, %s17250_s20 }
 0x525   : > { %p17252_p12 = pnand %p17251_p6, %p21990_p9 }
 0x526   : > { %p17257_p3 = por %p17256_p13, %p17255_p5 }
 0x527   : > { %p17253_p8 = pneg %p17252_p12 }
 0x529   : > { %p17258_p7 = pnand %p17257_p3, %p17253_p8 }
 0x52b   : > { %17261 = shalt.err (!%p17258_p7)
}
 0x52c   : > { %17086 = dma.vmem_to_hbm [thread:$0]  (%p21990_p9), %s16769_s22, 16, %s16766_s14, %s16756_s9  }
 0x52d PF: > { %s16780_s8 = sand.u32 1, %s17296_s15   ;;  %p21991_p10 = scmp.ne.s32.totalorder %s21479_s28, 0 }
 0x52e   : > { %p21992_p2 = scmp.ge.s32.totalorder %s17308_s18, 2  ;;  %s16781_s26 = scalar_lea.sflag [#allocation4], %s16780_s8 }
 0x530   : > { %p17100_p0 = pnand %p21992_p2, %p21991_p10 }
 0x532   : > { %p17101_p4 = pneg %p17100_p0 }
 0x534   : > { %17291 = dma.done.wait (%p17101_p4), %s16781_s26, 16  }
 0x535   : > { %17293 = vsyncadd (%p17101_p4), %s16781_s26, 4294967280  ;;  %p20_p11 = scmp.ge.s32.totalorder %s17369_s21, 4   ;;  %s21993_s15 = smov %s17300_s16 }
 0x536   : > { %s21994_s16 = smov %s17304_s17  ;;  %s21995_s17 = smov %s17381_s24 }
 0x537   : > { %s21996_s18 = smov %s17369_s21  ;;  %22 = sbr.rel (!%p20_p11) target bundleno = 10 (0xa), region = 98 }
 0x53c   :  { %16785 = vsyncpa [#allocation3], 1 }
 0x53d   :  { %16787 = vsyncpa [#allocation3 + $0x1], 1 }
 0x53e   :  { %16788 = vsyncpa [#allocation6], 1 }
 0x53f   :  { %16790 = vsyncpa [#allocation6 + $0x1], 1 }
 0x540   :  { %16791 = vsyncpa [#allocation4], 1 }
 0x541   :  { %16793 = vsyncpa [#allocation4 + $0x1], 1 }

</bundles_post_ra>
